<compile_context>
chip_gen: v7x
topology: tpu7x:2x2x1
jax: 0.10.0
libtpu: 0.0.40
codegen_flags: <defaults>
</compile_context>

<pallas_src>
import functools
import math

import numpy as np
import jax
import jax.numpy as jnp
from jax.experimental import pallas as pl
from jax.experimental.pallas import tpu as pltpu


# ---------------------------------------------------------------------------
# Legendre multiwavelet filters (numpy; mirrors FEDformer's get_filter for
# base='legendre', where PHI0 = PHI1 = I).  Pure numpy (no scipy/sympy).
# ---------------------------------------------------------------------------
def _shifted_legendre_coeffs(n, a, b):
    """Ascending power-series coefficients of P_n(a*x + b)."""
    e = np.zeros(n + 1)
    e[-1] = 1.0
    p = np.polynomial.legendre.Legendre(e).convert(kind=np.polynomial.Polynomial)
    comp = p(np.polynomial.Polynomial([b, a]))
    coefs = getattr(comp, "coef", comp)
    return np.atleast_1d(np.asarray(coefs, dtype=np.float64))


def _get_phi_psi_legendre(k):
    phi_coeff = np.zeros((k, k))
    phi_2x_coeff = np.zeros((k, k))
    for ki in range(k):
        c = _shifted_legendre_coeffs(ki, 2.0, -1.0)
        phi_coeff[ki, :len(c)] = np.sqrt(2 * ki + 1) * c
        c = _shifted_legendre_coeffs(ki, 4.0, -1.0)
        phi_2x_coeff[ki, :len(c)] = np.sqrt(2.0) * np.sqrt(2 * ki + 1) * c

    def int_lower(prod):   # integral of the polynomial over [0, 0.5]
        n = np.arange(len(prod))
        return (prod / (n + 1) * 0.5 ** (n + 1)).sum()

    def int_upper(prod):   # integral of the polynomial over [0.5, 1]
        n = np.arange(len(prod))
        return (prod / (n + 1) * (1.0 - 0.5 ** (n + 1))).sum()

    psi1 = np.zeros((k, k))
    psi2 = np.zeros((k, k))
    for ki in range(k):
        psi1[ki, :] = phi_2x_coeff[ki, :]
        for i in range(k):
            prod_ = np.convolve(phi_2x_coeff[ki, :ki + 1], phi_coeff[i, :i + 1])
            prod_[np.abs(prod_) < 1e-8] = 0.0
            proj = int_lower(prod_)
            psi1[ki, :] -= proj * phi_coeff[i, :]
            psi2[ki, :] -= proj * phi_coeff[i, :]
        for j in range(ki):
            prod_ = np.convolve(phi_2x_coeff[ki, :ki + 1], psi1[j, :])
            prod_[np.abs(prod_) < 1e-8] = 0.0
            proj = int_lower(prod_)
            psi1[ki, :] -= proj * psi1[j, :]
            psi2[ki, :] -= proj * psi2[j, :]
        prod_ = np.convolve(psi1[ki, :], psi1[ki, :])
        prod_[np.abs(prod_) < 1e-8] = 0.0
        norm1 = int_lower(prod_)
        prod_ = np.convolve(psi2[ki, :], psi2[ki, :])
        prod_[np.abs(prod_) < 1e-8] = 0.0
        norm2 = int_upper(prod_)
        norm_ = np.sqrt(norm1 + norm2)
        psi1[ki, :] /= norm_
        psi2[ki, :] /= norm_
        psi1[np.abs(psi1) < 1e-8] = 0.0
        psi2[np.abs(psi2) < 1e-8] = 0.0
    return phi_coeff, psi1, psi2


def get_filter_legendre(k):
    phi_c, psi1_c, psi2_c = _get_phi_psi_legendre(k)
    t, wq = np.polynomial.legendre.leggauss(k)
    x_m = (t + 1.0) / 2.0            # roots of P_k(2x-1) on [0, 1]
    wm = wq / 2.0                    # Gauss-Legendre weights on [0, 1]
    polyval = np.polynomial.polynomial.polyval

    def phi(i, x):
        return polyval(x, phi_c[i])

    def psi(i, x):
        mask = (x <= 0.5).astype(np.float64)
        return polyval(x, psi1_c[i]) * mask + polyval(x, psi2_c[i]) * (1.0 - mask)

    H0 = np.zeros((k, k)); H1 = np.zeros((k, k))
    G0 = np.zeros((k, k)); G1 = np.zeros((k, k))
    for ki in range(k):
        for kpi in range(k):
            H0[ki, kpi] = 1 / np.sqrt(2) * (wm * phi(ki, x_m / 2) * phi(kpi, x_m)).sum()
            G0[ki, kpi] = 1 / np.sqrt(2) * (wm * psi(ki, x_m / 2) * phi(kpi, x_m)).sum()
            H1[ki, kpi] = 1 / np.sqrt(2) * (wm * phi(ki, (x_m + 1) / 2) * phi(kpi, x_m)).sum()
            G1[ki, kpi] = 1 / np.sqrt(2) * (wm * psi(ki, (x_m + 1) / 2) * phi(kpi, x_m)).sum()
    for M in (H0, H1, G0, G1):
        M[np.abs(M) < 1e-8] = 0.0
    return H0, H1, G0, G1, np.eye(k), np.eye(k)


# ---------------------------------------------------------------------------
# Small helpers
# ---------------------------------------------------------------------------
def _round_up(x, m):
    return (x + m - 1) // m * m


@functools.lru_cache(maxsize=None)
def _dft_mats(m, l):
    """Real-DFT matrices reproducing np.fft.rfft / np.fft.irfft (pocketfft
    halfcomplex: the imaginary parts of the DC and Nyquist bins are dropped)."""
    t = np.arange(m)
    f = np.arange(l)
    ang = 2.0 * np.pi * np.outer(f, t) / m            # (l, m)
    fcos = np.cos(ang)
    fsin = -np.sin(ang)
    cvec = np.full(l, 2.0); cvec[0] = 1.0
    svec = np.full(l, 2.0); svec[0] = 0.0
    if m % 2 == 0 and l == m // 2 + 1:                 # Nyquist bin retained
        cvec[-1] = 1.0
        svec[-1] = 0.0
    angi = 2.0 * np.pi * np.outer(t, f) / m            # (m, l)
    icos = np.cos(angi) * cvec / m
    isin = -np.sin(angi) * svec / m
    return (fcos.astype(np.float32), fsin.astype(np.float32),
            icos.astype(np.float32), isin.astype(np.float32))


# ---------------------------------------------------------------------------
# Pallas kernel: generic tiled linear (used for Lk0 / Lk1)
# ---------------------------------------------------------------------------
def _linear_kernel(x_ref, w_ref, b_ref, o_ref, *, compute_dtype):
    x = x_ref[...].astype(compute_dtype)
    w = w_ref[...].astype(compute_dtype)
    acc = jnp.dot(x, w, preferred_element_type=jnp.float32)
    o_ref[...] = acc + b_ref[...]


def pallas_linear(x, w, b, *, compute_dtype=jnp.float32, tile_m=128):
    """y = x @ w + b.  x: (M, K), w: (K, N), b: (N,).

    K, N are lane-dense (multiples of 128 here).  Weights/bias use a constant
    block index so they are DMA'd once; no explicit M padding (Pallas masks
    the partial last row block); >=2 row tiles when M allows it so a v7x
    megacore can split the grid.
    """
    M, K = x.shape
    N = w.shape[1]
    if compute_dtype != jnp.float32:
        x = x.astype(compute_dtype)
        w = w.astype(compute_dtype)
    TM = min(tile_m, _round_up(max(M // 2, 1), 8))
    TM = min(TM, _round_up(M, 8))
    grid_m = pl.cdiv(M, TM)
    out = pl.pallas_call(
        functools.partial(_linear_kernel, compute_dtype=compute_dtype),
        out_shape=jax.ShapeDtypeStruct((M, N), jnp.float32),
        grid_spec=pltpu.PrefetchScalarGridSpec(
            num_scalar_prefetch=0,
            grid=(grid_m,),
            in_specs=[
                pl.BlockSpec((TM, K), lambda i: (i, 0)),
                pl.BlockSpec((K, N), lambda i: (0, 0)),    # resident weights
                pl.BlockSpec((1, N), lambda i: (0, 0)),    # resident bias
            ],
            out_specs=pl.BlockSpec((TM, N), lambda i: (i, 0)),
        ),
        compiler_params=pltpu.CompilerParams(
            dimension_semantics=("parallel",)),
    )(x, w, b.astype(jnp.float32).reshape(1, N))
    return out


# ---------------------------------------------------------------------------
# Pallas kernel: one fused wavelet level
#   analysis matmul -> real DFT -> packed complex freq mix (A,B,C) -> iDFT
# ---------------------------------------------------------------------------
def _level_kernel(xa_ref, wana_ref, fcos_ref, fsin_ref, icos_ref, isin_ref,
                  wud_ref, wus_ref, s_ref, ud_ref, us_ref,
                  *, ck, nmodes, compute_dtype):
    m = xa_ref.shape[1]
    xa = xa_ref[0]                                           # (m, 2ck) f32
    # wavelet analysis: block-diagonal (2ck, 2ck) matmul -> [d | s]
    ds = jnp.dot(xa, wana_ref[...], preferred_element_type=jnp.float32)
    d = ds[:, :ck]
    s = ds[:, ck:]
    s_ref[0] = s

    # forward real DFT over the (tiny, <= 8) time axis as small matmuls
    if m == 1:   # rfft of length 1 is the identity (zero imaginary part)
        zeros = jnp.zeros_like(d)
        dr, di, sr, si = d, zeros, s, zeros
    else:
        fcos = fcos_ref[...]                                 # (l, m)
        fsin = fsin_ref[...]
        dr = jnp.dot(fcos, d, preferred_element_type=jnp.float32)
        di = jnp.dot(fsin, d, preferred_element_type=jnp.float32)
        sr = jnp.dot(fcos, s, preferred_element_type=jnp.float32)
        si = jnp.dot(fsin, s, preferred_element_type=jnp.float32)

    # packed complex frequency mixing:
    #   Ud_ft = d_ft @ W_A + s_ft @ W_B  -> one (1,4ck)x(4ck,2ck) matmul / mode
    #   Us_ft = d_ft @ W_C               -> one (1,2ck)x(2ck,2ck) matmul / mode
    L = jnp.concatenate([dr, di, sr, si], axis=-1).astype(compute_dtype)
    ud_rows, us_rows = [], []
    for f in range(nmodes):                                  # nmodes <= alpha (tiny)
        lf = L[f:f + 1, :]                                   # (1, 4ck)
        ud_rows.append(jnp.dot(lf, wud_ref[f],
                               preferred_element_type=jnp.float32))
        us_rows.append(jnp.dot(lf[:, :2 * ck], wus_ref[f],
                               preferred_element_type=jnp.float32))
    ud_pk = ud_rows[0] if nmodes == 1 else jnp.concatenate(ud_rows, axis=0)
    us_pk = us_rows[0] if nmodes == 1 else jnp.concatenate(us_rows, axis=0)

    # inverse real DFT (irfft: imaginary parts of DC / Nyquist bins dropped)
    if m == 1:
        ud = ud_pk[:, :ck]
        us = us_pk[:, :ck]
    else:
        icos = icos_ref[...]                                 # (m, l)
        isin = isin_ref[...]
        ud = (jnp.dot(icos, ud_pk[:, :ck], preferred_element_type=jnp.float32)
              + jnp.dot(isin, ud_pk[:, ck:], preferred_element_type=jnp.float32))
        us = (jnp.dot(icos, us_pk[:, :ck], preferred_element_type=jnp.float32)
              + jnp.dot(isin, us_pk[:, ck:], preferred_element_type=jnp.float32))
    ud_ref[0] = ud
    us_ref[0] = us


def wavelet_level(xa, w_ana, w_ud, w_us, alpha):
    """One MWT_CZ level, fully fused.

    xa:    (B, m, 2CK) f32   (even/odd pairs are lane-concatenated by a free reshape)
    w_ana: (2CK, 2CK)  f32   block-diagonal analysis filters
    w_ud:  (modes, 4CK, 2CK) bf16 packed [A | B] complex weights
    w_us:  (modes, 2CK, 2CK) bf16 packed C complex weights
    Returns (s, Ud, Us), each (B, m, CK) f32.
    """
    B, m, ck2 = xa.shape
    ck = ck2 // 2
    l = min(alpha, m // 2 + 1)
    fcos_np, fsin_np, icos_np, isin_np = _dft_mats(m, l)
    fcos = jnp.asarray(fcos_np)
    fsin = jnp.asarray(fsin_np)
    icos = jnp.asarray(icos_np)
    isin = jnp.asarray(isin_np)

    kern = functools.partial(_level_kernel, ck=ck, nmodes=l,
                             compute_dtype=jnp.bfloat16)
    # NOTE: weight BlockSpecs take only the first l mode planes (no zero-padded
    # modes) and use constant block indices (DMA'd to VMEM once per call).
    # At production sizes (c*k=512, alpha>=32) set vmem_limit_bytes and shrink
    # the per-call mode slice for the 64 MiB v7x VMEM.
    return pl.pallas_call(
        kern,
        out_shape=tuple(jax.ShapeDtypeStruct((B, m, ck), jnp.float32)
                        for _ in range(3)),
        grid_spec=pltpu.PrefetchScalarGridSpec(
            num_scalar_prefetch=0,
            grid=(B,),
            in_specs=[
                pl.BlockSpec((1, m, 2 * ck), lambda b: (b, 0, 0)),
                pl.BlockSpec((2 * ck, 2 * ck), lambda b: (0, 0)),
                pl.BlockSpec((l, m), lambda b: (0, 0)),
                pl.BlockSpec((l, m), lambda b: (0, 0)),
                pl.BlockSpec((m, l), lambda b: (0, 0)),
                pl.BlockSpec((m, l), lambda b: (0, 0)),
                pl.BlockSpec((l, 4 * ck, 2 * ck), lambda b: (0, 0, 0)),
                pl.BlockSpec((l, 2 * ck, 2 * ck), lambda b: (0, 0, 0)),
            ],
            out_specs=[pl.BlockSpec((1, m, ck), lambda b: (b, 0, 0))] * 3,
        ),
        compiler_params=pltpu.CompilerParams(
            dimension_semantics=("parallel",)),
    )(xa, w_ana, fcos, fsin, icos, isin, w_ud, w_us)


# ---------------------------------------------------------------------------
# MultiWaveletTransform forward (JAX wrapper around the Pallas kernels)
# ---------------------------------------------------------------------------
def _mwt_cz_forward(x, p, cfg):
    """MWT_CZ1d.forward on the flattened lane-dense (B, N, c*k) layout."""
    B, N, CK = x.shape
    ns = int(math.floor(math.log2(N)))
    nl = 2 ** int(math.ceil(math.log2(N)))
    if nl > N:
        x = jnp.concatenate([x, x[:, :nl - N]], axis=1)

    Ud, Us = [], []
    for _ in range(ns - cfg['L0']):
        n = x.shape[1]
        m = n // 2
        # even/odd pairing is a free reshape of the contiguous (B, n, CK) slab
        xa = x.reshape(B, m, 2 * CK)
        s, ud, us = wavelet_level(xa, p['W_ana'], p['W_ud'], p['W_us'],
                                  cfg['alpha'])
        Ud.append(ud)
        Us.append(us)
        x = s

    # T0 + synthesis: tiny (<= B*N rows) block-diagonal matmuls; XLA fuses them
    # with the neighboring adds/reshapes (a Pallas launch each is pure overhead).
    x = jnp.einsum('bnc,co->bno', x, p['W_t0']) + p['b_t0']
    for i in range(ns - 1 - cfg['L0'], -1, -1):
        x = x + Us[i]
        xc = jnp.concatenate([x, Ud[i]], axis=-1)            # (B, n_i, 2CK)
        eo = jnp.einsum('bnc,co->bno', xc, p['W_syn'])        # [x_e | x_o]
        n_i = eo.shape[1]
        x = eo.reshape(B, 2 * n_i, CK)                        # free interleave
    return x[:, :N]


def multiwavelet_transform_forward(params, cfg, queries, keys, values, attn_mask=None):
    del attn_mask
    B, L, H, E = queries.shape
    _, S, _, D = values.shape
    if L > S:
        zeros = jnp.zeros((B, L - S, H, D), values.dtype)
        values = jnp.concatenate([values, zeros], axis=1)
        keys = jnp.concatenate([keys, zeros], axis=1)   # mirrors module; unused after
    else:
        values = values[:, :L]
        keys = keys[:, :L]
    CK = cfg['c'] * cfg['k']
    V = values.reshape(B, L, H * D)
    V = pallas_linear(V.reshape(B * L, H * D), params['w0'], params['b0'],
                      compute_dtype=jnp.bfloat16)                   # Lk0
    V = V.reshape(B, L, CK)
    for icz in range(cfg['nCZ']):
        V = _mwt_cz_forward(V, params['cz'][icz], cfg)
        if icz < cfg['nCZ'] - 1:
            V = jax.nn.relu(V)
    V = pallas_linear(V.reshape(B * L, CK), params['w1'], params['b1'],
                      compute_dtype=jnp.bfloat16)                   # Lk1
    return V.reshape(B, L, -1, D), None


# ---------------------------------------------------------------------------
# Parameters (mirrors the PyTorch module's parameter/buffer structure)
# ---------------------------------------------------------------------------
def _pack_complex_rows(wr, wi):
    """(modes, n_in, n_out) real/imag -> real form (modes, 2*n_in, 2*n_out):
    rows consume [x_r | x_i], columns produce [y_r | y_i]."""
    top = np.concatenate([wr, wi], axis=2)
    bot = np.concatenate([-wi, wr], axis=2)
    return np.concatenate([top, bot], axis=1)


def build_params(key, cfg):
    k, c, alpha, ich, nCZ = cfg['k'], cfg['c'], cfg['alpha'], cfg['ich'], cfg['nCZ']
    ck = c * k
    keys = jax.random.split(key, 4 + nCZ)

    def _np(a):
        return np.asarray(a, dtype=np.float64)

    def uniform(kk_, shape, lim):
        return _np(jax.random.uniform(kk_, shape, jnp.float32, -lim, lim))

    p = {
        'w0': uniform(keys[0], (ich, ck), 1.0 / math.sqrt(ich)),
        'b0': uniform(keys[1], (ck,), 1.0 / math.sqrt(ich)),
        'w1': uniform(keys[2], (ck, ich), 1.0 / math.sqrt(ck)),
        'b1': uniform(keys[3], (ich,), 1.0 / math.sqrt(ck)),
        'cz': [],
    }

    H0, H1, G0, G1, PHI0, PHI1 = get_filter_legendre(k)
    H0r, G0r, H1r, G1r = H0 @ PHI0, G0 @ PHI0, H1 @ PHI1, G1 @ PHI1
    for M in (H0r, G0r, H1r, G1r):
        M[np.abs(M) < 1e-8] = 0.0
    ec_s = np.concatenate([H0.T, H1.T], axis=0)     # (2k, k)
    ec_d = np.concatenate([G0.T, G1.T], axis=0)
    rc_e = np.concatenate([H0r, G0r], axis=0)
    rc_o = np.concatenate([H1r, G1r], axis=0)

    eye_c = np.eye(c)
    bd = lambda M: np.kron(eye_c, M)                # block-diagonal over c

    for i in range(nCZ):
        sub = jax.random.split(keys[4 + i], 8)
        scale = 1.0 / (ck * ck)
        u01 = lambda kk_, shape: _np(jax.random.uniform(kk_, shape, jnp.float32))
        t0_w = uniform(sub[6], (k, k), 1.0 / math.sqrt(k))
        t0_b = uniform(sub[7], (k,), 1.0 / math.sqrt(k))
        wa_r = scale * u01(sub[0], (alpha, ck, ck))
        wa_i = scale * u01(sub[1], (alpha, ck, ck))
        wb_r = scale * u01(sub[2], (alpha, ck, ck))
        wb_i = scale * u01(sub[3], (alpha, ck, ck))
        wc_r = scale * u01(sub[4], (alpha, ck, ck))
        wc_i = scale * u01(sub[5], (alpha, ck, ck))
        czp = {
            'ec_s': ec_s, 'ec_d': ec_d, 'rc_e': rc_e, 'rc_o': rc_o,
            't0_w': t0_w, 't0_b': t0_b,
            # sparseKernelFT1d weights, mode-major (modes, ck_in, ck_out)
            'wa_r': wa_r, 'wa_i': wa_i,
            'wb_r': wb_r, 'wb_i': wb_i,
            'wc_r': wc_r, 'wc_i': wc_i,
            # lane-dense block-diagonal forms used by the Pallas path
            'W_ana': np.block([[bd(ec_d[:k]), bd(ec_s[:k])],
                               [bd(ec_d[k:]), bd(ec_s[k:])]]),
            'W_syn': np.block([[bd(rc_e[:k]), bd(rc_o[:k])],
                               [bd(rc_e[k:]), bd(rc_o[k:])]]),
            'W_t0': bd(t0_w),
            'b_t0': np.tile(t0_b, c),
            # packed real-form freq weights (hoisted out of the level loop):
            # rows [d_r|d_i|s_r|s_i] -> cols [Ud_r|Ud_i]  /  rows [d_r|d_i] -> [Us_r|Us_i]
            'W_ud': np.concatenate([_pack_complex_rows(wa_r, wa_i),
                                    _pack_complex_rows(wb_r, wb_i)], axis=1),
            'W_us': _pack_complex_rows(wc_r, wc_i),
        }
        p['cz'].append(czp)
    return p


def params_to_device(np_params):
    """Device params tree: packed freq weights stored bf16 once; rest f32."""
    f32 = lambda a: jnp.asarray(a, jnp.float32)
    dev = {key: f32(np_params[key]) for key in ('w0', 'b0', 'w1', 'b1')}
    dev['cz'] = []
    for czp in np_params['cz']:
        dev['cz'].append({
            'W_ana': f32(czp['W_ana']),
            'W_syn': f32(czp['W_syn']),
            'W_t0': f32(czp['W_t0']),
            'b_t0': f32(czp['b_t0']),
            'W_ud': jnp.asarray(czp['W_ud'], jnp.bfloat16),
            'W_us': jnp.asarray(czp['W_us'], jnp.bfloat16),
        })
    return dev


# ---------------------------------------------------------------------------
# Pure numpy float64 reference (literal mirror of the PyTorch forward)
# ---------------------------------------------------------------------------
def _ref_sparse_ft(x, w_r, w_i, alpha):
    B, n, c, k = x.shape
    ck = c * k
    xf = x.reshape(B, n, ck).transpose(0, 2, 1)                 # (B, ck, n)
    x_fft = np.fft.rfft(xf, axis=-1)
    l = min(alpha, n // 2 + 1)
    w = (w_r + 1j * w_i)[:l]                                    # (l, ck, ck)
    out_ft = np.zeros((B, ck, n // 2 + 1), dtype=np.complex128)
    out_ft[:, :, :l] = np.einsum('bim,mio->bom', x_fft[:, :, :l], w)
    out = np.fft.irfft(out_ft, n=n, axis=-1)
    return out.transpose(0, 2, 1).reshape(B, n, c, k)


def _ref_mwt_cz(x, p, cfg):
    B, N, c, k = x.shape
    ns = int(math.floor(math.log2(N)))
    nl = 2 ** int(math.ceil(math.log2(N)))
    x = np.concatenate([x, x[:, :nl - N]], axis=1)
    Ud, Us = [], []
    for _ in range(ns - cfg['L0']):
        xa = np.concatenate([x[:, ::2], x[:, 1::2]], axis=-1)
        d = xa @ p['ec_d']
        s = xa @ p['ec_s']
        Ud.append(_ref_sparse_ft(d, p['wa_r'], p['wa_i'], cfg['alpha'])
                  + _ref_sparse_ft(s, p['wb_r'], p['wb_i'], cfg['alpha']))
        Us.append(_ref_sparse_ft(d, p['wc_r'], p['wc_i'], cfg['alpha']))
        x = s
    x = x @ p['t0_w'] + p['t0_b']
    for i in range(ns - 1 - cfg['L0'], -1, -1):
        x = x + Us[i]
        xc = np.concatenate([x, Ud[i]], axis=-1)
        x_e = xc @ p['rc_e']
        x_o = xc @ p['rc_o']
        n_i = x_e.shape[1]
        xn = np.zeros((B, 2 * n_i, c, k))
        xn[:, ::2] = x_e
        xn[:, 1::2] = x_o
        x = xn
    return x[:, :N]


def reference_forward(queries, keys, values, p, cfg):
    del keys
    B, L, H, E = queries.shape
    _, S, _, D = values.shape
    if L > S:
        values = np.concatenate([values, np.zeros((B, L - S, H, D))], axis=1)
    else:
        values = values[:, :L]
    c, k = cfg['c'], cfg['k']
    V = values.reshape(B, L, H * D) @ p['w0'] + p['b0']
    V = V.reshape(B, L, c, k)
    for icz in range(cfg['nCZ']):
        V = _ref_mwt_cz(V, p['cz'][icz], cfg)
        if icz < cfg['nCZ'] - 1:
            V = np.maximum(V, 0.0)
    V = V.reshape(B, L, c * k) @ p['w1'] + p['b1']
    return V.reshape(B, L, -1, D)


# ---------------------------------------------------------------------------
if __name__ == "__main__":
    # Small config: ich = H*E = 128, c*k = 128 so every lane dim is 128/256/512.
    cfg = dict(ich=128, k=8, c=16, alpha=16, nCZ=1, L0=0)
    B, L, S, H = 2, 16, 16, 8
    E = cfg['ich'] // H        # 16
    D = E

    root = jax.random.PRNGKey(0)
    kp, kq, kk, kv = jax.random.split(root, 4)
    np_params = build_params(kp, cfg)
    params = params_to_device(np_params)

    queries = jax.random.normal(kq, (B, L, H, E), dtype=jnp.float32)
    keys = jax.random.normal(kk, (B, S, H, E), dtype=jnp.float32)
    values = jax.random.normal(kv, (B, S, H, D), dtype=jnp.float32)

    fwd = jax.jit(lambda p, q, k_, v: multiwavelet_transform_forward(p, cfg, q, k_, v))
    out, _ = fwd(params, queries, keys, values)
    out = jax.block_until_ready(out)

    ref = reference_forward(np.asarray(queries, np.float64),
                            np.asarray(keys, np.float64),
                            np.asarray(values, np.float64),
                            np_params, cfg)
    rel_err = np.max(np.abs(np.asarray(out, np.float64) - ref)) / max(np.max(np.abs(ref)), 1e-12)
    # bf16 matmul inputs (Lk0/Lk1 + packed frequency mixing) with f32 accumulation.
    assert rel_err < 5e-2, f"mismatch vs reference: rel_err={rel_err}"
    print("KERNEL_OK")
</pallas_src>

<mosaic_0001>
module attributes {stable_mosaic.version = 11 : i64} {
  func.func @_linear_kernel(%arg0: i32, %arg1: memref<16x128xbf16, #tpu.memory_space<vmem>>, %arg2: memref<128x128xbf16, #tpu.memory_space<vmem>>, %arg3: memref<1x128xf32, #tpu.memory_space<vmem>>, %arg4: memref<16x128xf32, #tpu.memory_space<vmem>>) attributes {dimension_semantics = [#tpu.dimension_semantics<parallel>], iteration_bounds = array<i64: 2>, scalar_prefetch = 0 : i64, scratch_operands = 0 : i64, tpu.core_type = #tpu.core_type<tc>, window_params = [{transform_indices = @transform_0, window_bounds = array<i64: 16, 128>}, {pipeline_mode = #tpu.pipeline_mode<synchronous>, transform_indices = @transform_1, window_bounds = array<i64: 128, 128>}, {pipeline_mode = #tpu.pipeline_mode<synchronous>, transform_indices = @transform_2, window_bounds = array<i64: 1, 128>}, {transform_indices = @transform_3, window_bounds = array<i64: 16, 128>}]} {
    %c0 = arith.constant 0 : index
    %c0_0 = arith.constant 0 : index
    %0 = vector.load %arg1[%c0, %c0_0] : memref<16x128xbf16, #tpu.memory_space<vmem>>, vector<16x128xbf16>
    %c0_1 = arith.constant 0 : index
    %c0_2 = arith.constant 0 : index
    %1 = vector.load %arg2[%c0_1, %c0_2] : memref<128x128xbf16, #tpu.memory_space<vmem>>, vector<128x128xbf16>
    %cst = arith.constant dense<0.000000e+00> : vector<16x128xf32>
    %2 = tpu.matmul %0, %1, %cst {dimension_numbers = #tpu.dot_dimension_numbers<[1], [0], [0], [1], [0, 0, 1, 1], [], []>} : vector<16x128xbf16>, vector<128x128xbf16>, vector<16x128xf32> -> vector<16x128xf32>
    %c0_3 = arith.constant 0 : index
    %c0_4 = arith.constant 0 : index
    %3 = vector.load %arg3[%c0_3, %c0_4] : memref<1x128xf32, #tpu.memory_space<vmem>>, vector<1x128xf32>
    %4 = vector.broadcast %3 : vector<1x128xf32> to vector<16x128xf32>
    %5 = arith.addf %2, %4 : vector<16x128xf32>
    %c0_5 = arith.constant 0 : index
    %c0_6 = arith.constant 0 : index
    %6 = vector.load %arg4[%c0_5, %c0_6] : memref<16x128xf32, #tpu.memory_space<vmem>>, vector<16x128xf32>
    tpu.vector_store %arg4[%c0_5, %c0_6], %5 {strides = array<i32>} : memref<16x128xf32, #tpu.memory_space<vmem>>, vector<16x128xf32>,
    return
  }
  func.func @transform_0(%arg0: i32) -> (i32, i32) {
    %c0_i32 = arith.constant 0 : i32
    %c0_i32_0 = arith.constant 0 : i32
    return %arg0, %c0_i32 : i32, i32
  }
  func.func @transform_1(%arg0: i32) -> (i32, i32) {
    %c0_i32 = arith.constant 0 : i32
    %c0_i32_0 = arith.constant 0 : i32
    %c0_i32_1 = arith.constant 0 : i32
    return %c0_i32, %c0_i32_0 : i32, i32
  }
  func.func @transform_2(%arg0: i32) -> (i32, i32) {
    %c0_i32 = arith.constant 0 : i32
    %c0_i32_0 = arith.constant 0 : i32
    %c0_i32_1 = arith.constant 0 : i32
    return %c0_i32, %c0_i32_0 : i32, i32
  }
  func.func @transform_3(%arg0: i32) -> (i32, i32) {
    %c0_i32 = arith.constant 0 : i32
    %c0_i32_0 = arith.constant 0 : i32
    return %arg0, %c0_i32 : i32, i32
  }
}

module attributes {stable_mosaic.version = 11 : i64} {
  func.func @_level_kernel(%arg0: i32, %arg1: memref<1x8x256xf32, #tpu.memory_space<vmem>>, %arg2: memref<256x256xf32, #tpu.memory_space<vmem>>, %arg3: memref<5x8xf32, #tpu.memory_space<vmem>>, %arg4: memref<5x8xf32, #tpu.memory_space<vmem>>, %arg5: memref<8x5xf32, #tpu.memory_space<vmem>>, %arg6: memref<8x5xf32, #tpu.memory_space<vmem>>, %arg7: memref<5x512x256xbf16, #tpu.memory_space<vmem>>, %arg8: memref<5x256x256xbf16, #tpu.memory_space<vmem>>, %arg9: memref<1x8x128xf32, #tpu.memory_space<vmem>>, %arg10: memref<1x8x128xf32, #tpu.memory_space<vmem>>, %arg11: memref<1x8x128xf32, #tpu.memory_space<vmem>>) attributes {dimension_semantics = [#tpu.dimension_semantics<parallel>], iteration_bounds = array<i64: 2>, scalar_prefetch = 0 : i64, scratch_operands = 0 : i64, tpu.core_type = #tpu.core_type<tc>, window_params = [{transform_indices = @transform_0, window_bounds = array<i64: 1, 8, 256>}, {pipeline_mode = #tpu.pipeline_mode<synchronous>, transform_indices = @transform_1, window_bounds = array<i64: 256, 256>}, {pipeline_mode = #tpu.pipeline_mode<synchronous>, transform_indices = @transform_2, window_bounds = array<i64: 5, 8>}, {pipeline_mode = #tpu.pipeline_mode<synchronous>, transform_indices = @transform_3, window_bounds = array<i64: 5, 8>}, {pipeline_mode = #tpu.pipeline_mode<synchronous>, transform_indices = @transform_4, window_bounds = array<i64: 8, 5>}, {pipeline_mode = #tpu.pipeline_mode<synchronous>, transform_indices = @transform_5, window_bounds = array<i64: 8, 5>}, {transform_indices = @transform_6, window_bounds = array<i64: 5, 512, 256>}, {transform_indices = @transform_7, window_bounds = array<i64: 5, 256, 256>}, {transform_indices = @transform_8, window_bounds = array<i64: 1, 8, 128>}, {transform_indices = @transform_9, window_bounds = array<i64: 1, 8, 128>}, {transform_indices = @transform_10, window_bounds = array<i64: 1, 8, 128>}]} {
    %c0 = arith.constant 0 : index
    %c0_0 = arith.constant 0 : index
    %c0_1 = arith.constant 0 : index
    %0 = vector.load %arg1[%c0, %c0_0, %c0_1] : memref<1x8x256xf32, #tpu.memory_space<vmem>>, vector<1x8x256xf32>
    %1 = vector.shape_cast %0 : vector<1x8x256xf32> to vector<8x256xf32>
    %c0_2 = arith.constant 0 : index
    %c0_3 = arith.constant 0 : index
    %2 = vector.load %arg2[%c0_2, %c0_3] : memref<256x256xf32, #tpu.memory_space<vmem>>, vector<256x256xf32>
    %cst = arith.constant dense<0.000000e+00> : vector<8x256xf32>
    %3 = tpu.matmul %1, %2, %cst {dimension_numbers = #tpu.dot_dimension_numbers<[1], [0], [0], [1], [0, 0, 1, 1], [], []>} : vector<8x256xf32>, vector<256x256xf32>, vector<8x256xf32> -> vector<8x256xf32>
    %4 = vector.extract_strided_slice %3 {offsets = [0, 0], sizes = [8, 128], strides = [1, 1]} : vector<8x256xf32> to vector<8x128xf32>
    %5 = vector.extract_strided_slice %3 {offsets = [0, 128], sizes = [8, 128], strides = [1, 1]} : vector<8x256xf32> to vector<8x128xf32>
    %c0_4 = arith.constant 0 : index
    %c0_5 = arith.constant 0 : index
    %c0_6 = arith.constant 0 : index
    %6 = vector.load %arg9[%c0_4, %c0_5, %c0_6] : memref<1x8x128xf32, #tpu.memory_space<vmem>>, vector<1x8x128xf32>
    %7 = vector.shape_cast %6 : vector<1x8x128xf32> to vector<8x128xf32>
    %8 = vector.shape_cast %5 : vector<8x128xf32> to vector<1x8x128xf32>
    tpu.vector_store %arg9[%c0_4, %c0_5, %c0_6], %8 {strides = array<i32>} : memref<1x8x128xf32, #tpu.memory_space<vmem>>, vector<1x8x128xf32>,
    %c0_7 = arith.constant 0 : index
    %c0_8 = arith.constant 0 : index
    %9 = vector.load %arg3[%c0_7, %c0_8] : memref<5x8xf32, #tpu.memory_space<vmem>>, vector<5x8xf32>
    %c0_9 = arith.constant 0 : index
    %c0_10 = arith.constant 0 : index
    %10 = vector.load %arg4[%c0_9, %c0_10] : memref<5x8xf32, #tpu.memory_space<vmem>>, vector<5x8xf32>
    %cst_11 = arith.constant dense<0.000000e+00> : vector<5x128xf32>
    %11 = tpu.matmul %9, %4, %cst_11 {dimension_numbers = #tpu.dot_dimension_numbers<[1], [0], [0], [1], [0, 0, 1, 1], [], []>} : vector<5x8xf32>, vector<8x128xf32>, vector<5x128xf32> -> vector<5x128xf32>
    %cst_12 = arith.constant dense<0.000000e+00> : vector<5x128xf32>
    %12 = tpu.matmul %10, %4, %cst_12 {dimension_numbers = #tpu.dot_dimension_numbers<[1], [0], [0], [1], [0, 0, 1, 1], [], []>} : vector<5x8xf32>, vector<8x128xf32>, vector<5x128xf32> -> vector<5x128xf32>
    %cst_13 = arith.constant dense<0.000000e+00> : vector<5x128xf32>
    %13 = tpu.matmul %9, %5, %cst_13 {dimension_numbers = #tpu.dot_dimension_numbers<[1], [0], [0], [1], [0, 0, 1, 1], [], []>} : vector<5x8xf32>, vector<8x128xf32>, vector<5x128xf32> -> vector<5x128xf32>
    %cst_14 = arith.constant dense<0.000000e+00> : vector<5x128xf32>
    %14 = tpu.matmul %10, %5, %cst_14 {dimension_numbers = #tpu.dot_dimension_numbers<[1], [0], [0], [1], [0, 0, 1, 1], [], []>} : vector<5x8xf32>, vector<8x128xf32>, vector<5x128xf32> -> vector<5x128xf32>
    %15 = tpu.concatenate %11, %12, %13, %14 in 1 : vector<5x128xf32>, vector<5x128xf32>, vector<5x128xf32>, vector<5x128xf32> -> vector<5x512xf32>
    %16 = arith.truncf %15 : vector<5x512xf32> to vector<5x512xbf16>
    %17 = vector.extract_strided_slice %16 {offsets = [0, 0], sizes = [1, 512], strides = [1, 1]} : vector<5x512xbf16> to vector<1x512xbf16>
    %c0_15 = arith.constant 0 : index
    %c0_16 = arith.constant 0 : index
    %c0_17 = arith.constant 0 : index
    %18 = vector.load %arg7[%c0_15, %c0_16, %c0_17] : memref<5x512x256xbf16, #tpu.memory_space<vmem>>, vector<1x512x256xbf16>
    %19 = vector.shape_cast %18 : vector<1x512x256xbf16> to vector<512x256xbf16>
    %cst_18 = arith.constant dense<0.000000e+00> : vector<1x256xf32>
    %20 = tpu.matmul %17, %19, %cst_18 {dimension_numbers = #tpu.dot_dimension_numbers<[1], [0], [0], [1], [0, 0, 1, 1], [], []>} : vector<1x512xbf16>, vector<512x256xbf16>, vector<1x256xf32> -> vector<1x256xf32>
    %21 = vector.extract_strided_slice %17 {offsets = [0, 0], sizes = [1, 256], strides = [1, 1]} : vector<1x512xbf16> to vector<1x256xbf16>
    %c0_19 = arith.constant 0 : index
    %c0_20 = arith.constant 0 : index
    %c0_21 = arith.constant 0 : index
    %22 = vector.load %arg8[%c0_19, %c0_20, %c0_21] : memref<5x256x256xbf16, #tpu.memory_space<vmem>>, vector<1x256x256xbf16>
    %23 = vector.shape_cast %22 : vector<1x256x256xbf16> to vector<256x256xbf16>
    %cst_22 = arith.constant dense<0.000000e+00> : vector<1x256xf32>
    %24 = tpu.matmul %21, %23, %cst_22 {dimension_numbers = #tpu.dot_dimension_numbers<[1], [0], [0], [1], [0, 0, 1, 1], [], []>} : vector<1x256xbf16>, vector<256x256xbf16>, vector<1x256xf32> -> vector<1x256xf32>
    %25 = vector.extract_strided_slice %16 {offsets = [1, 0], sizes = [1, 512], strides = [1, 1]} : vector<5x512xbf16> to vector<1x512xbf16>
    %c1 = arith.constant 1 : index
    %c0_23 = arith.constant 0 : index
    %c0_24 = arith.constant 0 : index
    %26 = vector.load %arg7[%c1, %c0_23, %c0_24] : memref<5x512x256xbf16, #tpu.memory_space<vmem>>, vector<1x512x256xbf16>
    %27 = vector.shape_cast %26 : vector<1x512x256xbf16> to vector<512x256xbf16>
    %cst_25 = arith.constant dense<0.000000e+00> : vector<1x256xf32>
    %28 = tpu.matmul %25, %27, %cst_25 {dimension_numbers = #tpu.dot_dimension_numbers<[1], [0], [0], [1], [0, 0, 1, 1], [], []>} : vector<1x512xbf16>, vector<512x256xbf16>, vector<1x256xf32> -> vector<1x256xf32>
    %29 = vector.extract_strided_slice %25 {offsets = [0, 0], sizes = [1, 256], strides = [1, 1]} : vector<1x512xbf16> to vector<1x256xbf16>
    %c1_26 = arith.constant 1 : index
    %c0_27 = arith.constant 0 : index
    %c0_28 = arith.constant 0 : index
    %30 = vector.load %arg8[%c1_26, %c0_27, %c0_28] : memref<5x256x256xbf16, #tpu.memory_space<vmem>>, vector<1x256x256xbf16>
    %31 = vector.shape_cast %30 : vector<1x256x256xbf16> to vector<256x256xbf16>
    %cst_29 = arith.constant dense<0.000000e+00> : vector<1x256xf32>
    %32 = tpu.matmul %29, %31, %cst_29 {dimension_numbers = #tpu.dot_dimension_numbers<[1], [0], [0], [1], [0, 0, 1, 1], [], []>} : vector<1x256xbf16>, vector<256x256xbf16>, vector<1x256xf32> -> vector<1x256xf32>
    %33 = vector.extract_strided_slice %16 {offsets = [2, 0], sizes = [1, 512], strides = [1, 1]} : vector<5x512xbf16> to vector<1x512xbf16>
    %c2 = arith.constant 2 : index
    %c0_30 = arith.constant 0 : index
    %c0_31 = arith.constant 0 : index
    %34 = vector.load %arg7[%c2, %c0_30, %c0_31] : memref<5x512x256xbf16, #tpu.memory_space<vmem>>, vector<1x512x256xbf16>
    %35 = vector.shape_cast %34 : vector<1x512x256xbf16> to vector<512x256xbf16>
    %cst_32 = arith.constant dense<0.000000e+00> : vector<1x256xf32>
    %36 = tpu.matmul %33, %35, %cst_32 {dimension_numbers = #tpu.dot_dimension_numbers<[1], [0], [0], [1], [0, 0, 1, 1], [], []>} : vector<1x512xbf16>, vector<512x256xbf16>, vector<1x256xf32> -> vector<1x256xf32>
    %37 = vector.extract_strided_slice %33 {offsets = [0, 0], sizes = [1, 256], strides = [1, 1]} : vector<1x512xbf16> to vector<1x256xbf16>
    %c2_33 = arith.constant 2 : index
    %c0_34 = arith.constant 0 : index
    %c0_35 = arith.constant 0 : index
    %38 = vector.load %arg8[%c2_33, %c0_34, %c0_35] : memref<5x256x256xbf16, #tpu.memory_space<vmem>>, vector<1x256x256xbf16>
    %39 = vector.shape_cast %38 : vector<1x256x256xbf16> to vector<256x256xbf16>
    %cst_36 = arith.constant dense<0.000000e+00> : vector<1x256xf32>
    %40 = tpu.matmul %37, %39, %cst_36 {dimension_numbers = #tpu.dot_dimension_numbers<[1], [0], [0], [1], [0, 0, 1, 1], [], []>} : vector<1x256xbf16>, vector<256x256xbf16>, vector<1x256xf32> -> vector<1x256xf32>
    %41 = vector.extract_strided_slice %16 {offsets = [3, 0], sizes = [1, 512], strides = [1, 1]} : vector<5x512xbf16> to vector<1x512xbf16>
    %c3 = arith.constant 3 : index
    %c0_37 = arith.constant 0 : index
    %c0_38 = arith.constant 0 : index
    %42 = vector.load %arg7[%c3, %c0_37, %c0_38] : memref<5x512x256xbf16, #tpu.memory_space<vmem>>, vector<1x512x256xbf16>
    %43 = vector.shape_cast %42 : vector<1x512x256xbf16> to vector<512x256xbf16>
    %cst_39 = arith.constant dense<0.000000e+00> : vector<1x256xf32>
    %44 = tpu.matmul %41, %43, %cst_39 {dimension_numbers = #tpu.dot_dimension_numbers<[1], [0], [0], [1], [0, 0, 1, 1], [], []>} : vector<1x512xbf16>, vector<512x256xbf16>, vector<1x256xf32> -> vector<1x256xf32>
    %45 = vector.extract_strided_slice %41 {offsets = [0, 0], sizes = [1, 256], strides = [1, 1]} : vector<1x512xbf16> to vector<1x256xbf16>
    %c3_40 = arith.constant 3 : index
    %c0_41 = arith.constant 0 : index
    %c0_42 = arith.constant 0 : index
    %46 = vector.load %arg8[%c3_40, %c0_41, %c0_42] : memref<5x256x256xbf16, #tpu.memory_space<vmem>>, vector<1x256x256xbf16>
    %47 = vector.shape_cast %46 : vector<1x256x256xbf16> to vector<256x256xbf16>
    %cst_43 = arith.constant dense<0.000000e+00> : vector<1x256xf32>
    %48 = tpu.matmul %45, %47, %cst_43 {dimension_numbers = #tpu.dot_dimension_numbers<[1], [0], [0], [1], [0, 0, 1, 1], [], []>} : vector<1x256xbf16>, vector<256x256xbf16>, vector<1x256xf32> -> vector<1x256xf32>
    %49 = vector.extract_strided_slice %16 {offsets = [4, 0], sizes = [1, 512], strides = [1, 1]} : vector<5x512xbf16> to vector<1x512xbf16>
    %c4 = arith.constant 4 : index
    %c0_44 = arith.constant 0 : index
    %c0_45 = arith.constant 0 : index
    %50 = vector.load %arg7[%c4, %c0_44, %c0_45] : memref<5x512x256xbf16, #tpu.memory_space<vmem>>, vector<1x512x256xbf16>
    %51 = vector.shape_cast %50 : vector<1x512x256xbf16> to vector<512x256xbf16>
    %cst_46 = arith.constant dense<0.000000e+00> : vector<1x256xf32>
    %52 = tpu.matmul %49, %51, %cst_46 {dimension_numbers = #tpu.dot_dimension_numbers<[1], [0], [0], [1], [0, 0, 1, 1], [], []>} : vector<1x512xbf16>, vector<512x256xbf16>, vector<1x256xf32> -> vector<1x256xf32>
    %53 = vector.extract_strided_slice %49 {offsets = [0, 0], sizes = [1, 256], strides = [1, 1]} : vector<1x512xbf16> to vector<1x256xbf16>
    %c4_47 = arith.constant 4 : index
    %c0_48 = arith.constant 0 : index
    %c0_49 = arith.constant 0 : index
    %54 = vector.load %arg8[%c4_47, %c0_48, %c0_49] : memref<5x256x256xbf16, #tpu.memory_space<vmem>>, vector<1x256x256xbf16>
    %55 = vector.shape_cast %54 : vector<1x256x256xbf16> to vector<256x256xbf16>
    %cst_50 = arith.constant dense<0.000000e+00> : vector<1x256xf32>
    %56 = tpu.matmul %53, %55, %cst_50 {dimension_numbers = #tpu.dot_dimension_numbers<[1], [0], [0], [1], [0, 0, 1, 1], [], []>} : vector<1x256xbf16>, vector<256x256xbf16>, vector<1x256xf32> -> vector<1x256xf32>
    %57 = tpu.concatenate %20, %28, %36, %44, %52 in 0 : vector<1x256xf32>, vector<1x256xf32>, vector<1x256xf32>, vector<1x256xf32>, vector<1x256xf32> -> vector<5x256xf32>
    %58 = tpu.concatenate %24, %32, %40, %48, %56 in 0 : vector<1x256xf32>, vector<1x256xf32>, vector<1x256xf32>, vector<1x256xf32>, vector<1x256xf32> -> vector<5x256xf32>
    %c0_51 = arith.constant 0 : index
    %c0_52 = arith.constant 0 : index
    %59 = vector.load %arg5[%c0_51, %c0_52] : memref<8x5xf32, #tpu.memory_space<vmem>>, vector<8x5xf32>
    %c0_53 = arith.constant 0 : index
    %c0_54 = arith.constant 0 : index
    %60 = vector.load %arg6[%c0_53, %c0_54] : memref<8x5xf32, #tpu.memory_space<vmem>>, vector<8x5xf32>
    %61 = vector.extract_strided_slice %57 {offsets = [0, 0], sizes = [5, 128], strides = [1, 1]} : vector<5x256xf32> to vector<5x128xf32>
    %cst_55 = arith.constant dense<0.000000e+00> : vector<8x128xf32>
    %62 = tpu.matmul %59, %61, %cst_55 {dimension_numbers = #tpu.dot_dimension_numbers<[1], [0], [0], [1], [0, 0, 1, 1], [], []>} : vector<8x5xf32>, vector<5x128xf32>, vector<8x128xf32> -> vector<8x128xf32>
    %63 = vector.extract_strided_slice %57 {offsets = [0, 128], sizes = [5, 128], strides = [1, 1]} : vector<5x256xf32> to vector<5x128xf32>
    %cst_56 = arith.constant dense<0.000000e+00> : vector<8x128xf32>
    %64 = tpu.matmul %60, %63, %cst_56 {dimension_numbers = #tpu.dot_dimension_numbers<[1], [0], [0], [1], [0, 0, 1, 1], [], []>} : vector<8x5xf32>, vector<5x128xf32>, vector<8x128xf32> -> vector<8x128xf32>
    %65 = arith.addf %62, %64 : vector<8x128xf32>
    %66 = vector.extract_strided_slice %58 {offsets = [0, 0], sizes = [5, 128], strides = [1, 1]} : vector<5x256xf32> to vector<5x128xf32>
    %cst_57 = arith.constant dense<0.000000e+00> : vector<8x128xf32>
    %67 = tpu.matmul %59, %66, %cst_57 {dimension_numbers = #tpu.dot_dimension_numbers<[1], [0], [0], [1], [0, 0, 1, 1], [], []>} : vector<8x5xf32>, vector<5x128xf32>, vector<8x128xf32> -> vector<8x128xf32>
    %68 = vector.extract_strided_slice %58 {offsets = [0, 128], sizes = [5, 128], strides = [1, 1]} : vector<5x256xf32> to vector<5x128xf32>
    %cst_58 = arith.constant dense<0.000000e+00> : vector<8x128xf32>
    %69 = tpu.matmul %60, %68, %cst_58 {dimension_numbers = #tpu.dot_dimension_numbers<[1], [0], [0], [1], [0, 0, 1, 1], [], []>} : vector<8x5xf32>, vector<5x128xf32>, vector<8x128xf32> -> vector<8x128xf32>
    %70 = arith.addf %67, %69 : vector<8x128xf32>
    %c0_59 = arith.constant 0 : index
    %c0_60 = arith.constant 0 : index
    %c0_61 = arith.constant 0 : index
    %71 = vector.load %arg10[%c0_59, %c0_60, %c0_61] : memref<1x8x128xf32, #tpu.memory_space<vmem>>, vector<1x8x128xf32>
    %72 = vector.shape_cast %71 : vector<1x8x128xf32> to vector<8x128xf32>
    %73 = vector.shape_cast %65 : vector<8x128xf32> to vector<1x8x128xf32>
    tpu.vector_store %arg10[%c0_59, %c0_60, %c0_61], %73 {strides = array<i32>} : memref<1x8x128xf32, #tpu.memory_space<vmem>>, vector<1x8x128xf32>,
    %c0_62 = arith.constant 0 : index
    %c0_63 = arith.constant 0 : index
    %c0_64 = arith.constant 0 : index
    %74 = vector.load %arg11[%c0_62, %c0_63, %c0_64] : memref<1x8x128xf32, #tpu.memory_space<vmem>>, vector<1x8x128xf32>
    %75 = vector.shape_cast %74 : vector<1x8x128xf32> to vector<8x128xf32>
    %76 = vector.shape_cast %70 : vector<8x128xf32> to vector<1x8x128xf32>
    tpu.vector_store %arg11[%c0_62, %c0_63, %c0_64], %76 {strides = array<i32>} : memref<1x8x128xf32, #tpu.memory_space<vmem>>, vector<1x8x128xf32>,
    return
  }
  func.func @transform_0(%arg0: i32) -> (i32, i32, i32) {
    %c0_i32 = arith.constant 0 : i32
    %c0_i32_0 = arith.constant 0 : i32
    %c0_i32_1 = arith.constant 0 : i32
    return %arg0, %c0_i32, %c0_i32_0 : i32, i32, i32
  }
  func.func @transform_1(%arg0: i32) -> (i32, i32) {
    %c0_i32 = arith.constant 0 : i32
    %c0_i32_0 = arith.constant 0 : i32
    %c0_i32_1 = arith.constant 0 : i32
    return %c0_i32, %c0_i32_0 : i32, i32
  }
  func.func @transform_2(%arg0: i32) -> (i32, i32) {
    %c0_i32 = arith.constant 0 : i32
    %c0_i32_0 = arith.constant 0 : i32
    %c0_i32_1 = arith.constant 0 : i32
    return %c0_i32, %c0_i32_0 : i32, i32
  }
  func.func @transform_3(%arg0: i32) -> (i32, i32) {
    %c0_i32 = arith.constant 0 : i32
    %c0_i32_0 = arith.constant 0 : i32
    %c0_i32_1 = arith.constant 0 : i32
    return %c0_i32, %c0_i32_0 : i32, i32
  }
  func.func @transform_4(%arg0: i32) -> (i32, i32) {
    %c0_i32 = arith.constant 0 : i32
    %c0_i32_0 = arith.constant 0 : i32
    %c0_i32_1 = arith.constant 0 : i32
    return %c0_i32, %c0_i32_0 : i32, i32
  }
  func.func @transform_5(%arg0: i32) -> (i32, i32) {
    %c0_i32 = arith.constant 0 : i32
    %c0_i32_0 = arith.constant 0 : i32
    %c0_i32_1 = arith.constant 0 : i32
    return %c0_i32, %c0_i32_0 : i32, i32
  }
  func.func @transform_6(%arg0: i32) -> (i32, i32, i32) {
    %c0_i32 = arith.constant 0 : i32
    %c0_i32_0 = arith.constant 0 : i32
    %c0_i32_1 = arith.constant 0 : i32
    %c0_i32_2 = arith.constant 0 : i32
    return %c0_i32, %c0_i32_0, %c0_i32_1 : i32, i32, i32
  }
  func.func @transform_7(%arg0: i32) -> (i32, i32, i32) {
    %c0_i32 = arith.constant 0 : i32
    %c0_i32_0 = arith.constant 0 : i32
    %c0_i32_1 = arith.constant 0 : i32
    %c0_i32_2 = arith.constant 0 : i32
    return %c0_i32, %c0_i32_0, %c0_i32_1 : i32, i32, i32
  }
  func.func @transform_8(%arg0: i32) -> (i32, i32, i32) {
    %c0_i32 = arith.constant 0 : i32
    %c0_i32_0 = arith.constant 0 : i32
    %c0_i32_1 = arith.constant 0 : i32
    return %arg0, %c0_i32, %c0_i32_0 : i32, i32, i32
  }
  func.func @transform_9(%arg0: i32) -> (i32, i32, i32) {
    %c0_i32 = arith.constant 0 : i32
    %c0_i32_0 = arith.constant 0 : i32
    %c0_i32_1 = arith.constant 0 : i32
    return %arg0, %c0_i32, %c0_i32_0 : i32, i32, i32
  }
  func.func @transform_10(%arg0: i32) -> (i32, i32, i32) {
    %c0_i32 = arith.constant 0 : i32
    %c0_i32_0 = arith.constant 0 : i32
    %c0_i32_1 = arith.constant 0 : i32
    return %arg0, %c0_i32, %c0_i32_0 : i32, i32, i32
  }
}

module attributes {stable_mosaic.version = 11 : i64} {
  func.func @_level_kernel(%arg0: i32, %arg1: memref<1x4x256xf32, #tpu.memory_space<vmem>>, %arg2: memref<256x256xf32, #tpu.memory_space<vmem>>, %arg3: memref<3x4xf32, #tpu.memory_space<vmem>>, %arg4: memref<3x4xf32, #tpu.memory_space<vmem>>, %arg5: memref<4x3xf32, #tpu.memory_space<vmem>>, %arg6: memref<4x3xf32, #tpu.memory_space<vmem>>, %arg7: memref<3x512x256xbf16, #tpu.memory_space<vmem>>, %arg8: memref<3x256x256xbf16, #tpu.memory_space<vmem>>, %arg9: memref<1x4x128xf32, #tpu.memory_space<vmem>>, %arg10: memref<1x4x128xf32, #tpu.memory_space<vmem>>, %arg11: memref<1x4x128xf32, #tpu.memory_space<vmem>>) attributes {dimension_semantics = [#tpu.dimension_semantics<parallel>], iteration_bounds = array<i64: 2>, scalar_prefetch = 0 : i64, scratch_operands = 0 : i64, tpu.core_type = #tpu.core_type<tc>, window_params = [{transform_indices = @transform_0, window_bounds = array<i64: 1, 4, 256>}, {pipeline_mode = #tpu.pipeline_mode<synchronous>, transform_indices = @transform_1, window_bounds = array<i64: 256, 256>}, {pipeline_mode = #tpu.pipeline_mode<synchronous>, transform_indices = @transform_2, window_bounds = array<i64: 3, 4>}, {pipeline_mode = #tpu.pipeline_mode<synchronous>, transform_indices = @transform_3, window_bounds = array<i64: 3, 4>}, {pipeline_mode = #tpu.pipeline_mode<synchronous>, transform_indices = @transform_4, window_bounds = array<i64: 4, 3>}, {pipeline_mode = #tpu.pipeline_mode<synchronous>, transform_indices = @transform_5, window_bounds = array<i64: 4, 3>}, {transform_indices = @transform_6, window_bounds = array<i64: 3, 512, 256>}, {transform_indices = @transform_7, window_bounds = array<i64: 3, 256, 256>}, {transform_indices = @transform_8, window_bounds = array<i64: 1, 4, 128>}, {transform_indices = @transform_9, window_bounds = array<i64: 1, 4, 128>}, {transform_indices = @transform_10, window_bounds = array<i64: 1, 4, 128>}]} {
    %c0 = arith.constant 0 : index
    %c0_0 = arith.constant 0 : index
    %c0_1 = arith.constant 0 : index
    %0 = vector.load %arg1[%c0, %c0_0, %c0_1] : memref<1x4x256xf32, #tpu.memory_space<vmem>>, vector<1x4x256xf32>
    %1 = vector.shape_cast %0 : vector<1x4x256xf32> to vector<4x256xf32>
    %c0_2 = arith.constant 0 : index
    %c0_3 = arith.constant 0 : index
    %2 = vector.load %arg2[%c0_2, %c0_3] : memref<256x256xf32, #tpu.memory_space<vmem>>, vector<256x256xf32>
    %cst = arith.constant dense<0.000000e+00> : vector<4x256xf32>
    %3 = tpu.matmul %1, %2, %cst {dimension_numbers = #tpu.dot_dimension_numbers<[1], [0], [0], [1], [0, 0, 1, 1], [], []>} : vector<4x256xf32>, vector<256x256xf32>, vector<4x256xf32> -> vector<4x256xf32>
    %4 = vector.extract_strided_slice %3 {offsets = [0, 0], sizes = [4, 128], strides = [1, 1]} : vector<4x256xf32> to vector<4x128xf32>
    %5 = vector.extract_strided_slice %3 {offsets = [0, 128], sizes = [4, 128], strides = [1, 1]} : vector<4x256xf32> to vector<4x128xf32>
    %c0_4 = arith.constant 0 : index
    %c0_5 = arith.constant 0 : index
    %c0_6 = arith.constant 0 : index
    %6 = vector.load %arg9[%c0_4, %c0_5, %c0_6] : memref<1x4x128xf32, #tpu.memory_space<vmem>>, vector<1x4x128xf32>
    %7 = vector.shape_cast %6 : vector<1x4x128xf32> to vector<4x128xf32>
    %8 = vector.shape_cast %5 : vector<4x128xf32> to vector<1x4x128xf32>
    tpu.vector_store %arg9[%c0_4, %c0_5, %c0_6], %8 {strides = array<i32>} : memref<1x4x128xf32, #tpu.memory_space<vmem>>, vector<1x4x128xf32>,
    %c0_7 = arith.constant 0 : index
    %c0_8 = arith.constant 0 : index
    %9 = vector.load %arg3[%c0_7, %c0_8] : memref<3x4xf32, #tpu.memory_space<vmem>>, vector<3x4xf32>
    %c0_9 = arith.constant 0 : index
    %c0_10 = arith.constant 0 : index
    %10 = vector.load %arg4[%c0_9, %c0_10] : memref<3x4xf32, #tpu.memory_space<vmem>>, vector<3x4xf32>
    %cst_11 = arith.constant dense<0.000000e+00> : vector<3x128xf32>
    %11 = tpu.matmul %9, %4, %cst_11 {dimension_numbers = #tpu.dot_dimension_numbers<[1], [0], [0], [1], [0, 0, 1, 1], [], []>} : vector<3x4xf32>, vector<4x128xf32>, vector<3x128xf32> -> vector<3x128xf32>
    %cst_12 = arith.constant dense<0.000000e+00> : vector<3x128xf32>
    %12 = tpu.matmul %10, %4, %cst_12 {dimension_numbers = #tpu.dot_dimension_numbers<[1], [0], [0], [1], [0, 0, 1, 1], [], []>} : vector<3x4xf32>, vector<4x128xf32>, vector<3x128xf32> -> vector<3x128xf32>
    %cst_13 = arith.constant dense<0.000000e+00> : vector<3x128xf32>
    %13 = tpu.matmul %9, %5, %cst_13 {dimension_numbers = #tpu.dot_dimension_numbers<[1], [0], [0], [1], [0, 0, 1, 1], [], []>} : vector<3x4xf32>, vector<4x128xf32>, vector<3x128xf32> -> vector<3x128xf32>
    %cst_14 = arith.constant dense<0.000000e+00> : vector<3x128xf32>
    %14 = tpu.matmul %10, %5, %cst_14 {dimension_numbers = #tpu.dot_dimension_numbers<[1], [0], [0], [1], [0, 0, 1, 1], [], []>} : vector<3x4xf32>, vector<4x128xf32>, vector<3x128xf32> -> vector<3x128xf32>
    %15 = tpu.concatenate %11, %12, %13, %14 in 1 : vector<3x128xf32>, vector<3x128xf32>, vector<3x128xf32>, vector<3x128xf32> -> vector<3x512xf32>
    %16 = arith.truncf %15 : vector<3x512xf32> to vector<3x512xbf16>
    %17 = vector.extract_strided_slice %16 {offsets = [0, 0], sizes = [1, 512], strides = [1, 1]} : vector<3x512xbf16> to vector<1x512xbf16>
    %c0_15 = arith.constant 0 : index
    %c0_16 = arith.constant 0 : index
    %c0_17 = arith.constant 0 : index
    %18 = vector.load %arg7[%c0_15, %c0_16, %c0_17] : memref<3x512x256xbf16, #tpu.memory_space<vmem>>, vector<1x512x256xbf16>
    %19 = vector.shape_cast %18 : vector<1x512x256xbf16> to vector<512x256xbf16>
    %cst_18 = arith.constant dense<0.000000e+00> : vector<1x256xf32>
    %20 = tpu.matmul %17, %19, %cst_18 {dimension_numbers = #tpu.dot_dimension_numbers<[1], [0], [0], [1], [0, 0, 1, 1], [], []>} : vector<1x512xbf16>, vector<512x256xbf16>, vector<1x256xf32> -> vector<1x256xf32>
    %21 = vector.extract_strided_slice %17 {offsets = [0, 0], sizes = [1, 256], strides = [1, 1]} : vector<1x512xbf16> to vector<1x256xbf16>
    %c0_19 = arith.constant 0 : index
    %c0_20 = arith.constant 0 : index
    %c0_21 = arith.constant 0 : index
    %22 = vector.load %arg8[%c0_19, %c0_20, %c0_21] : memref<3x256x256xbf16, #tpu.memory_space<vmem>>, vector<1x256x256xbf16>
    %23 = vector.shape_cast %22 : vector<1x256x256xbf16> to vector<256x256xbf16>
    %cst_22 = arith.constant dense<0.000000e+00> : vector<1x256xf32>
    %24 = tpu.matmul %21, %23, %cst_22 {dimension_numbers = #tpu.dot_dimension_numbers<[1], [0], [0], [1], [0, 0, 1, 1], [], []>} : vector<1x256xbf16>, vector<256x256xbf16>, vector<1x256xf32> -> vector<1x256xf32>
    %25 = vector.extract_strided_slice %16 {offsets = [1, 0], sizes = [1, 512], strides = [1, 1]} : vector<3x512xbf16> to vector<1x512xbf16>
    %c1 = arith.constant 1 : index
    %c0_23 = arith.constant 0 : index
    %c0_24 = arith.constant 0 : index
    %26 = vector.load %arg7[%c1, %c0_23, %c0_24] : memref<3x512x256xbf16, #tpu.memory_space<vmem>>, vector<1x512x256xbf16>
    %27 = vector.shape_cast %26 : vector<1x512x256xbf16> to vector<512x256xbf16>
    %cst_25 = arith.constant dense<0.000000e+00> : vector<1x256xf32>
    %28 = tpu.matmul %25, %27, %cst_25 {dimension_numbers = #tpu.dot_dimension_numbers<[1], [0], [0], [1], [0, 0, 1, 1], [], []>} : vector<1x512xbf16>, vector<512x256xbf16>, vector<1x256xf32> -> vector<1x256xf32>
    %29 = vector.extract_strided_slice %25 {offsets = [0, 0], sizes = [1, 256], strides = [1, 1]} : vector<1x512xbf16> to vector<1x256xbf16>
    %c1_26 = arith.constant 1 : index
    %c0_27 = arith.constant 0 : index
    %c0_28 = arith.constant 0 : index
    %30 = vector.load %arg8[%c1_26, %c0_27, %c0_28] : memref<3x256x256xbf16, #tpu.memory_space<vmem>>, vector<1x256x256xbf16>
    %31 = vector.shape_cast %30 : vector<1x256x256xbf16> to vector<256x256xbf16>
    %cst_29 = arith.constant dense<0.000000e+00> : vector<1x256xf32>
    %32 = tpu.matmul %29, %31, %cst_29 {dimension_numbers = #tpu.dot_dimension_numbers<[1], [0], [0], [1], [0, 0, 1, 1], [], []>} : vector<1x256xbf16>, vector<256x256xbf16>, vector<1x256xf32> -> vector<1x256xf32>
    %33 = vector.extract_strided_slice %16 {offsets = [2, 0], sizes = [1, 512], strides = [1, 1]} : vector<3x512xbf16> to vector<1x512xbf16>
    %c2 = arith.constant 2 : index
    %c0_30 = arith.constant 0 : index
    %c0_31 = arith.constant 0 : index
    %34 = vector.load %arg7[%c2, %c0_30, %c0_31] : memref<3x512x256xbf16, #tpu.memory_space<vmem>>, vector<1x512x256xbf16>
    %35 = vector.shape_cast %34 : vector<1x512x256xbf16> to vector<512x256xbf16>
    %cst_32 = arith.constant dense<0.000000e+00> : vector<1x256xf32>
    %36 = tpu.matmul %33, %35, %cst_32 {dimension_numbers = #tpu.dot_dimension_numbers<[1], [0], [0], [1], [0, 0, 1, 1], [], []>} : vector<1x512xbf16>, vector<512x256xbf16>, vector<1x256xf32> -> vector<1x256xf32>
    %37 = vector.extract_strided_slice %33 {offsets = [0, 0], sizes = [1, 256], strides = [1, 1]} : vector<1x512xbf16> to vector<1x256xbf16>
    %c2_33 = arith.constant 2 : index
    %c0_34 = arith.constant 0 : index
    %c0_35 = arith.constant 0 : index
    %38 = vector.load %arg8[%c2_33, %c0_34, %c0_35] : memref<3x256x256xbf16, #tpu.memory_space<vmem>>, vector<1x256x256xbf16>
    %39 = vector.shape_cast %38 : vector<1x256x256xbf16> to vector<256x256xbf16>
    %cst_36 = arith.constant dense<0.000000e+00> : vector<1x256xf32>
    %40 = tpu.matmul %37, %39, %cst_36 {dimension_numbers = #tpu.dot_dimension_numbers<[1], [0], [0], [1], [0, 0, 1, 1], [], []>} : vector<1x256xbf16>, vector<256x256xbf16>, vector<1x256xf32> -> vector<1x256xf32>
    %41 = tpu.concatenate %20, %28, %36 in 0 : vector<1x256xf32>, vector<1x256xf32>, vector<1x256xf32> -> vector<3x256xf32>
    %42 = tpu.concatenate %24, %32, %40 in 0 : vector<1x256xf32>, vector<1x256xf32>, vector<1x256xf32> -> vector<3x256xf32>
    %c0_37 = arith.constant 0 : index
    %c0_38 = arith.constant 0 : index
    %43 = vector.load %arg5[%c0_37, %c0_38] : memref<4x3xf32, #tpu.memory_space<vmem>>, vector<4x3xf32>
    %c0_39 = arith.constant 0 : index
    %c0_40 = arith.constant 0 : index
    %44 = vector.load %arg6[%c0_39, %c0_40] : memref<4x3xf32, #tpu.memory_space<vmem>>, vector<4x3xf32>
    %45 = vector.extract_strided_slice %41 {offsets = [0, 0], sizes = [3, 128], strides = [1, 1]} : vector<3x256xf32> to vector<3x128xf32>
    %cst_41 = arith.constant dense<0.000000e+00> : vector<4x128xf32>
    %46 = tpu.matmul %43, %45, %cst_41 {dimension_numbers = #tpu.dot_dimension_numbers<[1], [0], [0], [1], [0, 0, 1, 1], [], []>} : vector<4x3xf32>, vector<3x128xf32>, vector<4x128xf32> -> vector<4x128xf32>
    %47 = vector.extract_strided_slice %41 {offsets = [0, 128], sizes = [3, 128], strides = [1, 1]} : vector<3x256xf32> to vector<3x128xf32>
    %cst_42 = arith.constant dense<0.000000e+00> : vector<4x128xf32>
    %48 = tpu.matmul %44, %47, %cst_42 {dimension_numbers = #tpu.dot_dimension_numbers<[1], [0], [0], [1], [0, 0, 1, 1], [], []>} : vector<4x3xf32>, vector<3x128xf32>, vector<4x128xf32> -> vector<4x128xf32>
    %49 = arith.addf %46, %48 : vector<4x128xf32>
    %50 = vector.extract_strided_slice %42 {offsets = [0, 0], sizes = [3, 128], strides = [1, 1]} : vector<3x256xf32> to vector<3x128xf32>
    %cst_43 = arith.constant dense<0.000000e+00> : vector<4x128xf32>
    %51 = tpu.matmul %43, %50, %cst_43 {dimension_numbers = #tpu.dot_dimension_numbers<[1], [0], [0], [1], [0, 0, 1, 1], [], []>} : vector<4x3xf32>, vector<3x128xf32>, vector<4x128xf32> -> vector<4x128xf32>
    %52 = vector.extract_strided_slice %42 {offsets = [0, 128], sizes = [3, 128], strides = [1, 1]} : vector<3x256xf32> to vector<3x128xf32>
    %cst_44 = arith.constant dense<0.000000e+00> : vector<4x128xf32>
    %53 = tpu.matmul %44, %52, %cst_44 {dimension_numbers = #tpu.dot_dimension_numbers<[1], [0], [0], [1], [0, 0, 1, 1], [], []>} : vector<4x3xf32>, vector<3x128xf32>, vector<4x128xf32> -> vector<4x128xf32>
    %54 = arith.addf %51, %53 : vector<4x128xf32>
    %c0_45 = arith.constant 0 : index
    %c0_46 = arith.constant 0 : index
    %c0_47 = arith.constant 0 : index
    %55 = vector.load %arg10[%c0_45, %c0_46, %c0_47] : memref<1x4x128xf32, #tpu.memory_space<vmem>>, vector<1x4x128xf32>
    %56 = vector.shape_cast %55 : vector<1x4x128xf32> to vector<4x128xf32>
    %57 = vector.shape_cast %49 : vector<4x128xf32> to vector<1x4x128xf32>
    tpu.vector_store %arg10[%c0_45, %c0_46, %c0_47], %57 {strides = array<i32>} : memref<1x4x128xf32, #tpu.memory_space<vmem>>, vector<1x4x128xf32>,
    %c0_48 = arith.constant 0 : index
    %c0_49 = arith.constant 0 : index
    %c0_50 = arith.constant 0 : index
    %58 = vector.load %arg11[%c0_48, %c0_49, %c0_50] : memref<1x4x128xf32, #tpu.memory_space<vmem>>, vector<1x4x128xf32>
    %59 = vector.shape_cast %58 : vector<1x4x128xf32> to vector<4x128xf32>
    %60 = vector.shape_cast %54 : vector<4x128xf32> to vector<1x4x128xf32>
    tpu.vector_store %arg11[%c0_48, %c0_49, %c0_50], %60 {strides = array<i32>} : memref<1x4x128xf32, #tpu.memory_space<vmem>>, vector<1x4x128xf32>,
    return
  }
  func.func @transform_0(%arg0: i32) -> (i32, i32, i32) {
    %c0_i32 = arith.constant 0 : i32
    %c0_i32_0 = arith.constant 0 : i32
    %c0_i32_1 = arith.constant 0 : i32
    return %arg0, %c0_i32, %c0_i32_0 : i32, i32, i32
  }
  func.func @transform_1(%arg0: i32) -> (i32, i32) {
    %c0_i32 = arith.constant 0 : i32
    %c0_i32_0 = arith.constant 0 : i32
    %c0_i32_1 = arith.constant 0 : i32
    return %c0_i32, %c0_i32_0 : i32, i32
  }
  func.func @transform_2(%arg0: i32) -> (i32, i32) {
    %c0_i32 = arith.constant 0 : i32
    %c0_i32_0 = arith.constant 0 : i32
    %c0_i32_1 = arith.constant 0 : i32
    return %c0_i32, %c0_i32_0 : i32, i32
  }
  func.func @transform_3(%arg0: i32) -> (i32, i32) {
    %c0_i32 = arith.constant 0 : i32
    %c0_i32_0 = arith.constant 0 : i32
    %c0_i32_1 = arith.constant 0 : i32
    return %c0_i32, %c0_i32_0 : i32, i32
  }
  func.func @transform_4(%arg0: i32) -> (i32, i32) {
    %c0_i32 = arith.constant 0 : i32
    %c0_i32_0 = arith.constant 0 : i32
    %c0_i32_1 = arith.constant 0 : i32
    return %c0_i32, %c0_i32_0 : i32, i32
  }
  func.func @transform_5(%arg0: i32) -> (i32, i32) {
    %c0_i32 = arith.constant 0 : i32
    %c0_i32_0 = arith.constant 0 : i32
    %c0_i32_1 = arith.constant 0 : i32
    return %c0_i32, %c0_i32_0 : i32, i32
  }
  func.func @transform_6(%arg0: i32) -> (i32, i32, i32) {
    %c0_i32 = arith.constant 0 : i32
    %c0_i32_0 = arith.constant 0 : i32
    %c0_i32_1 = arith.constant 0 : i32
    %c0_i32_2 = arith.constant 0 : i32
    return %c0_i32, %c0_i32_0, %c0_i32_1 : i32, i32, i32
  }
  func.func @transform_7(%arg0: i32) -> (i32, i32, i32) {
    %c0_i32 = arith.constant 0 : i32
    %c0_i32_0 = arith.constant 0 : i32
    %c0_i32_1 = arith.constant 0 : i32
    %c0_i32_2 = arith.constant 0 : i32
    return %c0_i32, %c0_i32_0, %c0_i32_1 : i32, i32, i32
  }
  func.func @transform_8(%arg0: i32) -> (i32, i32, i32) {
    %c0_i32 = arith.constant 0 : i32
    %c0_i32_0 = arith.constant 0 : i32
    %c0_i32_1 = arith.constant 0 : i32
    return %arg0, %c0_i32, %c0_i32_0 : i32, i32, i32
  }
  func.func @transform_9(%arg0: i32) -> (i32, i32, i32) {
    %c0_i32 = arith.constant 0 : i32
    %c0_i32_0 = arith.constant 0 : i32
    %c0_i32_1 = arith.constant 0 : i32
    return %arg0, %c0_i32, %c0_i32_0 : i32, i32, i32
  }
  func.func @transform_10(%arg0: i32) -> (i32, i32, i32) {
    %c0_i32 = arith.constant 0 : i32
    %c0_i32_0 = arith.constant 0 : i32
    %c0_i32_1 = arith.constant 0 : i32
    return %arg0, %c0_i32, %c0_i32_0 : i32, i32, i32
  }
}

module attributes {stable_mosaic.version = 11 : i64} {
  func.func @_level_kernel(%arg0: i32, %arg1: memref<1x2x256xf32, #tpu.memory_space<vmem>>, %arg2: memref<256x256xf32, #tpu.memory_space<vmem>>, %arg3: memref<2x2xf32, #tpu.memory_space<vmem>>, %arg4: memref<2x2xf32, #tpu.memory_space<vmem>>, %arg5: memref<2x2xf32, #tpu.memory_space<vmem>>, %arg6: memref<2x2xf32, #tpu.memory_space<vmem>>, %arg7: memref<2x512x256xbf16, #tpu.memory_space<vmem>>, %arg8: memref<2x256x256xbf16, #tpu.memory_space<vmem>>, %arg9: memref<1x2x128xf32, #tpu.memory_space<vmem>>, %arg10: memref<1x2x128xf32, #tpu.memory_space<vmem>>, %arg11: memref<1x2x128xf32, #tpu.memory_space<vmem>>) attributes {dimension_semantics = [#tpu.dimension_semantics<parallel>], iteration_bounds = array<i64: 2>, scalar_prefetch = 0 : i64, scratch_operands = 0 : i64, tpu.core_type = #tpu.core_type<tc>, window_params = [{transform_indices = @transform_0, window_bounds = array<i64: 1, 2, 256>}, {pipeline_mode = #tpu.pipeline_mode<synchronous>, transform_indices = @transform_1, window_bounds = array<i64: 256, 256>}, {pipeline_mode = #tpu.pipeline_mode<synchronous>, transform_indices = @transform_2, window_bounds = array<i64: 2, 2>}, {pipeline_mode = #tpu.pipeline_mode<synchronous>, transform_indices = @transform_3, window_bounds = array<i64: 2, 2>}, {pipeline_mode = #tpu.pipeline_mode<synchronous>, transform_indices = @transform_4, window_bounds = array<i64: 2, 2>}, {pipeline_mode = #tpu.pipeline_mode<synchronous>, transform_indices = @transform_5, window_bounds = array<i64: 2, 2>}, {transform_indices = @transform_6, window_bounds = array<i64: 2, 512, 256>}, {transform_indices = @transform_7, window_bounds = array<i64: 2, 256, 256>}, {transform_indices = @transform_8, window_bounds = array<i64: 1, 2, 128>}, {transform_indices = @transform_9, window_bounds = array<i64: 1, 2, 128>}, {transform_indices = @transform_10, window_bounds = array<i64: 1, 2, 128>}]} {
    %c0 = arith.constant 0 : index
    %c0_0 = arith.constant 0 : index
    %c0_1 = arith.constant 0 : index
    %0 = vector.load %arg1[%c0, %c0_0, %c0_1] : memref<1x2x256xf32, #tpu.memory_space<vmem>>, vector<1x2x256xf32>
    %1 = vector.shape_cast %0 : vector<1x2x256xf32> to vector<2x256xf32>
    %c0_2 = arith.constant 0 : index
    %c0_3 = arith.constant 0 : index
    %2 = vector.load %arg2[%c0_2, %c0_3] : memref<256x256xf32, #tpu.memory_space<vmem>>, vector<256x256xf32>
    %cst = arith.constant dense<0.000000e+00> : vector<2x256xf32>
    %3 = tpu.matmul %1, %2, %cst {dimension_numbers = #tpu.dot_dimension_numbers<[1], [0], [0], [1], [0, 0, 1, 1], [], []>} : vector<2x256xf32>, vector<256x256xf32>, vector<2x256xf32> -> vector<2x256xf32>
    %4 = vector.extract_strided_slice %3 {offsets = [0, 0], sizes = [2, 128], strides = [1, 1]} : vector<2x256xf32> to vector<2x128xf32>
    %5 = vector.extract_strided_slice %3 {offsets = [0, 128], sizes = [2, 128], strides = [1, 1]} : vector<2x256xf32> to vector<2x128xf32>
    %c0_4 = arith.constant 0 : index
    %c0_5 = arith.constant 0 : index
    %c0_6 = arith.constant 0 : index
    %6 = vector.load %arg9[%c0_4, %c0_5, %c0_6] : memref<1x2x128xf32, #tpu.memory_space<vmem>>, vector<1x2x128xf32>
    %7 = vector.shape_cast %6 : vector<1x2x128xf32> to vector<2x128xf32>
    %8 = vector.shape_cast %5 : vector<2x128xf32> to vector<1x2x128xf32>
    tpu.vector_store %arg9[%c0_4, %c0_5, %c0_6], %8 {strides = array<i32>} : memref<1x2x128xf32, #tpu.memory_space<vmem>>, vector<1x2x128xf32>,
    %c0_7 = arith.constant 0 : index
    %c0_8 = arith.constant 0 : index
    %9 = vector.load %arg3[%c0_7, %c0_8] : memref<2x2xf32, #tpu.memory_space<vmem>>, vector<2x2xf32>
    %c0_9 = arith.constant 0 : index
    %c0_10 = arith.constant 0 : index
    %10 = vector.load %arg4[%c0_9, %c0_10] : memref<2x2xf32, #tpu.memory_space<vmem>>, vector<2x2xf32>
    %cst_11 = arith.constant dense<0.000000e+00> : vector<2x128xf32>
    %11 = tpu.matmul %9, %4, %cst_11 {dimension_numbers = #tpu.dot_dimension_numbers<[1], [0], [0], [1], [0, 0, 1, 1], [], []>} : vector<2x2xf32>, vector<2x128xf32>, vector<2x128xf32> -> vector<2x128xf32>
    %cst_12 = arith.constant dense<0.000000e+00> : vector<2x128xf32>
    %12 = tpu.matmul %10, %4, %cst_12 {dimension_numbers = #tpu.dot_dimension_numbers<[1], [0], [0], [1], [0, 0, 1, 1], [], []>} : vector<2x2xf32>, vector<2x128xf32>, vector<2x128xf32> -> vector<2x128xf32>
    %cst_13 = arith.constant dense<0.000000e+00> : vector<2x128xf32>
    %13 = tpu.matmul %9, %5, %cst_13 {dimension_numbers = #tpu.dot_dimension_numbers<[1], [0], [0], [1], [0, 0, 1, 1], [], []>} : vector<2x2xf32>, vector<2x128xf32>, vector<2x128xf32> -> vector<2x128xf32>
    %cst_14 = arith.constant dense<0.000000e+00> : vector<2x128xf32>
    %14 = tpu.matmul %10, %5, %cst_14 {dimension_numbers = #tpu.dot_dimension_numbers<[1], [0], [0], [1], [0, 0, 1, 1], [], []>} : vector<2x2xf32>, vector<2x128xf32>, vector<2x128xf32> -> vector<2x128xf32>
    %15 = tpu.concatenate %11, %12, %13, %14 in 1 : vector<2x128xf32>, vector<2x128xf32>, vector<2x128xf32>, vector<2x128xf32> -> vector<2x512xf32>
    %16 = arith.truncf %15 : vector<2x512xf32> to vector<2x512xbf16>
    %17 = vector.extract_strided_slice %16 {offsets = [0, 0], sizes = [1, 512], strides = [1, 1]} : vector<2x512xbf16> to vector<1x512xbf16>
    %c0_15 = arith.constant 0 : index
    %c0_16 = arith.constant 0 : index
    %c0_17 = arith.constant 0 : index
    %18 = vector.load %arg7[%c0_15, %c0_16, %c0_17] : memref<2x512x256xbf16, #tpu.memory_space<vmem>>, vector<1x512x256xbf16>
    %19 = vector.shape_cast %18 : vector<1x512x256xbf16> to vector<512x256xbf16>
    %cst_18 = arith.constant dense<0.000000e+00> : vector<1x256xf32>
    %20 = tpu.matmul %17, %19, %cst_18 {dimension_numbers = #tpu.dot_dimension_numbers<[1], [0], [0], [1], [0, 0, 1, 1], [], []>} : vector<1x512xbf16>, vector<512x256xbf16>, vector<1x256xf32> -> vector<1x256xf32>
    %21 = vector.extract_strided_slice %17 {offsets = [0, 0], sizes = [1, 256], strides = [1, 1]} : vector<1x512xbf16> to vector<1x256xbf16>
    %c0_19 = arith.constant 0 : index
    %c0_20 = arith.constant 0 : index
    %c0_21 = arith.constant 0 : index
    %22 = vector.load %arg8[%c0_19, %c0_20, %c0_21] : memref<2x256x256xbf16, #tpu.memory_space<vmem>>, vector<1x256x256xbf16>
    %23 = vector.shape_cast %22 : vector<1x256x256xbf16> to vector<256x256xbf16>
    %cst_22 = arith.constant dense<0.000000e+00> : vector<1x256xf32>
    %24 = tpu.matmul %21, %23, %cst_22 {dimension_numbers = #tpu.dot_dimension_numbers<[1], [0], [0], [1], [0, 0, 1, 1], [], []>} : vector<1x256xbf16>, vector<256x256xbf16>, vector<1x256xf32> -> vector<1x256xf32>
    %25 = vector.extract_strided_slice %16 {offsets = [1, 0], sizes = [1, 512], strides = [1, 1]} : vector<2x512xbf16> to vector<1x512xbf16>
    %c1 = arith.constant 1 : index
    %c0_23 = arith.constant 0 : index
    %c0_24 = arith.constant 0 : index
    %26 = vector.load %arg7[%c1, %c0_23, %c0_24] : memref<2x512x256xbf16, #tpu.memory_space<vmem>>, vector<1x512x256xbf16>
    %27 = vector.shape_cast %26 : vector<1x512x256xbf16> to vector<512x256xbf16>
    %cst_25 = arith.constant dense<0.000000e+00> : vector<1x256xf32>
    %28 = tpu.matmul %25, %27, %cst_25 {dimension_numbers = #tpu.dot_dimension_numbers<[1], [0], [0], [1], [0, 0, 1, 1], [], []>} : vector<1x512xbf16>, vector<512x256xbf16>, vector<1x256xf32> -> vector<1x256xf32>
    %29 = vector.extract_strided_slice %25 {offsets = [0, 0], sizes = [1, 256], strides = [1, 1]} : vector<1x512xbf16> to vector<1x256xbf16>
    %c1_26 = arith.constant 1 : index
    %c0_27 = arith.constant 0 : index
    %c0_28 = arith.constant 0 : index
    %30 = vector.load %arg8[%c1_26, %c0_27, %c0_28] : memref<2x256x256xbf16, #tpu.memory_space<vmem>>, vector<1x256x256xbf16>
    %31 = vector.shape_cast %30 : vector<1x256x256xbf16> to vector<256x256xbf16>
    %cst_29 = arith.constant dense<0.000000e+00> : vector<1x256xf32>
    %32 = tpu.matmul %29, %31, %cst_29 {dimension_numbers = #tpu.dot_dimension_numbers<[1], [0], [0], [1], [0, 0, 1, 1], [], []>} : vector<1x256xbf16>, vector<256x256xbf16>, vector<1x256xf32> -> vector<1x256xf32>
    %33 = tpu.concatenate %20, %28 in 0 : vector<1x256xf32>, vector<1x256xf32> -> vector<2x256xf32>
    %34 = tpu.concatenate %24, %32 in 0 : vector<1x256xf32>, vector<1x256xf32> -> vector<2x256xf32>
    %c0_30 = arith.constant 0 : index
    %c0_31 = arith.constant 0 : index
    %35 = vector.load %arg5[%c0_30, %c0_31] : memref<2x2xf32, #tpu.memory_space<vmem>>, vector<2x2xf32>
    %c0_32 = arith.constant 0 : index
    %c0_33 = arith.constant 0 : index
    %36 = vector.load %arg6[%c0_32, %c0_33] : memref<2x2xf32, #tpu.memory_space<vmem>>, vector<2x2xf32>
    %37 = vector.extract_strided_slice %33 {offsets = [0, 0], sizes = [2, 128], strides = [1, 1]} : vector<2x256xf32> to vector<2x128xf32>
    %cst_34 = arith.constant dense<0.000000e+00> : vector<2x128xf32>
    %38 = tpu.matmul %35, %37, %cst_34 {dimension_numbers = #tpu.dot_dimension_numbers<[1], [0], [0], [1], [0, 0, 1, 1], [], []>} : vector<2x2xf32>, vector<2x128xf32>, vector<2x128xf32> -> vector<2x128xf32>
    %39 = vector.extract_strided_slice %33 {offsets = [0, 128], sizes = [2, 128], strides = [1, 1]} : vector<2x256xf32> to vector<2x128xf32>
    %cst_35 = arith.constant dense<0.000000e+00> : vector<2x128xf32>
    %40 = tpu.matmul %36, %39, %cst_35 {dimension_numbers = #tpu.dot_dimension_numbers<[1], [0], [0], [1], [0, 0, 1, 1], [], []>} : vector<2x2xf32>, vector<2x128xf32>, vector<2x128xf32> -> vector<2x128xf32>
    %41 = arith.addf %38, %40 : vector<2x128xf32>
    %42 = vector.extract_strided_slice %34 {offsets = [0, 0], sizes = [2, 128], strides = [1, 1]} : vector<2x256xf32> to vector<2x128xf32>
    %cst_36 = arith.constant dense<0.000000e+00> : vector<2x128xf32>
    %43 = tpu.matmul %35, %42, %cst_36 {dimension_numbers = #tpu.dot_dimension_numbers<[1], [0], [0], [1], [0, 0, 1, 1], [], []>} : vector<2x2xf32>, vector<2x128xf32>, vector<2x128xf32> -> vector<2x128xf32>
    %44 = vector.extract_strided_slice %34 {offsets = [0, 128], sizes = [2, 128], strides = [1, 1]} : vector<2x256xf32> to vector<2x128xf32>
    %cst_37 = arith.constant dense<0.000000e+00> : vector<2x128xf32>
    %45 = tpu.matmul %36, %44, %cst_37 {dimension_numbers = #tpu.dot_dimension_numbers<[1], [0], [0], [1], [0, 0, 1, 1], [], []>} : vector<2x2xf32>, vector<2x128xf32>, vector<2x128xf32> -> vector<2x128xf32>
    %46 = arith.addf %43, %45 : vector<2x128xf32>
    %c0_38 = arith.constant 0 : index
    %c0_39 = arith.constant 0 : index
    %c0_40 = arith.constant 0 : index
    %47 = vector.load %arg10[%c0_38, %c0_39, %c0_40] : memref<1x2x128xf32, #tpu.memory_space<vmem>>, vector<1x2x128xf32>
    %48 = vector.shape_cast %47 : vector<1x2x128xf32> to vector<2x128xf32>
    %49 = vector.shape_cast %41 : vector<2x128xf32> to vector<1x2x128xf32>
    tpu.vector_store %arg10[%c0_38, %c0_39, %c0_40], %49 {strides = array<i32>} : memref<1x2x128xf32, #tpu.memory_space<vmem>>, vector<1x2x128xf32>,
    %c0_41 = arith.constant 0 : index
    %c0_42 = arith.constant 0 : index
    %c0_43 = arith.constant 0 : index
    %50 = vector.load %arg11[%c0_41, %c0_42, %c0_43] : memref<1x2x128xf32, #tpu.memory_space<vmem>>, vector<1x2x128xf32>
    %51 = vector.shape_cast %50 : vector<1x2x128xf32> to vector<2x128xf32>
    %52 = vector.shape_cast %46 : vector<2x128xf32> to vector<1x2x128xf32>
    tpu.vector_store %arg11[%c0_41, %c0_42, %c0_43], %52 {strides = array<i32>} : memref<1x2x128xf32, #tpu.memory_space<vmem>>, vector<1x2x128xf32>,
    return
  }
  func.func @transform_0(%arg0: i32) -> (i32, i32, i32) {
    %c0_i32 = arith.constant 0 : i32
    %c0_i32_0 = arith.constant 0 : i32
    %c0_i32_1 = arith.constant 0 : i32
    return %arg0, %c0_i32, %c0_i32_0 : i32, i32, i32
  }
  func.func @transform_1(%arg0: i32) -> (i32, i32) {
    %c0_i32 = arith.constant 0 : i32
    %c0_i32_0 = arith.constant 0 : i32
    %c0_i32_1 = arith.constant 0 : i32
    return %c0_i32, %c0_i32_0 : i32, i32
  }
  func.func @transform_2(%arg0: i32) -> (i32, i32) {
    %c0_i32 = arith.constant 0 : i32
    %c0_i32_0 = arith.constant 0 : i32
    %c0_i32_1 = arith.constant 0 : i32
    return %c0_i32, %c0_i32_0 : i32, i32
  }
  func.func @transform_3(%arg0: i32) -> (i32, i32) {
    %c0_i32 = arith.constant 0 : i32
    %c0_i32_0 = arith.constant 0 : i32
    %c0_i32_1 = arith.constant 0 : i32
    return %c0_i32, %c0_i32_0 : i32, i32
  }
  func.func @transform_4(%arg0: i32) -> (i32, i32) {
    %c0_i32 = arith.constant 0 : i32
    %c0_i32_0 = arith.constant 0 : i32
    %c0_i32_1 = arith.constant 0 : i32
    return %c0_i32, %c0_i32_0 : i32, i32
  }
  func.func @transform_5(%arg0: i32) -> (i32, i32) {
    %c0_i32 = arith.constant 0 : i32
    %c0_i32_0 = arith.constant 0 : i32
    %c0_i32_1 = arith.constant 0 : i32
    return %c0_i32, %c0_i32_0 : i32, i32
  }
  func.func @transform_6(%arg0: i32) -> (i32, i32, i32) {
    %c0_i32 = arith.constant 0 : i32
    %c0_i32_0 = arith.constant 0 : i32
    %c0_i32_1 = arith.constant 0 : i32
    %c0_i32_2 = arith.constant 0 : i32
    return %c0_i32, %c0_i32_0, %c0_i32_1 : i32, i32, i32
  }
  func.func @transform_7(%arg0: i32) -> (i32, i32, i32) {
    %c0_i32 = arith.constant 0 : i32
    %c0_i32_0 = arith.constant 0 : i32
    %c0_i32_1 = arith.constant 0 : i32
    %c0_i32_2 = arith.constant 0 : i32
    return %c0_i32, %c0_i32_0, %c0_i32_1 : i32, i32, i32
  }
  func.func @transform_8(%arg0: i32) -> (i32, i32, i32) {
    %c0_i32 = arith.constant 0 : i32
    %c0_i32_0 = arith.constant 0 : i32
    %c0_i32_1 = arith.constant 0 : i32
    return %arg0, %c0_i32, %c0_i32_0 : i32, i32, i32
  }
  func.func @transform_9(%arg0: i32) -> (i32, i32, i32) {
    %c0_i32 = arith.constant 0 : i32
    %c0_i32_0 = arith.constant 0 : i32
    %c0_i32_1 = arith.constant 0 : i32
    return %arg0, %c0_i32, %c0_i32_0 : i32, i32, i32
  }
  func.func @transform_10(%arg0: i32) -> (i32, i32, i32) {
    %c0_i32 = arith.constant 0 : i32
    %c0_i32_0 = arith.constant 0 : i32
    %c0_i32_1 = arith.constant 0 : i32
    return %arg0, %c0_i32, %c0_i32_0 : i32, i32, i32
  }
}

module attributes {stable_mosaic.version = 11 : i64} {
  func.func @_level_kernel(%arg0: i32, %arg1: memref<1x1x256xf32, #tpu.memory_space<vmem>>, %arg2: memref<256x256xf32, #tpu.memory_space<vmem>>, %arg3: memref<1x1xf32, #tpu.memory_space<vmem>>, %arg4: memref<1x1xf32, #tpu.memory_space<vmem>>, %arg5: memref<1x1xf32, #tpu.memory_space<vmem>>, %arg6: memref<1x1xf32, #tpu.memory_space<vmem>>, %arg7: memref<1x512x256xbf16, #tpu.memory_space<vmem>>, %arg8: memref<1x256x256xbf16, #tpu.memory_space<vmem>>, %arg9: memref<1x1x128xf32, #tpu.memory_space<vmem>>, %arg10: memref<1x1x128xf32, #tpu.memory_space<vmem>>, %arg11: memref<1x1x128xf32, #tpu.memory_space<vmem>>) attributes {dimension_semantics = [#tpu.dimension_semantics<parallel>], iteration_bounds = array<i64: 2>, scalar_prefetch = 0 : i64, scratch_operands = 0 : i64, tpu.core_type = #tpu.core_type<tc>, window_params = [{transform_indices = @transform_0, window_bounds = array<i64: 1, 1, 256>}, {pipeline_mode = #tpu.pipeline_mode<synchronous>, transform_indices = @transform_1, window_bounds = array<i64: 256, 256>}, {pipeline_mode = #tpu.pipeline_mode<synchronous>, transform_indices = @transform_2, window_bounds = array<i64: 1, 1>}, {pipeline_mode = #tpu.pipeline_mode<synchronous>, transform_indices = @transform_3, window_bounds = array<i64: 1, 1>}, {pipeline_mode = #tpu.pipeline_mode<synchronous>, transform_indices = @transform_4, window_bounds = array<i64: 1, 1>}, {pipeline_mode = #tpu.pipeline_mode<synchronous>, transform_indices = @transform_5, window_bounds = array<i64: 1, 1>}, {transform_indices = @transform_6, window_bounds = array<i64: 1, 512, 256>}, {transform_indices = @transform_7, window_bounds = array<i64: 1, 256, 256>}, {transform_indices = @transform_8, window_bounds = array<i64: 1, 1, 128>}, {transform_indices = @transform_9, window_bounds = array<i64: 1, 1, 128>}, {transform_indices = @transform_10, window_bounds = array<i64: 1, 1, 128>}]} {
    %c0 = arith.constant 0 : index
    %c0_0 = arith.constant 0 : index
    %c0_1 = arith.constant 0 : index
    %0 = vector.load %arg1[%c0, %c0_0, %c0_1] : memref<1x1x256xf32, #tpu.memory_space<vmem>>, vector<1x1x256xf32>
    %1 = vector.shape_cast %0 : vector<1x1x256xf32> to vector<1x256xf32>
    %c0_2 = arith.constant 0 : index
    %c0_3 = arith.constant 0 : index
    %2 = vector.load %arg2[%c0_2, %c0_3] : memref<256x256xf32, #tpu.memory_space<vmem>>, vector<256x256xf32>
    %cst = arith.constant dense<0.000000e+00> : vector<1x256xf32>
    %3 = tpu.matmul %1, %2, %cst {dimension_numbers = #tpu.dot_dimension_numbers<[1], [0], [0], [1], [0, 0, 1, 1], [], []>} : vector<1x256xf32>, vector<256x256xf32>, vector<1x256xf32> -> vector<1x256xf32>
    %4 = vector.extract_strided_slice %3 {offsets = [0, 0], sizes = [1, 128], strides = [1, 1]} : vector<1x256xf32> to vector<1x128xf32>
    %5 = vector.extract_strided_slice %3 {offsets = [0, 128], sizes = [1, 128], strides = [1, 1]} : vector<1x256xf32> to vector<1x128xf32>
    %c0_4 = arith.constant 0 : index
    %c0_5 = arith.constant 0 : index
    %c0_6 = arith.constant 0 : index
    %6 = vector.load %arg9[%c0_4, %c0_5, %c0_6] : memref<1x1x128xf32, #tpu.memory_space<vmem>>, vector<1x1x128xf32>
    %7 = vector.shape_cast %6 : vector<1x1x128xf32> to vector<1x128xf32>
    %8 = vector.shape_cast %5 : vector<1x128xf32> to vector<1x1x128xf32>
    tpu.vector_store %arg9[%c0_4, %c0_5, %c0_6], %8 {strides = array<i32>} : memref<1x1x128xf32, #tpu.memory_space<vmem>>, vector<1x1x128xf32>,
    %cst_7 = arith.constant 0.000000e+00 : f32
    %9 = vector.broadcast %cst_7 : f32 to vector<1x128xf32>
    %10 = tpu.concatenate %4, %9, %5, %9 in 1 : vector<1x128xf32>, vector<1x128xf32>, vector<1x128xf32>, vector<1x128xf32> -> vector<1x512xf32>
    %11 = arith.truncf %10 : vector<1x512xf32> to vector<1x512xbf16>
    %c0_8 = arith.constant 0 : index
    %c0_9 = arith.constant 0 : index
    %c0_10 = arith.constant 0 : index
    %12 = vector.load %arg7[%c0_8, %c0_9, %c0_10] : memref<1x512x256xbf16, #tpu.memory_space<vmem>>, vector<1x512x256xbf16>
    %13 = vector.shape_cast %12 : vector<1x512x256xbf16> to vector<512x256xbf16>
    %cst_11 = arith.constant dense<0.000000e+00> : vector<1x256xf32>
    %14 = tpu.matmul %11, %13, %cst_11 {dimension_numbers = #tpu.dot_dimension_numbers<[1], [0], [0], [1], [0, 0, 1, 1], [], []>} : vector<1x512xbf16>, vector<512x256xbf16>, vector<1x256xf32> -> vector<1x256xf32>
    %15 = vector.extract_strided_slice %11 {offsets = [0, 0], sizes = [1, 256], strides = [1, 1]} : vector<1x512xbf16> to vector<1x256xbf16>
    %c0_12 = arith.constant 0 : index
    %c0_13 = arith.constant 0 : index
    %c0_14 = arith.constant 0 : index
    %16 = vector.load %arg8[%c0_12, %c0_13, %c0_14] : memref<1x256x256xbf16, #tpu.memory_space<vmem>>, vector<1x256x256xbf16>
    %17 = vector.shape_cast %16 : vector<1x256x256xbf16> to vector<256x256xbf16>
    %cst_15 = arith.constant dense<0.000000e+00> : vector<1x256xf32>
    %18 = tpu.matmul %15, %17, %cst_15 {dimension_numbers = #tpu.dot_dimension_numbers<[1], [0], [0], [1], [0, 0, 1, 1], [], []>} : vector<1x256xbf16>, vector<256x256xbf16>, vector<1x256xf32> -> vector<1x256xf32>
    %19 = vector.extract_strided_slice %14 {offsets = [0, 0], sizes = [1, 128], strides = [1, 1]} : vector<1x256xf32> to vector<1x128xf32>
    %20 = vector.extract_strided_slice %18 {offsets = [0, 0], sizes = [1, 128], strides = [1, 1]} : vector<1x256xf32> to vector<1x128xf32>
    %c0_16 = arith.constant 0 : index
    %c0_17 = arith.constant 0 : index
    %c0_18 = arith.constant 0 : index
    %21 = vector.load %arg10[%c0_16, %c0_17, %c0_18] : memref<1x1x128xf32, #tpu.memory_space<vmem>>, vector<1x1x128xf32>
    %22 = vector.shape_cast %21 : vector<1x1x128xf32> to vector<1x128xf32>
    %23 = vector.shape_cast %19 : vector<1x128xf32> to vector<1x1x128xf32>
    tpu.vector_store %arg10[%c0_16, %c0_17, %c0_18], %23 {strides = array<i32>} : memref<1x1x128xf32, #tpu.memory_space<vmem>>, vector<1x1x128xf32>,
    %c0_19 = arith.constant 0 : index
    %c0_20 = arith.constant 0 : index
    %c0_21 = arith.constant 0 : index
    %24 = vector.load %arg11[%c0_19, %c0_20, %c0_21] : memref<1x1x128xf32, #tpu.memory_space<vmem>>, vector<1x1x128xf32>
    %25 = vector.shape_cast %24 : vector<1x1x128xf32> to vector<1x128xf32>
    %26 = vector.shape_cast %20 : vector<1x128xf32> to vector<1x1x128xf32>
    tpu.vector_store %arg11[%c0_19, %c0_20, %c0_21], %26 {strides = array<i32>} : memref<1x1x128xf32, #tpu.memory_space<vmem>>, vector<1x1x128xf32>,
    return
  }
  func.func @transform_0(%arg0: i32) -> (i32, i32, i32) {
    %c0_i32 = arith.constant 0 : i32
    %c0_i32_0 = arith.constant 0 : i32
    %c0_i32_1 = arith.constant 0 : i32
    return %arg0, %c0_i32, %c0_i32_0 : i32, i32, i32
  }
  func.func @transform_1(%arg0: i32) -> (i32, i32) {
    %c0_i32 = arith.constant 0 : i32
    %c0_i32_0 = arith.constant 0 : i32
    %c0_i32_1 = arith.constant 0 : i32
    return %c0_i32, %c0_i32_0 : i32, i32
  }
  func.func @transform_2(%arg0: i32) -> (i32, i32) {
    %c0_i32 = arith.constant 0 : i32
    %c0_i32_0 = arith.constant 0 : i32
    %c0_i32_1 = arith.constant 0 : i32
    return %c0_i32, %c0_i32_0 : i32, i32
  }
  func.func @transform_3(%arg0: i32) -> (i32, i32) {
    %c0_i32 = arith.constant 0 : i32
    %c0_i32_0 = arith.constant 0 : i32
    %c0_i32_1 = arith.constant 0 : i32
    return %c0_i32, %c0_i32_0 : i32, i32
  }
  func.func @transform_4(%arg0: i32) -> (i32, i32) {
    %c0_i32 = arith.constant 0 : i32
    %c0_i32_0 = arith.constant 0 : i32
    %c0_i32_1 = arith.constant 0 : i32
    return %c0_i32, %c0_i32_0 : i32, i32
  }
  func.func @transform_5(%arg0: i32) -> (i32, i32) {
    %c0_i32 = arith.constant 0 : i32
    %c0_i32_0 = arith.constant 0 : i32
    %c0_i32_1 = arith.constant 0 : i32
    return %c0_i32, %c0_i32_0 : i32, i32
  }
  func.func @transform_6(%arg0: i32) -> (i32, i32, i32) {
    %c0_i32 = arith.constant 0 : i32
    %c0_i32_0 = arith.constant 0 : i32
    %c0_i32_1 = arith.constant 0 : i32
    %c0_i32_2 = arith.constant 0 : i32
    return %c0_i32, %c0_i32_0, %c0_i32_1 : i32, i32, i32
  }
  func.func @transform_7(%arg0: i32) -> (i32, i32, i32) {
    %c0_i32 = arith.constant 0 : i32
    %c0_i32_0 = arith.constant 0 : i32
    %c0_i32_1 = arith.constant 0 : i32
    %c0_i32_2 = arith.constant 0 : i32
    return %c0_i32, %c0_i32_0, %c0_i32_1 : i32, i32, i32
  }
  func.func @transform_8(%arg0: i32) -> (i32, i32, i32) {
    %c0_i32 = arith.constant 0 : i32
    %c0_i32_0 = arith.constant 0 : i32
    %c0_i32_1 = arith.constant 0 : i32
    return %arg0, %c0_i32, %c0_i32_0 : i32, i32, i32
  }
  func.func @transform_9(%arg0: i32) -> (i32, i32, i32) {
    %c0_i32 = arith.constant 0 : i32
    %c0_i32_0 = arith.constant 0 : i32
    %c0_i32_1 = arith.constant 0 : i32
    return %arg0, %c0_i32, %c0_i32_0 : i32, i32, i32
  }
  func.func @transform_10(%arg0: i32) -> (i32, i32, i32) {
    %c0_i32 = arith.constant 0 : i32
    %c0_i32_0 = arith.constant 0 : i32
    %c0_i32_1 = arith.constant 0 : i32
    return %arg0, %c0_i32, %c0_i32_0 : i32, i32, i32
  }
}

module attributes {stable_mosaic.version = 11 : i64} {
  func.func @_linear_kernel(%arg0: i32, %arg1: memref<16x128xbf16, #tpu.memory_space<vmem>>, %arg2: memref<128x128xbf16, #tpu.memory_space<vmem>>, %arg3: memref<1x128xf32, #tpu.memory_space<vmem>>, %arg4: memref<16x128xf32, #tpu.memory_space<vmem>>) attributes {dimension_semantics = [#tpu.dimension_semantics<parallel>], iteration_bounds = array<i64: 2>, scalar_prefetch = 0 : i64, scratch_operands = 0 : i64, tpu.core_type = #tpu.core_type<tc>, window_params = [{transform_indices = @transform_0, window_bounds = array<i64: 16, 128>}, {pipeline_mode = #tpu.pipeline_mode<synchronous>, transform_indices = @transform_1, window_bounds = array<i64: 128, 128>}, {pipeline_mode = #tpu.pipeline_mode<synchronous>, transform_indices = @transform_2, window_bounds = array<i64: 1, 128>}, {transform_indices = @transform_3, window_bounds = array<i64: 16, 128>}]} {
    %c0 = arith.constant 0 : index
    %c0_0 = arith.constant 0 : index
    %0 = vector.load %arg1[%c0, %c0_0] : memref<16x128xbf16, #tpu.memory_space<vmem>>, vector<16x128xbf16>
    %c0_1 = arith.constant 0 : index
    %c0_2 = arith.constant 0 : index
    %1 = vector.load %arg2[%c0_1, %c0_2] : memref<128x128xbf16, #tpu.memory_space<vmem>>, vector<128x128xbf16>
    %cst = arith.constant dense<0.000000e+00> : vector<16x128xf32>
    %2 = tpu.matmul %0, %1, %cst {dimension_numbers = #tpu.dot_dimension_numbers<[1], [0], [0], [1], [0, 0, 1, 1], [], []>} : vector<16x128xbf16>, vector<128x128xbf16>, vector<16x128xf32> -> vector<16x128xf32>
    %c0_3 = arith.constant 0 : index
    %c0_4 = arith.constant 0 : index
    %3 = vector.load %arg3[%c0_3, %c0_4] : memref<1x128xf32, #tpu.memory_space<vmem>>, vector<1x128xf32>
    %4 = vector.broadcast %3 : vector<1x128xf32> to vector<16x128xf32>
    %5 = arith.addf %2, %4 : vector<16x128xf32>
    %c0_5 = arith.constant 0 : index
    %c0_6 = arith.constant 0 : index
    %6 = vector.load %arg4[%c0_5, %c0_6] : memref<16x128xf32, #tpu.memory_space<vmem>>, vector<16x128xf32>
    tpu.vector_store %arg4[%c0_5, %c0_6], %5 {strides = array<i32>} : memref<16x128xf32, #tpu.memory_space<vmem>>, vector<16x128xf32>,
    return
  }
  func.func @transform_0(%arg0: i32) -> (i32, i32) {
    %c0_i32 = arith.constant 0 : i32
    %c0_i32_0 = arith.constant 0 : i32
    return %arg0, %c0_i32 : i32, i32
  }
  func.func @transform_1(%arg0: i32) -> (i32, i32) {
    %c0_i32 = arith.constant 0 : i32
    %c0_i32_0 = arith.constant 0 : i32
    %c0_i32_1 = arith.constant 0 : i32
    return %c0_i32, %c0_i32_0 : i32, i32
  }
  func.func @transform_2(%arg0: i32) -> (i32, i32) {
    %c0_i32 = arith.constant 0 : i32
    %c0_i32_0 = arith.constant 0 : i32
    %c0_i32_1 = arith.constant 0 : i32
    return %c0_i32, %c0_i32_0 : i32, i32
  }
  func.func @transform_3(%arg0: i32) -> (i32, i32) {
    %c0_i32 = arith.constant 0 : i32
    %c0_i32_0 = arith.constant 0 : i32
    return %arg0, %c0_i32 : i32, i32
  }
}

</mosaic_0001>

<bundles_post_ra>
// kernel: _lambda_.6
= control target key start
LH: loop header
LB: loop body
LE: loop exit
PB: predicated region body
PF: predicated region fallthrough
CT: control target
= control target key end

     0   :  { %8 = vsyncpa [#allocation3], 0  ;;  %s523_s12 = smov 0   ;;  %s610_s0 = inlined_call_operand.vmem [shape: bf16[32,128], index: 0, kind: input, shape index: {}]   ;;  %s611_s1 = inlined_call_operand.vmem [shape: bf16[128,128], index: 1, kind: input, shape index: {}]   ;;  %s612_s2 = inlined_call_operand.hbm [shape: f32[1,128], index: 2, kind: input, shape index: {}]   ;;  %s613_s3 = inlined_call_operand.vmem [shape: f32[32,128], index: 3, kind: output, shape index: {}]  }
   0x1 LB: > { %s378_s13 = sadd.s32 4294967295, %s498_s12   ;;  %p380_p0 = scmp.ge.s32.totalorder %s498_s12, 1  ;;  %s498_s12 = sphi %s523_s12, %s14_s12  }
   0x2   : > { %p113_p1 = scmp.lt.s32.totalorder %s498_s12, 3  ;;  %p537_p3 = scmp.eq.s32.totalorder %s378_s13, 0 }
   0x3   : > { %s500_s16 = smov [#allocation2]   ;;  %s460_s21 = scalar_lea.hbm %s612_s2, 16 }
   0x4   : > { %p531_p2 = pnand %p380_p0, %p113_p1  ;;  %s129_s17 = sshll.u32 %s500_s16, 4  ;;  %s130_s17 = int_to_ptr.vmem [resolvable:$true] %s129_s17 }
   0x5   : > { %s618_s15 = scalar_select %p537_p3, 1, 0 }
   0x6   : > { %s617_s14 = scalar_select %p531_p2, 1, 0 }
   0x7   : > { %p434_p4 = pneg %p531_p2  ;;  %p461_p6 = scmp.ne.s32.totalorder %s612_s2, %s460_s21 }
   0x8   : > { %p467_p10 = scmp.lt.u32.totalorder %s460_s21, %s612_s2 }
   0x9   : > { %p545_p5 = pnand %p537_p3, %p434_p4 }
   0xb   : > { %p462_p7 = pneg %p545_p5 }
   0xd   : > { %p463_p8 = pnand %p462_p7, %p461_p6 }
   0xf   : > { %p464_p9 = pneg %p463_p8 }
  0x11   : > { %p469_p11 = pnand %p467_p10, %p464_p9 }
  0x13   : > { %472 = shalt.err (!%p469_p11)
}
  0x14   : > { %s473_s26 = scalar_lea.vmem %s130_s17, 16  ;;  %s480_s27 = scalar_lea.vmem %s130_s17, 32 }
  0x15   : > { %p474_p12 = scmp.ne.s32.totalorder %s130_s17, %s473_s26  ;;  %p481_p1 = scmp.lt.s32.totalorder %s130_s17, %s130_s17 }
  0x16   : > { %p482_p4 = scmp.lt.s32.totalorder %s480_s27, %s473_s26 }
  0x17   : > { %p476_p13 = pnand %p474_p12, %p462_p7 }
  0x18   : > { %p483_p3 = por %p482_p4, %p481_p1 }
  0x19   : > { %p477_p0 = pneg %p476_p13 }
  0x1b   : > { %p484_p2 = pnand %p483_p3, %p477_p0 }
  0x1d   : > { %487 = shalt.err (!%p484_p2)
}
  0x1e   : > { %437 = dma.hbm_to_vmem [thread:$0]  (!%p545_p5), %s612_s2, 16, %s130_s17, [#allocation3]  }
  0x1f   : > { %p620_p6 = scmp.ne.s32.totalorder %s617_s14, 0 }
  0x20   : > { %p621_p8 = scmp.ne.s32.totalorder (!%p620_p6), %s618_s15, 0 }
  0x21   : > { %151 = sbr.rel (%p620_p6) target bundleno = 291 (0x123), region = 32 }
  0x28   : > { %493 = dma.done.wait (%p621_p8), [#allocation3], 16  }
  0x29   : > { %495 = vsyncadd (%p621_p8), [#allocation3], 4294967280  ;;  %s385_s30 = sshll.u32 %s378_s13, 1  ;;  %v501_v0 = vmov 0.0   ;;  %vm502_vm0 = vmmov 0   ;;  %v451_v1 = vld [vmem:[%s611_s1] sm:$0xff]  }
  0x2a   : > { %410 = vmatprep.subr.bf16.mxu0 %v501_v0  ;;  %426 = vmatprep.mubr.msk.bf16.mxu0 %vm502_vm0, %v501_v0  ;;  %p176_p2 = scmp.lt.s32.totalorder %s385_s30, 3  ;;  %v452_v2 = vld [vmem:[%s611_s1 + $0x8] sm:$0xff]   ;;  %v453_v3 = vld [vmem:[%s611_s1 + $0x10] sm:$0xff]   ;;  %v454_v4 = vld [vmem:[%s611_s1 + $0x18] sm:$0xff]  }
  0x2b   : > { %411 = vmatpush3.bf16.msra.mxu0 %v451_v1  ;;  %v455_v5 = vld [vmem:[%s611_s1 + $0x20] sm:$0xff]   ;;  %v456_v6 = vld [vmem:[%s611_s1 + $0x28] sm:$0xff]   ;;  %v457_v7 = vld [vmem:[%s611_s1 + $0x30] sm:$0xff]  }
  0x2c   : > { %s623_s30 = smov (!%p176_p2, %s385_s30), 3  ;;  %412 = vmatprep.subr.bf16.mxu0 %v501_v0  ;;  %v458_v8 = vld [vmem:[%s611_s1 + $0x38] sm:$0xff]   ;;  %v389_v10 = vld [vmem:[#allocation2] ss:$0 sm:$0xff] }
  0x2d   : > { %s386_s8 = sshll.u32 %s623_s30, 2  ;;  %s388_s25 = sshll.u32 %s623_s30, 3 }
  0x2e   : > { %s179_s14 = scalar_lea.vmem %s610_s0, %s386_s8  ;;  %s185_s28 = scalar_lea.vmem %s613_s3, %s388_s25 }
  0x2f   : > { %413 = vmatpush3.bf16.msra.mxu0 %v452_v2  ;;  %v459_v9 = vld [vmem:[%s179_s14] sm:$0xff]  }
  0x30   : > { %414 = vmatprep.subr.bf16.mxu0 %v501_v0 }
  0x33   : > { %415 = vmatpush3.bf16.msra.mxu0 %v453_v3 }
  0x34   : > { %416 = vmatprep.subr.bf16.mxu0 %v501_v0 }
  0x37   : > { %417 = vmatpush3.bf16.msra.mxu0 %v454_v4 }
  0x38   : > { %418 = vmatprep.subr.bf16.mxu0 %v501_v0 }
  0x3b   : > { %419 = vmatpush3.bf16.msra.mxu0 %v455_v5 }
  0x3c   : > { %420 = vmatprep.subr.bf16.mxu0 %v501_v0 }
  0x3f   : > { %421 = vmatpush3.bf16.msra.mxu0 %v456_v6 }
  0x40   : > { %422 = vmatprep.subr.bf16.mxu0 %v501_v0 }
  0x43   : > { %423 = vmatpush3.bf16.msra.mxu0 %v457_v7 }
  0x44   : > { %424 = vmatprep.subr.bf16.mxu0 %v501_v0 }
  0x47   : > { %425 = vmatpush3.bf16.msra.mxu0 %v458_v8 }
  0x4a   : > { %427 = vmatmul.mubr.bf16.vlgmr.msra.gmra.mrb[0].mxu0 %v459_v9 }
 0x11d   : > { %v301_v11 = vpop.f32.mrb[0].mxu0 }
 0x11e   : > { %v302_v12 = vadd.f32 %v389_v10, %v301_v11  ;;  %v428_v13 = vpop.f32.mrb[1].mxu0 }
 0x11f   : > { %v304_v14 = vpop.f32.mrb[2].mxu0 }
 0x120   : > { %308 = vst [vmem:[%s185_s28] sm:$0xff] %v302_v12  ;;  %v305_v15 = vadd.f32 %v389_v10, %v304_v14  ;;  %v429_v16 = vpop.f32.mrb[3].mxu0 }
 0x122   : > { %309 = vst [vmem:[%s185_s28 + $0x8] sm:$0xff] %v305_v15 }
 0x123 PF: > { %s14_s12 = sadd.s32 1, %s498_s12  }
 0x124   : > { %p11_p3 = scmp.ge.s32.totalorder %s14_s12, 4  }
 0x126   :  { %13 = sbr.rel (!%p11_p3) target bundleno = 1 (0x1), region = 67 }
 0x12d   :  { %332 = vsyncpa [#allocation3], 1 }
 0x12e   :  { %334 = vsyncpa [#allocation3 + $0x1], 1 }

// kernel: _lambda_.8
= control target key start
LH: loop header
LB: loop body
LE: loop exit
PB: predicated region body
PF: predicated region fallthrough
CT: control target
= control target key end

     0   :  { %s4554_s13 = smov 0   ;;  %s5747_s0 = inlined_call_operand.vmem [shape: f32[2,4,256], index: 0, kind: input, shape index: {}]   ;;  %s5748_s1 = inlined_call_operand.vmem [shape: f32[256,256], index: 1, kind: input, shape index: {}]   ;;  %s5749_s2 = inlined_call_operand.vmem [shape: f32[3,4], index: 2, kind: input, shape index: {}]   ;;  %s5750_s3 = inlined_call_operand.vmem [shape: f32[3,4], index: 3, kind: input, shape index: {}]   ;;  %s5751_s4 = inlined_call_operand.vmem [shape: f32[4,3], index: 4, kind: input, shape index: {}]   ;;  %s5752_s5 = inlined_call_operand.vmem [shape: f32[4,3], index: 5, kind: input, shape index: {}]   ;;  %s5753_s6 = inlined_call_operand.vmem [shape: bf16[16,512,256], index: 6, kind: input, shape index: {}]   ;;  %s5754_s7 = inlined_call_operand.vmem [shape: bf16[16,256,256], index: 7, kind: input, shape index: {}]   ;;  %s5755_s8 = inlined_call_operand.vmem [shape: f32[2,4,128], index: 8, kind: output, shape index: {0}]   ;;  %s5756_s9 = inlined_call_operand.vmem [shape: f32[2,4,128], index: 9, kind: output, shape index: {1}]   ;;  %s5757_s10 = inlined_call_operand.vmem [shape: f32[2,4,128], index: 10, kind: output, shape index: {2}]  }
   0x1 LB: > { %s3401_s14 = sadd.s32 4294967295, %s4495_s13   ;;  %p3405_p0 = scmp.ge.s32.totalorder %s4495_s13, 1  ;;  %s4495_s13 = sphi %s4554_s13, %s21_s13  }
   0x2   : > { %p317_p1 = scmp.lt.s32.totalorder %s4495_s13, 3 }
   0x4   : > { %p318_p2 = pnand %p3405_p0, %p317_p1 }
   0x5   : > { %v381_v0 = vld [vmem:[%s5748_s1 + $0x8] sm:$0xff] (!%p318_p2)  ;;  %v383_v1 = vld [vmem:[%s5748_s1 + $0x18] sm:$0xff] (!%p318_p2)  ;;  %v380_v2 = vld [vmem:[%s5748_s1] sm:$0xff] (!%p318_p2)  ;;  %p362_p3 = scmp.lt.s32.totalorder (!%p318_p2), %s3401_s14, 1  ;;  %vm4498_vm0 = vmmov (!%p318_p2), 0   ;;  %vm525_vm1 = vcmask (!%p318_p2), 1043456  }
   0x6   : > { %321 = sbr.rel (%p318_p2) target bundleno = 1210 (0x4ba), region = 52  ;;  %v3966_v3 = vpack.c.bf16 (!%p318_p2), %v383_v1, %v381_v0  ;;  %v382_v4 = vld [vmem:[%s5748_s1 + $0x10] sm:$0xff] (!%p318_p2)  ;;  %v385_v5 = vld [vmem:[%s5748_s1 + $0x28] sm:$0xff] (!%p318_p2)  ;;  %v387_v6 = vld [vmem:[%s5748_s1 + $0x38] sm:$0xff] (!%p318_p2)  ;;  %vm521_vm2 = vcmask (!%p318_p2), 31744   ;;  %vm2960_vm3 = vcmask (!%p318_p2), 1040384  }
   0x7   : > { %v3968_v7 = vpack.c.bf16 (!%p318_p2), %v382_v4, %v380_v2  ;;  %v3970_v8 = vpack.c.bf16 (!%p318_p2), %v387_v6, %v385_v5  ;;  %v384_v9 = vld [vmem:[%s5748_s1 + $0x20] sm:$0xff] (!%p318_p2)  ;;  %v386_v10 = vld [vmem:[%s5748_s1 + $0x30] sm:$0xff] (!%p318_p2)  ;;  %v389_v11 = vld [vmem:[%s5748_s1 + $0x48] sm:$0xff] (!%p318_p2)  ;;  %vm2963_vm4 = vcmask (!%p318_p2), 1041408   ;;  %vm2988_vm5 = vcmask (!%p318_p2), 1042432  }
   0x8   : > { %3967 = vmatprep.subr.bf16.mxu0 (!%p318_p2), %v3966_v3  ;;  %v391_v12 = vld [vmem:[%s5748_s1 + $0x58] sm:$0xff] (!%p318_p2)  ;;  %v3972_v13 = vpack.c.bf16 (!%p318_p2), %v386_v10, %v384_v9  ;;  %v388_v15 = vld [vmem:[%s5748_s1 + $0x40] sm:$0xff] (!%p318_p2)  ;;  %v390_v16 = vld [vmem:[%s5748_s1 + $0x50] sm:$0xff] (!%p318_p2)  ;;  %vm2984_vm6 = vcmask (!%p318_p2), 23552  }
   0x9   : > { %3969 = vmatpush1.bf16.msra.mxu0 (!%p318_p2), %v3968_v7  ;;  %v3974_v14 = vpack.c.bf16 (!%p318_p2), %v391_v12, %v389_v11  ;;  %v393_v17 = vld [vmem:[%s5748_s1 + $0x68] sm:$0xff] (!%p318_p2)  ;;  %v395_v18 = vld [vmem:[%s5748_s1 + $0x78] sm:$0xff] (!%p318_p2)  ;;  %v3976_v19 = vpack.c.bf16 (!%p318_p2), %v390_v16, %v388_v15  ;;  %v392_v21 = vld [vmem:[%s5748_s1 + $0x60] sm:$0xff] (!%p318_p2) }
   0xa   : > { %3971 = vmatprep.subr.bf16.mxu0 (!%p318_p2), %v3970_v8  ;;  %v3978_v20 = vpack.c.bf16 (!%p318_p2), %v395_v18, %v393_v17  ;;  %v394_v22 = vld [vmem:[%s5748_s1 + $0x70] sm:$0xff] (!%p318_p2)  ;;  %v397_v23 = vld [vmem:[%s5748_s1 + $0x88] sm:$0xff] (!%p318_p2)  ;;  %v399_v24 = vld [vmem:[%s5748_s1 + $0x98] sm:$0xff] (!%p318_p2) }
   0xb   : > { %v3980_v25 = vpack.c.bf16 (!%p318_p2), %v394_v22, %v392_v21  ;;  %v3982_v26 = vpack.c.bf16 (!%p318_p2), %v399_v24, %v397_v23  ;;  %v396_v27 = vld [vmem:[%s5748_s1 + $0x80] sm:$0xff] (!%p318_p2)  ;;  %v398_v28 = vld [vmem:[%s5748_s1 + $0x90] sm:$0xff] (!%p318_p2)  ;;  %v401_v29 = vld [vmem:[%s5748_s1 + $0xa8] sm:$0xff] (!%p318_p2) }
   0xc   : > { %v403_v30 = vld [vmem:[%s5748_s1 + $0xb8] sm:$0xff] (!%p318_p2)  ;;  %v3984_v31 = vpack.c.bf16 (!%p318_p2), %v398_v28, %v396_v27  ;;  %v400_v33 = vld [vmem:[%s5748_s1 + $0xa0] sm:$0xff] (!%p318_p2)  ;;  %v402_v34 = vld [vmem:[%s5748_s1 + $0xb0] sm:$0xff] (!%p318_p2) }
   0xd   : > { %3973 = vmatpush1.bf16.msra.mxu0 %v3972_v13  ;;  %s5759_s14 = smov (!%p362_p3, %s3401_s14), 1  ;;  %v3986_v32 = vpack.c.bf16 %v403_v30, %v401_v29  ;;  %v405_v35 = vld [vmem:[%s5748_s1 + $0xc8] sm:$0xff]  ;;  %v407_v36 = vld [vmem:[%s5748_s1 + $0xd8] sm:$0xff]  ;;  %v3988_v37 = vpack.c.bf16 %v402_v34, %v400_v33  ;;  %v404_v38 = vld [vmem:[%s5748_s1 + $0xc0] sm:$0xff]  ;;  %v4497_v34 = vmov 0.0  }
   0xe   : > { %3975 = vmatprep.subr.bf16.mxu0 %v3974_v14  ;;  %s3909_s23 = sshll.u32 %s5759_s14, 3  ;;  %v406_v39 = vld [vmem:[%s5748_s1 + $0xd0] sm:$0xff]  ;;  %v409_v40 = vld [vmem:[%s5748_s1 + $0xe8] sm:$0xff]  ;;  %v3990_v41 = vpack.c.bf16 %v407_v36, %v405_v35  ;;  %v411_v42 = vld [vmem:[%s5748_s1 + $0xf8] sm:$0xff]  ;;  %3926 = vmatprep.subr.mxu1 %v4497_v34  ;;  %s4863_s27 = sshll.u32 %s5759_s14, 2 }
   0xf   : > { %s366_s16 = scalar_lea.vmem %s5747_s0, %s3909_s23  ;;  %v408_v45 = vld [vmem:[%s5748_s1 + $0xe0] sm:$0xff]  ;;  %v410_v46 = vld [vmem:[%s5748_s1 + $0xf0] sm:$0xff]  ;;  %v3992_v47 = vpack.c.bf16 %v406_v39, %v404_v38  ;;  %v413_v48 = vld [vmem:[%s5748_s1 + $0x108] sm:$0xff]  ;;  %v3994_v50 = vpack.c.bf16 %v411_v42, %v409_v40  ;;  %3928 = vmatprep.mubr.msk.f32.mxu1 %vm4498_vm0, %v4497_v34  ;;  %s370_s30 = scalar_lea.vmem %s5755_s8, %s4863_s27 }
  0x10   : > { %v4662_v43 = vld [vmem:[%s366_s16] sm:$0xff]  ;;  %v415_v49 = vld [vmem:[%s5748_s1 + $0x118] sm:$0xff]  ;;  %v414_v52 = vld [vmem:[%s5748_s1 + $0x110] sm:$0xff]  ;;  %v3996_v53 = vpack.c.bf16 %v410_v46, %v408_v45  ;;  %s374_s16 = scalar_lea.vmem %s5756_s9, %s4863_s27  ;;  %s378_s19 = scalar_lea.vmem %s5757_s10, %s4863_s27 }
  0x11   : > { %3977 = vmatpush1.bf16.msra.mxu0 %v3976_v19  ;;  %v445_v44 = vcombine.high %v4662_v43, %v4662_v43  ;;  %v412_v51 = vld [vmem:[%s5748_s1 + $0x100] sm:$0xff]  ;;  %v417_v54 = vld [vmem:[%s5748_s1 + $0x128] sm:$0xff]  ;;  %v419_v55 = vld [vmem:[%s5748_s1 + $0x138] sm:$0xff]  ;;  %v3998_v56 = vpack.c.bf16 %v415_v49, %v413_v48 }
  0x12   : > { %3979 = vmatprep.subr.bf16.mxu0 %v3978_v20  ;;  %v416_v57 = vld [vmem:[%s5748_s1 + $0x120] sm:$0xff]  ;;  %v418_v58 = vld [vmem:[%s5748_s1 + $0x130] sm:$0xff]  ;;  %v4000_v59 = vpack.c.bf16 %v414_v52, %v412_v51  ;;  %v421_v60 = vld [vmem:[%s5748_s1 + $0x148] sm:$0xff]  ;;  %v4002_v62 = vpack.c.bf16 %v419_v55, %v417_v54 }
  0x13   : > { %511 = vmatprep.mubr.f32.mxu0 %v445_v44  ;;  %v423_v61 = vld [vmem:[%s5748_s1 + $0x158] sm:$0xff]  ;;  %v420_v63 = vld [vmem:[%s5748_s1 + $0x140] sm:$0xff]  ;;  %v422_v0 = vld [vmem:[%s5748_s1 + $0x150] sm:$0xff]  ;;  %v4004_v1 = vpack.c.bf16 %v418_v58, %v416_v57 }
  0x14   : > { %v425_v2 = vld [vmem:[%s5748_s1 + $0x168] sm:$0xff]  ;;  %v427_v3 = vld [vmem:[%s5748_s1 + $0x178] sm:$0xff]  ;;  %v4006_v4 = vpack.c.bf16 %v423_v61, %v421_v60  ;;  %v424_v5 = vld [vmem:[%s5748_s1 + $0x160] sm:$0xff]  ;;  %v4008_v7 = vpack.c.bf16 %v422_v0, %v420_v63 }
  0x15   : > { %3981 = vmatpush1.bf16.msra.mxu0 %v3980_v25  ;;  %v426_v6 = vld [vmem:[%s5748_s1 + $0x170] sm:$0xff]  ;;  %v429_v8 = vld [vmem:[%s5748_s1 + $0x188] sm:$0xff]  ;;  %v431_v9 = vld [vmem:[%s5748_s1 + $0x198] sm:$0xff]  ;;  %v4010_v10 = vpack.c.bf16 %v427_v3, %v425_v2 }
  0x16   : > { %3983 = vmatprep.subr.bf16.mxu0 %v3982_v26  ;;  %v428_v11 = vld [vmem:[%s5748_s1 + $0x180] sm:$0xff]  ;;  %v430_v12 = vld [vmem:[%s5748_s1 + $0x190] sm:$0xff]  ;;  %v4012_v13 = vpack.c.bf16 %v426_v6, %v424_v5  ;;  %v433_v14 = vld [vmem:[%s5748_s1 + $0x1a8] sm:$0xff]  ;;  %v4014_v16 = vpack.c.bf16 %v431_v9, %v429_v8 }
  0x17   : > { %v435_v15 = vld [vmem:[%s5748_s1 + $0x1b8] sm:$0xff]  ;;  %v432_v17 = vld [vmem:[%s5748_s1 + $0x1a0] sm:$0xff]  ;;  %v434_v18 = vld [vmem:[%s5748_s1 + $0x1b0] sm:$0xff]  ;;  %v4016_v19 = vpack.c.bf16 %v430_v12, %v428_v11 }
  0x18   : > { %v437_v20 = vld [vmem:[%s5748_s1 + $0x1c8] sm:$0xff]  ;;  %v439_v21 = vld [vmem:[%s5748_s1 + $0x1d8] sm:$0xff]  ;;  %v4018_v22 = vpack.c.bf16 %v435_v15, %v433_v14  ;;  %v436_v23 = vld [vmem:[%s5748_s1 + $0x1c0] sm:$0xff]  ;;  %v4020_v25 = vpack.c.bf16 %v434_v18, %v432_v17 }
  0x19   : > { %3985 = vmatpush1.bf16.msra.mxu0 %v3984_v31  ;;  %v438_v24 = vld [vmem:[%s5748_s1 + $0x1d0] sm:$0xff]  ;;  %v441_v26 = vld [vmem:[%s5748_s1 + $0x1e8] sm:$0xff]  ;;  %v443_v27 = vld [vmem:[%s5748_s1 + $0x1f8] sm:$0xff]  ;;  %v4022_v28 = vpack.c.bf16 %v439_v21, %v437_v20 }
  0x1a   : > { %3987 = vmatprep.subr.bf16.mxu0 %v3986_v32  ;;  %v440_v29 = vld [vmem:[%s5748_s1 + $0x1e0] sm:$0xff]  ;;  %v442_v30 = vld [vmem:[%s5748_s1 + $0x1f0] sm:$0xff]  ;;  %v4024_v31 = vpack.c.bf16 %v438_v24, %v436_v23  ;;  %v4026_v32 = vpack.c.bf16 %v443_v27, %v441_v26 }
  0x1b   : > { %v4028_v33 = vpack.c.bf16 %v442_v30, %v440_v29  ;;  %v4060_v35 = vld [vmem:[%s5754_s7] ss:$8 sps:$4 sm:$0xff]   ;;  %v4062_v36 = vld [vmem:[%s5754_s7 + $0x4] ss:$8 sps:$4 sm:$0xff]   ;;  %v4066_v38 = vld [vmem:[%s5754_s7 + $0x10] ss:$8 sps:$4 sm:$0xff]  }
  0x1c   : > { %v4074_v39 = vld [vmem:[%s5754_s7 + $0x24] ss:$8 sps:$4 sm:$0xff]   ;;  %v4072_v40 = vld [vmem:[%s5754_s7 + $0x20] ss:$8 sps:$4 sm:$0xff]   ;;  %v4078_v42 = vld [vmem:[%s5754_s7 + $0x30] ss:$8 sps:$4 sm:$0xff]  }
  0x1d   : > { %3989 = vmatpush1.bf16.msra.mxu0 %v3988_v37  ;;  %v4068_v37 = vld [vmem:[%s5754_s7 + $0x14] ss:$8 sps:$4 sm:$0xff]   ;;  %v4084_v44 = vld [vmem:[%s5754_s7 + $0x40] ss:$8 sps:$4 sm:$0xff]   ;;  %v4090_v46 = vld [vmem:[%s5754_s7 + $0x50] ss:$8 sps:$4 sm:$0xff]  }
  0x1e   : > { %3991 = vmatprep.subr.bf16.mxu0 %v3990_v41  ;;  %v4080_v41 = vld [vmem:[%s5754_s7 + $0x34] ss:$8 sps:$4 sm:$0xff]   ;;  %v4096_v48 = vld [vmem:[%s5754_s7 + $0x60] ss:$8 sps:$4 sm:$0xff]   ;;  %v4110_v51 = vld [vmem:[%s5754_s7 + $0x84] ss:$8 sps:$4 sm:$0xff]  }
  0x1f   : > { %v4092_v45 = vld [vmem:[%s5754_s7 + $0x54] ss:$8 sps:$4 sm:$0xff]   ;;  %v4108_v52 = vld [vmem:[%s5754_s7 + $0x80] ss:$8 sps:$4 sm:$0xff]   ;;  %v4114_v54 = vld [vmem:[%s5754_s7 + $0x90] ss:$8 sps:$4 sm:$0xff]  }
  0x20   : > { %v4104_v49 = vld [vmem:[%s5754_s7 + $0x74] ss:$8 sps:$4 sm:$0xff]   ;;  %v4122_v55 = vld [vmem:[%s5754_s7 + $0xa4] ss:$8 sps:$4 sm:$0xff]   ;;  %v4126_v58 = vld [vmem:[%s5754_s7 + $0xb0] ss:$8 sps:$4 sm:$0xff]  }
  0x21   : > { %3993 = vmatpush1.bf16.msra.mxu0 %v3992_v47  ;;  %v4098_v47 = vld [vmem:[%s5754_s7 + $0x64] ss:$8 sps:$4 sm:$0xff]   ;;  %v4128_v57 = vld [vmem:[%s5754_s7 + $0xb4] ss:$8 sps:$4 sm:$0xff]   ;;  %v4132_v60 = vld [vmem:[%s5754_s7 + $0xc0] ss:$8 sps:$4 sm:$0xff]  }
  0x22   : > { %3995 = vmatprep.subr.bf16.mxu0 %v3994_v50  ;;  %v4102_v50 = vld [vmem:[%s5754_s7 + $0x70] ss:$8 sps:$4 sm:$0xff]   ;;  %v4140_v61 = vld [vmem:[%s5754_s7 + $0xd4] ss:$8 sps:$4 sm:$0xff]   ;;  %v4146_v63 = vld [vmem:[%s5754_s7 + $0xe4] ss:$8 sps:$4 sm:$0xff]  }
  0x23   : > { %v4144_v0 = vld [vmem:[%s5754_s7 + $0xe0] ss:$8 sps:$4 sm:$0xff]   ;;  %v4059_v5 = vld [vmem:[%s5753_s6 + $0x4] ss:$8 sps:$4 sm:$0xff]   ;;  %v4063_v8 = vld [vmem:[%s5753_s6 + $0x10] ss:$8 sps:$4 sm:$0xff]  }
  0x24   : > { %v4057_v6 = vld [vmem:[%s5753_s6] ss:$8 sps:$4 sm:$0xff]   ;;  %v4071_v9 = vld [vmem:[%s5753_s6 + $0x24] ss:$8 sps:$4 sm:$0xff]   ;;  %v4077_v11 = vld [vmem:[%s5753_s6 + $0x34] ss:$8 sps:$4 sm:$0xff]  }
  0x25   : > { %3997 = vmatpush1.bf16.msra.mxu0 %v3996_v53  ;;  %v4116_v53 = vld [vmem:[%s5754_s7 + $0x94] ss:$8 sps:$4 sm:$0xff]   ;;  %v4075_v12 = vld [vmem:[%s5753_s6 + $0x30] ss:$8 sps:$4 sm:$0xff]   ;;  %v4081_v14 = vld [vmem:[%s5753_s6 + $0x40] ss:$8 sps:$4 sm:$0xff]  }
  0x26   : > { %3999 = vmatprep.subr.bf16.mxu0 %v3998_v56  ;;  %v4120_v56 = vld [vmem:[%s5754_s7 + $0xa0] ss:$8 sps:$4 sm:$0xff]   ;;  %v4089_v15 = vld [vmem:[%s5753_s6 + $0x54] ss:$8 sps:$4 sm:$0xff]   ;;  %v4095_v17 = vld [vmem:[%s5753_s6 + $0x64] ss:$8 sps:$4 sm:$0xff]  }
  0x27   : > { %v4093_v18 = vld [vmem:[%s5753_s6 + $0x60] ss:$8 sps:$4 sm:$0xff]   ;;  %v4099_v20 = vld [vmem:[%s5753_s6 + $0x70] ss:$8 sps:$4 sm:$0xff]   ;;  %v4107_v21 = vld [vmem:[%s5753_s6 + $0x84] ss:$8 sps:$4 sm:$0xff]  }
  0x28   : > { %v4113_v23 = vld [vmem:[%s5753_s6 + $0x94] ss:$8 sps:$4 sm:$0xff]   ;;  %v4111_v24 = vld [vmem:[%s5753_s6 + $0x90] ss:$8 sps:$4 sm:$0xff]   ;;  %v4117_v26 = vld [vmem:[%s5753_s6 + $0xa0] ss:$8 sps:$4 sm:$0xff]  }
  0x29   : > { %4001 = vmatpush1.bf16.msra.mxu0 %v4000_v59  ;;  %v4134_v59 = vld [vmem:[%s5754_s7 + $0xc4] ss:$8 sps:$4 sm:$0xff]   ;;  %v4125_v27 = vld [vmem:[%s5753_s6 + $0xb4] ss:$8 sps:$4 sm:$0xff]   ;;  %v4129_v30 = vld [vmem:[%s5753_s6 + $0xc0] ss:$8 sps:$4 sm:$0xff]  }
  0x2a   : > { %4003 = vmatprep.subr.bf16.mxu0 %v4002_v62  ;;  %v4138_v62 = vld [vmem:[%s5754_s7 + $0xd0] ss:$8 sps:$4 sm:$0xff]   ;;  %v4131_v29 = vld [vmem:[%s5753_s6 + $0xc4] ss:$8 sps:$4 sm:$0xff]  }
  0x2d   : > { %4005 = vmatpush1.bf16.msra.mxu0 %v4004_v1  ;;  %v519_v1 = vld [vmem:[%s5749_s2] sm:$0x7] }
  0x2e   : > { %4007 = vmatprep.subr.bf16.mxu0 %v4006_v4  ;;  %v520_v4 = vld [vmem:[%s5750_s3] sm:$0x7] }
  0x31   : > { %4009 = vmatpush1.bf16.msra.mxu0 %v4008_v7  ;;  %v4065_v7 = vld [vmem:[%s5753_s6 + $0x14] ss:$8 sps:$4 sm:$0xff]  }
  0x32   : > { %4011 = vmatprep.subr.bf16.mxu0 %v4010_v10  ;;  %v4069_v10 = vld [vmem:[%s5753_s6 + $0x20] ss:$8 sps:$4 sm:$0xff]  }
  0x35   : > { %4013 = vmatpush1.bf16.msra.mxu0 %v4012_v13  ;;  %v4083_v13 = vld [vmem:[%s5753_s6 + $0x44] ss:$8 sps:$4 sm:$0xff]  }
  0x36   : > { %4015 = vmatprep.subr.bf16.mxu0 %v4014_v16  ;;  %v4087_v16 = vld [vmem:[%s5753_s6 + $0x50] ss:$8 sps:$4 sm:$0xff]  }
  0x39   : > { %4017 = vmatpush1.bf16.msra.mxu0 %v4016_v19  ;;  %v4101_v19 = vld [vmem:[%s5753_s6 + $0x74] ss:$8 sps:$4 sm:$0xff]  }
  0x3a   : > { %4019 = vmatprep.subr.bf16.mxu0 %v4018_v22  ;;  %v4105_v22 = vld [vmem:[%s5753_s6 + $0x80] ss:$8 sps:$4 sm:$0xff]  }
  0x3d   : > { %4021 = vmatpush1.bf16.msra.mxu0 %v4020_v25  ;;  %v4119_v25 = vld [vmem:[%s5753_s6 + $0xa4] ss:$8 sps:$4 sm:$0xff]  }
  0x3e   : > { %4023 = vmatprep.subr.bf16.mxu0 %v4022_v28  ;;  %v4123_v28 = vld [vmem:[%s5753_s6 + $0xb0] ss:$8 sps:$4 sm:$0xff]  }
  0x41   : > { %4025 = vmatpush1.bf16.msra.mxu0 %v4024_v31  ;;  %v4137_v31 = vld [vmem:[%s5753_s6 + $0xd4] ss:$8 sps:$4 sm:$0xff]  }
  0x42   : > { %4027 = vmatprep.subr.bf16.mxu0 %v4026_v32  ;;  %v4135_v32 = vld [vmem:[%s5753_s6 + $0xd0] ss:$8 sps:$4 sm:$0xff]  }
  0x45   : > { %4029 = vmatpush1.bf16.msra.mxu0 %v4028_v33  ;;  %v4143_v33 = vld [vmem:[%s5753_s6 + $0xe4] ss:$8 sps:$4 sm:$0xff]  }
  0x46   : > { %1477 = vmatprep.subr.bf16.mxu0 %v4062_v36  ;;  %v4147_v36 = vld [vmem:[%s5753_s6 + $0xf0] ss:$8 sps:$4 sm:$0xff]  }
  0x48   : > { %512 = vmatmul.mubr.f32.vlgmr.msra.gmra.mrb[0].mxu0 %v4662_v43  ;;  %v4086_v43 = vld [vmem:[%s5754_s7 + $0x44] ss:$8 sps:$4 sm:$0xff]  }
  0x49   : > { %1478 = vmatpush1.bf16.msra.mxu0 %v4060_v35  ;;  %v4141_v35 = vld [vmem:[%s5753_s6 + $0xe0] ss:$8 sps:$4 sm:$0xff]  }
  0x4a   : > { %1479 = vmatprep.subr.bf16.mxu0 %v4068_v37  ;;  %v4149_v37 = vld [vmem:[%s5753_s6 + $0xf4] ss:$8 sps:$4 sm:$0xff]  }
  0x4d   : > { %1480 = vmatpush1.bf16.msra.mxu0 %v4066_v38  ;;  %v4150_v38 = vld [vmem:[%s5754_s7 + $0xf0] ss:$8 sps:$4 sm:$0xff]  }
  0x4e   : > { %1481 = vmatprep.subr.bf16.mxu0 %v4074_v39  ;;  %v4152_v39 = vld [vmem:[%s5754_s7 + $0xf4] ss:$8 sps:$4 sm:$0xff]  }
  0x51   : > { %1482 = vmatpush1.bf16.msra.mxu0 %v4072_v40  ;;  %v4155_v40 = vld [vmem:[%s5753_s6 + $0x104] ss:$8 sps:$4 sm:$0xff]  }
  0x52   : > { %1483 = vmatprep.subr.bf16.mxu0 %v4080_v41  ;;  %v4158_v41 = vld [vmem:[%s5753_s6 + $0x204] ss:$8 sps:$4 sm:$0xff]  }
  0x55   : > { %1484 = vmatpush1.bf16.msra.mxu0 %v4078_v42 }
  0x56   : > { %1485 = vmatprep.subr.bf16.mxu0 %v4086_v43 }
  0x59   : > { %1486 = vmatpush1.bf16.msra.mxu0 %v4084_v44 }
  0x5a   : > { %1487 = vmatprep.subr.bf16.mxu0 %v4092_v45 }
  0x5d   : > { %1488 = vmatpush1.bf16.msra.mxu0 %v4090_v46 }
  0x5e   : > { %1489 = vmatprep.subr.bf16.mxu0 %v4098_v47  ;;  %v4153_v47 = vld [vmem:[%s5753_s6 + $0x100] ss:$8 sps:$4 sm:$0xff]  }
  0x61   : > { %1490 = vmatpush1.bf16.msra.mxu0 %v4096_v48  ;;  %v4156_v48 = vld [vmem:[%s5753_s6 + $0x200] ss:$8 sps:$4 sm:$0xff]  }
  0x62   : > { %1491 = vmatprep.subr.bf16.mxu0 %v4104_v49 }
  0x65   : > { %1492 = vmatpush1.bf16.msra.mxu0 %v4102_v50  ;;  %v4161_v50 = vld [vmem:[%s5753_s6 + $0x114] ss:$8 sps:$4 sm:$0xff]  }
  0x66   : > { %1493 = vmatprep.subr.bf16.mxu0 %v4110_v51 }
  0x69   : > { %1494 = vmatpush1.bf16.msra.mxu0 %v4108_v52  ;;  %v4164_v52 = vld [vmem:[%s5753_s6 + $0x214] ss:$8 sps:$4 sm:$0xff]  }
  0x6a   : > { %1495 = vmatprep.subr.bf16.mxu0 %v4116_v53 }
  0x6d   : > { %1496 = vmatpush1.bf16.msra.mxu0 %v4114_v54  ;;  %v4159_v54 = vld [vmem:[%s5753_s6 + $0x110] ss:$8 sps:$4 sm:$0xff]  }
  0x6e   : > { %1497 = vmatprep.subr.bf16.mxu0 %v4122_v55  ;;  %v4162_v55 = vld [vmem:[%s5753_s6 + $0x210] ss:$8 sps:$4 sm:$0xff]  }
  0x71   : > { %1498 = vmatpush1.bf16.msra.mxu0 %v4120_v56 }
  0x72   : > { %1499 = vmatprep.subr.bf16.mxu0 %v4128_v57  ;;  %v4167_v57 = vld [vmem:[%s5753_s6 + $0x124] ss:$8 sps:$4 sm:$0xff]  }
  0x75   : > { %1500 = vmatpush1.bf16.msra.mxu0 %v4126_v58  ;;  %v4170_v58 = vld [vmem:[%s5753_s6 + $0x224] ss:$8 sps:$4 sm:$0xff]  }
  0x76   : > { %1501 = vmatprep.subr.bf16.mxu0 %v4134_v59 }
  0x79   : > { %1502 = vmatpush1.bf16.msra.mxu0 %v4132_v60  ;;  %v4165_v60 = vld [vmem:[%s5753_s6 + $0x120] ss:$8 sps:$4 sm:$0xff]  }
  0x7a   : > { %1503 = vmatprep.subr.bf16.mxu0 %v4140_v61  ;;  %v4168_v61 = vld [vmem:[%s5753_s6 + $0x220] ss:$8 sps:$4 sm:$0xff]  }
  0x7d   : > { %1504 = vmatpush1.bf16.msra.mxu0 %v4138_v62 }
  0x7e   : > { %1505 = vmatprep.subr.bf16.mxu0 %v4146_v63 }
  0x81   : > { %1506 = vmatpush1.bf16.msra.mxu0 %v4144_v0  ;;  %v4173_v0 = vld [vmem:[%s5753_s6 + $0x134] ss:$8 sps:$4 sm:$0xff]  }
  0x82   : > { %1507 = vmatprep.subr.bf16.mxu0 %v4152_v39  ;;  %v4225_v39 = vld [vmem:[%s5753_s6 + $0x1c0] ss:$8 sps:$4 sm:$0xff]  }
  0x85   : > { %1508 = vmatpush1.bf16.msra.mxu0 %v4150_v38  ;;  %v4230_v38 = vld [vmem:[%s5753_s6 + $0x2c4] ss:$8 sps:$4 sm:$0xff]  }
  0x86   : > { %1919 = vmatprep.subr.bf16.mxu0 %v4158_v41  ;;  %v4233_v41 = vld [vmem:[%s5753_s6 + $0x1d4] ss:$8 sps:$4 sm:$0xff]  }
 0x11b   : > { %v513_v2 = vpop.f32.mrb[0].mxu0 }
 0x11c   : > { %v515_v3 = vpop.f32.mrb[1].mxu0  ;;  %3927 = vmatpush3.msk.msra.mxu1 %vm525_vm1, %v513_v2 }
 0x11d   : > { %518 = vst [vmem:[%s370_s30] sm:$0xf] %v515_v3  ;;  %3929 = vmatmul.mubr.msk.f32.vlgmr.msra.gmra.mrb[0].mxu1 %vm521_vm2, %v519_v1  ;;  %3931 = vmatprep.subr.mxu1 %v4497_v34 }
 0x11e   : > { %3932 = vmatpush3.msk.msra.mxu1 %vm525_vm1, %v513_v2  ;;  %3933 = vmatprep.mubr.msk.f32.mxu1 %vm4498_vm0, %v4497_v34  ;;  %v4171_v2 = vld [vmem:[%s5753_s6 + $0x130] ss:$8 sps:$4 sm:$0xff]  }
 0x11f   : > { %3936 = vmatprep.subr.mxu1 %v4497_v34 }
 0x121   : > { %3934 = vmatmul.mubr.msk.f32.vlgmr.msra.gmra.mrb[2].mxu1 %vm521_vm2, %v520_v4 }
 0x122   : > { %3937 = vmatpush3.msk.msra.mxu1 %vm525_vm1, %v515_v3  ;;  %3938 = vmatprep.mubr.msk.f32.mxu1 %vm4498_vm0, %v4497_v34 }
 0x123   : > { %3941 = vmatprep.subr.mxu1 %v4497_v34 }
 0x125   : > { %3939 = vmatmul.mubr.msk.f32.vlgmr.msra.gmra.mrb[4].mxu1 %vm521_vm2, %v519_v1  ;;  %v4176_v1 = vld [vmem:[%s5753_s6 + $0x234] ss:$8 sps:$4 sm:$0xff]  }
 0x126   : > { %3942 = vmatpush3.msk.msra.mxu1 %vm525_vm1, %v515_v3  ;;  %3943 = vmatprep.mubr.msk.f32.mxu1 %vm4498_vm0, %v4497_v34  ;;  %v4174_v3 = vld [vmem:[%s5753_s6 + $0x230] ss:$8 sps:$4 sm:$0xff]  }
 0x127   : > { %1203 = vmatprep.subr.bf16.mxu1 %v4059_v5  ;;  %v4182_v5 = vld [vmem:[%s5753_s6 + $0x244] ss:$8 sps:$4 sm:$0xff]  }
 0x129   : > { %3944 = vmatmul.mubr.msk.f32.vlgmr.msra.gmra.mrb[6].mxu1 %vm521_vm2, %v520_v4  ;;  %v4179_v4 = vld [vmem:[%s5753_s6 + $0x144] ss:$8 sps:$4 sm:$0xff]  }
 0x12a   : > { %1204 = vmatpush1.bf16.msra.mxu1 %v4057_v6  ;;  %v4177_v6 = vld [vmem:[%s5753_s6 + $0x140] ss:$8 sps:$4 sm:$0xff]  }
 0x12b   : > { %1205 = vmatprep.subr.bf16.mxu1 %v4065_v7  ;;  %v4180_v7 = vld [vmem:[%s5753_s6 + $0x240] ss:$8 sps:$4 sm:$0xff]  }
 0x12e   : > { %1206 = vmatpush1.bf16.msra.mxu1 %v4063_v8  ;;  %v4185_v8 = vld [vmem:[%s5753_s6 + $0x154] ss:$8 sps:$4 sm:$0xff]  }
 0x12f   : > { %1207 = vmatprep.subr.bf16.mxu1 %v4071_v9  ;;  %v4188_v9 = vld [vmem:[%s5753_s6 + $0x254] ss:$8 sps:$4 sm:$0xff]  }
 0x132   : > { %1208 = vmatpush1.bf16.msra.mxu1 %v4069_v10  ;;  %v4183_v10 = vld [vmem:[%s5753_s6 + $0x150] ss:$8 sps:$4 sm:$0xff]  }
 0x133   : > { %1209 = vmatprep.subr.bf16.mxu1 %v4077_v11  ;;  %v4186_v11 = vld [vmem:[%s5753_s6 + $0x250] ss:$8 sps:$4 sm:$0xff]  }
 0x136   : > { %1210 = vmatpush1.bf16.msra.mxu1 %v4075_v12  ;;  %v4191_v12 = vld [vmem:[%s5753_s6 + $0x164] ss:$8 sps:$4 sm:$0xff]  }
 0x137   : > { %1211 = vmatprep.subr.bf16.mxu1 %v4083_v13  ;;  %v4194_v13 = vld [vmem:[%s5753_s6 + $0x264] ss:$8 sps:$4 sm:$0xff]  }
 0x13a   : > { %1212 = vmatpush1.bf16.msra.mxu1 %v4081_v14  ;;  %v4189_v14 = vld [vmem:[%s5753_s6 + $0x160] ss:$8 sps:$4 sm:$0xff]  }
 0x13b   : > { %1213 = vmatprep.subr.bf16.mxu1 %v4089_v15  ;;  %v4192_v15 = vld [vmem:[%s5753_s6 + $0x260] ss:$8 sps:$4 sm:$0xff]  }
 0x13e   : > { %1214 = vmatpush1.bf16.msra.mxu1 %v4087_v16  ;;  %v4197_v16 = vld [vmem:[%s5753_s6 + $0x174] ss:$8 sps:$4 sm:$0xff]  }
 0x13f   : > { %1215 = vmatprep.subr.bf16.mxu1 %v4095_v17  ;;  %v4200_v17 = vld [vmem:[%s5753_s6 + $0x274] ss:$8 sps:$4 sm:$0xff]  }
 0x142   : > { %1216 = vmatpush1.bf16.msra.mxu1 %v4093_v18  ;;  %v4195_v18 = vld [vmem:[%s5753_s6 + $0x170] ss:$8 sps:$4 sm:$0xff]  }
 0x143   : > { %1217 = vmatprep.subr.bf16.mxu1 %v4101_v19  ;;  %v4198_v19 = vld [vmem:[%s5753_s6 + $0x270] ss:$8 sps:$4 sm:$0xff]  }
 0x146   : > { %1218 = vmatpush1.bf16.msra.mxu1 %v4099_v20  ;;  %v4203_v20 = vld [vmem:[%s5753_s6 + $0x184] ss:$8 sps:$4 sm:$0xff]  }
 0x147   : > { %1219 = vmatprep.subr.bf16.mxu1 %v4107_v21  ;;  %v4206_v21 = vld [vmem:[%s5753_s6 + $0x284] ss:$8 sps:$4 sm:$0xff]  }
 0x14a   : > { %1220 = vmatpush1.bf16.msra.mxu1 %v4105_v22  ;;  %v4201_v22 = vld [vmem:[%s5753_s6 + $0x180] ss:$8 sps:$4 sm:$0xff]  }
 0x14b   : > { %1221 = vmatprep.subr.bf16.mxu1 %v4113_v23  ;;  %v4204_v23 = vld [vmem:[%s5753_s6 + $0x280] ss:$8 sps:$4 sm:$0xff]  }
 0x14e   : > { %1222 = vmatpush1.bf16.msra.mxu1 %v4111_v24  ;;  %v4209_v24 = vld [vmem:[%s5753_s6 + $0x194] ss:$8 sps:$4 sm:$0xff]  }
 0x14f   : > { %1223 = vmatprep.subr.bf16.mxu1 %v4119_v25  ;;  %v4212_v25 = vld [vmem:[%s5753_s6 + $0x294] ss:$8 sps:$4 sm:$0xff]  }
 0x152   : > { %1224 = vmatpush1.bf16.msra.mxu1 %v4117_v26  ;;  %v4207_v26 = vld [vmem:[%s5753_s6 + $0x190] ss:$8 sps:$4 sm:$0xff]  }
 0x153   : > { %1225 = vmatprep.subr.bf16.mxu1 %v4125_v27  ;;  %v4210_v27 = vld [vmem:[%s5753_s6 + $0x290] ss:$8 sps:$4 sm:$0xff]  }
 0x156   : > { %1226 = vmatpush1.bf16.msra.mxu1 %v4123_v28  ;;  %v4215_v28 = vld [vmem:[%s5753_s6 + $0x1a4] ss:$8 sps:$4 sm:$0xff]  }
 0x157   : > { %1227 = vmatprep.subr.bf16.mxu1 %v4131_v29  ;;  %v4218_v29 = vld [vmem:[%s5753_s6 + $0x2a4] ss:$8 sps:$4 sm:$0xff]  }
 0x15a   : > { %1228 = vmatpush1.bf16.msra.mxu1 %v4129_v30  ;;  %v4213_v30 = vld [vmem:[%s5753_s6 + $0x1a0] ss:$8 sps:$4 sm:$0xff]  }
 0x15b   : > { %1229 = vmatprep.subr.bf16.mxu1 %v4137_v31  ;;  %v4216_v31 = vld [vmem:[%s5753_s6 + $0x2a0] ss:$8 sps:$4 sm:$0xff]  }
 0x15e   : > { %1230 = vmatpush1.bf16.msra.mxu1 %v4135_v32  ;;  %v4221_v32 = vld [vmem:[%s5753_s6 + $0x1b4] ss:$8 sps:$4 sm:$0xff]  }
 0x15f   : > { %1231 = vmatprep.subr.bf16.mxu1 %v4143_v33  ;;  %v4224_v33 = vld [vmem:[%s5753_s6 + $0x2b4] ss:$8 sps:$4 sm:$0xff]  }
 0x162   : > { %1232 = vmatpush1.bf16.msra.mxu1 %v4141_v35  ;;  %v4219_v35 = vld [vmem:[%s5753_s6 + $0x1b0] ss:$8 sps:$4 sm:$0xff]  }
 0x163   : > { %1233 = vmatprep.subr.bf16.mxu1 %v4149_v37  ;;  %v4227_v37 = vld [vmem:[%s5753_s6 + $0x1c4] ss:$8 sps:$4 sm:$0xff]  }
 0x166   : > { %1234 = vmatpush1.bf16.msra.mxu1 %v4147_v36  ;;  %v4222_v36 = vld [vmem:[%s5753_s6 + $0x2b0] ss:$8 sps:$4 sm:$0xff]  }
 0x167   : > { %1244 = vmatprep.subr.bf16.mxu1 %v4155_v40  ;;  %v4228_v40 = vld [vmem:[%s5753_s6 + $0x2c0] ss:$8 sps:$4 sm:$0xff]  }
 0x1f0   : > { %v595_v42 = vpop.f32.mrb[0].mxu1 }
 0x1f1   : > { %v3930_v43 = vpop.f32.mrb[1].mxu1  ;;  %v5008_v49 = vpack.c.bf16 %v595_v42, %v595_v42  ;;  %v4236_v42 = vld [vmem:[%s5753_s6 + $0x2d4] ss:$8 sps:$4 sm:$0xff]  }
 0x1f2   : > { %v4231_v43 = vld [vmem:[%s5753_s6 + $0x1d0] ss:$8 sps:$4 sm:$0xff]  }
 0x1f4   : > { %v668_v44 = vpop.f32.mrb[2].mxu1 }
 0x1f5   : > { %v5000_v45 = vpack.c.bf16 %v668_v44, %v668_v44  ;;  %v3935_v46 = vpop.f32.mrb[3].mxu1  ;;  %v4234_v44 = vld [vmem:[%s5753_s6 + $0x2d0] ss:$8 sps:$4 sm:$0xff]  }
 0x1f6   : > { %v4239_v46 = vld [vmem:[%s5753_s6 + $0x1e4] ss:$8 sps:$4 sm:$0xff]  }
 0x1f7   : > { %1235 = vmatprep.mubr.bf16.mxu1 %v5000_v45  ;;  %1509 = vmatprep.mubr.bf16.mxu0 %v5000_v45  ;;  %v1587_v51 = vshrl.u32 %v5000_v45, 16 }
 0x1f8   : > { %1236 = vmatmul.mubr.bf16.vlgmr.msra.gmra.mrb[8].mxu1 %v5008_v49  ;;  %1510 = vmatmul.mubr.bf16.vlgmr.msra.gmra.mrb[4].mxu0 %v5008_v49  ;;  %v5021_v53 = vpop.f32.mrb[4].mxu1 }
 0x1f9   : > { %1245 = vmatpush1.bf16.msra.mxu1 %v4153_v47  ;;  %1920 = vmatpush1.bf16.msra.mxu0 %v4156_v48  ;;  %v3940_v56 = vpop.f32.mrb[5].mxu1  ;;  %v4242_v47 = vld [vmem:[%s5753_s6 + $0x2e4] ss:$8 sps:$4 sm:$0xff]   ;;  %v4237_v48 = vld [vmem:[%s5753_s6 + $0x1e0] ss:$8 sps:$4 sm:$0xff]  }
 0x1fa   : > { %1951 = vmatprep.mubr.bf16.mxu0 %v1587_v51  ;;  %1246 = vmatprep.subr.bf16.mxu1 %v4161_v50  ;;  %v4240_v50 = vld [vmem:[%s5753_s6 + $0x2e0] ss:$8 sps:$4 sm:$0xff]   ;;  %v4246_v56 = vld [vmem:[%s5753_s6 + $0x2f0] ss:$8 sps:$4 sm:$0xff]  }
 0x1fb   : > { %1921 = vmatprep.subr.bf16.mxu0 %v4164_v52  ;;  %v4245_v52 = vld [vmem:[%s5753_s6 + $0x1f4] ss:$8 sps:$4 sm:$0xff]  }
 0x1fc   : > { %v811_v59 = vpop.f32.mrb[6].mxu1 }
 0x1fd   : > { %1247 = vmatpush1.bf16.msra.mxu1 %v4159_v54  ;;  %1922 = vmatpush1.bf16.msra.mxu0 %v4162_v55  ;;  %v5043_v62 = vpack.c.bf16 %v811_v59, %v811_v59  ;;  %v3945_v63 = vpop.f32.mrb[7].mxu1  ;;  %v4248_v54 = vld [vmem:[%s5753_s6 + $0x2f4] ss:$8 sps:$4 sm:$0xff]   ;;  %v4243_v55 = vld [vmem:[%s5753_s6 + $0x1f0] ss:$8 sps:$4 sm:$0xff]  }
 0x1fe   : > { %1248 = vmatprep.subr.bf16.mxu1 %v4167_v57  ;;  %1923 = vmatprep.subr.bf16.mxu0 %v4170_v58  ;;  %v4251_v57 = vld [vmem:[%s5753_s6 + $0x304] ss:$8 sps:$4 sm:$0xff]   ;;  %v4249_v59 = vld [vmem:[%s5753_s6 + $0x300] ss:$8 sps:$4 sm:$0xff]   ;;  %v1584_v63 = vshrl.u32 %v5008_v49, 16 }
 0x1ff   : > { %1276 = vmatprep.mubr.bf16.mxu1 %v5043_v62  ;;  %v4254_v58 = vld [vmem:[%s5754_s7 + $0x104] ss:$8 sps:$4 sm:$0xff]  }
 0x201   : > { %1249 = vmatpush1.bf16.msra.mxu1 %v4165_v60  ;;  %1924 = vmatpush1.bf16.msra.mxu0 %v4168_v61  ;;  %v4252_v60 = vld [vmem:[%s5754_s7 + $0x100] ss:$8 sps:$4 sm:$0xff]   ;;  %v5216_v61 = vpack.c.bf16 %v5021_v53, %v5021_v53  ;;  %v4255_v53 = vld [vmem:[%s5753_s6 + $0x310] ss:$8 sps:$4 sm:$0xff]  }
 0x202   : > { %1250 = vmatprep.subr.bf16.mxu1 %v4173_v0  ;;  %1925 = vmatprep.subr.bf16.mxu0 %v4176_v1  ;;  %v1593_v0 = vshrl.u32 %v5043_v62, 16  ;;  %v4257_v1 = vld [vmem:[%s5753_s6 + $0x314] ss:$8 sps:$4 sm:$0xff]  }
 0x205   : > { %1251 = vmatpush1.bf16.msra.mxu1 %v4171_v2  ;;  %1926 = vmatpush1.bf16.msra.mxu0 %v4174_v3  ;;  %v4260_v2 = vld [vmem:[%s5754_s7 + $0x114] ss:$8 sps:$4 sm:$0xff]   ;;  %v4258_v3 = vld [vmem:[%s5754_s7 + $0x110] ss:$8 sps:$4 sm:$0xff]  }
 0x206   : > { %1252 = vmatprep.subr.bf16.mxu1 %v4179_v4  ;;  %1927 = vmatprep.subr.bf16.mxu0 %v4182_v5  ;;  %v4263_v4 = vld [vmem:[%s5753_s6 + $0x324] ss:$8 sps:$4 sm:$0xff]  }
 0x207   : > { %v4266_v5 = vld [vmem:[%s5754_s7 + $0x124] ss:$8 sps:$4 sm:$0xff]  }
 0x209   : > { %1253 = vmatpush1.bf16.msra.mxu1 %v4177_v6  ;;  %1928 = vmatpush1.bf16.msra.mxu0 %v4180_v7  ;;  %v4261_v6 = vld [vmem:[%s5753_s6 + $0x320] ss:$8 sps:$4 sm:$0xff]   ;;  %v4269_v7 = vld [vmem:[%s5753_s6 + $0x334] ss:$8 sps:$4 sm:$0xff]  }
 0x20a   : > { %1254 = vmatprep.subr.bf16.mxu1 %v4185_v8  ;;  %1929 = vmatprep.subr.bf16.mxu0 %v4188_v9  ;;  %v4272_v8 = vld [vmem:[%s5754_s7 + $0x134] ss:$8 sps:$4 sm:$0xff]   ;;  %v4267_v9 = vld [vmem:[%s5753_s6 + $0x330] ss:$8 sps:$4 sm:$0xff]  }
 0x20d   : > { %1255 = vmatpush1.bf16.msra.mxu1 %v4183_v10  ;;  %1930 = vmatpush1.bf16.msra.mxu0 %v4186_v11  ;;  %v4270_v10 = vld [vmem:[%s5754_s7 + $0x130] ss:$8 sps:$4 sm:$0xff]   ;;  %v4275_v11 = vld [vmem:[%s5753_s6 + $0x344] ss:$8 sps:$4 sm:$0xff]  }
 0x20e   : > { %1256 = vmatprep.subr.bf16.mxu1 %v4191_v12  ;;  %1931 = vmatprep.subr.bf16.mxu0 %v4194_v13  ;;  %v4278_v12 = vld [vmem:[%s5754_s7 + $0x144] ss:$8 sps:$4 sm:$0xff]   ;;  %v4273_v13 = vld [vmem:[%s5753_s6 + $0x340] ss:$8 sps:$4 sm:$0xff]  }
 0x211   : > { %1257 = vmatpush1.bf16.msra.mxu1 %v4189_v14  ;;  %1932 = vmatpush1.bf16.msra.mxu0 %v4192_v15  ;;  %v4276_v14 = vld [vmem:[%s5754_s7 + $0x140] ss:$8 sps:$4 sm:$0xff]   ;;  %v4281_v15 = vld [vmem:[%s5753_s6 + $0x354] ss:$8 sps:$4 sm:$0xff]  }
 0x212   : > { %1258 = vmatprep.subr.bf16.mxu1 %v4197_v16  ;;  %1933 = vmatprep.subr.bf16.mxu0 %v4200_v17  ;;  %v4284_v16 = vld [vmem:[%s5754_s7 + $0x154] ss:$8 sps:$4 sm:$0xff]   ;;  %v4279_v17 = vld [vmem:[%s5753_s6 + $0x350] ss:$8 sps:$4 sm:$0xff]  }
 0x215   : > { %1259 = vmatpush1.bf16.msra.mxu1 %v4195_v18  ;;  %1934 = vmatpush1.bf16.msra.mxu0 %v4198_v19  ;;  %v4282_v18 = vld [vmem:[%s5754_s7 + $0x150] ss:$8 sps:$4 sm:$0xff]   ;;  %v4287_v19 = vld [vmem:[%s5753_s6 + $0x364] ss:$8 sps:$4 sm:$0xff]  }
 0x216   : > { %1260 = vmatprep.subr.bf16.mxu1 %v4203_v20  ;;  %1935 = vmatprep.subr.bf16.mxu0 %v4206_v21  ;;  %v4290_v20 = vld [vmem:[%s5754_s7 + $0x164] ss:$8 sps:$4 sm:$0xff]   ;;  %v4285_v21 = vld [vmem:[%s5753_s6 + $0x360] ss:$8 sps:$4 sm:$0xff]  }
 0x219   : > { %1261 = vmatpush1.bf16.msra.mxu1 %v4201_v22  ;;  %1936 = vmatpush1.bf16.msra.mxu0 %v4204_v23  ;;  %v4288_v22 = vld [vmem:[%s5754_s7 + $0x160] ss:$8 sps:$4 sm:$0xff]   ;;  %v4293_v23 = vld [vmem:[%s5753_s6 + $0x374] ss:$8 sps:$4 sm:$0xff]  }
 0x21a   : > { %1262 = vmatprep.subr.bf16.mxu1 %v4209_v24  ;;  %1937 = vmatprep.subr.bf16.mxu0 %v4212_v25  ;;  %v4296_v24 = vld [vmem:[%s5754_s7 + $0x174] ss:$8 sps:$4 sm:$0xff]   ;;  %v4291_v25 = vld [vmem:[%s5753_s6 + $0x370] ss:$8 sps:$4 sm:$0xff]  }
 0x21d   : > { %1263 = vmatpush1.bf16.msra.mxu1 %v4207_v26  ;;  %1938 = vmatpush1.bf16.msra.mxu0 %v4210_v27  ;;  %v4294_v26 = vld [vmem:[%s5754_s7 + $0x170] ss:$8 sps:$4 sm:$0xff]   ;;  %v4299_v27 = vld [vmem:[%s5753_s6 + $0x384] ss:$8 sps:$4 sm:$0xff]  }
 0x21e   : > { %1264 = vmatprep.subr.bf16.mxu1 %v4215_v28  ;;  %1939 = vmatprep.subr.bf16.mxu0 %v4218_v29  ;;  %v4302_v28 = vld [vmem:[%s5754_s7 + $0x184] ss:$8 sps:$4 sm:$0xff]   ;;  %v4297_v29 = vld [vmem:[%s5753_s6 + $0x380] ss:$8 sps:$4 sm:$0xff]  }
 0x221   : > { %1265 = vmatpush1.bf16.msra.mxu1 %v4213_v30  ;;  %1940 = vmatpush1.bf16.msra.mxu0 %v4216_v31  ;;  %v4300_v30 = vld [vmem:[%s5754_s7 + $0x180] ss:$8 sps:$4 sm:$0xff]   ;;  %v4305_v31 = vld [vmem:[%s5753_s6 + $0x394] ss:$8 sps:$4 sm:$0xff]  }
 0x222   : > { %1266 = vmatprep.subr.bf16.mxu1 %v4221_v32  ;;  %1941 = vmatprep.subr.bf16.mxu0 %v4224_v33  ;;  %v4308_v32 = vld [vmem:[%s5754_s7 + $0x194] ss:$8 sps:$4 sm:$0xff]   ;;  %v4303_v33 = vld [vmem:[%s5753_s6 + $0x390] ss:$8 sps:$4 sm:$0xff]  }
 0x225   : > { %1267 = vmatpush1.bf16.msra.mxu1 %v4219_v35  ;;  %1942 = vmatpush1.bf16.msra.mxu0 %v4222_v36  ;;  %v4306_v35 = vld [vmem:[%s5754_s7 + $0x190] ss:$8 sps:$4 sm:$0xff]   ;;  %v4311_v36 = vld [vmem:[%s5753_s6 + $0x3a4] ss:$8 sps:$4 sm:$0xff]  }
 0x226   : > { %1268 = vmatprep.subr.bf16.mxu1 %v4227_v37  ;;  %1943 = vmatprep.subr.bf16.mxu0 %v4230_v38  ;;  %v4314_v37 = vld [vmem:[%s5754_s7 + $0x1a4] ss:$8 sps:$4 sm:$0xff]   ;;  %v4309_v38 = vld [vmem:[%s5753_s6 + $0x3a0] ss:$8 sps:$4 sm:$0xff]  }
 0x229   : > { %1269 = vmatpush1.bf16.msra.mxu1 %v4225_v39  ;;  %1944 = vmatpush1.bf16.msra.mxu0 %v4228_v40  ;;  %v4312_v39 = vld [vmem:[%s5754_s7 + $0x1a0] ss:$8 sps:$4 sm:$0xff]   ;;  %v4317_v40 = vld [vmem:[%s5753_s6 + $0x3b4] ss:$8 sps:$4 sm:$0xff]  }
 0x22a   : > { %1270 = vmatprep.subr.bf16.mxu1 %v4233_v41  ;;  %1945 = vmatprep.subr.bf16.mxu0 %v4236_v42  ;;  %v4320_v41 = vld [vmem:[%s5754_s7 + $0x1b4] ss:$8 sps:$4 sm:$0xff]   ;;  %v4315_v42 = vld [vmem:[%s5753_s6 + $0x3b0] ss:$8 sps:$4 sm:$0xff]  }
 0x22d   : > { %1271 = vmatpush1.bf16.msra.mxu1 %v4231_v43  ;;  %1946 = vmatpush1.bf16.msra.mxu0 %v4234_v44  ;;  %v4318_v43 = vld [vmem:[%s5754_s7 + $0x1b0] ss:$8 sps:$4 sm:$0xff]   ;;  %v4323_v44 = vld [vmem:[%s5753_s6 + $0x3c4] ss:$8 sps:$4 sm:$0xff]  }
 0x22e   : > { %1272 = vmatprep.subr.bf16.mxu1 %v4239_v46  ;;  %1947 = vmatprep.subr.bf16.mxu0 %v4242_v47  ;;  %v4326_v46 = vld [vmem:[%s5754_s7 + $0x1c4] ss:$8 sps:$4 sm:$0xff]   ;;  %v4321_v47 = vld [vmem:[%s5753_s6 + $0x3c0] ss:$8 sps:$4 sm:$0xff]  }
 0x231   : > { %1273 = vmatpush1.bf16.msra.mxu1 %v4237_v48  ;;  %1948 = vmatpush1.bf16.msra.mxu0 %v4240_v50  ;;  %v4324_v48 = vld [vmem:[%s5754_s7 + $0x1c0] ss:$8 sps:$4 sm:$0xff]   ;;  %v4329_v50 = vld [vmem:[%s5753_s6 + $0x3d4] ss:$8 sps:$4 sm:$0xff]  }
 0x232   : > { %1274 = vmatprep.subr.bf16.mxu1 %v4245_v52  ;;  %1949 = vmatprep.subr.bf16.mxu0 %v4248_v54  ;;  %v4332_v52 = vld [vmem:[%s5754_s7 + $0x1d4] ss:$8 sps:$4 sm:$0xff]   ;;  %v4327_v54 = vld [vmem:[%s5753_s6 + $0x3d0] ss:$8 sps:$4 sm:$0xff]  }
 0x235   : > { %1275 = vmatpush1.bf16.msra.mxu1 %v4243_v55  ;;  %1950 = vmatpush1.bf16.msra.mxu0 %v4246_v56  ;;  %v4330_v55 = vld [vmem:[%s5754_s7 + $0x1d0] ss:$8 sps:$4 sm:$0xff]   ;;  %v4335_v56 = vld [vmem:[%s5753_s6 + $0x3e4] ss:$8 sps:$4 sm:$0xff]  }
 0x236   : > { %1960 = vmatprep.subr.bf16.mxu0 %v4251_v57  ;;  %2194 = vmatprep.subr.bf16.mxu1 %v4254_v58  ;;  %v4338_v57 = vld [vmem:[%s5754_s7 + $0x1e4] ss:$8 sps:$4 sm:$0xff]   ;;  %v4333_v58 = vld [vmem:[%s5753_s6 + $0x3e0] ss:$8 sps:$4 sm:$0xff]  }
 0x238   : > { %1277 = vmatmul.mubr.bf16.vlgmr.msra.gmra.mrb[8].mxu1 %v5216_v61  ;;  %1952 = vmatmul.mubr.bf16.vlgmr.msra.gmra.mrb[8].mxu0 %v1584_v63 }
 0x239   : > { %1961 = vmatpush1.bf16.msra.mxu0 %v4249_v59  ;;  %2195 = vmatpush1.bf16.msra.mxu1 %v4252_v60  ;;  %v4336_v59 = vld [vmem:[%s5754_s7 + $0x1e0] ss:$8 sps:$4 sm:$0xff]   ;;  %v4341_v60 = vld [vmem:[%s5753_s6 + $0x3f4] ss:$8 sps:$4 sm:$0xff]  }
 0x23a   : > { %2226 = vmatprep.mubr.bf16.mxu1 %v1587_v51  ;;  %1992 = vmatprep.mubr.bf16.mxu0 %v1593_v0  ;;  %v4264_v51 = vld [vmem:[%s5754_s7 + $0x120] ss:$8 sps:$4 sm:$0xff]   ;;  %v4344_v0 = vld [vmem:[%s5754_s7 + $0x1f4] ss:$8 sps:$4 sm:$0xff]  }
 0x23b   : > { %1962 = vmatprep.subr.bf16.mxu0 %v4257_v1  ;;  %2196 = vmatprep.subr.bf16.mxu1 %v4260_v2  ;;  %v4339_v1 = vld [vmem:[%s5753_s6 + $0x3f0] ss:$8 sps:$4 sm:$0xff]  }
 0x23c   : > { %v4342_v2 = vld [vmem:[%s5754_s7 + $0x1f0] ss:$8 sps:$4 sm:$0xff]  }
 0x23d   : > { %1963 = vmatpush1.bf16.msra.mxu0 %v4255_v53  ;;  %2197 = vmatpush1.bf16.msra.mxu1 %v4258_v3  ;;  %v4347_v53 = vld [vmem:[%s5753_s6 + $0x404] ss:$8 sps:$4 sm:$0xff]  }
 0x23e   : > { %1964 = vmatprep.subr.bf16.mxu0 %v4263_v4  ;;  %2198 = vmatprep.subr.bf16.mxu1 %v4266_v5  ;;  %v4350_v3 = vld [vmem:[%s5754_s7 + $0x204] ss:$8 sps:$4 sm:$0xff]   ;;  %v4345_v4 = vld [vmem:[%s5753_s6 + $0x400] ss:$8 sps:$4 sm:$0xff]   ;;  %v1590_v5 = vshrl.u32 %v5216_v61, 16 }
 0x241   : > { %1965 = vmatpush1.bf16.msra.mxu0 %v4261_v6  ;;  %2199 = vmatpush1.bf16.msra.mxu1 %v4264_v51  ;;  %v4348_v6 = vld [vmem:[%s5754_s7 + $0x200] ss:$8 sps:$4 sm:$0xff]   ;;  %v2305_v51 = vrot.slane %v5000_v45, 1  ;;  %v4354_v45 = vld [vmem:[%s5754_s7 + $0x210] ss:$8 sps:$4 sm:$0xff]  }
 0x242   : > { %1966 = vmatprep.subr.bf16.mxu0 %v4269_v7  ;;  %2200 = vmatprep.subr.bf16.mxu1 %v4272_v8  ;;  %v4353_v7 = vld [vmem:[%s5753_s6 + $0x414] ss:$8 sps:$4 sm:$0xff]  }
 0x243   : > { %v4356_v8 = vld [vmem:[%s5754_s7 + $0x214] ss:$8 sps:$4 sm:$0xff]  }
 0x245   : > { %1967 = vmatpush1.bf16.msra.mxu0 %v4267_v9  ;;  %2201 = vmatpush1.bf16.msra.mxu1 %v4270_v10  ;;  %v4351_v9 = vld [vmem:[%s5753_s6 + $0x410] ss:$8 sps:$4 sm:$0xff]   ;;  %v4359_v10 = vld [vmem:[%s5753_s6 + $0x424] ss:$8 sps:$4 sm:$0xff]  }
 0x246   : > { %1968 = vmatprep.subr.bf16.mxu0 %v4275_v11  ;;  %2202 = vmatprep.subr.bf16.mxu1 %v4278_v12  ;;  %v4357_v11 = vld [vmem:[%s5753_s6 + $0x420] ss:$8 sps:$4 sm:$0xff]  }
 0x247   : > { %v4360_v12 = vld [vmem:[%s5754_s7 + $0x220] ss:$8 sps:$4 sm:$0xff]  }
 0x249   : > { %1969 = vmatpush1.bf16.msra.mxu0 %v4273_v13  ;;  %2203 = vmatpush1.bf16.msra.mxu1 %v4276_v14  ;;  %v4365_v13 = vld [vmem:[%s5753_s6 + $0x434] ss:$8 sps:$4 sm:$0xff]  }
 0x24a   : > { %1970 = vmatprep.subr.bf16.mxu0 %v4281_v15  ;;  %2204 = vmatprep.subr.bf16.mxu1 %v4284_v16  ;;  %v4368_v14 = vld [vmem:[%s5754_s7 + $0x234] ss:$8 sps:$4 sm:$0xff]   ;;  %v4363_v15 = vld [vmem:[%s5753_s6 + $0x430] ss:$8 sps:$4 sm:$0xff]  }
 0x24b   : > { %v4366_v16 = vld [vmem:[%s5754_s7 + $0x230] ss:$8 sps:$4 sm:$0xff]  }
 0x24d   : > { %1971 = vmatpush1.bf16.msra.mxu0 %v4279_v17  ;;  %2205 = vmatpush1.bf16.msra.mxu1 %v4282_v18  ;;  %v4371_v17 = vld [vmem:[%s5753_s6 + $0x444] ss:$8 sps:$4 sm:$0xff]  }
 0x24e   : > { %1972 = vmatprep.subr.bf16.mxu0 %v4287_v19  ;;  %2206 = vmatprep.subr.bf16.mxu1 %v4290_v20  ;;  %v4374_v18 = vld [vmem:[%s5754_s7 + $0x244] ss:$8 sps:$4 sm:$0xff]   ;;  %v4369_v19 = vld [vmem:[%s5753_s6 + $0x440] ss:$8 sps:$4 sm:$0xff]  }
 0x24f   : > { %v4372_v20 = vld [vmem:[%s5754_s7 + $0x240] ss:$8 sps:$4 sm:$0xff]  }
 0x251   : > { %1973 = vmatpush1.bf16.msra.mxu0 %v4285_v21  ;;  %2207 = vmatpush1.bf16.msra.mxu1 %v4288_v22  ;;  %v4377_v21 = vld [vmem:[%s5753_s6 + $0x454] ss:$8 sps:$4 sm:$0xff]  }
 0x252   : > { %1974 = vmatprep.subr.bf16.mxu0 %v4293_v23  ;;  %2208 = vmatprep.subr.bf16.mxu1 %v4296_v24  ;;  %v4380_v22 = vld [vmem:[%s5754_s7 + $0x254] ss:$8 sps:$4 sm:$0xff]   ;;  %v4375_v23 = vld [vmem:[%s5753_s6 + $0x450] ss:$8 sps:$4 sm:$0xff]  }
 0x253   : > { %v4378_v24 = vld [vmem:[%s5754_s7 + $0x250] ss:$8 sps:$4 sm:$0xff]  }
 0x255   : > { %1975 = vmatpush1.bf16.msra.mxu0 %v4291_v25  ;;  %2209 = vmatpush1.bf16.msra.mxu1 %v4294_v26  ;;  %v4383_v25 = vld [vmem:[%s5753_s6 + $0x464] ss:$8 sps:$4 sm:$0xff]  }
 0x256   : > { %1976 = vmatprep.subr.bf16.mxu0 %v4299_v27  ;;  %2210 = vmatprep.subr.bf16.mxu1 %v4302_v28  ;;  %v4386_v26 = vld [vmem:[%s5754_s7 + $0x264] ss:$8 sps:$4 sm:$0xff]   ;;  %v4381_v27 = vld [vmem:[%s5753_s6 + $0x460] ss:$8 sps:$4 sm:$0xff]  }
 0x257   : > { %v4384_v28 = vld [vmem:[%s5754_s7 + $0x260] ss:$8 sps:$4 sm:$0xff]  }
 0x259   : > { %1977 = vmatpush1.bf16.msra.mxu0 %v4297_v29  ;;  %2211 = vmatpush1.bf16.msra.mxu1 %v4300_v30  ;;  %v4389_v29 = vld [vmem:[%s5753_s6 + $0x474] ss:$8 sps:$4 sm:$0xff]  }
 0x25a   : > { %1978 = vmatprep.subr.bf16.mxu0 %v4305_v31  ;;  %2212 = vmatprep.subr.bf16.mxu1 %v4308_v32  ;;  %v4392_v30 = vld [vmem:[%s5754_s7 + $0x274] ss:$8 sps:$4 sm:$0xff]   ;;  %v4387_v31 = vld [vmem:[%s5753_s6 + $0x470] ss:$8 sps:$4 sm:$0xff]  }
 0x25b   : > { %v4390_v32 = vld [vmem:[%s5754_s7 + $0x270] ss:$8 sps:$4 sm:$0xff]  }
 0x25d   : > { %1979 = vmatpush1.bf16.msra.mxu0 %v4303_v33  ;;  %2213 = vmatpush1.bf16.msra.mxu1 %v4306_v35  ;;  %v4395_v33 = vld [vmem:[%s5753_s6 + $0x484] ss:$8 sps:$4 sm:$0xff]  }
 0x25e   : > { %1980 = vmatprep.subr.bf16.mxu0 %v4311_v36  ;;  %2214 = vmatprep.subr.bf16.mxu1 %v4314_v37  ;;  %v4398_v35 = vld [vmem:[%s5754_s7 + $0x284] ss:$8 sps:$4 sm:$0xff]   ;;  %v4393_v36 = vld [vmem:[%s5753_s6 + $0x480] ss:$8 sps:$4 sm:$0xff]  }
 0x25f   : > { %v4396_v37 = vld [vmem:[%s5754_s7 + $0x280] ss:$8 sps:$4 sm:$0xff]  }
 0x261   : > { %1981 = vmatpush1.bf16.msra.mxu0 %v4309_v38  ;;  %2215 = vmatpush1.bf16.msra.mxu1 %v4312_v39  ;;  %v4401_v38 = vld [vmem:[%s5753_s6 + $0x494] ss:$8 sps:$4 sm:$0xff]  }
 0x262   : > { %1982 = vmatprep.subr.bf16.mxu0 %v4317_v40  ;;  %2216 = vmatprep.subr.bf16.mxu1 %v4320_v41  ;;  %v4404_v39 = vld [vmem:[%s5754_s7 + $0x294] ss:$8 sps:$4 sm:$0xff]   ;;  %v4399_v40 = vld [vmem:[%s5753_s6 + $0x490] ss:$8 sps:$4 sm:$0xff]  }
 0x263   : > { %v4402_v41 = vld [vmem:[%s5754_s7 + $0x290] ss:$8 sps:$4 sm:$0xff]  }
 0x265   : > { %1983 = vmatpush1.bf16.msra.mxu0 %v4315_v42  ;;  %2217 = vmatpush1.bf16.msra.mxu1 %v4318_v43  ;;  %v4407_v42 = vld [vmem:[%s5753_s6 + $0x4a4] ss:$8 sps:$4 sm:$0xff]  }
 0x266   : > { %1984 = vmatprep.subr.bf16.mxu0 %v4323_v44  ;;  %2218 = vmatprep.subr.bf16.mxu1 %v4326_v46  ;;  %v4410_v43 = vld [vmem:[%s5754_s7 + $0x2a4] ss:$8 sps:$4 sm:$0xff]   ;;  %v4405_v44 = vld [vmem:[%s5753_s6 + $0x4a0] ss:$8 sps:$4 sm:$0xff]  }
 0x267   : > { %v4408_v46 = vld [vmem:[%s5754_s7 + $0x2a0] ss:$8 sps:$4 sm:$0xff]  }
 0x269   : > { %1985 = vmatpush1.bf16.msra.mxu0 %v4321_v47  ;;  %2219 = vmatpush1.bf16.msra.mxu1 %v4324_v48  ;;  %v4413_v47 = vld [vmem:[%s5753_s6 + $0x4b4] ss:$8 sps:$4 sm:$0xff]  }
 0x26a   : > { %1986 = vmatprep.subr.bf16.mxu0 %v4329_v50  ;;  %2220 = vmatprep.subr.bf16.mxu1 %v4332_v52  ;;  %v4416_v48 = vld [vmem:[%s5754_s7 + $0x2b4] ss:$8 sps:$4 sm:$0xff]   ;;  %v4411_v50 = vld [vmem:[%s5753_s6 + $0x4b0] ss:$8 sps:$4 sm:$0xff]  }
 0x26b   : > { %v4414_v52 = vld [vmem:[%s5754_s7 + $0x2b0] ss:$8 sps:$4 sm:$0xff]  }
 0x26d   : > { %1987 = vmatpush1.bf16.msra.mxu0 %v4327_v54  ;;  %2221 = vmatpush1.bf16.msra.mxu1 %v4330_v55  ;;  %v4419_v54 = vld [vmem:[%s5753_s6 + $0x4c4] ss:$8 sps:$4 sm:$0xff]  }
 0x26e   : > { %1988 = vmatprep.subr.bf16.mxu0 %v4335_v56  ;;  %2222 = vmatprep.subr.bf16.mxu1 %v4338_v57  ;;  %v4422_v55 = vld [vmem:[%s5754_s7 + $0x2c4] ss:$8 sps:$4 sm:$0xff]   ;;  %v4417_v56 = vld [vmem:[%s5753_s6 + $0x4c0] ss:$8 sps:$4 sm:$0xff]  }
 0x26f   : > { %v4420_v57 = vld [vmem:[%s5754_s7 + $0x2c0] ss:$8 sps:$4 sm:$0xff]  }
 0x271   : > { %1989 = vmatpush1.bf16.msra.mxu0 %v4333_v58  ;;  %2223 = vmatpush1.bf16.msra.mxu1 %v4336_v59  ;;  %v4425_v58 = vld [vmem:[%s5753_s6 + $0x4d4] ss:$8 sps:$4 sm:$0xff]  }
 0x272   : > { %1990 = vmatprep.subr.bf16.mxu0 %v4341_v60  ;;  %2224 = vmatprep.subr.bf16.mxu1 %v4344_v0  ;;  %v4428_v59 = vld [vmem:[%s5754_s7 + $0x2d4] ss:$8 sps:$4 sm:$0xff]   ;;  %v4423_v60 = vld [vmem:[%s5753_s6 + $0x4d0] ss:$8 sps:$4 sm:$0xff]  }
 0x273   : > { %v4426_v0 = vld [vmem:[%s5754_s7 + $0x2d0] ss:$8 sps:$4 sm:$0xff]  }
 0x275   : > { %1991 = vmatpush1.bf16.msra.mxu0 %v4339_v1  ;;  %2225 = vmatpush1.bf16.msra.mxu1 %v4342_v2  ;;  %v4431_v1 = vld [vmem:[%s5753_s6 + $0x4e4] ss:$8 sps:$4 sm:$0xff]  }
 0x276   : > { %2632 = vmatprep.subr.bf16.mxu1 %v4347_v53  ;;  %2907 = vmatprep.subr.bf16.mxu0 %v4350_v3  ;;  %v4434_v2 = vld [vmem:[%s5754_s7 + $0x2e4] ss:$8 sps:$4 sm:$0xff]   ;;  %v4429_v53 = vld [vmem:[%s5753_s6 + $0x4e0] ss:$8 sps:$4 sm:$0xff]  }
 0x277   : > { %v4432_v3 = vld [vmem:[%s5754_s7 + $0x2e0] ss:$8 sps:$4 sm:$0xff]  }
 0x278   : > { %1993 = vmatmul.mubr.bf16.vlgmr.msra.gmra.mrb[8].mxu0 %v1590_v5  ;;  %2227 = vmatmul.mubr.bf16.vlgmr.msra.gmra.mrb[12].mxu1 %v1584_v63  ;;  %v4362_v63 = vld [vmem:[%s5754_s7 + $0x224] ss:$8 sps:$4 sm:$0xff]   ;;  %v4440_v5 = vld [vmem:[%s5754_s7 + $0x2f4] ss:$8 sps:$4 sm:$0xff]  }
 0x279   : > { %2633 = vmatpush1.bf16.msra.mxu1 %v4345_v4  ;;  %2664 = vmatprep.mubr.bf16.mxu1 %v2305_v51  ;;  %v4437_v4 = vld [vmem:[%s5753_s6 + $0x4f4] ss:$8 sps:$4 sm:$0xff]  }
 0x27a   : > { %2908 = vmatpush1.bf16.msra.mxu0 %v4348_v6  ;;  %2939 = vmatprep.mubr.bf16.mxu0 %v2305_v51  ;;  %v4435_v6 = vld [vmem:[%s5753_s6 + $0x4f0] ss:$8 sps:$4 sm:$0xff]  }
 0x27b   : > { %2634 = vmatprep.subr.bf16.mxu1 %v4353_v7  ;;  %2909 = vmatprep.subr.bf16.mxu0 %v4356_v8  ;;  %v4438_v51 = vld [vmem:[%s5754_s7 + $0x2f0] ss:$8 sps:$4 sm:$0xff]   ;;  %v4443_v7 = vld [vmem:[%s5753_s6 + $0x504] ss:$8 sps:$4 sm:$0xff]   ;;  %v4441_v8 = vld [vmem:[%s5753_s6 + $0x500] ss:$8 sps:$4 sm:$0xff]  }
 0x27d   : > { %2635 = vmatpush1.bf16.msra.mxu1 %v4351_v9  ;;  %v2304_v9 = vrot.slane %v5008_v49, 1  ;;  %v4449_v49 = vld [vmem:[%s5753_s6 + $0x524] ss:$8 sps:$4 sm:$0xff]  }
 0x27e   : > { %2910 = vmatpush1.bf16.msra.mxu0 %v4354_v45  ;;  %2636 = vmatprep.subr.bf16.mxu1 %v4359_v10  ;;  %v4446_v45 = vld [vmem:[%s5753_s6 + $0x514] ss:$8 sps:$4 sm:$0xff]   ;;  %v2307_v10 = vrot.slane %v5043_v62, 1  ;;  %v4447_v62 = vld [vmem:[%s5753_s6 + $0x520] ss:$8 sps:$4 sm:$0xff]  }
 0x27f   : > { %2911 = vmatprep.subr.bf16.mxu0 %v4362_v63  ;;  %v4444_v63 = vld [vmem:[%s5753_s6 + $0x510] ss:$8 sps:$4 sm:$0xff]  }
 0x281   : > { %2637 = vmatpush1.bf16.msra.mxu1 %v4357_v11  ;;  %v4452_v11 = vld [vmem:[%s5753_s6 + $0x534] ss:$8 sps:$4 sm:$0xff]  }
 0x282   : > { %2912 = vmatpush1.bf16.msra.mxu0 %v4360_v12  ;;  %2638 = vmatprep.subr.bf16.mxu1 %v4365_v13  ;;  %v4450_v12 = vld [vmem:[%s5753_s6 + $0x530] ss:$8 sps:$4 sm:$0xff]   ;;  %v4455_v13 = vld [vmem:[%s5753_s6 + $0x544] ss:$8 sps:$4 sm:$0xff]  }
 0x283   : > { %2913 = vmatprep.subr.bf16.mxu0 %v4368_v14  ;;  %v4453_v14 = vld [vmem:[%s5753_s6 + $0x540] ss:$8 sps:$4 sm:$0xff]  }
 0x285   : > { %2639 = vmatpush1.bf16.msra.mxu1 %v4363_v15  ;;  %v4458_v15 = vld [vmem:[%s5753_s6 + $0x554] ss:$8 sps:$4 sm:$0xff]  }
 0x286   : > { %2914 = vmatpush1.bf16.msra.mxu0 %v4366_v16  ;;  %2640 = vmatprep.subr.bf16.mxu1 %v4371_v17  ;;  %v4456_v16 = vld [vmem:[%s5753_s6 + $0x550] ss:$8 sps:$4 sm:$0xff]   ;;  %v4461_v17 = vld [vmem:[%s5753_s6 + $0x564] ss:$8 sps:$4 sm:$0xff]  }
 0x287   : > { %2915 = vmatprep.subr.bf16.mxu0 %v4374_v18 }
 0x289   : > { %2641 = vmatpush1.bf16.msra.mxu1 %v4369_v19 }
 0x28a   : > { %2916 = vmatpush1.bf16.msra.mxu0 %v4372_v20  ;;  %2642 = vmatprep.subr.bf16.mxu1 %v4377_v21  ;;  %v4459_v21 = vld [vmem:[%s5753_s6 + $0x560] ss:$8 sps:$4 sm:$0xff]  }
 0x28b   : > { %2917 = vmatprep.subr.bf16.mxu0 %v4380_v22 }
 0x28d   : > { %2643 = vmatpush1.bf16.msra.mxu1 %v4375_v23  ;;  %v4464_v23 = vld [vmem:[%s5753_s6 + $0x574] ss:$8 sps:$4 sm:$0xff]  }
 0x28e   : > { %2918 = vmatpush1.bf16.msra.mxu0 %v4378_v24  ;;  %2644 = vmatprep.subr.bf16.mxu1 %v4383_v25  ;;  %v4462_v24 = vld [vmem:[%s5753_s6 + $0x570] ss:$8 sps:$4 sm:$0xff]   ;;  %v4467_v25 = vld [vmem:[%s5753_s6 + $0x584] ss:$8 sps:$4 sm:$0xff]  }
 0x28f   : > { %2919 = vmatprep.subr.bf16.mxu0 %v4386_v26  ;;  %v4465_v26 = vld [vmem:[%s5753_s6 + $0x580] ss:$8 sps:$4 sm:$0xff]  }
 0x291   : > { %2645 = vmatpush1.bf16.msra.mxu1 %v4381_v27  ;;  %v4470_v27 = vld [vmem:[%s5753_s6 + $0x594] ss:$8 sps:$4 sm:$0xff]  }
 0x292   : > { %2920 = vmatpush1.bf16.msra.mxu0 %v4384_v28  ;;  %2646 = vmatprep.subr.bf16.mxu1 %v4389_v29  ;;  %v4468_v28 = vld [vmem:[%s5753_s6 + $0x590] ss:$8 sps:$4 sm:$0xff]   ;;  %v4473_v29 = vld [vmem:[%s5753_s6 + $0x5a4] ss:$8 sps:$4 sm:$0xff]  }
 0x293   : > { %2921 = vmatprep.subr.bf16.mxu0 %v4392_v30  ;;  %v4471_v30 = vld [vmem:[%s5753_s6 + $0x5a0] ss:$8 sps:$4 sm:$0xff]  }
 0x295   : > { %2647 = vmatpush1.bf16.msra.mxu1 %v4387_v31  ;;  %v4476_v31 = vld [vmem:[%s5753_s6 + $0x5b4] ss:$8 sps:$4 sm:$0xff]  }
 0x296   : > { %2922 = vmatpush1.bf16.msra.mxu0 %v4390_v32  ;;  %2648 = vmatprep.subr.bf16.mxu1 %v4395_v33  ;;  %v4474_v32 = vld [vmem:[%s5753_s6 + $0x5b0] ss:$8 sps:$4 sm:$0xff]   ;;  %v4479_v33 = vld [vmem:[%s5753_s6 + $0x5c4] ss:$8 sps:$4 sm:$0xff]  }
 0x297   : > { %2923 = vmatprep.subr.bf16.mxu0 %v4398_v35  ;;  %v4477_v35 = vld [vmem:[%s5753_s6 + $0x5c0] ss:$8 sps:$4 sm:$0xff]  }
 0x299   : > { %2649 = vmatpush1.bf16.msra.mxu1 %v4393_v36  ;;  %v4482_v36 = vld [vmem:[%s5753_s6 + $0x5d4] ss:$8 sps:$4 sm:$0xff]  }
 0x29a   : > { %2924 = vmatpush1.bf16.msra.mxu0 %v4396_v37  ;;  %2650 = vmatprep.subr.bf16.mxu1 %v4401_v38  ;;  %v4480_v37 = vld [vmem:[%s5753_s6 + $0x5d0] ss:$8 sps:$4 sm:$0xff]   ;;  %v4485_v38 = vld [vmem:[%s5753_s6 + $0x5e4] ss:$8 sps:$4 sm:$0xff]  }
 0x29b   : > { %2925 = vmatprep.subr.bf16.mxu0 %v4404_v39  ;;  %v4483_v39 = vld [vmem:[%s5753_s6 + $0x5e0] ss:$8 sps:$4 sm:$0xff]  }
 0x29d   : > { %2651 = vmatpush1.bf16.msra.mxu1 %v4399_v40  ;;  %v4488_v40 = vld [vmem:[%s5753_s6 + $0x5f4] ss:$8 sps:$4 sm:$0xff]  }
 0x29e   : > { %2926 = vmatpush1.bf16.msra.mxu0 %v4402_v41  ;;  %2652 = vmatprep.subr.bf16.mxu1 %v4407_v42  ;;  %v4486_v41 = vld [vmem:[%s5753_s6 + $0x5f0] ss:$8 sps:$4 sm:$0xff]   ;;  %v2306_v42 = vrot.slane %v5216_v61, 1 }
 0x29f   : > { %2927 = vmatprep.subr.bf16.mxu0 %v4410_v43 }
 0x2a1   : > { %2653 = vmatpush1.bf16.msra.mxu1 %v4405_v44 }
 0x2a2   : > { %2928 = vmatpush1.bf16.msra.mxu0 %v4408_v46  ;;  %2654 = vmatprep.subr.bf16.mxu1 %v4413_v47 }
 0x2a3   : > { %2929 = vmatprep.subr.bf16.mxu0 %v4416_v48 }
 0x2a5   : > { %2655 = vmatpush1.bf16.msra.mxu1 %v4411_v50 }
 0x2a6   : > { %2930 = vmatpush1.bf16.msra.mxu0 %v4414_v52  ;;  %2656 = vmatprep.subr.bf16.mxu1 %v4419_v54 }
 0x2a7   : > { %2931 = vmatprep.subr.bf16.mxu0 %v4422_v55 }
 0x2a9   : > { %2657 = vmatpush1.bf16.msra.mxu1 %v4417_v56 }
 0x2aa   : > { %2932 = vmatpush1.bf16.msra.mxu0 %v4420_v57  ;;  %2658 = vmatprep.subr.bf16.mxu1 %v4425_v58 }
 0x2ab   : > { %2933 = vmatprep.subr.bf16.mxu0 %v4428_v59 }
 0x2ad   : > { %2659 = vmatpush1.bf16.msra.mxu1 %v4423_v60 }
 0x2ae   : > { %2934 = vmatpush1.bf16.msra.mxu0 %v4426_v0  ;;  %2660 = vmatprep.subr.bf16.mxu1 %v4431_v1 }
 0x2af   : > { %2935 = vmatprep.subr.bf16.mxu0 %v4434_v2 }
 0x2b1   : > { %2661 = vmatpush1.bf16.msra.mxu1 %v4429_v53 }
 0x2b2   : > { %2936 = vmatpush1.bf16.msra.mxu0 %v4432_v3  ;;  %2662 = vmatprep.subr.bf16.mxu1 %v4437_v4 }
 0x2b3   : > { %2937 = vmatprep.subr.bf16.mxu0 %v4440_v5 }
 0x2b5   : > { %2663 = vmatpush1.bf16.msra.mxu1 %v4435_v6 }
 0x2b6   : > { %2938 = vmatpush1.bf16.msra.mxu0 %v4438_v51  ;;  %2673 = vmatprep.subr.bf16.mxu1 %v4443_v7 }
 0x2b7   : > { %3946 = vmatprep.subr.mxu0 %v4497_v34 }
 0x2b8   : > { %2665 = vmatmul.mubr.bf16.vlgmr.msra.gmra.mrb[16].mxu1 %v2304_v9 }
 0x2b9   : > { %2940 = vmatmul.mubr.bf16.vlgmr.msra.gmra.mrb[12].mxu0 %v2304_v9  ;;  %2674 = vmatpush1.bf16.msra.mxu1 %v4441_v8 }
 0x2ba   : > { %2705 = vmatprep.mubr.bf16.mxu1 %v2307_v10  ;;  %2675 = vmatprep.subr.bf16.mxu1 %v4446_v45 }
 0x2bb   : > { %3948 = vmatprep.mubr.msk.f32.mxu0 %vm4498_vm0, %v4497_v34 }
 0x2bd   : > { %2676 = vmatpush1.bf16.msra.mxu1 %v4444_v63 }
 0x2be   : > { %2677 = vmatprep.subr.bf16.mxu1 %v4449_v49 }
 0x2c1   : > { %2678 = vmatpush1.bf16.msra.mxu1 %v4447_v62 }
 0x2c2   : > { %2679 = vmatprep.subr.bf16.mxu1 %v4452_v11 }
 0x2c5   : > { %2680 = vmatpush1.bf16.msra.mxu1 %v4450_v12 }
 0x2c6   : > { %2681 = vmatprep.subr.bf16.mxu1 %v4455_v13 }
 0x2c9   : > { %2682 = vmatpush1.bf16.msra.mxu1 %v4453_v14  ;;  %v2983_v14 = vld [vmem:[%s5752_s5] sm:$0xf] }
 0x2ca   : > { %2683 = vmatprep.subr.bf16.mxu1 %v4458_v15 }
 0x2cb   : > { %v5645_v18 = vpop.f32.mrb[4].mxu0 }
 0x2cc   : > { %v5647_v19 = vpop.f32.mrb[5].mxu0 }
 0x2cd   : > { %2684 = vmatpush1.bf16.msra.mxu1 %v4456_v16  ;;  %v1515_v20 = vpop.f32.mrb[6].mxu0  ;;  %v2982_v16 = vld [vmem:[%s5751_s4] sm:$0xf] }
 0x2ce   : > { %v1516_v22 = vpop.f32.mrb[7].mxu0  ;;  %2685 = vmatprep.subr.bf16.mxu1 %v4461_v17 }
 0x2d1   : > { %2686 = vmatpush1.bf16.msra.mxu1 %v4459_v21 }
 0x2d2   : > { %2687 = vmatprep.subr.bf16.mxu1 %v4464_v23 }
 0x2d5   : > { %2688 = vmatpush1.bf16.msra.mxu1 %v4462_v24 }
 0x2d6   : > { %2689 = vmatprep.subr.bf16.mxu1 %v4467_v25 }
 0x2d9   : > { %2690 = vmatpush1.bf16.msra.mxu1 %v4465_v26 }
 0x2da   : > { %2691 = vmatprep.subr.bf16.mxu1 %v4470_v27 }
 0x2dd   : > { %2692 = vmatpush1.bf16.msra.mxu1 %v4468_v28 }
 0x2de   : > { %2693 = vmatprep.subr.bf16.mxu1 %v4473_v29 }
 0x2e1   : > { %2694 = vmatpush1.bf16.msra.mxu1 %v4471_v30 }
 0x2e2   : > { %2695 = vmatprep.subr.bf16.mxu1 %v4476_v31 }
 0x2e5   : > { %2696 = vmatpush1.bf16.msra.mxu1 %v4474_v32 }
 0x2e6   : > { %2697 = vmatprep.subr.bf16.mxu1 %v4479_v33 }
 0x2e9   : > { %2698 = vmatpush1.bf16.msra.mxu1 %v4477_v35 }
 0x2ea   : > { %2699 = vmatprep.subr.bf16.mxu1 %v4482_v36 }
 0x2ed   : > { %2700 = vmatpush1.bf16.msra.mxu1 %v4480_v37 }
 0x2ee   : > { %2701 = vmatprep.subr.bf16.mxu1 %v4485_v38 }
 0x2f1   : > { %2702 = vmatpush1.bf16.msra.mxu1 %v4483_v39 }
 0x2f2   : > { %2703 = vmatprep.subr.bf16.mxu1 %v4488_v40 }
 0x2f5   : > { %2704 = vmatpush1.bf16.msra.mxu1 %v4486_v41 }
 0x2f8   : > { %2706 = vmatmul.mubr.bf16.vlgmr.msra.gmra.mrb[16].mxu1 %v2306_v42 }
 0x30b   : > { %v1278_v43 = vpop.f32.mrb[8].mxu1 }
 0x30c   : > { %v1280_v44 = vpop.f32.mrb[9].mxu1 }
 0x30d   : > { %v1282_v46 = vpop.f32.mrb[10].mxu1 }
 0x30e   : > { %v1283_v47 = vpop.f32.mrb[11].mxu1 }
 0x34b   : > { %v1994_v48 = vpop.f32.mrb[8].mxu0  ;;  %v2228_v50 = vpop.f32.mrb[12].mxu1 }
 0x34c   : > { %v2950_v52 = vrot.slane %v1994_v48, 7  ;;  %v2968_v54 = vrot.slane %v2228_v50, 7  ;;  %v1996_v55 = vpop.f32.mrb[9].mxu0  ;;  %v2230_v56 = vpop.f32.mrb[13].mxu1 }
 0x34d   : > { %v2951_v57 = vrot.slane %v1996_v55, 7  ;;  %v2969_v58 = vrot.slane %v2230_v56, 7  ;;  %v1998_v59 = vpop.f32.mrb[10].mxu0  ;;  %v2232_v60 = vpop.f32.mrb[14].mxu1 }
 0x34e   : > { %v2961_v0 = vsel %vm2960_vm3, %v1278_v43, %v2950_v52  ;;  %v2978_v1 = vsel %vm2960_vm3, %v5645_v18, %v2968_v54  ;;  %v1999_v61 = vpop.f32.mrb[11].mxu0  ;;  %v2233_v2 = vpop.f32.mrb[15].mxu1 }
 0x34f   : > { %v2962_v53 = vsel %vm2960_vm3, %v1280_v44, %v2951_v57  ;;  %v2979_v3 = vsel %vm2960_vm3, %v5647_v19, %v2969_v58 }
 0x38c   : > { %v2941_v4 = vpop.f32.mrb[12].mxu0 }
 0x38d   : > { %v2974_v5 = vrot.slane %v2941_v4, 6  ;;  %v2943_v6 = vpop.f32.mrb[13].mxu0 }
 0x38e   : > { %v2975_v51 = vrot.slane %v2943_v6, 6  ;;  %v2945_v7 = vpop.f32.mrb[14].mxu0 }
 0x38f   : > { %v2980_v8 = vsel %vm2963_vm4, %v2978_v1, %v2974_v5  ;;  %v2946_v9 = vpop.f32.mrb[15].mxu0 }
 0x390   : > { %v2981_v45 = vsel %vm2963_vm4, %v2979_v3, %v2975_v51 }
 0x3cb   : > { %v2707_v10 = vpop.f32.mrb[16].mxu1 }
 0x3cc   : > { %v2956_v63 = vrot.slane %v2707_v10, 6  ;;  %v2709_v49 = vpop.f32.mrb[17].mxu1 }
 0x3cd   : > { %v2957_v62 = vrot.slane %v2709_v49, 6  ;;  %v2711_v11 = vpop.f32.mrb[18].mxu1 }
 0x3ce   : > { %v2964_v12 = vsel %vm2963_vm4, %v2961_v0, %v2956_v63  ;;  %v2712_v13 = vpop.f32.mrb[19].mxu1 }
 0x3cf   : > { %v2965_v15 = vsel %vm2963_vm4, %v2962_v53, %v2957_v62 }
 0x3d0   : > { %3947 = vmatpush3.msk.msra.mxu0 %vm2988_vm5, %v2965_v15 }
 0x3d1   : > { %3949 = vmatmul.mubr.msk.f32.vlgmr.msra.gmra.mrb[2].mxu0 %vm2984_vm6, %v2983_v14  ;;  %3951 = vmatprep.subr.mxu0 %v4497_v34 }
 0x3d2   : > { %3952 = vmatpush3.msk.msra.mxu0 %vm2988_vm5, %v2964_v12  ;;  %3953 = vmatprep.mubr.msk.f32.mxu0 %vm4498_vm0, %v4497_v34 }
 0x3d3   : > { %3956 = vmatprep.subr.mxu0 %v4497_v34 }
 0x3d9   : > { %3954 = vmatmul.mubr.msk.f32.vlgmr.msra.gmra.mrb[2].mxu0 %vm2984_vm6, %v2982_v16 }
 0x3da   : > { %3957 = vmatpush3.msk.msra.mxu0 %vm2988_vm5, %v2981_v45  ;;  %3958 = vmatprep.mubr.msk.f32.mxu0 %vm4498_vm0, %v4497_v34 }
 0x3db   : > { %3961 = vmatprep.subr.mxu0 %v4497_v34 }
 0x3dd   : > { %3959 = vmatmul.mubr.msk.f32.vlgmr.msra.gmra.mrb[16].mxu0 %vm2984_vm6, %v2983_v14 }
 0x3de   : > { %3962 = vmatpush3.msk.msra.mxu0 %vm2988_vm5, %v2980_v8  ;;  %3963 = vmatprep.mubr.msk.f32.mxu0 %vm4498_vm0, %v4497_v34 }
 0x3e5   : > { %3964 = vmatmul.mubr.msk.f32.vlgmr.msra.gmra.mrb[16].mxu0 %vm2984_vm6, %v2982_v16 }
 0x4ac   : > { %v3134_v17 = vpop.f32.mrb[2].mxu0 }
 0x4ad   : > { %3284 = vst [vmem:[%s374_s16] sm:$0xf] %v3134_v17  ;;  %v3955_v18 = vpop.f32.mrb[3].mxu0 }
 0x4b8   : > { %v3280_v19 = vpop.f32.mrb[16].mxu0 }
 0x4b9   : > { %3285 = vst [vmem:[%s378_s19] sm:$0xf] %v3280_v19  ;;  %v3965_v20 = vpop.f32.mrb[17].mxu0 }
 0x4ba PF: > { %s21_s13 = sadd.s32 1, %s4495_s13  }
 0x4bb   : > { %p18_p4 = scmp.ge.s32.totalorder %s21_s13, 4  }
 0x4bd   :  { %20 = sbr.rel (!%p18_p4) target bundleno = 1 (0x1), region = 110 }

// kernel: _lambda_.10
= control target key start
LH: loop header
LB: loop body
LE: loop exit
PB: predicated region body
PF: predicated region fallthrough
CT: control target
= control target key end

     0   :  { %s1713_s12 = smov 0   ;;  %s2239_s0 = inlined_call_operand.vmem [shape: f32[2,1,256], index: 0, kind: input, shape index: {}]   ;;  %s2240_s1 = inlined_call_operand.vmem [shape: f32[256,256], index: 1, kind: input, shape index: {}]   ;;  %s2241_s2 = inlined_call_operand.<no memory space> [shape: f32[1,1], index: 2, kind: input, shape index: {}, may-alias: {2,4}]   ;;  %s2242_s6 = inlined_call_operand.vmem [shape: bf16[16,512,256], index: 6, kind: input, shape index: {}]   ;;  %s2243_s7 = inlined_call_operand.vmem [shape: bf16[16,256,256], index: 7, kind: input, shape index: {}]   ;;  %s2244_s8 = inlined_call_operand.vmem [shape: f32[2,1,128], index: 8, kind: output, shape index: {0}]   ;;  %s2245_s9 = inlined_call_operand.vmem [shape: f32[2,1,128], index: 9, kind: output, shape index: {1}]   ;;  %s2246_s10 = inlined_call_operand.vmem [shape: f32[2,1,128], index: 10, kind: output, shape index: {2}]   ;;  %s2247_s3 = inlined_call_operand.<no memory space> [shape: f32[1,1], index: 3, kind: input, shape index: {}, may-alias: {3,5}]   ;;  %s2248_s4 = inlined_call_operand.<no memory space> [shape: f32[1,1], index: 4, kind: input, shape index: {}, may-alias: {2,4}]   ;;  %s2249_s5 = inlined_call_operand.<no memory space> [shape: f32[1,1], index: 5, kind: input, shape index: {}, may-alias: {3,5}]  }
   0x1 LB: > { %s1324_s13 = sadd.s32 4294967295, %s1655_s12   ;;  %p1328_p0 = scmp.ge.s32.totalorder %s1655_s12, 1  ;;  %s1655_s12 = sphi %s1713_s12, %s29_s12  }
   0x2   : > { %p324_p1 = scmp.lt.s32.totalorder %s1655_s12, 3 }
   0x4   : > { %p325_p2 = pnand %p1328_p0, %p324_p1 }
   0x5   : > { %v380_v0 = vld [vmem:[%s2240_s1 + $0x8] sm:$0xff] (!%p325_p2)  ;;  %v382_v1 = vld [vmem:[%s2240_s1 + $0x18] sm:$0xff] (!%p325_p2)  ;;  %v379_v2 = vld [vmem:[%s2240_s1] sm:$0xff] (!%p325_p2)  ;;  %p365_p3 = scmp.lt.s32.totalorder (!%p325_p2), %s1324_s13, 1  ;;  %v444_v25 = vlaneseq (!%p325_p2) }
   0x6   : > { %328 = sbr.rel (%p325_p2) target bundleno = 565 (0x235), region = 52  ;;  %v1428_v3 = vpack.c.bf16 (!%p325_p2), %v382_v1, %v380_v0  ;;  %v381_v4 = vld [vmem:[%s2240_s1 + $0x10] sm:$0xff] (!%p325_p2)  ;;  %v384_v5 = vld [vmem:[%s2240_s1 + $0x28] sm:$0xff] (!%p325_p2)  ;;  %v386_v6 = vld [vmem:[%s2240_s1 + $0x38] sm:$0xff] (!%p325_p2) }
   0x7   : > { %v1430_v7 = vpack.c.bf16 (!%p325_p2), %v381_v4, %v379_v2  ;;  %v1432_v8 = vpack.c.bf16 (!%p325_p2), %v386_v6, %v384_v5  ;;  %v383_v9 = vld [vmem:[%s2240_s1 + $0x20] sm:$0xff] (!%p325_p2)  ;;  %v385_v10 = vld [vmem:[%s2240_s1 + $0x30] sm:$0xff] (!%p325_p2)  ;;  %v388_v11 = vld [vmem:[%s2240_s1 + $0x48] sm:$0xff] (!%p325_p2)  ;;  %v1793_v32 = vshrl.u32 (!%p325_p2), %v444_v25, 7 }
   0x8   : > { %1429 = vmatprep.subr.bf16.mxu0 (!%p325_p2), %v1428_v3  ;;  %v390_v12 = vld [vmem:[%s2240_s1 + $0x58] sm:$0xff] (!%p325_p2)  ;;  %v1434_v13 = vpack.c.bf16 (!%p325_p2), %v385_v10, %v383_v9  ;;  %v387_v15 = vld [vmem:[%s2240_s1 + $0x40] sm:$0xff] (!%p325_p2)  ;;  %v389_v16 = vld [vmem:[%s2240_s1 + $0x50] sm:$0xff] (!%p325_p2) }
   0x9   : > { %1431 = vmatpush1.bf16.msra.mxu0 (!%p325_p2), %v1430_v7  ;;  %v1436_v14 = vpack.c.bf16 (!%p325_p2), %v390_v12, %v388_v11  ;;  %v392_v17 = vld [vmem:[%s2240_s1 + $0x68] sm:$0xff] (!%p325_p2)  ;;  %v394_v18 = vld [vmem:[%s2240_s1 + $0x78] sm:$0xff] (!%p325_p2)  ;;  %v1438_v19 = vpack.c.bf16 (!%p325_p2), %v389_v16, %v387_v15  ;;  %v391_v21 = vld [vmem:[%s2240_s1 + $0x60] sm:$0xff] (!%p325_p2)  ;;  %v450_v39 = vsub.s32 (!%p325_p2), 1, %v1793_v32 }
   0xa   : > { %1433 = vmatprep.subr.bf16.mxu0 (!%p325_p2), %v1432_v8  ;;  %v1440_v20 = vpack.c.bf16 (!%p325_p2), %v394_v18, %v392_v17  ;;  %v393_v22 = vld [vmem:[%s2240_s1 + $0x70] sm:$0xff] (!%p325_p2)  ;;  %v396_v23 = vld [vmem:[%s2240_s1 + $0x88] sm:$0xff] (!%p325_p2)  ;;  %v398_v24 = vld [vmem:[%s2240_s1 + $0x98] sm:$0xff] (!%p325_p2) }
   0xb   : > { %v1442_v26 = vpack.c.bf16 (!%p325_p2), %v393_v22, %v391_v21  ;;  %v1444_v27 = vpack.c.bf16 (!%p325_p2), %v398_v24, %v396_v23  ;;  %v395_v28 = vld [vmem:[%s2240_s1 + $0x80] sm:$0xff] (!%p325_p2)  ;;  %v397_v29 = vld [vmem:[%s2240_s1 + $0x90] sm:$0xff] (!%p325_p2)  ;;  %v400_v30 = vld [vmem:[%s2240_s1 + $0xa8] sm:$0xff] (!%p325_p2) }
   0xc   : > { %v402_v31 = vld [vmem:[%s2240_s1 + $0xb8] sm:$0xff] (!%p325_p2)  ;;  %v1446_v33 = vpack.c.bf16 (!%p325_p2), %v397_v29, %v395_v28  ;;  %v399_v35 = vld [vmem:[%s2240_s1 + $0xa0] sm:$0xff] (!%p325_p2)  ;;  %v401_v36 = vld [vmem:[%s2240_s1 + $0xb0] sm:$0xff] (!%p325_p2) }
   0xd   : > { %1435 = vmatpush1.bf16.msra.mxu0 %v1434_v13  ;;  %s2251_s13 = smov (!%p365_p3, %s1324_s13), 1  ;;  %v1448_v34 = vpack.c.bf16 %v402_v31, %v400_v30  ;;  %v404_v37 = vld [vmem:[%s2240_s1 + $0xc8] sm:$0xff]  ;;  %v406_v38 = vld [vmem:[%s2240_s1 + $0xd8] sm:$0xff]  ;;  %v1450_v40 = vpack.c.bf16 %v401_v36, %v399_v35  ;;  %v403_v41 = vld [vmem:[%s2240_s1 + $0xc0] sm:$0xff] }
   0xe   : > { %1437 = vmatprep.subr.bf16.mxu0 %v1436_v14  ;;  %s1329_s3 = sshll.u32 %s2251_s13, 1  ;;  %v405_v42 = vld [vmem:[%s2240_s1 + $0xd0] sm:$0xff]  ;;  %v408_v43 = vld [vmem:[%s2240_s1 + $0xe8] sm:$0xff]  ;;  %v1452_v44 = vpack.c.bf16 %v406_v38, %v404_v37  ;;  %v410_v45 = vld [vmem:[%s2240_s1 + $0xf8] sm:$0xff]  ;;  %s377_s11 = scalar_lea.vmem %s2246_s10, %s2251_s13 }
   0xf   : > { %s368_s22 = scalar_lea.vmem %s2239_s0, %s1329_s3  ;;  %v1505_v48 = vld [vmem:[%s2242_s6 + $0x4] ss:$8 sps:$4 sm:$0xff]   ;;  %v1507_v49 = vld [vmem:[%s2242_s6] ss:$8 sps:$4 sm:$0xff]   ;;  %v1454_v51 = vpack.c.bf16 %v405_v42, %v403_v41  ;;  %v409_v52 = vld [vmem:[%s2240_s1 + $0xf0] sm:$0xff]  ;;  %v1456_v53 = vpack.c.bf16 %v410_v45, %v408_v43  ;;  %s371_s3 = scalar_lea.vmem %s2244_s8, %s2251_s13 }
  0x10   : > { %v1824_v46 = vld [vmem:[%s368_s22] sm:$0x3]  ;;  %v412_v54 = vld [vmem:[%s2240_s1 + $0x108] sm:$0xff]  ;;  %913 = vmatprep.subr.bf16.mxu1 %v1505_v48  ;;  %v1511_v55 = vld [vmem:[%s2242_s6 + $0x14] ss:$8 sps:$4 sm:$0xff]   ;;  %s374_s5 = scalar_lea.vmem %s2245_s9, %s2251_s13 }
  0x11   : > { %1439 = vmatpush1.bf16.msra.mxu0 %v1438_v19  ;;  %v451_v47 = vrot.slane %v1824_v46, %v450_v39  ;;  %v407_v50 = vld [vmem:[%s2240_s1 + $0xe0] sm:$0xff]  ;;  %v414_v56 = vld [vmem:[%s2240_s1 + $0x118] sm:$0xff]  ;;  %914 = vmatpush1.bf16.msra.mxu1 %v1507_v49  ;;  %v413_v62 = vld [vmem:[%s2240_s1 + $0x110] sm:$0xff] }
  0x12   : > { %1441 = vmatprep.subr.bf16.mxu0 %v1440_v20  ;;  %v1513_v57 = vld [vmem:[%s2242_s6 + $0x10] ss:$8 sps:$4 sm:$0xff]   ;;  %915 = vmatprep.subr.bf16.mxu1 %v1511_v55  ;;  %v1517_v58 = vld [vmem:[%s2242_s6 + $0x24] ss:$8 sps:$4 sm:$0xff]   ;;  %v1458_v59 = vpack.c.bf16 %v409_v52, %v407_v50  ;;  %v1460_v61 = vpack.c.bf16 %v414_v56, %v412_v54  ;;  %v1519_v1 = vld [vmem:[%s2242_s6 + $0x20] ss:$8 sps:$4 sm:$0xff]  }
  0x13   : > { %518 = vmatprep.mubr.f32.mxu0 %v451_v47  ;;  %v411_v60 = vld [vmem:[%s2240_s1 + $0x100] sm:$0xff]  ;;  %v416_v63 = vld [vmem:[%s2240_s1 + $0x128] sm:$0xff]  ;;  %v418_v0 = vld [vmem:[%s2240_s1 + $0x138] sm:$0xff] }
  0x14   : > { %v1523_v2 = vld [vmem:[%s2242_s6 + $0x34] ss:$8 sps:$4 sm:$0xff]   ;;  %v1462_v3 = vpack.c.bf16 %v413_v62, %v411_v60  ;;  %v415_v4 = vld [vmem:[%s2240_s1 + $0x120] sm:$0xff]  ;;  %v1464_v5 = vpack.c.bf16 %v418_v0, %v416_v63  ;;  %v420_v7 = vld [vmem:[%s2240_s1 + $0x148] sm:$0xff] }
  0x15   : > { %1443 = vmatpush1.bf16.msra.mxu0 %v1442_v26  ;;  %916 = vmatpush1.bf16.msra.mxu1 %v1513_v57  ;;  %v417_v6 = vld [vmem:[%s2240_s1 + $0x130] sm:$0xff]  ;;  %v422_v8 = vld [vmem:[%s2240_s1 + $0x158] sm:$0xff]  ;;  %v1529_v10 = vld [vmem:[%s2242_s6 + $0x44] ss:$8 sps:$4 sm:$0xff]  }
  0x16   : > { %1445 = vmatprep.subr.bf16.mxu0 %v1444_v27  ;;  %917 = vmatprep.subr.bf16.mxu1 %v1517_v58  ;;  %v1525_v9 = vld [vmem:[%s2242_s6 + $0x30] ss:$8 sps:$4 sm:$0xff]   ;;  %v1466_v11 = vpack.c.bf16 %v417_v6, %v415_v4  ;;  %v419_v12 = vld [vmem:[%s2240_s1 + $0x140] sm:$0xff]  ;;  %v1468_v13 = vpack.c.bf16 %v422_v8, %v420_v7  ;;  %v424_v15 = vld [vmem:[%s2240_s1 + $0x168] sm:$0xff]  ;;  %v446_v58 = vsub.s32 0, %v1793_v32 }
  0x17   : > { %v421_v14 = vld [vmem:[%s2240_s1 + $0x150] sm:$0xff]  ;;  %v426_v16 = vld [vmem:[%s2240_s1 + $0x178] sm:$0xff]  ;;  %v1531_v17 = vld [vmem:[%s2242_s6 + $0x40] ss:$8 sps:$4 sm:$0xff]  }
  0x18   : > { %v1535_v18 = vld [vmem:[%s2242_s6 + $0x54] ss:$8 sps:$4 sm:$0xff]   ;;  %v1470_v19 = vpack.c.bf16 %v421_v14, %v419_v12  ;;  %v423_v20 = vld [vmem:[%s2240_s1 + $0x160] sm:$0xff]  ;;  %v1472_v21 = vpack.c.bf16 %v426_v16, %v424_v15  ;;  %v428_v23 = vld [vmem:[%s2240_s1 + $0x188] sm:$0xff]  ;;  %v447_v63 = vrot.slane %v1824_v46, %v446_v58 }
  0x19   : > { %1447 = vmatpush1.bf16.msra.mxu0 %v1446_v33  ;;  %918 = vmatpush1.bf16.msra.mxu1 %v1519_v1  ;;  %v425_v22 = vld [vmem:[%s2240_s1 + $0x170] sm:$0xff]  ;;  %v430_v24 = vld [vmem:[%s2240_s1 + $0x198] sm:$0xff]  ;;  %v1541_v26 = vld [vmem:[%s2242_s6 + $0x64] ss:$8 sps:$4 sm:$0xff]  }
  0x1a   : > { %1449 = vmatprep.subr.bf16.mxu0 %v1448_v34  ;;  %919 = vmatprep.subr.bf16.mxu1 %v1523_v2  ;;  %v1537_v25 = vld [vmem:[%s2242_s6 + $0x50] ss:$8 sps:$4 sm:$0xff]   ;;  %v1474_v27 = vpack.c.bf16 %v425_v22, %v423_v20  ;;  %v427_v28 = vld [vmem:[%s2240_s1 + $0x180] sm:$0xff]  ;;  %v1476_v29 = vpack.c.bf16 %v430_v24, %v428_v23  ;;  %v432_v31 = vld [vmem:[%s2240_s1 + $0x1a8] sm:$0xff] }
  0x1b   : > { %v429_v30 = vld [vmem:[%s2240_s1 + $0x190] sm:$0xff]  ;;  %v434_v33 = vld [vmem:[%s2240_s1 + $0x1b8] sm:$0xff]  ;;  %v1543_v34 = vld [vmem:[%s2242_s6 + $0x60] ss:$8 sps:$4 sm:$0xff]  }
  0x1c   : > { %v1547_v35 = vld [vmem:[%s2242_s6 + $0x74] ss:$8 sps:$4 sm:$0xff]   ;;  %v1478_v36 = vpack.c.bf16 %v429_v30, %v427_v28  ;;  %v431_v37 = vld [vmem:[%s2240_s1 + $0x1a0] sm:$0xff]  ;;  %v1480_v38 = vpack.c.bf16 %v434_v33, %v432_v31  ;;  %v1549_v42 = vld [vmem:[%s2242_s6 + $0x70] ss:$8 sps:$4 sm:$0xff]  }
  0x1d   : > { %1451 = vmatpush1.bf16.msra.mxu0 %v1450_v40  ;;  %920 = vmatpush1.bf16.msra.mxu1 %v1525_v9  ;;  %v433_v39 = vld [vmem:[%s2240_s1 + $0x1b0] sm:$0xff]  ;;  %v436_v40 = vld [vmem:[%s2240_s1 + $0x1c8] sm:$0xff]  ;;  %v438_v41 = vld [vmem:[%s2240_s1 + $0x1d8] sm:$0xff] }
  0x1e   : > { %1453 = vmatprep.subr.bf16.mxu0 %v1452_v44  ;;  %921 = vmatprep.subr.bf16.mxu1 %v1529_v10  ;;  %v1553_v43 = vld [vmem:[%s2242_s6 + $0x84] ss:$8 sps:$4 sm:$0xff]   ;;  %v1482_v44 = vpack.c.bf16 %v433_v39, %v431_v37  ;;  %v1484_v47 = vpack.c.bf16 %v438_v41, %v436_v40  ;;  %v437_v48 = vld [vmem:[%s2240_s1 + $0x1d0] sm:$0xff]  ;;  %v442_v50 = vld [vmem:[%s2240_s1 + $0x1f8] sm:$0xff]  ;;  %v1657_v41 = vmov 0.0|0.0  }
  0x1f   : > { %v435_v45 = vld [vmem:[%s2240_s1 + $0x1c0] sm:$0xff]  ;;  %v440_v49 = vld [vmem:[%s2240_s1 + $0x1e8] sm:$0xff]  ;;  %v1559_v52 = vld [vmem:[%s2242_s6 + $0x94] ss:$8 sps:$4 sm:$0xff]   ;;  %945 = vmatprep.mubr.bf16.mxu1 %v1657_v41 }
  0x20   : > { %v1488_v54 = vpack.c.bf16 %v442_v50, %v440_v49  ;;  %v439_v55 = vld [vmem:[%s2240_s1 + $0x1e0] sm:$0xff]  ;;  %v441_v56 = vld [vmem:[%s2240_s1 + $0x1f0] sm:$0xff] }
  0x21   : > { %1455 = vmatpush1.bf16.msra.mxu0 %v1454_v51  ;;  %922 = vmatpush1.bf16.msra.mxu1 %v1531_v17  ;;  %v1555_v51 = vld [vmem:[%s2242_s6 + $0x80] ss:$8 sps:$4 sm:$0xff]   ;;  %v1561_v57 = vld [vmem:[%s2242_s6 + $0x90] ss:$8 sps:$4 sm:$0xff]   ;;  %v1490_v60 = vpack.c.bf16 %v441_v56, %v439_v55  ;;  %v1516_v0 = vld [vmem:[%s2243_s7 + $0x14] ss:$8 sps:$4 sm:$0xff]  }
  0x22   : > { %1457 = vmatprep.subr.bf16.mxu0 %v1456_v53  ;;  %923 = vmatprep.subr.bf16.mxu1 %v1535_v18  ;;  %v1486_v53 = vpack.c.bf16 %v437_v48, %v435_v45  ;;  %v1508_v62 = vld [vmem:[%s2243_s7] ss:$8 sps:$4 sm:$0xff]   ;;  %v1571_v1 = vld [vmem:[%s2242_s6 + $0xb4] ss:$8 sps:$4 sm:$0xff]   ;;  %v1573_v2 = vld [vmem:[%s2242_s6 + $0xb0] ss:$8 sps:$4 sm:$0xff]  }
  0x23   : > { %v1567_v32 = vld [vmem:[%s2242_s6 + $0xa0] ss:$8 sps:$4 sm:$0xff]   ;;  %v1514_v46 = vld [vmem:[%s2243_s7 + $0x10] ss:$8 sps:$4 sm:$0xff]   ;;  %v1522_v4 = vld [vmem:[%s2243_s7 + $0x24] ss:$8 sps:$4 sm:$0xff]  }
  0x24   : > { %v1583_v6 = vld [vmem:[%s2242_s6 + $0xd4] ss:$8 sps:$4 sm:$0xff]   ;;  %v1520_v7 = vld [vmem:[%s2243_s7 + $0x20] ss:$8 sps:$4 sm:$0xff]   ;;  %v1585_v9 = vld [vmem:[%s2242_s6 + $0xd0] ss:$8 sps:$4 sm:$0xff]  }
  0x25   : > { %1459 = vmatpush1.bf16.msra.mxu0 %v1458_v59  ;;  %924 = vmatpush1.bf16.msra.mxu1 %v1537_v25  ;;  %v1565_v59 = vld [vmem:[%s2242_s6 + $0xa4] ss:$8 sps:$4 sm:$0xff]   ;;  %v1528_v8 = vld [vmem:[%s2243_s7 + $0x34] ss:$8 sps:$4 sm:$0xff]   ;;  %v1532_v15 = vld [vmem:[%s2243_s7 + $0x40] ss:$8 sps:$4 sm:$0xff]  }
  0x26   : > { %1461 = vmatprep.subr.bf16.mxu0 %v1460_v61  ;;  %925 = vmatprep.subr.bf16.mxu1 %v1541_v26  ;;  %v1510_v61 = vld [vmem:[%s2243_s7 + $0x4] ss:$8 sps:$4 sm:$0xff]   ;;  %v1595_v14 = vld [vmem:[%s2242_s6 + $0xf4] ss:$8 sps:$4 sm:$0xff]   ;;  %v1597_v17 = vld [vmem:[%s2242_s6 + $0xf0] ss:$8 sps:$4 sm:$0xff]  }
  0x27   : > { %v1589_v10 = vld [vmem:[%s2242_s6 + $0xe4] ss:$8 sps:$4 sm:$0xff]   ;;  %v1540_v16 = vld [vmem:[%s2243_s7 + $0x54] ss:$8 sps:$4 sm:$0xff]   ;;  %v1538_v18 = vld [vmem:[%s2243_s7 + $0x50] ss:$8 sps:$4 sm:$0xff]  }
  0x28   : > { %v1534_v12 = vld [vmem:[%s2243_s7 + $0x44] ss:$8 sps:$4 sm:$0xff]   ;;  %v1544_v20 = vld [vmem:[%s2243_s7 + $0x60] ss:$8 sps:$4 sm:$0xff]   ;;  %v1550_v22 = vld [vmem:[%s2243_s7 + $0x70] ss:$8 sps:$4 sm:$0xff]  }
  0x29   : > { %1463 = vmatpush1.bf16.msra.mxu0 %v1462_v3  ;;  %926 = vmatpush1.bf16.msra.mxu1 %v1543_v34  ;;  %v1577_v3 = vld [vmem:[%s2242_s6 + $0xc4] ss:$8 sps:$4 sm:$0xff]   ;;  %v1556_v24 = vld [vmem:[%s2243_s7 + $0x80] ss:$8 sps:$4 sm:$0xff]   ;;  %v1564_v25 = vld [vmem:[%s2243_s7 + $0x94] ss:$8 sps:$4 sm:$0xff]  }
  0x2a   : > { %1465 = vmatprep.subr.bf16.mxu0 %v1464_v5  ;;  %927 = vmatprep.subr.bf16.mxu1 %v1547_v35  ;;  %v1579_v5 = vld [vmem:[%s2242_s6 + $0xc0] ss:$8 sps:$4 sm:$0xff]   ;;  %v1558_v23 = vld [vmem:[%s2243_s7 + $0x84] ss:$8 sps:$4 sm:$0xff]   ;;  %v1562_v26 = vld [vmem:[%s2243_s7 + $0x90] ss:$8 sps:$4 sm:$0xff]  }
  0x2b   : > { %v1568_v28 = vld [vmem:[%s2243_s7 + $0xa0] ss:$8 sps:$4 sm:$0xff]   ;;  %v1574_v30 = vld [vmem:[%s2243_s7 + $0xb0] ss:$8 sps:$4 sm:$0xff]   ;;  %v1582_v31 = vld [vmem:[%s2243_s7 + $0xc4] ss:$8 sps:$4 sm:$0xff]  }
  0x2c   : > { %v1580_v33 = vld [vmem:[%s2243_s7 + $0xc0] ss:$8 sps:$4 sm:$0xff]   ;;  %v1588_v34 = vld [vmem:[%s2243_s7 + $0xd4] ss:$8 sps:$4 sm:$0xff]   ;;  %v1586_v35 = vld [vmem:[%s2243_s7 + $0xd0] ss:$8 sps:$4 sm:$0xff]  }
  0x2d   : > { %1467 = vmatpush1.bf16.msra.mxu0 %v1466_v11  ;;  %928 = vmatpush1.bf16.msra.mxu1 %v1549_v42  ;;  %v1526_v11 = vld [vmem:[%s2243_s7 + $0x30] ss:$8 sps:$4 sm:$0xff]   ;;  %v1592_v37 = vld [vmem:[%s2243_s7 + $0xe0] ss:$8 sps:$4 sm:$0xff]   ;;  %v1603_v40 = vld [vmem:[%s2242_s6 + $0x104] ss:$8 sps:$4 sm:$0xff]  }
  0x2e   : > { %1469 = vmatprep.subr.bf16.mxu0 %v1468_v13  ;;  %929 = vmatprep.subr.bf16.mxu1 %v1553_v43  ;;  %v1591_v13 = vld [vmem:[%s2242_s6 + $0xe0] ss:$8 sps:$4 sm:$0xff]   ;;  %v1598_v39 = vld [vmem:[%s2243_s7 + $0xf0] ss:$8 sps:$4 sm:$0xff]   ;;  %v1609_v49 = vld [vmem:[%s2242_s6 + $0x124] ss:$8 sps:$4 sm:$0xff]  }
  0x2f   : > { %v1601_v43 = vld [vmem:[%s2242_s6 + $0x100] ss:$8 sps:$4 sm:$0xff]   ;;  %v1604_v48 = vld [vmem:[%s2242_s6 + $0x110] ss:$8 sps:$4 sm:$0xff]   ;;  %v1618_v55 = vld [vmem:[%s2242_s6 + $0x154] ss:$8 sps:$4 sm:$0xff]  }
  0x30   : > { %v1607_v50 = vld [vmem:[%s2242_s6 + $0x120] ss:$8 sps:$4 sm:$0xff]   ;;  %v1616_v56 = vld [vmem:[%s2242_s6 + $0x150] ss:$8 sps:$4 sm:$0xff]  }
  0x31   : > { %1471 = vmatpush1.bf16.msra.mxu0 %v1470_v19  ;;  %930 = vmatpush1.bf16.msra.mxu1 %v1555_v51  ;;  %v1546_v19 = vld [vmem:[%s2243_s7 + $0x64] ss:$8 sps:$4 sm:$0xff]   ;;  %v1612_v51 = vld [vmem:[%s2242_s6 + $0x134] ss:$8 sps:$4 sm:$0xff]   ;;  %v1619_v58 = vld [vmem:[%s2242_s6 + $0x160] ss:$8 sps:$4 sm:$0xff]  }
  0x32   : > { %1473 = vmatprep.subr.bf16.mxu0 %v1472_v21  ;;  %931 = vmatprep.subr.bf16.mxu1 %v1559_v52  ;;  %v1552_v21 = vld [vmem:[%s2243_s7 + $0x74] ss:$8 sps:$4 sm:$0xff]   ;;  %v1610_v52 = vld [vmem:[%s2242_s6 + $0x130] ss:$8 sps:$4 sm:$0xff]  }
  0x35   : > { %1475 = vmatpush1.bf16.msra.mxu0 %v1474_v27  ;;  %932 = vmatpush1.bf16.msra.mxu1 %v1561_v57  ;;  %v1570_v27 = vld [vmem:[%s2243_s7 + $0xa4] ss:$8 sps:$4 sm:$0xff]  }
  0x36   : > { %1477 = vmatprep.subr.bf16.mxu0 %v1476_v29  ;;  %933 = vmatprep.subr.bf16.mxu1 %v1565_v59  ;;  %v1576_v29 = vld [vmem:[%s2243_s7 + $0xb4] ss:$8 sps:$4 sm:$0xff]   ;;  %v1621_v57 = vld [vmem:[%s2242_s6 + $0x164] ss:$8 sps:$4 sm:$0xff]  }
  0x37   : > { %v1624_v59 = vld [vmem:[%s2242_s6 + $0x174] ss:$8 sps:$4 sm:$0xff]  }
  0x39   : > { %1479 = vmatpush1.bf16.msra.mxu0 %v1478_v36  ;;  %934 = vmatpush1.bf16.msra.mxu1 %v1567_v32  ;;  %v1594_v36 = vld [vmem:[%s2243_s7 + $0xe4] ss:$8 sps:$4 sm:$0xff]   ;;  %v1630_v32 = vld [vmem:[%s2242_s6 + $0x194] ss:$8 sps:$4 sm:$0xff]  }
  0x3a   : > { %1481 = vmatprep.subr.bf16.mxu0 %v1480_v38  ;;  %935 = vmatprep.subr.bf16.mxu1 %v1571_v1  ;;  %v1600_v38 = vld [vmem:[%s2243_s7 + $0xf4] ss:$8 sps:$4 sm:$0xff]   ;;  %v1631_v1 = vld [vmem:[%s2242_s6 + $0x1a0] ss:$8 sps:$4 sm:$0xff]  }
  0x3d   : > { %1483 = vmatpush1.bf16.msra.mxu0 %v1482_v44  ;;  %936 = vmatpush1.bf16.msra.mxu1 %v1573_v2  ;;  %v1636_v2 = vld [vmem:[%s2242_s6 + $0x1b4] ss:$8 sps:$4 sm:$0xff]  }
  0x3e   : > { %1485 = vmatprep.subr.bf16.mxu0 %v1484_v47  ;;  %937 = vmatprep.subr.bf16.mxu1 %v1577_v3  ;;  %v1606_v47 = vld [vmem:[%s2242_s6 + $0x114] ss:$8 sps:$4 sm:$0xff]   ;;  %v1634_v3 = vld [vmem:[%s2242_s6 + $0x1b0] ss:$8 sps:$4 sm:$0xff]  }
  0x41   : > { %1487 = vmatpush1.bf16.msra.mxu0 %v1486_v53  ;;  %938 = vmatpush1.bf16.msra.mxu1 %v1579_v5  ;;  %v1615_v53 = vld [vmem:[%s2242_s6 + $0x144] ss:$8 sps:$4 sm:$0xff]   ;;  %v1642_v5 = vld [vmem:[%s2242_s6 + $0x1d4] ss:$8 sps:$4 sm:$0xff]  }
  0x42   : > { %1489 = vmatprep.subr.bf16.mxu0 %v1488_v54  ;;  %939 = vmatprep.subr.bf16.mxu1 %v1583_v6  ;;  %v1613_v54 = vld [vmem:[%s2242_s6 + $0x140] ss:$8 sps:$4 sm:$0xff]   ;;  %v1640_v6 = vld [vmem:[%s2242_s6 + $0x1d0] ss:$8 sps:$4 sm:$0xff]  }
  0x45   : > { %1491 = vmatpush1.bf16.msra.mxu0 %v1490_v60  ;;  %940 = vmatpush1.bf16.msra.mxu1 %v1585_v9  ;;  %v1622_v60 = vld [vmem:[%s2242_s6 + $0x170] ss:$8 sps:$4 sm:$0xff]   ;;  %v1648_v9 = vld [vmem:[%s2242_s6 + $0x1f4] ss:$8 sps:$4 sm:$0xff]  }
  0x46   : > { %1185 = vmatprep.subr.bf16.mxu0 %v1510_v61  ;;  %941 = vmatprep.subr.bf16.mxu1 %v1589_v10  ;;  %v1627_v61 = vld [vmem:[%s2242_s6 + $0x184] ss:$8 sps:$4 sm:$0xff]   ;;  %v1646_v10 = vld [vmem:[%s2242_s6 + $0x1f0] ss:$8 sps:$4 sm:$0xff]  }
  0x48   : > { %519 = vmatmul.mubr.f32.vlgmr.msra.gmra.mrb[0].mxu0 %v447_v63  ;;  %v1628_v63 = vld [vmem:[%s2242_s6 + $0x190] ss:$8 sps:$4 sm:$0xff]  }
  0x49   : > { %1186 = vmatpush1.bf16.msra.mxu0 %v1508_v62  ;;  %942 = vmatpush1.bf16.msra.mxu1 %v1591_v13  ;;  %v1625_v62 = vld [vmem:[%s2242_s6 + $0x180] ss:$8 sps:$4 sm:$0xff]  }
  0x4a   : > { %1187 = vmatprep.subr.bf16.mxu0 %v1516_v0  ;;  %943 = vmatprep.subr.bf16.mxu1 %v1595_v14  ;;  %v1633_v0 = vld [vmem:[%s2242_s6 + $0x1a4] ss:$8 sps:$4 sm:$0xff]  }
  0x4b   : > { %1217 = vmatprep.mubr.bf16.mxu0 %v1657_v41 }
  0x4d   : > { %1188 = vmatpush1.bf16.msra.mxu0 %v1514_v46  ;;  %944 = vmatpush1.bf16.msra.mxu1 %v1597_v17  ;;  %v1639_v46 = vld [vmem:[%s2242_s6 + $0x1c4] ss:$8 sps:$4 sm:$0xff]  }
  0x4e   : > { %1189 = vmatprep.subr.bf16.mxu0 %v1522_v4  ;;  %953 = vmatprep.subr.bf16.mxu1 %v1603_v40  ;;  %v1637_v4 = vld [vmem:[%s2242_s6 + $0x1c0] ss:$8 sps:$4 sm:$0xff]  }
  0x51   : > { %1190 = vmatpush1.bf16.msra.mxu0 %v1520_v7  ;;  %v1645_v7 = vld [vmem:[%s2242_s6 + $0x1e4] ss:$8 sps:$4 sm:$0xff]  }
  0x52   : > { %1191 = vmatprep.subr.bf16.mxu0 %v1528_v8  ;;  %v1643_v8 = vld [vmem:[%s2242_s6 + $0x1e0] ss:$8 sps:$4 sm:$0xff]  }
  0x55   : > { %1192 = vmatpush1.bf16.msra.mxu0 %v1526_v11 }
  0x56   : > { %1193 = vmatprep.subr.bf16.mxu0 %v1534_v12 }
  0x59   : > { %1194 = vmatpush1.bf16.msra.mxu0 %v1532_v15 }
  0x5a   : > { %1195 = vmatprep.subr.bf16.mxu0 %v1540_v16 }
  0x5d   : > { %1196 = vmatpush1.bf16.msra.mxu0 %v1538_v18 }
  0x5e   : > { %1197 = vmatprep.subr.bf16.mxu0 %v1546_v19 }
  0x61   : > { %1198 = vmatpush1.bf16.msra.mxu0 %v1544_v20 }
  0x62   : > { %1199 = vmatprep.subr.bf16.mxu0 %v1552_v21 }
  0x65   : > { %1200 = vmatpush1.bf16.msra.mxu0 %v1550_v22 }
  0x66   : > { %1201 = vmatprep.subr.bf16.mxu0 %v1558_v23 }
  0x69   : > { %1202 = vmatpush1.bf16.msra.mxu0 %v1556_v24 }
  0x6a   : > { %1203 = vmatprep.subr.bf16.mxu0 %v1564_v25 }
  0x6d   : > { %1204 = vmatpush1.bf16.msra.mxu0 %v1562_v26 }
  0x6e   : > { %1205 = vmatprep.subr.bf16.mxu0 %v1570_v27 }
  0x71   : > { %1206 = vmatpush1.bf16.msra.mxu0 %v1568_v28 }
  0x72   : > { %1207 = vmatprep.subr.bf16.mxu0 %v1576_v29 }
  0x75   : > { %1208 = vmatpush1.bf16.msra.mxu0 %v1574_v30 }
  0x76   : > { %1209 = vmatprep.subr.bf16.mxu0 %v1582_v31 }
  0x79   : > { %1210 = vmatpush1.bf16.msra.mxu0 %v1580_v33 }
  0x7a   : > { %1211 = vmatprep.subr.bf16.mxu0 %v1588_v34 }
  0x7d   : > { %1212 = vmatpush1.bf16.msra.mxu0 %v1586_v35 }
  0x7e   : > { %1213 = vmatprep.subr.bf16.mxu0 %v1594_v36 }
  0x81   : > { %1214 = vmatpush1.bf16.msra.mxu0 %v1592_v37 }
  0x82   : > { %1215 = vmatprep.subr.bf16.mxu0 %v1600_v38 }
  0x85   : > { %1216 = vmatpush1.bf16.msra.mxu0 %v1598_v39 }
 0x11b   : > { %v520_v42 = vpop.f32.mrb[0].mxu0 }
 0x11c   : > { %v526_v44 = vpack.c.bf16 %v520_v42, %v520_v42  ;;  %v2133_v45 = vpop.f32.mrb[1].mxu0 }
 0x11d   : > { %525 = vst [vmem:[%s371_s3] sm:$0x1] %v2133_v45  ;;  %v528_v11 = vpack.c.bf16 %v2133_v45, %v2133_v45 }
 0x11e   : > { %946 = vmatmul.mubr.bf16.vlgmr.msra.gmra.mrb[0].mxu1 %v526_v44  ;;  %1218 = vmatmul.mubr.bf16.vlgmr.msra.gmra.mrb[4].mxu0 %v526_v44 }
 0x11f   : > { %954 = vmatpush1.bf16.msra.mxu1 %v1601_v43  ;;  %985 = vmatprep.mubr.bf16.mxu1 %v1657_v41 }
 0x120   : > { %955 = vmatprep.subr.bf16.mxu1 %v1606_v47 }
 0x123   : > { %956 = vmatpush1.bf16.msra.mxu1 %v1604_v48 }
 0x124   : > { %957 = vmatprep.subr.bf16.mxu1 %v1609_v49 }
 0x127   : > { %958 = vmatpush1.bf16.msra.mxu1 %v1607_v50 }
 0x128   : > { %959 = vmatprep.subr.bf16.mxu1 %v1612_v51 }
 0x12b   : > { %960 = vmatpush1.bf16.msra.mxu1 %v1610_v52 }
 0x12c   : > { %961 = vmatprep.subr.bf16.mxu1 %v1615_v53 }
 0x12f   : > { %962 = vmatpush1.bf16.msra.mxu1 %v1613_v54 }
 0x130   : > { %963 = vmatprep.subr.bf16.mxu1 %v1618_v55 }
 0x133   : > { %964 = vmatpush1.bf16.msra.mxu1 %v1616_v56 }
 0x134   : > { %965 = vmatprep.subr.bf16.mxu1 %v1621_v57 }
 0x137   : > { %966 = vmatpush1.bf16.msra.mxu1 %v1619_v58 }
 0x138   : > { %967 = vmatprep.subr.bf16.mxu1 %v1624_v59 }
 0x13b   : > { %968 = vmatpush1.bf16.msra.mxu1 %v1622_v60 }
 0x13c   : > { %969 = vmatprep.subr.bf16.mxu1 %v1627_v61 }
 0x13f   : > { %970 = vmatpush1.bf16.msra.mxu1 %v1625_v62 }
 0x140   : > { %971 = vmatprep.subr.bf16.mxu1 %v1630_v32 }
 0x143   : > { %972 = vmatpush1.bf16.msra.mxu1 %v1628_v63 }
 0x144   : > { %973 = vmatprep.subr.bf16.mxu1 %v1633_v0 }
 0x147   : > { %974 = vmatpush1.bf16.msra.mxu1 %v1631_v1 }
 0x148   : > { %975 = vmatprep.subr.bf16.mxu1 %v1636_v2 }
 0x14b   : > { %976 = vmatpush1.bf16.msra.mxu1 %v1634_v3 }
 0x14c   : > { %977 = vmatprep.subr.bf16.mxu1 %v1639_v46 }
 0x14f   : > { %978 = vmatpush1.bf16.msra.mxu1 %v1637_v4 }
 0x150   : > { %979 = vmatprep.subr.bf16.mxu1 %v1642_v5 }
 0x153   : > { %980 = vmatpush1.bf16.msra.mxu1 %v1640_v6 }
 0x154   : > { %981 = vmatprep.subr.bf16.mxu1 %v1645_v7 }
 0x157   : > { %982 = vmatpush1.bf16.msra.mxu1 %v1643_v8 }
 0x158   : > { %983 = vmatprep.subr.bf16.mxu1 %v1648_v9 }
 0x15b   : > { %984 = vmatpush1.bf16.msra.mxu1 %v1646_v10 }
 0x15e   : > { %986 = vmatmul.mubr.bf16.vlgmr.msra.gmra.mrb[0].mxu1 %v528_v11 }
 0x1f1   : > { %v1219_v12 = vpop.f32.mrb[4].mxu0 }
 0x1f2   : > { %1226 = vst [vmem:[%s377_s11] sm:$0x1] %v1219_v12  ;;  %v1221_v13 = vpop.f32.mrb[5].mxu0 }
 0x1f3   : > { %v1222_v14 = vpop.f32.mrb[6].mxu0 }
 0x1f4   : > { %v1223_v15 = vpop.f32.mrb[7].mxu0 }
 0x231   : > { %v987_v16 = vpop.f32.mrb[0].mxu1 }
 0x232   : > { %1225 = vst [vmem:[%s374_s5] sm:$0x1] %v987_v16  ;;  %v989_v17 = vpop.f32.mrb[1].mxu1 }
 0x233   : > { %v990_v18 = vpop.f32.mrb[2].mxu1 }
 0x234   : > { %v991_v19 = vpop.f32.mrb[3].mxu1 }
 0x235 PF: > { %s29_s12 = sadd.s32 1, %s1655_s12  }
 0x236   : > { %p26_p4 = scmp.ge.s32.totalorder %s29_s12, 4  }
 0x238   :  { %28 = sbr.rel (!%p26_p4) target bundleno = 1 (0x1), region = 106 }

// kernel: _lambda_.9
= control target key start
LH: loop header
LB: loop body
LE: loop exit
PB: predicated region body
PF: predicated region fallthrough
CT: control target
= control target key end

     0   :  { %s3490_s13 = smov 0   ;;  %s4385_s0 = inlined_call_operand.vmem [shape: f32[2,2,256], index: 0, kind: input, shape index: {}]   ;;  %s4386_s1 = inlined_call_operand.vmem [shape: f32[256,256], index: 1, kind: input, shape index: {}]   ;;  %s4387_s2 = inlined_call_operand.vmem [shape: f32[2,2], index: 2, kind: input, shape index: {}]   ;;  %s4388_s3 = inlined_call_operand.vmem [shape: f32[2,2], index: 3, kind: input, shape index: {}]   ;;  %s4389_s4 = inlined_call_operand.vmem [shape: f32[2,2], index: 4, kind: input, shape index: {}]   ;;  %s4390_s5 = inlined_call_operand.vmem [shape: f32[2,2], index: 5, kind: input, shape index: {}]   ;;  %s4391_s6 = inlined_call_operand.vmem [shape: bf16[16,512,256], index: 6, kind: input, shape index: {}]   ;;  %s4392_s7 = inlined_call_operand.vmem [shape: bf16[16,256,256], index: 7, kind: input, shape index: {}]   ;;  %s4393_s8 = inlined_call_operand.vmem [shape: f32[2,2,128], index: 8, kind: output, shape index: {0}]   ;;  %s4394_s9 = inlined_call_operand.vmem [shape: f32[2,2,128], index: 9, kind: output, shape index: {1}]   ;;  %s4395_s10 = inlined_call_operand.vmem [shape: f32[2,2,128], index: 10, kind: output, shape index: {2}]  }
   0x1 LB: > { %s2677_s14 = sadd.s32 4294967295, %s3431_s13   ;;  %p2681_p0 = scmp.ge.s32.totalorder %s3431_s13, 1  ;;  %s3431_s13 = sphi %s3490_s13, %s21_s13  }
   0x2   : > { %p317_p1 = scmp.lt.s32.totalorder %s3431_s13, 3 }
   0x4   : > { %p318_p2 = pnand %p2681_p0, %p317_p1 }
   0x5   : > { %v381_v0 = vld [vmem:[%s4386_s1 + $0x8] sm:$0xff] (!%p318_p2)  ;;  %v383_v1 = vld [vmem:[%s4386_s1 + $0x18] sm:$0xff] (!%p318_p2)  ;;  %v380_v2 = vld [vmem:[%s4386_s1] sm:$0xff] (!%p318_p2)  ;;  %p362_p3 = scmp.lt.s32.totalorder (!%p318_p2), %s2677_s14, 1  ;;  %vm3434_vm0 = vmmov (!%p318_p2), 0   ;;  %vm533_vm1 = vcmask (!%p318_p2), 1041408  }
   0x6   : > { %321 = sbr.rel (%p318_p2) target bundleno = 1082 (0x43a), region = 52  ;;  %v3051_v3 = vpack.c.bf16 (!%p318_p2), %v383_v1, %v381_v0  ;;  %v382_v4 = vld [vmem:[%s4386_s1 + $0x10] sm:$0xff] (!%p318_p2)  ;;  %v385_v5 = vld [vmem:[%s4386_s1 + $0x28] sm:$0xff] (!%p318_p2)  ;;  %v387_v6 = vld [vmem:[%s4386_s1 + $0x38] sm:$0xff] (!%p318_p2)  ;;  %vm529_vm2 = vcmask (!%p318_p2), 15360   ;;  %vm2249_vm3 = vcmask (!%p318_p2), 1040384  }
   0x7   : > { %v3053_v7 = vpack.c.bf16 (!%p318_p2), %v382_v4, %v380_v2  ;;  %v3055_v8 = vpack.c.bf16 (!%p318_p2), %v387_v6, %v385_v5  ;;  %v384_v9 = vld [vmem:[%s4386_s1 + $0x20] sm:$0xff] (!%p318_p2)  ;;  %v386_v10 = vld [vmem:[%s4386_s1 + $0x30] sm:$0xff] (!%p318_p2)  ;;  %v389_v11 = vld [vmem:[%s4386_s1 + $0x48] sm:$0xff] (!%p318_p2) }
   0x8   : > { %3052 = vmatprep.subr.bf16.mxu0 (!%p318_p2), %v3051_v3  ;;  %v391_v12 = vld [vmem:[%s4386_s1 + $0x58] sm:$0xff] (!%p318_p2)  ;;  %v3057_v13 = vpack.c.bf16 (!%p318_p2), %v386_v10, %v384_v9  ;;  %v388_v15 = vld [vmem:[%s4386_s1 + $0x40] sm:$0xff] (!%p318_p2)  ;;  %v390_v16 = vld [vmem:[%s4386_s1 + $0x50] sm:$0xff] (!%p318_p2) }
   0x9   : > { %3054 = vmatpush1.bf16.msra.mxu0 (!%p318_p2), %v3053_v7  ;;  %v3059_v14 = vpack.c.bf16 (!%p318_p2), %v391_v12, %v389_v11  ;;  %v393_v17 = vld [vmem:[%s4386_s1 + $0x68] sm:$0xff] (!%p318_p2)  ;;  %v395_v18 = vld [vmem:[%s4386_s1 + $0x78] sm:$0xff] (!%p318_p2)  ;;  %v3061_v19 = vpack.c.bf16 (!%p318_p2), %v390_v16, %v388_v15  ;;  %v392_v21 = vld [vmem:[%s4386_s1 + $0x60] sm:$0xff] (!%p318_p2) }
   0xa   : > { %3056 = vmatprep.subr.bf16.mxu0 (!%p318_p2), %v3055_v8  ;;  %v3063_v20 = vpack.c.bf16 (!%p318_p2), %v395_v18, %v393_v17  ;;  %v394_v22 = vld [vmem:[%s4386_s1 + $0x70] sm:$0xff] (!%p318_p2)  ;;  %v397_v23 = vld [vmem:[%s4386_s1 + $0x88] sm:$0xff] (!%p318_p2)  ;;  %v399_v24 = vld [vmem:[%s4386_s1 + $0x98] sm:$0xff] (!%p318_p2) }
   0xb   : > { %v3065_v25 = vpack.c.bf16 (!%p318_p2), %v394_v22, %v392_v21  ;;  %v3067_v26 = vpack.c.bf16 (!%p318_p2), %v399_v24, %v397_v23  ;;  %v396_v27 = vld [vmem:[%s4386_s1 + $0x80] sm:$0xff] (!%p318_p2)  ;;  %v398_v28 = vld [vmem:[%s4386_s1 + $0x90] sm:$0xff] (!%p318_p2)  ;;  %v401_v29 = vld [vmem:[%s4386_s1 + $0xa8] sm:$0xff] (!%p318_p2) }
   0xc   : > { %v403_v30 = vld [vmem:[%s4386_s1 + $0xb8] sm:$0xff] (!%p318_p2)  ;;  %v3069_v31 = vpack.c.bf16 (!%p318_p2), %v398_v28, %v396_v27  ;;  %v400_v33 = vld [vmem:[%s4386_s1 + $0xa0] sm:$0xff] (!%p318_p2)  ;;  %v402_v34 = vld [vmem:[%s4386_s1 + $0xb0] sm:$0xff] (!%p318_p2) }
   0xd   : > { %3058 = vmatpush1.bf16.msra.mxu0 %v3057_v13  ;;  %s4397_s14 = smov (!%p362_p3, %s2677_s14), 1  ;;  %v3071_v32 = vpack.c.bf16 %v403_v30, %v401_v29  ;;  %v405_v35 = vld [vmem:[%s4386_s1 + $0xc8] sm:$0xff]  ;;  %v407_v36 = vld [vmem:[%s4386_s1 + $0xd8] sm:$0xff]  ;;  %v3073_v37 = vpack.c.bf16 %v402_v34, %v400_v33  ;;  %v404_v38 = vld [vmem:[%s4386_s1 + $0xc0] sm:$0xff]  ;;  %v3433_v34 = vmov 0.0  }
   0xe   : > { %3060 = vmatprep.subr.bf16.mxu0 %v3059_v14  ;;  %s2994_s23 = sshll.u32 %s4397_s14, 2  ;;  %v406_v39 = vld [vmem:[%s4386_s1 + $0xd0] sm:$0xff]  ;;  %v409_v40 = vld [vmem:[%s4386_s1 + $0xe8] sm:$0xff]  ;;  %v3075_v41 = vpack.c.bf16 %v407_v36, %v405_v35  ;;  %v411_v42 = vld [vmem:[%s4386_s1 + $0xf8] sm:$0xff]  ;;  %3011 = vmatprep.subr.mxu1 %v3433_v34  ;;  %s3799_s27 = sshll.u32 %s4397_s14, 1 }
   0xf   : > { %s366_s16 = scalar_lea.vmem %s4385_s0, %s2994_s23  ;;  %v408_v45 = vld [vmem:[%s4386_s1 + $0xe0] sm:$0xff]  ;;  %v410_v46 = vld [vmem:[%s4386_s1 + $0xf0] sm:$0xff]  ;;  %v3077_v47 = vpack.c.bf16 %v406_v39, %v404_v38  ;;  %v413_v48 = vld [vmem:[%s4386_s1 + $0x108] sm:$0xff]  ;;  %v3079_v50 = vpack.c.bf16 %v411_v42, %v409_v40  ;;  %3013 = vmatprep.mubr.msk.f32.mxu1 %vm3434_vm0, %v3433_v34  ;;  %s370_s30 = scalar_lea.vmem %s4393_s8, %s3799_s27 }
  0x10   : > { %v3598_v43 = vld.sshfl [vmem:[%s366_s16] sm:$0x33 pattern:$0x76325410]  ;;  %v415_v49 = vld [vmem:[%s4386_s1 + $0x118] sm:$0xff]  ;;  %v414_v52 = vld [vmem:[%s4386_s1 + $0x110] sm:$0xff]  ;;  %v3081_v53 = vpack.c.bf16 %v410_v46, %v408_v45  ;;  %s374_s22 = scalar_lea.vmem %s4394_s9, %s3799_s27  ;;  %s378_s23 = scalar_lea.vmem %s4395_s10, %s3799_s27 }
  0x11   : > { %3062 = vmatpush1.bf16.msra.mxu0 %v3061_v19  ;;  %v452_v44 = vcombine.high %v3598_v43, %v3598_v43  ;;  %v412_v51 = vld [vmem:[%s4386_s1 + $0x100] sm:$0xff]  ;;  %v417_v54 = vld [vmem:[%s4386_s1 + $0x128] sm:$0xff]  ;;  %v419_v55 = vld [vmem:[%s4386_s1 + $0x138] sm:$0xff]  ;;  %v3083_v56 = vpack.c.bf16 %v415_v49, %v413_v48 }
  0x12   : > { %3064 = vmatprep.subr.bf16.mxu0 %v3063_v20  ;;  %v416_v57 = vld [vmem:[%s4386_s1 + $0x120] sm:$0xff]  ;;  %v418_v58 = vld [vmem:[%s4386_s1 + $0x130] sm:$0xff]  ;;  %v3085_v59 = vpack.c.bf16 %v414_v52, %v412_v51  ;;  %v421_v60 = vld [vmem:[%s4386_s1 + $0x148] sm:$0xff]  ;;  %v3087_v62 = vpack.c.bf16 %v419_v55, %v417_v54 }
  0x13   : > { %519 = vmatprep.mubr.f32.mxu0 %v452_v44  ;;  %v423_v61 = vld [vmem:[%s4386_s1 + $0x158] sm:$0xff]  ;;  %v420_v63 = vld [vmem:[%s4386_s1 + $0x140] sm:$0xff]  ;;  %v422_v0 = vld [vmem:[%s4386_s1 + $0x150] sm:$0xff]  ;;  %v3089_v1 = vpack.c.bf16 %v418_v58, %v416_v57 }
  0x14   : > { %v425_v2 = vld [vmem:[%s4386_s1 + $0x168] sm:$0xff]  ;;  %v427_v3 = vld [vmem:[%s4386_s1 + $0x178] sm:$0xff]  ;;  %v3091_v4 = vpack.c.bf16 %v423_v61, %v421_v60  ;;  %v424_v5 = vld [vmem:[%s4386_s1 + $0x160] sm:$0xff]  ;;  %v3093_v7 = vpack.c.bf16 %v422_v0, %v420_v63 }
  0x15   : > { %3066 = vmatpush1.bf16.msra.mxu0 %v3065_v25  ;;  %v426_v6 = vld [vmem:[%s4386_s1 + $0x170] sm:$0xff]  ;;  %v429_v8 = vld [vmem:[%s4386_s1 + $0x188] sm:$0xff]  ;;  %v431_v9 = vld [vmem:[%s4386_s1 + $0x198] sm:$0xff]  ;;  %v3095_v10 = vpack.c.bf16 %v427_v3, %v425_v2 }
  0x16   : > { %3068 = vmatprep.subr.bf16.mxu0 %v3067_v26  ;;  %v428_v11 = vld [vmem:[%s4386_s1 + $0x180] sm:$0xff]  ;;  %v430_v12 = vld [vmem:[%s4386_s1 + $0x190] sm:$0xff]  ;;  %v3097_v13 = vpack.c.bf16 %v426_v6, %v424_v5  ;;  %v433_v14 = vld [vmem:[%s4386_s1 + $0x1a8] sm:$0xff]  ;;  %v3099_v16 = vpack.c.bf16 %v431_v9, %v429_v8 }
  0x17   : > { %v435_v15 = vld [vmem:[%s4386_s1 + $0x1b8] sm:$0xff]  ;;  %v432_v17 = vld [vmem:[%s4386_s1 + $0x1a0] sm:$0xff]  ;;  %v434_v18 = vld [vmem:[%s4386_s1 + $0x1b0] sm:$0xff]  ;;  %v3101_v19 = vpack.c.bf16 %v430_v12, %v428_v11 }
  0x18   : > { %v437_v20 = vld [vmem:[%s4386_s1 + $0x1c8] sm:$0xff]  ;;  %v439_v21 = vld [vmem:[%s4386_s1 + $0x1d8] sm:$0xff]  ;;  %v3103_v22 = vpack.c.bf16 %v435_v15, %v433_v14  ;;  %v436_v23 = vld [vmem:[%s4386_s1 + $0x1c0] sm:$0xff]  ;;  %v3105_v25 = vpack.c.bf16 %v434_v18, %v432_v17 }
  0x19   : > { %3070 = vmatpush1.bf16.msra.mxu0 %v3069_v31  ;;  %v438_v24 = vld [vmem:[%s4386_s1 + $0x1d0] sm:$0xff]  ;;  %v441_v26 = vld [vmem:[%s4386_s1 + $0x1e8] sm:$0xff]  ;;  %v443_v27 = vld [vmem:[%s4386_s1 + $0x1f8] sm:$0xff]  ;;  %v3107_v28 = vpack.c.bf16 %v439_v21, %v437_v20 }
  0x1a   : > { %3072 = vmatprep.subr.bf16.mxu0 %v3071_v32  ;;  %v440_v29 = vld [vmem:[%s4386_s1 + $0x1e0] sm:$0xff]  ;;  %v442_v30 = vld [vmem:[%s4386_s1 + $0x1f0] sm:$0xff]  ;;  %v3109_v31 = vpack.c.bf16 %v438_v24, %v436_v23  ;;  %v3111_v32 = vpack.c.bf16 %v443_v27, %v441_v26 }
  0x1b   : > { %v3113_v33 = vpack.c.bf16 %v442_v30, %v440_v29  ;;  %v3140_v35 = vld [vmem:[%s4392_s7] ss:$8 sps:$4 sm:$0xff]   ;;  %v3142_v36 = vld [vmem:[%s4392_s7 + $0x4] ss:$8 sps:$4 sm:$0xff]   ;;  %v3146_v38 = vld [vmem:[%s4392_s7 + $0x10] ss:$8 sps:$4 sm:$0xff]  }
  0x1c   : > { %v3154_v39 = vld [vmem:[%s4392_s7 + $0x24] ss:$8 sps:$4 sm:$0xff]   ;;  %v3152_v40 = vld [vmem:[%s4392_s7 + $0x20] ss:$8 sps:$4 sm:$0xff]   ;;  %v3158_v42 = vld [vmem:[%s4392_s7 + $0x30] ss:$8 sps:$4 sm:$0xff]  }
  0x1d   : > { %3074 = vmatpush1.bf16.msra.mxu0 %v3073_v37  ;;  %v3148_v37 = vld [vmem:[%s4392_s7 + $0x14] ss:$8 sps:$4 sm:$0xff]   ;;  %v3164_v44 = vld [vmem:[%s4392_s7 + $0x40] ss:$8 sps:$4 sm:$0xff]   ;;  %v3170_v46 = vld [vmem:[%s4392_s7 + $0x50] ss:$8 sps:$4 sm:$0xff]  }
  0x1e   : > { %3076 = vmatprep.subr.bf16.mxu0 %v3075_v41  ;;  %v3160_v41 = vld [vmem:[%s4392_s7 + $0x34] ss:$8 sps:$4 sm:$0xff]   ;;  %v3176_v48 = vld [vmem:[%s4392_s7 + $0x60] ss:$8 sps:$4 sm:$0xff]   ;;  %v3190_v51 = vld [vmem:[%s4392_s7 + $0x84] ss:$8 sps:$4 sm:$0xff]  }
  0x1f   : > { %v3172_v45 = vld [vmem:[%s4392_s7 + $0x54] ss:$8 sps:$4 sm:$0xff]   ;;  %v3188_v52 = vld [vmem:[%s4392_s7 + $0x80] ss:$8 sps:$4 sm:$0xff]   ;;  %v3194_v54 = vld [vmem:[%s4392_s7 + $0x90] ss:$8 sps:$4 sm:$0xff]  }
  0x20   : > { %v3184_v49 = vld [vmem:[%s4392_s7 + $0x74] ss:$8 sps:$4 sm:$0xff]   ;;  %v3202_v55 = vld [vmem:[%s4392_s7 + $0xa4] ss:$8 sps:$4 sm:$0xff]   ;;  %v3206_v58 = vld [vmem:[%s4392_s7 + $0xb0] ss:$8 sps:$4 sm:$0xff]  }
  0x21   : > { %3078 = vmatpush1.bf16.msra.mxu0 %v3077_v47  ;;  %v3178_v47 = vld [vmem:[%s4392_s7 + $0x64] ss:$8 sps:$4 sm:$0xff]   ;;  %v3208_v57 = vld [vmem:[%s4392_s7 + $0xb4] ss:$8 sps:$4 sm:$0xff]   ;;  %v3212_v60 = vld [vmem:[%s4392_s7 + $0xc0] ss:$8 sps:$4 sm:$0xff]  }
  0x22   : > { %3080 = vmatprep.subr.bf16.mxu0 %v3079_v50  ;;  %v3182_v50 = vld [vmem:[%s4392_s7 + $0x70] ss:$8 sps:$4 sm:$0xff]   ;;  %v3220_v61 = vld [vmem:[%s4392_s7 + $0xd4] ss:$8 sps:$4 sm:$0xff]   ;;  %v3226_v63 = vld [vmem:[%s4392_s7 + $0xe4] ss:$8 sps:$4 sm:$0xff]  }
  0x23   : > { %v3224_v0 = vld [vmem:[%s4392_s7 + $0xe0] ss:$8 sps:$4 sm:$0xff]   ;;  %v3139_v5 = vld [vmem:[%s4391_s6 + $0x4] ss:$8 sps:$4 sm:$0xff]   ;;  %v3143_v8 = vld [vmem:[%s4391_s6 + $0x10] ss:$8 sps:$4 sm:$0xff]  }
  0x24   : > { %v3137_v6 = vld [vmem:[%s4391_s6] ss:$8 sps:$4 sm:$0xff]   ;;  %v3151_v9 = vld [vmem:[%s4391_s6 + $0x24] ss:$8 sps:$4 sm:$0xff]   ;;  %v3157_v11 = vld [vmem:[%s4391_s6 + $0x34] ss:$8 sps:$4 sm:$0xff]  }
  0x25   : > { %3082 = vmatpush1.bf16.msra.mxu0 %v3081_v53  ;;  %v3196_v53 = vld [vmem:[%s4392_s7 + $0x94] ss:$8 sps:$4 sm:$0xff]   ;;  %v3155_v12 = vld [vmem:[%s4391_s6 + $0x30] ss:$8 sps:$4 sm:$0xff]   ;;  %v3161_v14 = vld [vmem:[%s4391_s6 + $0x40] ss:$8 sps:$4 sm:$0xff]  }
  0x26   : > { %3084 = vmatprep.subr.bf16.mxu0 %v3083_v56  ;;  %v3200_v56 = vld [vmem:[%s4392_s7 + $0xa0] ss:$8 sps:$4 sm:$0xff]   ;;  %v3169_v15 = vld [vmem:[%s4391_s6 + $0x54] ss:$8 sps:$4 sm:$0xff]   ;;  %v3175_v17 = vld [vmem:[%s4391_s6 + $0x64] ss:$8 sps:$4 sm:$0xff]  }
  0x27   : > { %v3173_v18 = vld [vmem:[%s4391_s6 + $0x60] ss:$8 sps:$4 sm:$0xff]   ;;  %v3179_v20 = vld [vmem:[%s4391_s6 + $0x70] ss:$8 sps:$4 sm:$0xff]   ;;  %v3187_v21 = vld [vmem:[%s4391_s6 + $0x84] ss:$8 sps:$4 sm:$0xff]  }
  0x28   : > { %v3193_v23 = vld [vmem:[%s4391_s6 + $0x94] ss:$8 sps:$4 sm:$0xff]   ;;  %v3191_v24 = vld [vmem:[%s4391_s6 + $0x90] ss:$8 sps:$4 sm:$0xff]   ;;  %v3197_v26 = vld [vmem:[%s4391_s6 + $0xa0] ss:$8 sps:$4 sm:$0xff]  }
  0x29   : > { %3086 = vmatpush1.bf16.msra.mxu0 %v3085_v59  ;;  %v3214_v59 = vld [vmem:[%s4392_s7 + $0xc4] ss:$8 sps:$4 sm:$0xff]   ;;  %v3205_v27 = vld [vmem:[%s4391_s6 + $0xb4] ss:$8 sps:$4 sm:$0xff]   ;;  %v3209_v30 = vld [vmem:[%s4391_s6 + $0xc0] ss:$8 sps:$4 sm:$0xff]  }
  0x2a   : > { %3088 = vmatprep.subr.bf16.mxu0 %v3087_v62  ;;  %v3218_v62 = vld [vmem:[%s4392_s7 + $0xd0] ss:$8 sps:$4 sm:$0xff]   ;;  %v3211_v29 = vld [vmem:[%s4391_s6 + $0xc4] ss:$8 sps:$4 sm:$0xff]  }
  0x2d   : > { %3090 = vmatpush1.bf16.msra.mxu0 %v3089_v1  ;;  %v527_v1 = vld [vmem:[%s4387_s2] sm:$0x3] }
  0x2e   : > { %3092 = vmatprep.subr.bf16.mxu0 %v3091_v4  ;;  %v528_v4 = vld [vmem:[%s4388_s3] sm:$0x3] }
  0x31   : > { %3094 = vmatpush1.bf16.msra.mxu0 %v3093_v7  ;;  %v3145_v7 = vld [vmem:[%s4391_s6 + $0x14] ss:$8 sps:$4 sm:$0xff]  }
  0x32   : > { %3096 = vmatprep.subr.bf16.mxu0 %v3095_v10  ;;  %v3149_v10 = vld [vmem:[%s4391_s6 + $0x20] ss:$8 sps:$4 sm:$0xff]  }
  0x35   : > { %3098 = vmatpush1.bf16.msra.mxu0 %v3097_v13  ;;  %v3163_v13 = vld [vmem:[%s4391_s6 + $0x44] ss:$8 sps:$4 sm:$0xff]  }
  0x36   : > { %3100 = vmatprep.subr.bf16.mxu0 %v3099_v16  ;;  %v3167_v16 = vld [vmem:[%s4391_s6 + $0x50] ss:$8 sps:$4 sm:$0xff]  }
  0x39   : > { %3102 = vmatpush1.bf16.msra.mxu0 %v3101_v19  ;;  %v3181_v19 = vld [vmem:[%s4391_s6 + $0x74] ss:$8 sps:$4 sm:$0xff]  }
  0x3a   : > { %3104 = vmatprep.subr.bf16.mxu0 %v3103_v22  ;;  %v3185_v22 = vld [vmem:[%s4391_s6 + $0x80] ss:$8 sps:$4 sm:$0xff]  }
  0x3d   : > { %3106 = vmatpush1.bf16.msra.mxu0 %v3105_v25  ;;  %v3199_v25 = vld [vmem:[%s4391_s6 + $0xa4] ss:$8 sps:$4 sm:$0xff]  }
  0x3e   : > { %3108 = vmatprep.subr.bf16.mxu0 %v3107_v28  ;;  %v3203_v28 = vld [vmem:[%s4391_s6 + $0xb0] ss:$8 sps:$4 sm:$0xff]  }
  0x41   : > { %3110 = vmatpush1.bf16.msra.mxu0 %v3109_v31  ;;  %v3217_v31 = vld [vmem:[%s4391_s6 + $0xd4] ss:$8 sps:$4 sm:$0xff]  }
  0x42   : > { %3112 = vmatprep.subr.bf16.mxu0 %v3111_v32  ;;  %v3215_v32 = vld [vmem:[%s4391_s6 + $0xd0] ss:$8 sps:$4 sm:$0xff]  }
  0x45   : > { %3114 = vmatpush1.bf16.msra.mxu0 %v3113_v33  ;;  %v3223_v33 = vld [vmem:[%s4391_s6 + $0xe4] ss:$8 sps:$4 sm:$0xff]  }
  0x46   : > { %1485 = vmatprep.subr.bf16.mxu0 %v3142_v36  ;;  %v3229_v36 = vld [vmem:[%s4391_s6 + $0xf4] ss:$8 sps:$4 sm:$0xff]  }
  0x48   : > { %520 = vmatmul.mubr.f32.vlgmr.msra.gmra.mrb[0].mxu0 %v3598_v43  ;;  %v3166_v43 = vld [vmem:[%s4392_s7 + $0x44] ss:$8 sps:$4 sm:$0xff]  }
  0x49   : > { %1486 = vmatpush1.bf16.msra.mxu0 %v3140_v35  ;;  %v3221_v35 = vld [vmem:[%s4391_s6 + $0xe0] ss:$8 sps:$4 sm:$0xff]  }
  0x4a   : > { %1487 = vmatprep.subr.bf16.mxu0 %v3148_v37  ;;  %v3232_v37 = vld [vmem:[%s4392_s7 + $0xf4] ss:$8 sps:$4 sm:$0xff]  }
  0x4d   : > { %1488 = vmatpush1.bf16.msra.mxu0 %v3146_v38  ;;  %v3227_v38 = vld [vmem:[%s4391_s6 + $0xf0] ss:$8 sps:$4 sm:$0xff]  }
  0x4e   : > { %1489 = vmatprep.subr.bf16.mxu0 %v3154_v39  ;;  %v3230_v39 = vld [vmem:[%s4392_s7 + $0xf0] ss:$8 sps:$4 sm:$0xff]  }
  0x51   : > { %1490 = vmatpush1.bf16.msra.mxu0 %v3152_v40  ;;  %v3235_v40 = vld [vmem:[%s4391_s6 + $0x104] ss:$8 sps:$4 sm:$0xff]  }
  0x52   : > { %1491 = vmatprep.subr.bf16.mxu0 %v3160_v41  ;;  %v3238_v41 = vld [vmem:[%s4391_s6 + $0x204] ss:$8 sps:$4 sm:$0xff]  }
  0x55   : > { %1492 = vmatpush1.bf16.msra.mxu0 %v3158_v42 }
  0x56   : > { %1493 = vmatprep.subr.bf16.mxu0 %v3166_v43 }
  0x59   : > { %1494 = vmatpush1.bf16.msra.mxu0 %v3164_v44 }
  0x5a   : > { %1495 = vmatprep.subr.bf16.mxu0 %v3172_v45 }
  0x5d   : > { %1496 = vmatpush1.bf16.msra.mxu0 %v3170_v46 }
  0x5e   : > { %1497 = vmatprep.subr.bf16.mxu0 %v3178_v47  ;;  %v3233_v47 = vld [vmem:[%s4391_s6 + $0x100] ss:$8 sps:$4 sm:$0xff]  }
  0x61   : > { %1498 = vmatpush1.bf16.msra.mxu0 %v3176_v48  ;;  %v3236_v48 = vld [vmem:[%s4391_s6 + $0x200] ss:$8 sps:$4 sm:$0xff]  }
  0x62   : > { %1499 = vmatprep.subr.bf16.mxu0 %v3184_v49 }
  0x65   : > { %1500 = vmatpush1.bf16.msra.mxu0 %v3182_v50  ;;  %v3241_v50 = vld [vmem:[%s4391_s6 + $0x114] ss:$8 sps:$4 sm:$0xff]  }
  0x66   : > { %1501 = vmatprep.subr.bf16.mxu0 %v3190_v51 }
  0x69   : > { %1502 = vmatpush1.bf16.msra.mxu0 %v3188_v52  ;;  %v3244_v52 = vld [vmem:[%s4391_s6 + $0x214] ss:$8 sps:$4 sm:$0xff]  }
  0x6a   : > { %1503 = vmatprep.subr.bf16.mxu0 %v3196_v53 }
  0x6d   : > { %1504 = vmatpush1.bf16.msra.mxu0 %v3194_v54  ;;  %v3239_v54 = vld [vmem:[%s4391_s6 + $0x110] ss:$8 sps:$4 sm:$0xff]  }
  0x6e   : > { %1505 = vmatprep.subr.bf16.mxu0 %v3202_v55  ;;  %v3242_v55 = vld [vmem:[%s4391_s6 + $0x210] ss:$8 sps:$4 sm:$0xff]  }
  0x71   : > { %1506 = vmatpush1.bf16.msra.mxu0 %v3200_v56 }
  0x72   : > { %1507 = vmatprep.subr.bf16.mxu0 %v3208_v57  ;;  %v3247_v57 = vld [vmem:[%s4391_s6 + $0x124] ss:$8 sps:$4 sm:$0xff]  }
  0x75   : > { %1508 = vmatpush1.bf16.msra.mxu0 %v3206_v58  ;;  %v3250_v58 = vld [vmem:[%s4391_s6 + $0x224] ss:$8 sps:$4 sm:$0xff]  }
  0x76   : > { %1509 = vmatprep.subr.bf16.mxu0 %v3214_v59 }
  0x79   : > { %1510 = vmatpush1.bf16.msra.mxu0 %v3212_v60  ;;  %v3245_v60 = vld [vmem:[%s4391_s6 + $0x120] ss:$8 sps:$4 sm:$0xff]  }
  0x7a   : > { %1511 = vmatprep.subr.bf16.mxu0 %v3220_v61  ;;  %v3248_v61 = vld [vmem:[%s4391_s6 + $0x220] ss:$8 sps:$4 sm:$0xff]  }
  0x7d   : > { %1512 = vmatpush1.bf16.msra.mxu0 %v3218_v62 }
  0x7e   : > { %1513 = vmatprep.subr.bf16.mxu0 %v3226_v63 }
  0x81   : > { %1514 = vmatpush1.bf16.msra.mxu0 %v3224_v0  ;;  %v3253_v0 = vld [vmem:[%s4391_s6 + $0x134] ss:$8 sps:$4 sm:$0xff]  }
  0x82   : > { %1515 = vmatprep.subr.bf16.mxu0 %v3232_v37  ;;  %v3307_v37 = vld [vmem:[%s4391_s6 + $0x1c4] ss:$8 sps:$4 sm:$0xff]  }
  0x85   : > { %1516 = vmatpush1.bf16.msra.mxu0 %v3230_v39  ;;  %v3305_v39 = vld [vmem:[%s4391_s6 + $0x1c0] ss:$8 sps:$4 sm:$0xff]  }
  0x86   : > { %1927 = vmatprep.subr.bf16.mxu0 %v3238_v41  ;;  %v3313_v41 = vld [vmem:[%s4391_s6 + $0x1d4] ss:$8 sps:$4 sm:$0xff]  }
 0x11b   : > { %v521_v2 = vpop.f32.mrb[0].mxu0 }
 0x11c   : > { %v523_v3 = vpop.f32.mrb[1].mxu0  ;;  %3012 = vmatpush3.msk.msra.mxu1 %vm533_vm1, %v521_v2 }
 0x11d   : > { %526 = vst [vmem:[%s370_s30] sm:$0x3] %v523_v3  ;;  %3014 = vmatmul.mubr.msk.f32.vlgmr.msra.gmra.mrb[0].mxu1 %vm529_vm2, %v527_v1  ;;  %3016 = vmatprep.subr.mxu1 %v3433_v34 }
 0x11e   : > { %3017 = vmatpush3.msk.msra.mxu1 %vm533_vm1, %v521_v2  ;;  %3018 = vmatprep.mubr.msk.f32.mxu1 %vm3434_vm0, %v3433_v34  ;;  %v3251_v2 = vld [vmem:[%s4391_s6 + $0x130] ss:$8 sps:$4 sm:$0xff]  }
 0x11f   : > { %3021 = vmatprep.subr.mxu1 %v3433_v34 }
 0x121   : > { %3019 = vmatmul.mubr.msk.f32.vlgmr.msra.gmra.mrb[2].mxu1 %vm529_vm2, %v528_v4 }
 0x122   : > { %3022 = vmatpush3.msk.msra.mxu1 %vm533_vm1, %v523_v3  ;;  %3023 = vmatprep.mubr.msk.f32.mxu1 %vm3434_vm0, %v3433_v34 }
 0x123   : > { %3026 = vmatprep.subr.mxu1 %v3433_v34 }
 0x125   : > { %3024 = vmatmul.mubr.msk.f32.vlgmr.msra.gmra.mrb[4].mxu1 %vm529_vm2, %v527_v1  ;;  %v3256_v1 = vld [vmem:[%s4391_s6 + $0x234] ss:$8 sps:$4 sm:$0xff]  }
 0x126   : > { %3027 = vmatpush3.msk.msra.mxu1 %vm533_vm1, %v523_v3  ;;  %3028 = vmatprep.mubr.msk.f32.mxu1 %vm3434_vm0, %v3433_v34  ;;  %v3254_v3 = vld [vmem:[%s4391_s6 + $0x230] ss:$8 sps:$4 sm:$0xff]  }
 0x127   : > { %1211 = vmatprep.subr.bf16.mxu1 %v3139_v5  ;;  %v3262_v5 = vld [vmem:[%s4391_s6 + $0x244] ss:$8 sps:$4 sm:$0xff]  }
 0x129   : > { %3029 = vmatmul.mubr.msk.f32.vlgmr.msra.gmra.mrb[6].mxu1 %vm529_vm2, %v528_v4  ;;  %v3259_v4 = vld [vmem:[%s4391_s6 + $0x144] ss:$8 sps:$4 sm:$0xff]  }
 0x12a   : > { %1212 = vmatpush1.bf16.msra.mxu1 %v3137_v6  ;;  %v3257_v6 = vld [vmem:[%s4391_s6 + $0x140] ss:$8 sps:$4 sm:$0xff]  }
 0x12b   : > { %1213 = vmatprep.subr.bf16.mxu1 %v3145_v7  ;;  %v3260_v7 = vld [vmem:[%s4391_s6 + $0x240] ss:$8 sps:$4 sm:$0xff]  }
 0x12e   : > { %1214 = vmatpush1.bf16.msra.mxu1 %v3143_v8  ;;  %v3265_v8 = vld [vmem:[%s4391_s6 + $0x154] ss:$8 sps:$4 sm:$0xff]  }
 0x12f   : > { %1215 = vmatprep.subr.bf16.mxu1 %v3151_v9  ;;  %v3268_v9 = vld [vmem:[%s4391_s6 + $0x254] ss:$8 sps:$4 sm:$0xff]  }
 0x132   : > { %1216 = vmatpush1.bf16.msra.mxu1 %v3149_v10  ;;  %v3263_v10 = vld [vmem:[%s4391_s6 + $0x150] ss:$8 sps:$4 sm:$0xff]  }
 0x133   : > { %1217 = vmatprep.subr.bf16.mxu1 %v3157_v11  ;;  %v3266_v11 = vld [vmem:[%s4391_s6 + $0x250] ss:$8 sps:$4 sm:$0xff]  }
 0x136   : > { %1218 = vmatpush1.bf16.msra.mxu1 %v3155_v12  ;;  %v3271_v12 = vld [vmem:[%s4391_s6 + $0x164] ss:$8 sps:$4 sm:$0xff]  }
 0x137   : > { %1219 = vmatprep.subr.bf16.mxu1 %v3163_v13  ;;  %v3274_v13 = vld [vmem:[%s4391_s6 + $0x264] ss:$8 sps:$4 sm:$0xff]  }
 0x13a   : > { %1220 = vmatpush1.bf16.msra.mxu1 %v3161_v14  ;;  %v3269_v14 = vld [vmem:[%s4391_s6 + $0x160] ss:$8 sps:$4 sm:$0xff]  }
 0x13b   : > { %1221 = vmatprep.subr.bf16.mxu1 %v3169_v15  ;;  %v3272_v15 = vld [vmem:[%s4391_s6 + $0x260] ss:$8 sps:$4 sm:$0xff]  }
 0x13e   : > { %1222 = vmatpush1.bf16.msra.mxu1 %v3167_v16  ;;  %v3277_v16 = vld [vmem:[%s4391_s6 + $0x174] ss:$8 sps:$4 sm:$0xff]  }
 0x13f   : > { %1223 = vmatprep.subr.bf16.mxu1 %v3175_v17  ;;  %v3280_v17 = vld [vmem:[%s4391_s6 + $0x274] ss:$8 sps:$4 sm:$0xff]  }
 0x142   : > { %1224 = vmatpush1.bf16.msra.mxu1 %v3173_v18  ;;  %v3275_v18 = vld [vmem:[%s4391_s6 + $0x170] ss:$8 sps:$4 sm:$0xff]  }
 0x143   : > { %1225 = vmatprep.subr.bf16.mxu1 %v3181_v19  ;;  %v3278_v19 = vld [vmem:[%s4391_s6 + $0x270] ss:$8 sps:$4 sm:$0xff]  }
 0x146   : > { %1226 = vmatpush1.bf16.msra.mxu1 %v3179_v20  ;;  %v3283_v20 = vld [vmem:[%s4391_s6 + $0x184] ss:$8 sps:$4 sm:$0xff]  }
 0x147   : > { %1227 = vmatprep.subr.bf16.mxu1 %v3187_v21  ;;  %v3286_v21 = vld [vmem:[%s4391_s6 + $0x284] ss:$8 sps:$4 sm:$0xff]  }
 0x14a   : > { %1228 = vmatpush1.bf16.msra.mxu1 %v3185_v22  ;;  %v3281_v22 = vld [vmem:[%s4391_s6 + $0x180] ss:$8 sps:$4 sm:$0xff]  }
 0x14b   : > { %1229 = vmatprep.subr.bf16.mxu1 %v3193_v23  ;;  %v3284_v23 = vld [vmem:[%s4391_s6 + $0x280] ss:$8 sps:$4 sm:$0xff]  }
 0x14e   : > { %1230 = vmatpush1.bf16.msra.mxu1 %v3191_v24  ;;  %v3289_v24 = vld [vmem:[%s4391_s6 + $0x194] ss:$8 sps:$4 sm:$0xff]  }
 0x14f   : > { %1231 = vmatprep.subr.bf16.mxu1 %v3199_v25  ;;  %v3292_v25 = vld [vmem:[%s4391_s6 + $0x294] ss:$8 sps:$4 sm:$0xff]  }
 0x152   : > { %1232 = vmatpush1.bf16.msra.mxu1 %v3197_v26  ;;  %v3287_v26 = vld [vmem:[%s4391_s6 + $0x190] ss:$8 sps:$4 sm:$0xff]  }
 0x153   : > { %1233 = vmatprep.subr.bf16.mxu1 %v3205_v27  ;;  %v3290_v27 = vld [vmem:[%s4391_s6 + $0x290] ss:$8 sps:$4 sm:$0xff]  }
 0x156   : > { %1234 = vmatpush1.bf16.msra.mxu1 %v3203_v28  ;;  %v3295_v28 = vld [vmem:[%s4391_s6 + $0x1a4] ss:$8 sps:$4 sm:$0xff]  }
 0x157   : > { %1235 = vmatprep.subr.bf16.mxu1 %v3211_v29  ;;  %v3298_v29 = vld [vmem:[%s4391_s6 + $0x2a4] ss:$8 sps:$4 sm:$0xff]  }
 0x15a   : > { %1236 = vmatpush1.bf16.msra.mxu1 %v3209_v30  ;;  %v3293_v30 = vld [vmem:[%s4391_s6 + $0x1a0] ss:$8 sps:$4 sm:$0xff]  }
 0x15b   : > { %1237 = vmatprep.subr.bf16.mxu1 %v3217_v31  ;;  %v3296_v31 = vld [vmem:[%s4391_s6 + $0x2a0] ss:$8 sps:$4 sm:$0xff]  }
 0x15e   : > { %1238 = vmatpush1.bf16.msra.mxu1 %v3215_v32  ;;  %v3301_v32 = vld [vmem:[%s4391_s6 + $0x1b4] ss:$8 sps:$4 sm:$0xff]  }
 0x15f   : > { %1239 = vmatprep.subr.bf16.mxu1 %v3223_v33  ;;  %v3304_v33 = vld [vmem:[%s4391_s6 + $0x2b4] ss:$8 sps:$4 sm:$0xff]  }
 0x162   : > { %1240 = vmatpush1.bf16.msra.mxu1 %v3221_v35  ;;  %v3299_v35 = vld [vmem:[%s4391_s6 + $0x1b0] ss:$8 sps:$4 sm:$0xff]  }
 0x163   : > { %1241 = vmatprep.subr.bf16.mxu1 %v3229_v36  ;;  %v3302_v36 = vld [vmem:[%s4391_s6 + $0x2b0] ss:$8 sps:$4 sm:$0xff]  }
 0x166   : > { %1242 = vmatpush1.bf16.msra.mxu1 %v3227_v38  ;;  %v3310_v38 = vld [vmem:[%s4391_s6 + $0x2c4] ss:$8 sps:$4 sm:$0xff]  }
 0x167   : > { %1252 = vmatprep.subr.bf16.mxu1 %v3235_v40  ;;  %v3308_v40 = vld [vmem:[%s4391_s6 + $0x2c0] ss:$8 sps:$4 sm:$0xff]  }
 0x1f0   : > { %v603_v42 = vpop.f32.mrb[0].mxu1 }
 0x1f1   : > { %v3015_v43 = vpop.f32.mrb[1].mxu1  ;;  %v3944_v49 = vpack.c.bf16 %v603_v42, %v603_v42  ;;  %v3316_v42 = vld [vmem:[%s4391_s6 + $0x2d4] ss:$8 sps:$4 sm:$0xff]  }
 0x1f2   : > { %v3311_v43 = vld [vmem:[%s4391_s6 + $0x1d0] ss:$8 sps:$4 sm:$0xff]  }
 0x1f4   : > { %v676_v44 = vpop.f32.mrb[2].mxu1 }
 0x1f5   : > { %v3936_v45 = vpack.c.bf16 %v676_v44, %v676_v44  ;;  %v3020_v46 = vpop.f32.mrb[3].mxu1  ;;  %v3314_v44 = vld [vmem:[%s4391_s6 + $0x2d0] ss:$8 sps:$4 sm:$0xff]  }
 0x1f6   : > { %v3319_v46 = vld [vmem:[%s4391_s6 + $0x1e4] ss:$8 sps:$4 sm:$0xff]  }
 0x1f7   : > { %1243 = vmatprep.mubr.bf16.mxu1 %v3936_v45  ;;  %1517 = vmatprep.mubr.bf16.mxu0 %v3936_v45  ;;  %v1595_v51 = vshrl.u32 %v3936_v45, 16  ;;  %v3344_v45 = vld [vmem:[%s4392_s7 + $0x120] ss:$8 sps:$4 sm:$0xff]  }
 0x1f8   : > { %1244 = vmatmul.mubr.bf16.vlgmr.msra.gmra.mrb[8].mxu1 %v3944_v49  ;;  %1518 = vmatmul.mubr.bf16.vlgmr.msra.gmra.mrb[4].mxu0 %v3944_v49  ;;  %v3957_v53 = vpop.f32.mrb[4].mxu1 }
 0x1f9   : > { %1253 = vmatpush1.bf16.msra.mxu1 %v3233_v47  ;;  %1928 = vmatpush1.bf16.msra.mxu0 %v3236_v48  ;;  %v3025_v56 = vpop.f32.mrb[5].mxu1  ;;  %v3322_v47 = vld [vmem:[%s4391_s6 + $0x2e4] ss:$8 sps:$4 sm:$0xff]   ;;  %v3317_v48 = vld [vmem:[%s4391_s6 + $0x1e0] ss:$8 sps:$4 sm:$0xff]  }
 0x1fa   : > { %1959 = vmatprep.mubr.bf16.mxu0 %v1595_v51  ;;  %1254 = vmatprep.subr.bf16.mxu1 %v3241_v50  ;;  %v3320_v50 = vld [vmem:[%s4391_s6 + $0x2e0] ss:$8 sps:$4 sm:$0xff]   ;;  %v3326_v56 = vld [vmem:[%s4391_s6 + $0x2f0] ss:$8 sps:$4 sm:$0xff]  }
 0x1fb   : > { %1929 = vmatprep.subr.bf16.mxu0 %v3244_v52  ;;  %v3325_v52 = vld [vmem:[%s4391_s6 + $0x1f4] ss:$8 sps:$4 sm:$0xff]  }
 0x1fc   : > { %v819_v59 = vpop.f32.mrb[6].mxu1 }
 0x1fd   : > { %1255 = vmatpush1.bf16.msra.mxu1 %v3239_v54  ;;  %1930 = vmatpush1.bf16.msra.mxu0 %v3242_v55  ;;  %v3979_v62 = vpack.c.bf16 %v819_v59, %v819_v59  ;;  %v3030_v63 = vpop.f32.mrb[7].mxu1  ;;  %v3328_v54 = vld [vmem:[%s4391_s6 + $0x2f4] ss:$8 sps:$4 sm:$0xff]   ;;  %v3323_v55 = vld [vmem:[%s4391_s6 + $0x1f0] ss:$8 sps:$4 sm:$0xff]   ;;  %v4146_v59 = vpack.c.bf16 %v3957_v53, %v3957_v53 }
 0x1fe   : > { %1256 = vmatprep.subr.bf16.mxu1 %v3247_v57  ;;  %1931 = vmatprep.subr.bf16.mxu0 %v3250_v58  ;;  %v3331_v57 = vld [vmem:[%s4391_s6 + $0x304] ss:$8 sps:$4 sm:$0xff]   ;;  %v1592_v63 = vshrl.u32 %v3944_v49, 16 }
 0x1ff   : > { %1284 = vmatprep.mubr.bf16.mxu1 %v3979_v62  ;;  %v3334_v58 = vld [vmem:[%s4392_s7 + $0x104] ss:$8 sps:$4 sm:$0xff]   ;;  %v1601_v53 = vshrl.u32 %v3979_v62, 16 }
 0x200   : > { %v3343_v62 = vld [vmem:[%s4391_s6 + $0x324] ss:$8 sps:$4 sm:$0xff]  }
 0x201   : > { %1257 = vmatpush1.bf16.msra.mxu1 %v3245_v60  ;;  %1932 = vmatpush1.bf16.msra.mxu0 %v3248_v61  ;;  %v3329_v60 = vld [vmem:[%s4391_s6 + $0x300] ss:$8 sps:$4 sm:$0xff]  }
 0x202   : > { %1258 = vmatprep.subr.bf16.mxu1 %v3253_v0  ;;  %1933 = vmatprep.subr.bf16.mxu0 %v3256_v1  ;;  %v3332_v61 = vld [vmem:[%s4392_s7 + $0x100] ss:$8 sps:$4 sm:$0xff]   ;;  %v3337_v0 = vld [vmem:[%s4391_s6 + $0x314] ss:$8 sps:$4 sm:$0xff]  }
 0x203   : > { %v3340_v1 = vld [vmem:[%s4392_s7 + $0x114] ss:$8 sps:$4 sm:$0xff]  }
 0x205   : > { %1259 = vmatpush1.bf16.msra.mxu1 %v3251_v2  ;;  %1934 = vmatpush1.bf16.msra.mxu0 %v3254_v3  ;;  %v3335_v2 = vld [vmem:[%s4391_s6 + $0x310] ss:$8 sps:$4 sm:$0xff]  }
 0x206   : > { %1260 = vmatprep.subr.bf16.mxu1 %v3259_v4  ;;  %1935 = vmatprep.subr.bf16.mxu0 %v3262_v5  ;;  %v3338_v3 = vld [vmem:[%s4392_s7 + $0x110] ss:$8 sps:$4 sm:$0xff]   ;;  %v3346_v4 = vld [vmem:[%s4392_s7 + $0x124] ss:$8 sps:$4 sm:$0xff]   ;;  %v3341_v5 = vld [vmem:[%s4391_s6 + $0x320] ss:$8 sps:$4 sm:$0xff]  }
 0x209   : > { %1261 = vmatpush1.bf16.msra.mxu1 %v3257_v6  ;;  %1936 = vmatpush1.bf16.msra.mxu0 %v3260_v7  ;;  %v3352_v6 = vld [vmem:[%s4392_s7 + $0x134] ss:$8 sps:$4 sm:$0xff]   ;;  %v3347_v7 = vld [vmem:[%s4391_s6 + $0x330] ss:$8 sps:$4 sm:$0xff]  }
 0x20a   : > { %1262 = vmatprep.subr.bf16.mxu1 %v3265_v8  ;;  %1937 = vmatprep.subr.bf16.mxu0 %v3268_v9  ;;  %v3350_v8 = vld [vmem:[%s4392_s7 + $0x130] ss:$8 sps:$4 sm:$0xff]   ;;  %v3355_v9 = vld [vmem:[%s4391_s6 + $0x344] ss:$8 sps:$4 sm:$0xff]  }
 0x20d   : > { %1263 = vmatpush1.bf16.msra.mxu1 %v3263_v10  ;;  %1938 = vmatpush1.bf16.msra.mxu0 %v3266_v11  ;;  %v3358_v10 = vld [vmem:[%s4392_s7 + $0x144] ss:$8 sps:$4 sm:$0xff]   ;;  %v3353_v11 = vld [vmem:[%s4391_s6 + $0x340] ss:$8 sps:$4 sm:$0xff]  }
 0x20e   : > { %1264 = vmatprep.subr.bf16.mxu1 %v3271_v12  ;;  %1939 = vmatprep.subr.bf16.mxu0 %v3274_v13  ;;  %v3356_v12 = vld [vmem:[%s4392_s7 + $0x140] ss:$8 sps:$4 sm:$0xff]   ;;  %v3361_v13 = vld [vmem:[%s4391_s6 + $0x354] ss:$8 sps:$4 sm:$0xff]  }
 0x211   : > { %1265 = vmatpush1.bf16.msra.mxu1 %v3269_v14  ;;  %1940 = vmatpush1.bf16.msra.mxu0 %v3272_v15  ;;  %v3364_v14 = vld [vmem:[%s4392_s7 + $0x154] ss:$8 sps:$4 sm:$0xff]   ;;  %v3359_v15 = vld [vmem:[%s4391_s6 + $0x350] ss:$8 sps:$4 sm:$0xff]  }
 0x212   : > { %1266 = vmatprep.subr.bf16.mxu1 %v3277_v16  ;;  %1941 = vmatprep.subr.bf16.mxu0 %v3280_v17  ;;  %v3362_v16 = vld [vmem:[%s4392_s7 + $0x150] ss:$8 sps:$4 sm:$0xff]   ;;  %v3367_v17 = vld [vmem:[%s4391_s6 + $0x364] ss:$8 sps:$4 sm:$0xff]  }
 0x215   : > { %1267 = vmatpush1.bf16.msra.mxu1 %v3275_v18  ;;  %1942 = vmatpush1.bf16.msra.mxu0 %v3278_v19  ;;  %v3370_v18 = vld [vmem:[%s4392_s7 + $0x164] ss:$8 sps:$4 sm:$0xff]   ;;  %v3365_v19 = vld [vmem:[%s4391_s6 + $0x360] ss:$8 sps:$4 sm:$0xff]  }
 0x216   : > { %1268 = vmatprep.subr.bf16.mxu1 %v3283_v20  ;;  %1943 = vmatprep.subr.bf16.mxu0 %v3286_v21  ;;  %v3368_v20 = vld [vmem:[%s4392_s7 + $0x160] ss:$8 sps:$4 sm:$0xff]   ;;  %v3373_v21 = vld [vmem:[%s4391_s6 + $0x374] ss:$8 sps:$4 sm:$0xff]  }
 0x219   : > { %1269 = vmatpush1.bf16.msra.mxu1 %v3281_v22  ;;  %1944 = vmatpush1.bf16.msra.mxu0 %v3284_v23  ;;  %v3376_v22 = vld [vmem:[%s4392_s7 + $0x174] ss:$8 sps:$4 sm:$0xff]   ;;  %v3371_v23 = vld [vmem:[%s4391_s6 + $0x370] ss:$8 sps:$4 sm:$0xff]  }
 0x21a   : > { %1270 = vmatprep.subr.bf16.mxu1 %v3289_v24  ;;  %1945 = vmatprep.subr.bf16.mxu0 %v3292_v25  ;;  %v3374_v24 = vld [vmem:[%s4392_s7 + $0x170] ss:$8 sps:$4 sm:$0xff]   ;;  %v3379_v25 = vld [vmem:[%s4391_s6 + $0x384] ss:$8 sps:$4 sm:$0xff]  }
 0x21d   : > { %1271 = vmatpush1.bf16.msra.mxu1 %v3287_v26  ;;  %1946 = vmatpush1.bf16.msra.mxu0 %v3290_v27  ;;  %v3382_v26 = vld [vmem:[%s4392_s7 + $0x184] ss:$8 sps:$4 sm:$0xff]   ;;  %v3377_v27 = vld [vmem:[%s4391_s6 + $0x380] ss:$8 sps:$4 sm:$0xff]  }
 0x21e   : > { %1272 = vmatprep.subr.bf16.mxu1 %v3295_v28  ;;  %1947 = vmatprep.subr.bf16.mxu0 %v3298_v29  ;;  %v3380_v28 = vld [vmem:[%s4392_s7 + $0x180] ss:$8 sps:$4 sm:$0xff]   ;;  %v3385_v29 = vld [vmem:[%s4391_s6 + $0x394] ss:$8 sps:$4 sm:$0xff]  }
 0x221   : > { %1273 = vmatpush1.bf16.msra.mxu1 %v3293_v30  ;;  %1948 = vmatpush1.bf16.msra.mxu0 %v3296_v31  ;;  %v3388_v30 = vld [vmem:[%s4392_s7 + $0x194] ss:$8 sps:$4 sm:$0xff]   ;;  %v3383_v31 = vld [vmem:[%s4391_s6 + $0x390] ss:$8 sps:$4 sm:$0xff]  }
 0x222   : > { %1274 = vmatprep.subr.bf16.mxu1 %v3301_v32  ;;  %1949 = vmatprep.subr.bf16.mxu0 %v3304_v33  ;;  %v3386_v32 = vld [vmem:[%s4392_s7 + $0x190] ss:$8 sps:$4 sm:$0xff]   ;;  %v3391_v33 = vld [vmem:[%s4391_s6 + $0x3a4] ss:$8 sps:$4 sm:$0xff]  }
 0x225   : > { %1275 = vmatpush1.bf16.msra.mxu1 %v3299_v35  ;;  %1950 = vmatpush1.bf16.msra.mxu0 %v3302_v36  ;;  %v3394_v35 = vld [vmem:[%s4392_s7 + $0x1a4] ss:$8 sps:$4 sm:$0xff]   ;;  %v3389_v36 = vld [vmem:[%s4391_s6 + $0x3a0] ss:$8 sps:$4 sm:$0xff]  }
 0x226   : > { %1276 = vmatprep.subr.bf16.mxu1 %v3307_v37  ;;  %1951 = vmatprep.subr.bf16.mxu0 %v3310_v38  ;;  %v3392_v37 = vld [vmem:[%s4392_s7 + $0x1a0] ss:$8 sps:$4 sm:$0xff]   ;;  %v3397_v38 = vld [vmem:[%s4391_s6 + $0x3b4] ss:$8 sps:$4 sm:$0xff]  }
 0x229   : > { %1277 = vmatpush1.bf16.msra.mxu1 %v3305_v39  ;;  %1952 = vmatpush1.bf16.msra.mxu0 %v3308_v40  ;;  %v3400_v39 = vld [vmem:[%s4392_s7 + $0x1b4] ss:$8 sps:$4 sm:$0xff]   ;;  %v3395_v40 = vld [vmem:[%s4391_s6 + $0x3b0] ss:$8 sps:$4 sm:$0xff]  }
 0x22a   : > { %1278 = vmatprep.subr.bf16.mxu1 %v3313_v41  ;;  %1953 = vmatprep.subr.bf16.mxu0 %v3316_v42  ;;  %v3398_v41 = vld [vmem:[%s4392_s7 + $0x1b0] ss:$8 sps:$4 sm:$0xff]   ;;  %v3403_v42 = vld [vmem:[%s4391_s6 + $0x3c4] ss:$8 sps:$4 sm:$0xff]  }
 0x22d   : > { %1279 = vmatpush1.bf16.msra.mxu1 %v3311_v43  ;;  %1954 = vmatpush1.bf16.msra.mxu0 %v3314_v44  ;;  %v3406_v43 = vld [vmem:[%s4392_s7 + $0x1c4] ss:$8 sps:$4 sm:$0xff]   ;;  %v3401_v44 = vld [vmem:[%s4391_s6 + $0x3c0] ss:$8 sps:$4 sm:$0xff]  }
 0x22e   : > { %1280 = vmatprep.subr.bf16.mxu1 %v3319_v46  ;;  %1955 = vmatprep.subr.bf16.mxu0 %v3322_v47  ;;  %v3404_v46 = vld [vmem:[%s4392_s7 + $0x1c0] ss:$8 sps:$4 sm:$0xff]   ;;  %v3409_v47 = vld [vmem:[%s4391_s6 + $0x3d4] ss:$8 sps:$4 sm:$0xff]  }
 0x231   : > { %1281 = vmatpush1.bf16.msra.mxu1 %v3317_v48  ;;  %1956 = vmatpush1.bf16.msra.mxu0 %v3320_v50  ;;  %v3412_v48 = vld [vmem:[%s4392_s7 + $0x1d4] ss:$8 sps:$4 sm:$0xff]   ;;  %v3407_v50 = vld [vmem:[%s4391_s6 + $0x3d0] ss:$8 sps:$4 sm:$0xff]  }
 0x232   : > { %1282 = vmatprep.subr.bf16.mxu1 %v3325_v52  ;;  %1957 = vmatprep.subr.bf16.mxu0 %v3328_v54  ;;  %v3410_v52 = vld [vmem:[%s4392_s7 + $0x1d0] ss:$8 sps:$4 sm:$0xff]   ;;  %v3415_v54 = vld [vmem:[%s4391_s6 + $0x3e4] ss:$8 sps:$4 sm:$0xff]  }
 0x235   : > { %1283 = vmatpush1.bf16.msra.mxu1 %v3323_v55  ;;  %1958 = vmatpush1.bf16.msra.mxu0 %v3326_v56  ;;  %v3418_v55 = vld [vmem:[%s4392_s7 + $0x1e4] ss:$8 sps:$4 sm:$0xff]   ;;  %v3413_v56 = vld [vmem:[%s4391_s6 + $0x3e0] ss:$8 sps:$4 sm:$0xff]  }
 0x236   : > { %1968 = vmatprep.subr.bf16.mxu0 %v3331_v57  ;;  %2202 = vmatprep.subr.bf16.mxu1 %v3334_v58  ;;  %v3416_v57 = vld [vmem:[%s4392_s7 + $0x1e0] ss:$8 sps:$4 sm:$0xff]   ;;  %v3421_v58 = vld [vmem:[%s4391_s6 + $0x3f4] ss:$8 sps:$4 sm:$0xff]  }
 0x238   : > { %1285 = vmatmul.mubr.bf16.vlgmr.msra.gmra.mrb[8].mxu1 %v4146_v59  ;;  %1960 = vmatmul.mubr.bf16.vlgmr.msra.gmra.mrb[8].mxu0 %v1592_v63 }
 0x239   : > { %1969 = vmatpush1.bf16.msra.mxu0 %v3329_v60  ;;  %2203 = vmatpush1.bf16.msra.mxu1 %v3332_v61  ;;  %v3424_v60 = vld [vmem:[%s4392_s7 + $0x1f4] ss:$8 sps:$4 sm:$0xff]   ;;  %v3419_v61 = vld [vmem:[%s4391_s6 + $0x3f0] ss:$8 sps:$4 sm:$0xff]  }
 0x23a   : > { %2234 = vmatprep.mubr.bf16.mxu1 %v1595_v51  ;;  %1970 = vmatprep.subr.bf16.mxu0 %v3337_v0  ;;  %v3349_v51 = vld [vmem:[%s4391_s6 + $0x334] ss:$8 sps:$4 sm:$0xff]   ;;  %v3422_v0 = vld [vmem:[%s4392_s7 + $0x1f0] ss:$8 sps:$4 sm:$0xff]  }
 0x23b   : > { %2204 = vmatprep.subr.bf16.mxu1 %v3340_v1  ;;  %2000 = vmatprep.mubr.bf16.mxu0 %v1601_v53  ;;  %v1598_v53 = vshrl.u32 %v4146_v59, 16 }
 0x23d   : > { %1971 = vmatpush1.bf16.msra.mxu0 %v3335_v2  ;;  %2205 = vmatpush1.bf16.msra.mxu1 %v3338_v3 }
 0x23e   : > { %1972 = vmatprep.subr.bf16.mxu0 %v3343_v62  ;;  %2206 = vmatprep.subr.bf16.mxu1 %v3346_v4 }
 0x241   : > { %1973 = vmatpush1.bf16.msra.mxu0 %v3341_v5  ;;  %2207 = vmatpush1.bf16.msra.mxu1 %v3344_v45 }
 0x242   : > { %1974 = vmatprep.subr.bf16.mxu0 %v3349_v51  ;;  %2208 = vmatprep.subr.bf16.mxu1 %v3352_v6 }
 0x245   : > { %1975 = vmatpush1.bf16.msra.mxu0 %v3347_v7  ;;  %2209 = vmatpush1.bf16.msra.mxu1 %v3350_v8 }
 0x246   : > { %1976 = vmatprep.subr.bf16.mxu0 %v3355_v9  ;;  %2210 = vmatprep.subr.bf16.mxu1 %v3358_v10 }
 0x249   : > { %1977 = vmatpush1.bf16.msra.mxu0 %v3353_v11  ;;  %2211 = vmatpush1.bf16.msra.mxu1 %v3356_v12 }
 0x24a   : > { %1978 = vmatprep.subr.bf16.mxu0 %v3361_v13  ;;  %2212 = vmatprep.subr.bf16.mxu1 %v3364_v14 }
 0x24d   : > { %1979 = vmatpush1.bf16.msra.mxu0 %v3359_v15  ;;  %2213 = vmatpush1.bf16.msra.mxu1 %v3362_v16 }
 0x24e   : > { %1980 = vmatprep.subr.bf16.mxu0 %v3367_v17  ;;  %2214 = vmatprep.subr.bf16.mxu1 %v3370_v18  ;;  %v2261_v17 = vld [vmem:[%s4390_s5] sm:$0x3] }
 0x251   : > { %1981 = vmatpush1.bf16.msra.mxu0 %v3365_v19  ;;  %2215 = vmatpush1.bf16.msra.mxu1 %v3368_v20  ;;  %v2260_v20 = vld [vmem:[%s4389_s4] sm:$0x3] }
 0x252   : > { %1982 = vmatprep.subr.bf16.mxu0 %v3373_v21  ;;  %2216 = vmatprep.subr.bf16.mxu1 %v3376_v22 }
 0x255   : > { %1983 = vmatpush1.bf16.msra.mxu0 %v3371_v23  ;;  %2217 = vmatpush1.bf16.msra.mxu1 %v3374_v24 }
 0x256   : > { %1984 = vmatprep.subr.bf16.mxu0 %v3379_v25  ;;  %2218 = vmatprep.subr.bf16.mxu1 %v3382_v26 }
 0x259   : > { %1985 = vmatpush1.bf16.msra.mxu0 %v3377_v27  ;;  %2219 = vmatpush1.bf16.msra.mxu1 %v3380_v28 }
 0x25a   : > { %1986 = vmatprep.subr.bf16.mxu0 %v3385_v29  ;;  %2220 = vmatprep.subr.bf16.mxu1 %v3388_v30 }
 0x25d   : > { %1987 = vmatpush1.bf16.msra.mxu0 %v3383_v31  ;;  %2221 = vmatpush1.bf16.msra.mxu1 %v3386_v32 }
 0x25e   : > { %1988 = vmatprep.subr.bf16.mxu0 %v3391_v33  ;;  %2222 = vmatprep.subr.bf16.mxu1 %v3394_v35 }
 0x261   : > { %1989 = vmatpush1.bf16.msra.mxu0 %v3389_v36  ;;  %2223 = vmatpush1.bf16.msra.mxu1 %v3392_v37 }
 0x262   : > { %1990 = vmatprep.subr.bf16.mxu0 %v3397_v38  ;;  %2224 = vmatprep.subr.bf16.mxu1 %v3400_v39 }
 0x265   : > { %1991 = vmatpush1.bf16.msra.mxu0 %v3395_v40  ;;  %2225 = vmatpush1.bf16.msra.mxu1 %v3398_v41 }
 0x266   : > { %1992 = vmatprep.subr.bf16.mxu0 %v3403_v42  ;;  %2226 = vmatprep.subr.bf16.mxu1 %v3406_v43 }
 0x269   : > { %1993 = vmatpush1.bf16.msra.mxu0 %v3401_v44  ;;  %2227 = vmatpush1.bf16.msra.mxu1 %v3404_v46 }
 0x26a   : > { %1994 = vmatprep.subr.bf16.mxu0 %v3409_v47  ;;  %2228 = vmatprep.subr.bf16.mxu1 %v3412_v48 }
 0x26d   : > { %1995 = vmatpush1.bf16.msra.mxu0 %v3407_v50  ;;  %2229 = vmatpush1.bf16.msra.mxu1 %v3410_v52 }
 0x26e   : > { %1996 = vmatprep.subr.bf16.mxu0 %v3415_v54  ;;  %2230 = vmatprep.subr.bf16.mxu1 %v3418_v55 }
 0x271   : > { %1997 = vmatpush1.bf16.msra.mxu0 %v3413_v56  ;;  %2231 = vmatpush1.bf16.msra.mxu1 %v3416_v57 }
 0x272   : > { %1998 = vmatprep.subr.bf16.mxu0 %v3421_v58  ;;  %2232 = vmatprep.subr.bf16.mxu1 %v3424_v60 }
 0x275   : > { %1999 = vmatpush1.bf16.msra.mxu0 %v3419_v61  ;;  %2233 = vmatpush1.bf16.msra.mxu1 %v3422_v0 }
 0x276   : > { %3031 = vmatprep.subr.mxu1 %v3433_v34 }
 0x278   : > { %2001 = vmatmul.mubr.bf16.vlgmr.msra.gmra.mrb[8].mxu0 %v1598_v53  ;;  %2235 = vmatmul.mubr.bf16.vlgmr.msra.gmra.mrb[12].mxu1 %v1592_v63 }
 0x279   : > { %3033 = vmatprep.mubr.msk.f32.mxu1 %vm3434_vm0, %v3433_v34 }
 0x2cb   : > { %v1519_v1 = vpop.f32.mrb[4].mxu0 }
 0x2cc   : > { %v1521_v2 = vpop.f32.mrb[5].mxu0 }
 0x2cd   : > { %v1523_v3 = vpop.f32.mrb[6].mxu0 }
 0x2ce   : > { %v1524_v62 = vpop.f32.mrb[7].mxu0 }
 0x30b   : > { %v1286_v4 = vpop.f32.mrb[8].mxu1 }
 0x30c   : > { %v1288_v5 = vpop.f32.mrb[9].mxu1 }
 0x30d   : > { %v1290_v45 = vpop.f32.mrb[10].mxu1 }
 0x30e   : > { %v1291_v51 = vpop.f32.mrb[11].mxu1 }
 0x34b   : > { %v2002_v6 = vpop.f32.mrb[8].mxu0  ;;  %v2236_v59 = vpop.f32.mrb[12].mxu1 }
 0x34c   : > { %v2245_v7 = vrot.slane %v2002_v6, 7  ;;  %v2254_v8 = vrot.slane %v2236_v59, 7  ;;  %v2004_v9 = vpop.f32.mrb[9].mxu0  ;;  %v2238_v10 = vpop.f32.mrb[13].mxu1 }
 0x34d   : > { %v2246_v49 = vrot.slane %v2004_v9, 7  ;;  %v2255_v63 = vrot.slane %v2238_v10, 7  ;;  %v2006_v11 = vpop.f32.mrb[10].mxu0  ;;  %v2240_v12 = vpop.f32.mrb[14].mxu1 }
 0x34e   : > { %v2250_v13 = vsel %vm2249_vm3, %v1286_v4, %v2245_v7  ;;  %v2258_v14 = vsel %vm2249_vm3, %v1519_v1, %v2254_v8  ;;  %v2007_v15 = vpop.f32.mrb[11].mxu0  ;;  %v2241_v16 = vpop.f32.mrb[15].mxu1 }
 0x34f   : > { %v2251_v18 = vsel %vm2249_vm3, %v1288_v5, %v2246_v49  ;;  %v2259_v19 = vsel %vm2249_vm3, %v1521_v2, %v2255_v63 }
 0x350   : > { %3032 = vmatpush3.msk.msra.mxu1 %vm533_vm1, %v2251_v18 }
 0x351   : > { %3034 = vmatmul.mubr.msk.f32.vlgmr.msra.gmra.mrb[16].mxu1 %vm529_vm2, %v2261_v17  ;;  %3036 = vmatprep.subr.mxu1 %v3433_v34 }
 0x352   : > { %3037 = vmatpush3.msk.msra.mxu1 %vm533_vm1, %v2250_v13  ;;  %3038 = vmatprep.mubr.msk.f32.mxu1 %vm3434_vm0, %v3433_v34 }
 0x353   : > { %3041 = vmatprep.subr.mxu1 %v3433_v34 }
 0x359   : > { %3039 = vmatmul.mubr.msk.f32.vlgmr.msra.gmra.mrb[16].mxu1 %vm529_vm2, %v2260_v20 }
 0x35a   : > { %3042 = vmatpush3.msk.msra.mxu1 %vm533_vm1, %v2259_v19  ;;  %3043 = vmatprep.mubr.msk.f32.mxu1 %vm3434_vm0, %v3433_v34 }
 0x35b   : > { %3046 = vmatprep.subr.mxu1 %v3433_v34 }
 0x35d   : > { %3044 = vmatmul.mubr.msk.f32.vlgmr.msra.gmra.mrb[18].mxu1 %vm529_vm2, %v2261_v17 }
 0x35e   : > { %3047 = vmatpush3.msk.msra.mxu1 %vm533_vm1, %v2258_v14  ;;  %3048 = vmatprep.mubr.msk.f32.mxu1 %vm3434_vm0, %v3433_v34 }
 0x365   : > { %3049 = vmatmul.mubr.msk.f32.vlgmr.msra.gmra.mrb[18].mxu1 %vm529_vm2, %v2260_v20 }
 0x42c   : > { %v2410_v21 = vpop.f32.mrb[16].mxu1 }
 0x42d   : > { %2560 = vst [vmem:[%s374_s22] sm:$0x3] %v2410_v21  ;;  %v3040_v22 = vpop.f32.mrb[17].mxu1 }
 0x438   : > { %v2556_v23 = vpop.f32.mrb[18].mxu1 }
 0x439   : > { %2561 = vst [vmem:[%s378_s23] sm:$0x3] %v2556_v23  ;;  %v3050_v24 = vpop.f32.mrb[19].mxu1 }
 0x43a PF: > { %s21_s13 = sadd.s32 1, %s3431_s13  }
 0x43b   : > { %p18_p4 = scmp.ge.s32.totalorder %s21_s13, 4  }
 0x43d   :  { %20 = sbr.rel (!%p18_p4) target bundleno = 1 (0x1), region = 108 }

// kernel: _lambda_.7
= control target key start
LH: loop header
LB: loop body
LE: loop exit
PB: predicated region body
PF: predicated region fallthrough
CT: control target
= control target key end

     0   :  { %s7134_s0 = inlined_call_operand.vmem [shape: f32[2,8,256], index: 0, kind: input, shape index: {}]   ;;  %s7135_s1 = inlined_call_operand.hbm [shape: f32[256,256], index: 1, kind: input, shape index: {}]   ;;  %s7136_s2 = inlined_call_operand.hbm [shape: f32[5,8], index: 2, kind: input, shape index: {}]   ;;  %s7137_s3 = inlined_call_operand.hbm [shape: f32[5,8], index: 3, kind: input, shape index: {}]   ;;  %s7138_s4 = inlined_call_operand.hbm [shape: f32[8,5], index: 4, kind: input, shape index: {}]   ;;  %s7139_s5 = inlined_call_operand.hbm [shape: f32[8,5], index: 5, kind: input, shape index: {}]   ;;  %s7140_s6 = inlined_call_operand.hbm [shape: bf16[16,512,256], index: 6, kind: input, shape index: {}]   ;;  %s7141_s7 = inlined_call_operand.hbm [shape: bf16[16,256,256], index: 7, kind: input, shape index: {}]   ;;  %s7142_s8 = inlined_call_operand.vmem [shape: f32[2,8,128], index: 8, kind: output, shape index: {0}]   ;;  %s7143_s9 = inlined_call_operand.vmem [shape: f32[2,8,128], index: 9, kind: output, shape index: {1}]   ;;  %s7144_s10 = inlined_call_operand.vmem [shape: f32[2,8,128], index: 10, kind: output, shape index: {2}]  }
   0x1   :  { %7149 = sst [smem:[#allocation17_spill]] %s7136_s2 }
   0x2   :  { %16 = vsyncpa [#allocation3], 0 }
   0x3   :  { %17 = vsyncpa [#allocation5], 0 }
   0x4   :  { %18 = vsyncpa [#allocation8], 0 }
   0x5   :  { %19 = vsyncpa [#allocation11], 0  ;;  %s6763_s13 = smov 0  }
   0x6 LB: > { %s6695_s14 = smov [#allocation4]   ;;  %s6769_s16 = sadd.s32 4294967295, %s6693_s13   ;;  %s6693_s13 = sphi %s6763_s13, %s25_s13  }
   0x7   : > { %s307_s15 = sshll.u32 %s6695_s14, 4  ;;  %p5009_p0 = scmp.ge.s32.totalorder %s6693_s13, 1  ;;  %s6774_s15 = int_to_ptr.vmem [resolvable:$true] %s307_s15 }
   0x8   : > { %p281_p1 = scmp.lt.s32.totalorder %s6693_s13, 3  ;;  %p7145_p2 = scmp.eq.s32.totalorder %s6769_s16, 0 }
   0x9   : > { %s6696_s18 = smov [#allocation7]   ;;  %s6697_s20 = smov [#allocation10]  }
   0xa   : > { %p6776_p3 = pnand %p5009_p0, %p281_p1  ;;  %s329_s19 = sshll.u32 %s6696_s18, 4  ;;  %s6782_s19 = int_to_ptr.vmem [resolvable:$true] %s329_s19 }
   0xb   : > { %s350_s21 = sshll.u32 %s6697_s20, 4  ;;  %s6698_s23 = smov [#allocation2]   ;;  %s6790_s21 = int_to_ptr.vmem [resolvable:$true] %s350_s21 }
   0xc   : > { %s7150_s17 = scalar_select %p6776_p3, 1, 0 }
   0xd   : > { %p5698_p4 = pneg %p6776_p3  ;;  %s6792_s24 = sshll.u32 %s6698_s23, 4  ;;  %s294_s24 = int_to_ptr.vmem [resolvable:$true] %s6792_s24 }
   0xe   : > { %s7152_s2 = sld [smem:[#allocation17_spill]] }
   0xf   : > { %p6786_p5 = pnand %p7145_p2, %p5698_p4 }
  0x11   : > { %p6802_p7 = pneg %p6786_p5 }
  0x14   : > { %s6475_s27 = scalar_lea.hbm %s7152_s2, 128 }
  0x15   : > { %p6476_p6 = scmp.ne.s32.totalorder %s7152_s2, %s6475_s27  ;;  %p6482_p10 = scmp.lt.u32.totalorder %s6475_s27, %s7152_s2 }
  0x17   : > { %p6478_p8 = pnand %p6802_p7, %p6476_p6 }
  0x19   : > { %p6479_p9 = pneg %p6478_p8 }
  0x1b   : > { %p6484_p11 = pnand %p6482_p10, %p6479_p9 }
  0x1d   : > { %6487 = shalt.err (!%p6484_p11)
}
  0x1e   : > { %s6488_s14 = scalar_lea.vmem %s6774_s15, 128  ;;  %p6496_p1 = scmp.lt.s32.totalorder %s6774_s15, %s6774_s15 }
  0x1f   : > { %p6489_p12 = scmp.ne.s32.totalorder %s6774_s15, %s6488_s14  ;;  %p6497_p4 = scmp.lt.s32.totalorder %s6488_s14, %s6488_s14 }
  0x21   : > { %p6491_p13 = pnand %p6489_p12, %p6802_p7  ;;  %p6498_p6 = por %p6497_p4, %p6496_p1 }
  0x23   : > { %p6492_p0 = pneg %p6491_p13 }
  0x25   : > { %p6499_p8 = pnand %p6498_p6, %p6492_p0 }
  0x27   : > { %6502 = shalt.err (!%p6499_p8)
}
  0x28   : > { %5704 = dma.hbm_to_vmem [thread:$0]  (!%p6786_p5), %s7152_s2, 128, %s6774_s15, [#allocation5]  }
  0x29   : > { %s6503_s26 = scalar_lea.hbm %s7138_s4, 128 }
  0x2a   : > { %p6504_p9 = scmp.ne.s32.totalorder %s7138_s4, %s6503_s26  ;;  %p6510_p12 = scmp.lt.u32.totalorder %s6503_s26, %s7138_s4 }
  0x2c   : > { %p6506_p10 = pnand %p6504_p9, %p6802_p7 }
  0x2e   : > { %p6507_p11 = pneg %p6506_p10 }
  0x30   : > { %p6512_p13 = pnand %p6510_p12, %p6507_p11 }
  0x32   : > { %6515 = shalt.err (!%p6512_p13)
}
  0x33   : > { %s6516_s15 = scalar_lea.vmem %s6782_s19, 128  ;;  %p6524_p6 = scmp.lt.s32.totalorder %s6782_s19, %s6782_s19 }
  0x34   : > { %p6517_p0 = scmp.ne.s32.totalorder %s6782_s19, %s6516_s15  ;;  %p6525_p8 = scmp.lt.s32.totalorder %s6516_s15, %s6516_s15 }
  0x36   : > { %p6519_p1 = pnand %p6517_p0, %p6802_p7  ;;  %p6526_p9 = por %p6525_p8, %p6524_p6 }
  0x38   : > { %p6520_p4 = pneg %p6519_p1 }
  0x3a   : > { %p6527_p10 = pnand %p6526_p9, %p6520_p4 }
  0x3c   : > { %6530 = shalt.err (!%p6527_p10)
}
  0x3d   : > { %5710 = dma.hbm_to_vmem [thread:$0]  (!%p6786_p5), %s7138_s4, 128, %s6782_s19, [#allocation8]  }
  0x3e   : > { %s6531_s23 = scalar_lea.hbm %s7140_s6, 40960  ;;  %s6536_s29 = scalar_lea.hbm %s7140_s6, 131072 }
  0x3f   : > { %p6532_p11 = scmp.ne.s32.totalorder %s7140_s6, %s6531_s23  ;;  %p6537_p0 = scmp.lt.u32.totalorder %s6536_s29, %s6531_s23 }
  0x40   : > { %p6538_p1 = scmp.lt.u32.totalorder %s6531_s23, %s7140_s6 }
  0x41   : > { %p6534_p12 = pnand %p6532_p11, %p6802_p7 }
  0x42   : > { %p6539_p4 = por %p6538_p1, %p6537_p0 }
  0x43   : > { %p6535_p13 = pneg %p6534_p12 }
  0x45   : > { %p6540_p6 = pnand %p6539_p4, %p6535_p13 }
  0x47   : > { %6543 = shalt.err (!%p6540_p6)
}
  0x48   : > { %s6544_s19 = scalar_lea.vmem %s6790_s21, 40960  ;;  %p6552_p11 = scmp.lt.s32.totalorder %s6790_s21, %s6790_s21 }
  0x49   : > { %p6545_p8 = scmp.ne.s32.totalorder %s6790_s21, %s6544_s19  ;;  %p6553_p12 = scmp.lt.s32.totalorder %s6544_s19, %s6544_s19 }
  0x4b   : > { %p6547_p9 = pnand %p6545_p8, %p6802_p7  ;;  %p6554_p2 = por %p6553_p12, %p6552_p11 }
  0x4d   : > { %p6548_p10 = pneg %p6547_p9 }
  0x4f   : > { %p6555_p3 = pnand %p6554_p2, %p6548_p10 }
  0x51   : > { %6558 = shalt.err (!%p6555_p3)
}
  0x52   : > { %s7147_s12 = smov 128   ;;  %s7148_s14 = smov 8  }
  0x53   : > { %5716 = dma.hbm_to_vmem [thread:$0]  (!%p6786_p5), %s7140_s6, 40960, %s6790_s21, [#allocation11], %s7147_s12, %s7147_s12, %s7148_s14  }
  0x54   : > { %s6559_s26 = scalar_lea.hbm %s7135_s1, 8192 }
  0x55   : > { %p6560_p2 = scmp.ne.s32.totalorder %s7135_s1, %s6559_s26  ;;  %p6566_p0 = scmp.lt.u32.totalorder %s6559_s26, %s7135_s1 }
  0x57   : > { %p6562_p3 = pnand %p6560_p2, %p6802_p7 }
  0x59   : > { %p6563_p13 = pneg %p6562_p3 }
  0x5b   : > { %p6568_p1 = pnand %p6566_p0, %p6563_p13 }
  0x5d   : > { %6571 = shalt.err (!%p6568_p1)
}
  0x5e   : > { %s6572_s15 = scalar_lea.vmem %s294_s24, 8192  ;;  %p6580_p9 = scmp.lt.s32.totalorder %s294_s24, %s294_s24 }
  0x5f   : > { %p6573_p4 = scmp.ne.s32.totalorder %s294_s24, %s6572_s15  ;;  %p6581_p10 = scmp.lt.s32.totalorder %s6572_s15, %s6572_s15 }
  0x61   : > { %p6575_p6 = pnand %p6573_p4, %p6802_p7  ;;  %p6582_p11 = por %p6581_p10, %p6580_p9 }
  0x63   : > { %p6576_p8 = pneg %p6575_p6 }
  0x65   : > { %p6583_p12 = pnand %p6582_p11, %p6576_p8 }
  0x67   : > { %6586 = shalt.err (!%p6583_p12)
}
  0x68   : > { %s6701_s21 = smov 256   ;;  %s6702_s19 = smov 16  }
  0x69   : > { %5701 = dma.hbm_to_vmem [thread:$0]  (!%p6786_p5), %s7135_s1, 8192, %s294_s24, [#allocation3], %s6701_s21, %s6701_s21, %s6702_s19  }
  0x6a   : > { %s6703_s23 = smov [#allocation6]   ;;  %s6704_s26 = smov [#allocation9]  }
  0x6b   : > { %s318_s25 = sshll.u32 %s6703_s23, 4  ;;  %s340_s27 = sshll.u32 %s6704_s26, 4  ;;  %s319_s25 = int_to_ptr.vmem [resolvable:$true] %s318_s25  ;;  %s341_s27 = int_to_ptr.vmem [resolvable:$true] %s340_s27 }
  0x6c   : > { %s6587_s11 = scalar_lea.hbm %s7137_s3, 128 }
  0x6d   : > { %p6588_p2 = scmp.ne.s32.totalorder %s7137_s3, %s6587_s11  ;;  %p6594_p0 = scmp.lt.u32.totalorder %s6587_s11, %s7137_s3 }
  0x6f   : > { %p6590_p3 = pnand %p6588_p2, %p6802_p7 }
  0x71   : > { %p6591_p13 = pneg %p6590_p3 }
  0x73   : > { %p6596_p1 = pnand %p6594_p0, %p6591_p13 }
  0x75   : > { %6599 = shalt.err (!%p6596_p1)
}
  0x76   : > { %s6600_s24 = scalar_lea.vmem %s319_s25, 128  ;;  %p6608_p9 = scmp.lt.s32.totalorder %s319_s25, %s319_s25 }
  0x77   : > { %p6601_p4 = scmp.ne.s32.totalorder %s319_s25, %s6600_s24  ;;  %p6609_p10 = scmp.lt.s32.totalorder %s6600_s24, %s6600_s24 }
  0x79   : > { %p6603_p6 = pnand %p6601_p4, %p6802_p7  ;;  %p6610_p11 = por %p6609_p10, %p6608_p9 }
  0x7b   : > { %p6604_p8 = pneg %p6603_p6 }
  0x7d   : > { %p6611_p12 = pnand %p6610_p11, %p6604_p8 }
  0x7f   : > { %6614 = shalt.err (!%p6611_p12)
}
  0x80   : > { %5707 = dma.hbm_to_vmem [thread:$0]  (!%p6786_p5), %s7137_s3, 128, %s319_s25, [#allocation5]  }
  0x81   : > { %s6615_s19 = scalar_lea.hbm %s7139_s5, 128 }
  0x82   : > { %p6616_p2 = scmp.ne.s32.totalorder %s7139_s5, %s6615_s19  ;;  %p6622_p0 = scmp.lt.u32.totalorder %s6615_s19, %s7139_s5 }
  0x84   : > { %p6618_p3 = pnand %p6616_p2, %p6802_p7 }
  0x86   : > { %p6619_p13 = pneg %p6618_p3 }
  0x88   : > { %p6624_p1 = pnand %p6622_p0, %p6619_p13 }
  0x8a   : > { %6627 = shalt.err (!%p6624_p1)
}
  0x8b   : > { %s6628_s28 = scalar_lea.vmem %s341_s27, 128  ;;  %p6636_p9 = scmp.lt.s32.totalorder %s341_s27, %s341_s27 }
  0x8c   : > { %p6629_p4 = scmp.ne.s32.totalorder %s341_s27, %s6628_s28  ;;  %p6637_p10 = scmp.lt.s32.totalorder %s6628_s28, %s6628_s28 }
  0x8e   : > { %p6631_p6 = pnand %p6629_p4, %p6802_p7  ;;  %p6638_p11 = por %p6637_p10, %p6636_p9 }
  0x90   : > { %p6632_p8 = pneg %p6631_p6 }
  0x92   : > { %p6639_p12 = pnand %p6638_p11, %p6632_p8 }
  0x94   : > { %6642 = shalt.err (!%p6639_p12)
}
  0x95   : > { %5713 = dma.hbm_to_vmem [thread:$0]  (!%p6786_p5), %s7139_s5, 128, %s341_s27, [#allocation8]  }
  0x96   : > { %s6705_s11 = smov [#allocation12]   ;;  %s6643_s21 = scalar_lea.hbm %s7141_s7, 20480 }
  0x97   : > { %s363_s15 = sshll.u32 %s6705_s11, 4  ;;  %p6644_p2 = scmp.ne.s32.totalorder %s7141_s7, %s6643_s21  ;;  %s364_s15 = int_to_ptr.vmem [resolvable:$true] %s363_s15 }
  0x98   : > { %s6648_s20 = scalar_lea.hbm %s7141_s7, 65536  ;;  %p6650_p1 = scmp.lt.u32.totalorder %s6643_s21, %s7141_s7 }
  0x99   : > { %p6646_p3 = pnand %p6644_p2, %p6802_p7  ;;  %p6649_p0 = scmp.lt.u32.totalorder %s6648_s20, %s6643_s21 }
  0x9b   : > { %p6647_p13 = pneg %p6646_p3  ;;  %p6651_p4 = por %p6650_p1, %p6649_p0 }
  0x9d   : > { %p6652_p6 = pnand %p6651_p4, %p6647_p13 }
  0x9f   : > { %6655 = shalt.err (!%p6652_p6)
}
  0xa0   : > { %s6656_s26 = scalar_lea.vmem %s364_s15, 20480  ;;  %p6664_p11 = scmp.lt.s32.totalorder %s364_s15, %s364_s15 }
  0xa1   : > { %p6657_p8 = scmp.ne.s32.totalorder %s364_s15, %s6656_s26  ;;  %p6665_p12 = scmp.lt.s32.totalorder %s6656_s26, %s6656_s26 }
  0xa3   : > { %p6659_p9 = pnand %p6657_p8, %p6802_p7  ;;  %p6666_p2 = por %p6665_p12, %p6664_p11 }
  0xa5   : > { %p6660_p10 = pneg %p6659_p9 }
  0xa7   : > { %p6667_p3 = pnand %p6666_p2, %p6660_p10 }
  0xa9   : > { %6670 = shalt.err (!%p6667_p3)
}
  0xaa   : > { %s7154_s28 = smov 8   ;;  %s7155_s25 = smov 128  }
  0xab   : > { %5719 = dma.hbm_to_vmem [thread:$0]  (!%p6786_p5), %s7141_s7, 20480, %s364_s15, [#allocation11], %s7155_s25, %s7155_s25, %s7154_s28  }
  0xac   : > { %p7156_p13 = scmp.ne.s32.totalorder %s7150_s17, 0 }
  0xad   : > { %p7157_p7 = scmp.eq.s32.totalorder (!%p7156_p13), %s6769_s16, 0 }
  0xae   : > { %387 = sbr.rel (%p7156_p13) target bundleno = 1589 (0x635), region = 52 }
  0xb5   : > { %6676 = dma.done.wait (%p7157_p7), [#allocation3], 8192   ;;  %p7158_p0 = pmov %p7157_p7 }
  0xb7   : > { %6678 = vsyncadd (%p7158_p0), [#allocation3], 4294959104  ;;  %p7159_p1 = pmov %p7158_p0 }
  0xb8   : > { %p7160_p4 = pmov %p7158_p0 }
  0xb9   : > { %6680 = dma.done.wait (%p7159_p1), [#allocation5], 256  }
  0xba   : > { %6682 = vsyncadd (%p7160_p4), [#allocation5], 4294967040  ;;  %p7161_p6 = pmov %p7158_p0 }
  0xbb   : > { %p7162_p5 = pmov %p7158_p0 }
  0xbc   : > { %6684 = dma.done.wait (%p7161_p6), [#allocation8], 256  }
  0xbd   : > { %6686 = vsyncadd (%p7162_p5), [#allocation8], 4294967040  ;;  %p7163_p8 = pmov %p7158_p0 }
  0xbe   : > { %p7164_p9 = pmov %p7158_p0 }
  0xbf   : > { %6688 = dma.done.wait (%p7163_p8), [#allocation11], 61440  }
  0xc0   : > { %6690 = vsyncadd (%p7164_p9), [#allocation11], 4294905856  ;;  %v476_v0 = vld [vmem:[#allocation2 + $0x8] sm:$0xff]  ;;  %v478_v1 = vld [vmem:[#allocation2 + $0x18] sm:$0xff]  ;;  %p456_p10 = scmp.lt.s32.totalorder %s6769_s16, 1  ;;  %vm6707_vm0 = vmmov 0  }
  0xc1   : > { %v475_v2 = vld [vmem:[#allocation2] sm:$0xff]  ;;  %v5582_v3 = vpack.c.bf16 %v478_v1, %v476_v0  ;;  %v477_v4 = vld [vmem:[#allocation2 + $0x10] sm:$0xff]  ;;  %v480_v5 = vld [vmem:[#allocation2 + $0x28] sm:$0xff]  ;;  %vm613_vm1 = vcmask 64512   ;;  %vm4475_vm2 = vcmask 1040384   ;;  %vm4478_vm3 = vcmask 1041408  }
  0xc2   : > { %v482_v6 = vld [vmem:[#allocation2 + $0x38] sm:$0xff]  ;;  %v5584_v7 = vpack.c.bf16 %v477_v4, %v475_v2  ;;  %v479_v9 = vld [vmem:[#allocation2 + $0x20] sm:$0xff]  ;;  %v481_v10 = vld [vmem:[#allocation2 + $0x30] sm:$0xff]  ;;  %s7166_s16 = smov (!%p456_p10, %s6769_s16), 1  ;;  %vm4481_vm4 = vcmask 1042432   ;;  %vm4484_vm5 = vcmask 1043456  }
  0xc3   : > { %v5586_v8 = vpack.c.bf16 %v482_v6, %v480_v5  ;;  %v484_v11 = vld [vmem:[#allocation2 + $0x48] sm:$0xff]  ;;  %5583 = vmatprep.subr.bf16.mxu0 %v5582_v3  ;;  %v486_v12 = vld [vmem:[#allocation2 + $0x58] sm:$0xff]  ;;  %v5588_v13 = vpack.c.bf16 %v481_v10, %v479_v9  ;;  %v483_v15 = vld [vmem:[#allocation2 + $0x40] sm:$0xff]  ;;  %s5525_s17 = sshll.u32 %s7166_s16, 4  ;;  %s6988_s24 = sshll.u32 %s7166_s16, 3  ;;  %vm4525_vm6 = vcmask 1044480  }
  0xc4   : > { %5585 = vmatpush1.bf16.msra.mxu0 %v5584_v7  ;;  %v5590_v14 = vpack.c.bf16 %v486_v12, %v484_v11  ;;  %v485_v16 = vld [vmem:[#allocation2 + $0x50] sm:$0xff]  ;;  %v488_v17 = vld [vmem:[#allocation2 + $0x68] sm:$0xff]  ;;  %v490_v18 = vld [vmem:[#allocation2 + $0x78] sm:$0xff]  ;;  %s6980_s15 = scalar_lea.vmem %s7134_s0, %s5525_s17  ;;  %s464_s2 = scalar_lea.vmem %s7142_s8, %s6988_s24  ;;  %vm4521_vm7 = vcmask 39936  }
  0xc5   : > { %5587 = vmatprep.subr.bf16.mxu0 %v5586_v8  ;;  %v5592_v19 = vpack.c.bf16 %v485_v16, %v483_v15  ;;  %v5594_v20 = vpack.c.bf16 %v490_v18, %v488_v17  ;;  %v487_v21 = vld [vmem:[#allocation2 + $0x60] sm:$0xff]  ;;  %v489_v22 = vld [vmem:[#allocation2 + $0x70] sm:$0xff]  ;;  %v492_v23 = vld [vmem:[#allocation2 + $0x88] sm:$0xff]  ;;  %s468_s19 = scalar_lea.vmem %s7143_s9, %s6988_s24  ;;  %s472_s27 = scalar_lea.vmem %s7144_s10, %s6988_s24 }
  0xc6   : > { %v494_v24 = vld [vmem:[#allocation2 + $0x98] sm:$0xff]  ;;  %v5596_v25 = vpack.c.bf16 %v489_v22, %v487_v21  ;;  %v491_v27 = vld [vmem:[#allocation2 + $0x80] sm:$0xff]  ;;  %v493_v28 = vld [vmem:[#allocation2 + $0x90] sm:$0xff] }
  0xc7   : > { %v5598_v26 = vpack.c.bf16 %v494_v24, %v492_v23  ;;  %v496_v29 = vld [vmem:[#allocation2 + $0xa8] sm:$0xff]  ;;  %v498_v30 = vld [vmem:[#allocation2 + $0xb8] sm:$0xff]  ;;  %v5600_v31 = vpack.c.bf16 %v493_v28, %v491_v27  ;;  %v495_v33 = vld [vmem:[#allocation2 + $0xa0] sm:$0xff] }
  0xc8   : > { %5589 = vmatpush1.bf16.msra.mxu0 %v5588_v13  ;;  %v5602_v32 = vpack.c.bf16 %v498_v30, %v496_v29  ;;  %v497_v34 = vld [vmem:[#allocation2 + $0xb0] sm:$0xff]  ;;  %v500_v35 = vld [vmem:[#allocation2 + $0xc8] sm:$0xff]  ;;  %v502_v36 = vld [vmem:[#allocation2 + $0xd8] sm:$0xff] }
  0xc9   : > { %5591 = vmatprep.subr.bf16.mxu0 %v5590_v14  ;;  %v5604_v37 = vpack.c.bf16 %v497_v34, %v495_v33  ;;  %v499_v38 = vld [vmem:[#allocation2 + $0xc0] sm:$0xff]  ;;  %v501_v39 = vld [vmem:[#allocation2 + $0xd0] sm:$0xff]  ;;  %v5606_v40 = vpack.c.bf16 %v502_v36, %v500_v35  ;;  %v504_v41 = vld [vmem:[#allocation2 + $0xe8] sm:$0xff]  ;;  %v6706_v34 = vmov 0.0  }
  0xca   : > { %v506_v42 = vld [vmem:[#allocation2 + $0xf8] sm:$0xff]  ;;  %v474_v43 = vld [vmem:[%s6980_s15 + $0x8] sm:$0xff]  ;;  %v503_v44 = vld [vmem:[#allocation2 + $0xe0] sm:$0xff]  ;;  %v5608_v46 = vpack.c.bf16 %v501_v39, %v499_v38  ;;  %5542 = vmatprep.subr.mxu1 %v6706_v34  ;;  %5544 = vmatprep.mubr.msk.f32.mxu1 %vm6707_vm0, %v6706_v34 }
  0xcb   : > { %603 = vmatprep.mubr.f32.mxu0 %v474_v43  ;;  %v505_v45 = vld [vmem:[#allocation2 + $0xf0] sm:$0xff]  ;;  %v508_v47 = vld [vmem:[#allocation2 + $0x108] sm:$0xff]  ;;  %v510_v48 = vld [vmem:[#allocation2 + $0x118] sm:$0xff]  ;;  %v5610_v49 = vpack.c.bf16 %v506_v42, %v504_v41 }
  0xcc   : > { %5593 = vmatpush1.bf16.msra.mxu0 %v5592_v19  ;;  %v507_v50 = vld [vmem:[#allocation2 + $0x100] sm:$0xff]  ;;  %v509_v51 = vld [vmem:[#allocation2 + $0x110] sm:$0xff]  ;;  %v5612_v52 = vpack.c.bf16 %v505_v45, %v503_v44  ;;  %v512_v53 = vld [vmem:[#allocation2 + $0x128] sm:$0xff]  ;;  %v5614_v55 = vpack.c.bf16 %v510_v48, %v508_v47 }
  0xcd   : > { %5595 = vmatprep.subr.bf16.mxu0 %v5594_v20  ;;  %v514_v54 = vld [vmem:[#allocation2 + $0x138] sm:$0xff]  ;;  %v511_v56 = vld [vmem:[#allocation2 + $0x120] sm:$0xff]  ;;  %v513_v57 = vld [vmem:[#allocation2 + $0x130] sm:$0xff]  ;;  %v5616_v58 = vpack.c.bf16 %v509_v51, %v507_v50 }
  0xce   : > { %v516_v59 = vld [vmem:[#allocation2 + $0x148] sm:$0xff]  ;;  %v518_v60 = vld [vmem:[#allocation2 + $0x158] sm:$0xff]  ;;  %v5618_v61 = vpack.c.bf16 %v514_v54, %v512_v53  ;;  %v515_v62 = vld [vmem:[#allocation2 + $0x140] sm:$0xff]  ;;  %v5620_v0 = vpack.c.bf16 %v513_v57, %v511_v56 }
  0xcf   : > { %v517_v63 = vld [vmem:[#allocation2 + $0x150] sm:$0xff]  ;;  %v520_v1 = vld [vmem:[#allocation2 + $0x168] sm:$0xff]  ;;  %v522_v2 = vld [vmem:[#allocation2 + $0x178] sm:$0xff]  ;;  %v5622_v3 = vpack.c.bf16 %v518_v60, %v516_v59 }
  0xd0   : > { %5597 = vmatpush1.bf16.msra.mxu0 %v5596_v25  ;;  %v519_v4 = vld [vmem:[#allocation2 + $0x160] sm:$0xff]  ;;  %v521_v5 = vld [vmem:[#allocation2 + $0x170] sm:$0xff]  ;;  %v5624_v6 = vpack.c.bf16 %v517_v63, %v515_v62  ;;  %v524_v7 = vld [vmem:[#allocation2 + $0x188] sm:$0xff]  ;;  %v5626_v9 = vpack.c.bf16 %v522_v2, %v520_v1 }
  0xd1   : > { %5599 = vmatprep.subr.bf16.mxu0 %v5598_v26  ;;  %v526_v8 = vld [vmem:[#allocation2 + $0x198] sm:$0xff]  ;;  %v523_v10 = vld [vmem:[#allocation2 + $0x180] sm:$0xff]  ;;  %v525_v11 = vld [vmem:[#allocation2 + $0x190] sm:$0xff]  ;;  %v5628_v12 = vpack.c.bf16 %v521_v5, %v519_v4 }
  0xd2   : > { %v528_v13 = vld [vmem:[#allocation2 + $0x1a8] sm:$0xff]  ;;  %v530_v14 = vld [vmem:[#allocation2 + $0x1b8] sm:$0xff]  ;;  %v5630_v15 = vpack.c.bf16 %v526_v8, %v524_v7  ;;  %v527_v16 = vld [vmem:[#allocation2 + $0x1a0] sm:$0xff]  ;;  %v5632_v18 = vpack.c.bf16 %v525_v11, %v523_v10 }
  0xd3   : > { %v529_v17 = vld [vmem:[#allocation2 + $0x1b0] sm:$0xff]  ;;  %v532_v19 = vld [vmem:[#allocation2 + $0x1c8] sm:$0xff]  ;;  %v534_v20 = vld [vmem:[#allocation2 + $0x1d8] sm:$0xff]  ;;  %v5634_v21 = vpack.c.bf16 %v530_v14, %v528_v13 }
  0xd4   : > { %5601 = vmatpush1.bf16.msra.mxu0 %v5600_v31  ;;  %v531_v22 = vld [vmem:[#allocation2 + $0x1c0] sm:$0xff]  ;;  %v533_v23 = vld [vmem:[#allocation2 + $0x1d0] sm:$0xff]  ;;  %v5636_v24 = vpack.c.bf16 %v529_v17, %v527_v16  ;;  %v536_v25 = vld [vmem:[#allocation2 + $0x1e8] sm:$0xff]  ;;  %v5638_v27 = vpack.c.bf16 %v534_v20, %v532_v19 }
  0xd5   : > { %5603 = vmatprep.subr.bf16.mxu0 %v5602_v32  ;;  %v538_v26 = vld [vmem:[#allocation2 + $0x1f8] sm:$0xff]  ;;  %v535_v28 = vld [vmem:[#allocation2 + $0x1e0] sm:$0xff]  ;;  %v537_v29 = vld [vmem:[#allocation2 + $0x1f0] sm:$0xff]  ;;  %v5640_v30 = vpack.c.bf16 %v533_v23, %v531_v22 }
  0xd6   : > { %v5642_v31 = vpack.c.bf16 %v538_v26, %v536_v25  ;;  %v5644_v32 = vpack.c.bf16 %v537_v29, %v535_v28  ;;  %v473_v33 = vld [vmem:[%s6980_s15] sm:$0xff]  ;;  %v5766_v38 = vld [vmem:[#allocation12 + $0x14] ss:$8 sps:$4 sm:$0xff]   ;;  %v5776_v41 = vld [vmem:[#allocation12 + $0x30] ss:$8 sps:$4 sm:$0xff]  }
  0xd7   : > { %v5758_v35 = vld [vmem:[#allocation12] ss:$8 sps:$4 sm:$0xff]   ;;  %v5760_v36 = vld [vmem:[#allocation12 + $0x4] ss:$8 sps:$4 sm:$0xff]   ;;  %v5778_v42 = vld [vmem:[#allocation12 + $0x34] ss:$8 sps:$4 sm:$0xff]  }
  0xd8   : > { %5605 = vmatpush1.bf16.msra.mxu0 %v5604_v37  ;;  %v5764_v37 = vld [vmem:[#allocation12 + $0x10] ss:$8 sps:$4 sm:$0xff]   ;;  %v5770_v39 = vld [vmem:[#allocation12 + $0x20] ss:$8 sps:$4 sm:$0xff]   ;;  %v5784_v44 = vld [vmem:[#allocation12 + $0x44] ss:$8 sps:$4 sm:$0xff]  }
  0xd9   : > { %5607 = vmatprep.subr.bf16.mxu0 %v5606_v40  ;;  %v5772_v40 = vld [vmem:[#allocation12 + $0x24] ss:$8 sps:$4 sm:$0xff]   ;;  %v5782_v43 = vld [vmem:[#allocation12 + $0x40] ss:$8 sps:$4 sm:$0xff]   ;;  %v5788_v45 = vld [vmem:[#allocation12 + $0x50] ss:$8 sps:$4 sm:$0xff]  }
  0xda   : > { %v5794_v47 = vld [vmem:[#allocation12 + $0x60] ss:$8 sps:$4 sm:$0xff]   ;;  %v5796_v48 = vld [vmem:[#allocation12 + $0x64] ss:$8 sps:$4 sm:$0xff]   ;;  %v5802_v50 = vld [vmem:[#allocation12 + $0x74] ss:$8 sps:$4 sm:$0xff]  }
  0xdb   : > { %v5808_v51 = vld [vmem:[#allocation12 + $0x84] ss:$8 sps:$4 sm:$0xff]   ;;  %v5814_v53 = vld [vmem:[#allocation12 + $0x94] ss:$8 sps:$4 sm:$0xff]   ;;  %v5812_v54 = vld [vmem:[#allocation12 + $0x90] ss:$8 sps:$4 sm:$0xff]  }
  0xdc   : > { %5609 = vmatpush1.bf16.msra.mxu0 %v5608_v46  ;;  %v5790_v46 = vld [vmem:[#allocation12 + $0x54] ss:$8 sps:$4 sm:$0xff]   ;;  %v5818_v56 = vld [vmem:[#allocation12 + $0xa0] ss:$8 sps:$4 sm:$0xff]   ;;  %v5832_v59 = vld [vmem:[#allocation12 + $0xc4] ss:$8 sps:$4 sm:$0xff]  }
  0xdd   : > { %5611 = vmatprep.subr.bf16.mxu0 %v5610_v49  ;;  %v5800_v49 = vld [vmem:[#allocation12 + $0x70] ss:$8 sps:$4 sm:$0xff]   ;;  %v5826_v57 = vld [vmem:[#allocation12 + $0xb4] ss:$8 sps:$4 sm:$0xff]   ;;  %v5830_v60 = vld [vmem:[#allocation12 + $0xc0] ss:$8 sps:$4 sm:$0xff]  }
  0xde   : > { %v5836_v62 = vld [vmem:[#allocation12 + $0xd0] ss:$8 sps:$4 sm:$0xff]   ;;  %v5844_v63 = vld [vmem:[#allocation12 + $0xe4] ss:$8 sps:$4 sm:$0xff]   ;;  %v5763_v7 = vld [vmem:[#allocation10 + $0x14] ss:$8 sps:$4 sm:$0xff]  }
  0xdf   : > { %v611_v1 = vld [vmem:[#allocation4] sm:$0x1f]  ;;  %v612_v4 = vld [vmem:[#allocation6] sm:$0x1f]  ;;  %v5761_v8 = vld [vmem:[#allocation10 + $0x10] ss:$8 sps:$4 sm:$0xff]  }
  0xe0   : > { %5613 = vmatpush1.bf16.msra.mxu0 %v5612_v52  ;;  %v5806_v52 = vld [vmem:[#allocation12 + $0x80] ss:$8 sps:$4 sm:$0xff]   ;;  %v5757_v5 = vld [vmem:[#allocation10 + $0x4] ss:$8 sps:$4 sm:$0xff]   ;;  %v5775_v11 = vld [vmem:[#allocation10 + $0x34] ss:$8 sps:$4 sm:$0xff]  }
  0xe1   : > { %5615 = vmatprep.subr.bf16.mxu0 %v5614_v55  ;;  %v5820_v55 = vld [vmem:[#allocation12 + $0xa4] ss:$8 sps:$4 sm:$0xff]   ;;  %v5767_v10 = vld [vmem:[#allocation10 + $0x20] ss:$8 sps:$4 sm:$0xff]   ;;  %v5785_v16 = vld [vmem:[#allocation10 + $0x50] ss:$8 sps:$4 sm:$0xff]  }
  0xe2   : > { %v5781_v13 = vld [vmem:[#allocation10 + $0x44] ss:$8 sps:$4 sm:$0xff]   ;;  %v5779_v14 = vld [vmem:[#allocation10 + $0x40] ss:$8 sps:$4 sm:$0xff]   ;;  %v5799_v19 = vld [vmem:[#allocation10 + $0x74] ss:$8 sps:$4 sm:$0xff]  }
  0xe3   : > { %v5793_v17 = vld [vmem:[#allocation10 + $0x64] ss:$8 sps:$4 sm:$0xff]   ;;  %v5797_v20 = vld [vmem:[#allocation10 + $0x70] ss:$8 sps:$4 sm:$0xff]   ;;  %v5803_v22 = vld [vmem:[#allocation10 + $0x80] ss:$8 sps:$4 sm:$0xff]  }
  0xe4   : > { %5617 = vmatpush1.bf16.msra.mxu0 %v5616_v58  ;;  %v5824_v58 = vld [vmem:[#allocation12 + $0xb0] ss:$8 sps:$4 sm:$0xff]   ;;  %v5811_v23 = vld [vmem:[#allocation10 + $0x94] ss:$8 sps:$4 sm:$0xff]   ;;  %v5817_v25 = vld [vmem:[#allocation10 + $0xa4] ss:$8 sps:$4 sm:$0xff]  }
  0xe5   : > { %5619 = vmatprep.subr.bf16.mxu0 %v5618_v61  ;;  %v5838_v61 = vld [vmem:[#allocation12 + $0xd4] ss:$8 sps:$4 sm:$0xff]   ;;  %v5815_v26 = vld [vmem:[#allocation10 + $0xa0] ss:$8 sps:$4 sm:$0xff]   ;;  %v5821_v28 = vld [vmem:[#allocation10 + $0xb0] ss:$8 sps:$4 sm:$0xff]  }
  0xe6   : > { %v5829_v29 = vld [vmem:[#allocation10 + $0xc4] ss:$8 sps:$4 sm:$0xff]  }
  0xe8   : > { %5621 = vmatpush1.bf16.msra.mxu0 %v5620_v0  ;;  %v5842_v0 = vld [vmem:[#allocation12 + $0xe0] ss:$8 sps:$4 sm:$0xff]  }
  0xe9   : > { %5623 = vmatprep.subr.bf16.mxu0 %v5622_v3 }
  0xec   : > { %5625 = vmatpush1.bf16.msra.mxu0 %v5624_v6  ;;  %v5755_v6 = vld [vmem:[#allocation10] ss:$8 sps:$4 sm:$0xff]  }
  0xed   : > { %5627 = vmatprep.subr.bf16.mxu0 %v5626_v9  ;;  %v5769_v9 = vld [vmem:[#allocation10 + $0x24] ss:$8 sps:$4 sm:$0xff]  }
  0xf0   : > { %5629 = vmatpush1.bf16.msra.mxu0 %v5628_v12  ;;  %v5773_v12 = vld [vmem:[#allocation10 + $0x30] ss:$8 sps:$4 sm:$0xff]  }
  0xf1   : > { %5631 = vmatprep.subr.bf16.mxu0 %v5630_v15  ;;  %v5787_v15 = vld [vmem:[#allocation10 + $0x54] ss:$8 sps:$4 sm:$0xff]  }
  0xf4   : > { %5633 = vmatpush1.bf16.msra.mxu0 %v5632_v18  ;;  %v5791_v18 = vld [vmem:[#allocation10 + $0x60] ss:$8 sps:$4 sm:$0xff]  }
  0xf5   : > { %5635 = vmatprep.subr.bf16.mxu0 %v5634_v21  ;;  %v5805_v21 = vld [vmem:[#allocation10 + $0x84] ss:$8 sps:$4 sm:$0xff]  }
  0xf8   : > { %5637 = vmatpush1.bf16.msra.mxu0 %v5636_v24  ;;  %v5809_v24 = vld [vmem:[#allocation10 + $0x90] ss:$8 sps:$4 sm:$0xff]  }
  0xf9   : > { %5639 = vmatprep.subr.bf16.mxu0 %v5638_v27  ;;  %v5823_v27 = vld [vmem:[#allocation10 + $0xb4] ss:$8 sps:$4 sm:$0xff]  }
  0xfc   : > { %5641 = vmatpush1.bf16.msra.mxu0 %v5640_v30  ;;  %v5827_v30 = vld [vmem:[#allocation10 + $0xc0] ss:$8 sps:$4 sm:$0xff]  }
  0xfd   : > { %5643 = vmatprep.subr.bf16.mxu0 %v5642_v31  ;;  %v5835_v31 = vld [vmem:[#allocation10 + $0xd4] ss:$8 sps:$4 sm:$0xff]  }
 0x100   : > { %5645 = vmatpush1.bf16.msra.mxu0 %v5644_v32  ;;  %v5833_v32 = vld [vmem:[#allocation10 + $0xd0] ss:$8 sps:$4 sm:$0xff]  }
 0x101   : > { %1562 = vmatprep.subr.bf16.mxu0 %v5760_v36  ;;  %v5845_v36 = vld [vmem:[#allocation10 + $0xf0] ss:$8 sps:$4 sm:$0xff]  }
 0x103   : > { %604 = vmatmul.mubr.f32.vlgmr.msra.gmra.mrb[0].mxu0 %v473_v33  ;;  %v5841_v33 = vld [vmem:[#allocation10 + $0xe4] ss:$8 sps:$4 sm:$0xff]  }
 0x104   : > { %1563 = vmatpush1.bf16.msra.mxu0 %v5758_v35  ;;  %v5839_v35 = vld [vmem:[#allocation10 + $0xe0] ss:$8 sps:$4 sm:$0xff]  }
 0x105   : > { %1564 = vmatprep.subr.bf16.mxu0 %v5766_v38  ;;  %v5848_v38 = vld [vmem:[#allocation12 + $0xf0] ss:$8 sps:$4 sm:$0xff]  }
 0x108   : > { %1565 = vmatpush1.bf16.msra.mxu0 %v5764_v37  ;;  %v5847_v37 = vld [vmem:[#allocation10 + $0xf4] ss:$8 sps:$4 sm:$0xff]  }
 0x109   : > { %1566 = vmatprep.subr.bf16.mxu0 %v5772_v40  ;;  %v5853_v40 = vld [vmem:[#allocation10 + $0x104] ss:$8 sps:$4 sm:$0xff]  }
 0x10c   : > { %1567 = vmatpush1.bf16.msra.mxu0 %v5770_v39  ;;  %v5850_v39 = vld [vmem:[#allocation12 + $0xf4] ss:$8 sps:$4 sm:$0xff]  }
 0x10d   : > { %1568 = vmatprep.subr.bf16.mxu0 %v5778_v42 }
 0x110   : > { %1569 = vmatpush1.bf16.msra.mxu0 %v5776_v41  ;;  %v5856_v41 = vld [vmem:[#allocation10 + $0x204] ss:$8 sps:$4 sm:$0xff]  }
 0x111   : > { %1570 = vmatprep.subr.bf16.mxu0 %v5784_v44 }
 0x114   : > { %1571 = vmatpush1.bf16.msra.mxu0 %v5782_v43 }
 0x115   : > { %1572 = vmatprep.subr.bf16.mxu0 %v5790_v46 }
 0x118   : > { %1573 = vmatpush1.bf16.msra.mxu0 %v5788_v45 }
 0x119   : > { %1574 = vmatprep.subr.bf16.mxu0 %v5796_v48  ;;  %v5854_v48 = vld [vmem:[#allocation10 + $0x200] ss:$8 sps:$4 sm:$0xff]  }
 0x11c   : > { %1575 = vmatpush1.bf16.msra.mxu0 %v5794_v47  ;;  %v5851_v47 = vld [vmem:[#allocation10 + $0x100] ss:$8 sps:$4 sm:$0xff]  }
 0x11d   : > { %1576 = vmatprep.subr.bf16.mxu0 %v5802_v50  ;;  %v5859_v50 = vld [vmem:[#allocation10 + $0x114] ss:$8 sps:$4 sm:$0xff]  }
 0x120   : > { %1577 = vmatpush1.bf16.msra.mxu0 %v5800_v49 }
 0x121   : > { %1578 = vmatprep.subr.bf16.mxu0 %v5808_v51 }
 0x124   : > { %1579 = vmatpush1.bf16.msra.mxu0 %v5806_v52  ;;  %v5862_v52 = vld [vmem:[#allocation10 + $0x214] ss:$8 sps:$4 sm:$0xff]  }
 0x125   : > { %1580 = vmatprep.subr.bf16.mxu0 %v5814_v53 }
 0x128   : > { %1581 = vmatpush1.bf16.msra.mxu0 %v5812_v54  ;;  %v5857_v54 = vld [vmem:[#allocation10 + $0x110] ss:$8 sps:$4 sm:$0xff]  }
 0x129   : > { %1582 = vmatprep.subr.bf16.mxu0 %v5820_v55  ;;  %v5860_v55 = vld [vmem:[#allocation10 + $0x210] ss:$8 sps:$4 sm:$0xff]  }
 0x12c   : > { %1583 = vmatpush1.bf16.msra.mxu0 %v5818_v56 }
 0x12d   : > { %1584 = vmatprep.subr.bf16.mxu0 %v5826_v57  ;;  %v5865_v57 = vld [vmem:[#allocation10 + $0x124] ss:$8 sps:$4 sm:$0xff]  }
 0x130   : > { %1585 = vmatpush1.bf16.msra.mxu0 %v5824_v58  ;;  %v5868_v58 = vld [vmem:[#allocation10 + $0x224] ss:$8 sps:$4 sm:$0xff]  }
 0x131   : > { %1586 = vmatprep.subr.bf16.mxu0 %v5832_v59 }
 0x134   : > { %1587 = vmatpush1.bf16.msra.mxu0 %v5830_v60  ;;  %v5863_v60 = vld [vmem:[#allocation10 + $0x120] ss:$8 sps:$4 sm:$0xff]  }
 0x135   : > { %1588 = vmatprep.subr.bf16.mxu0 %v5838_v61  ;;  %v5866_v61 = vld [vmem:[#allocation10 + $0x220] ss:$8 sps:$4 sm:$0xff]  }
 0x138   : > { %1589 = vmatpush1.bf16.msra.mxu0 %v5836_v62 }
 0x139   : > { %1590 = vmatprep.subr.bf16.mxu0 %v5844_v63 }
 0x13c   : > { %1591 = vmatpush1.bf16.msra.mxu0 %v5842_v0  ;;  %v5871_v0 = vld [vmem:[#allocation10 + $0x134] ss:$8 sps:$4 sm:$0xff]  }
 0x13d   : > { %1592 = vmatprep.subr.bf16.mxu0 %v5850_v39  ;;  %v5923_v39 = vld [vmem:[#allocation10 + $0x1c0] ss:$8 sps:$4 sm:$0xff]  }
 0x140   : > { %1593 = vmatpush1.bf16.msra.mxu0 %v5848_v38  ;;  %v5928_v38 = vld [vmem:[#allocation10 + $0x2c4] ss:$8 sps:$4 sm:$0xff]  }
 0x141   : > { %2004 = vmatprep.subr.bf16.mxu0 %v5856_v41  ;;  %v5931_v41 = vld [vmem:[#allocation10 + $0x1d4] ss:$8 sps:$4 sm:$0xff]  }
 0x1d6   : > { %v605_v2 = vpop.f32.mrb[0].mxu0 }
 0x1d7   : > { %v607_v3 = vpop.f32.mrb[1].mxu0  ;;  %5543 = vmatpush3.msra.mxu1 %v605_v2 }
 0x1d8   : > { %610 = vst [vmem:[%s464_s2] sm:$0xff] %v607_v3  ;;  %5545 = vmatmul.mubr.msk.f32.vlgmr.msra.gmra.mrb[0].mxu1 %vm613_vm1, %v611_v1  ;;  %5547 = vmatprep.subr.mxu1 %v6706_v34 }
 0x1d9   : > { %5548 = vmatpush3.msra.mxu1 %v605_v2  ;;  %5549 = vmatprep.mubr.msk.f32.mxu1 %vm6707_vm0, %v6706_v34  ;;  %v5869_v2 = vld [vmem:[#allocation10 + $0x130] ss:$8 sps:$4 sm:$0xff]  }
 0x1da   : > { %5552 = vmatprep.subr.mxu1 %v6706_v34 }
 0x1dc   : > { %5550 = vmatmul.mubr.msk.f32.vlgmr.msra.gmra.mrb[2].mxu1 %vm613_vm1, %v612_v4 }
 0x1dd   : > { %5553 = vmatpush3.msra.mxu1 %v607_v3  ;;  %5554 = vmatprep.mubr.msk.f32.mxu1 %vm6707_vm0, %v6706_v34 }
 0x1de   : > { %5557 = vmatprep.subr.mxu1 %v6706_v34 }
 0x1e0   : > { %5555 = vmatmul.mubr.msk.f32.vlgmr.msra.gmra.mrb[4].mxu1 %vm613_vm1, %v611_v1  ;;  %v5874_v1 = vld [vmem:[#allocation10 + $0x234] ss:$8 sps:$4 sm:$0xff]  }
 0x1e1   : > { %5558 = vmatpush3.msra.mxu1 %v607_v3  ;;  %5559 = vmatprep.mubr.msk.f32.mxu1 %vm6707_vm0, %v6706_v34  ;;  %v5872_v3 = vld [vmem:[#allocation10 + $0x230] ss:$8 sps:$4 sm:$0xff]  }
 0x1e2   : > { %1288 = vmatprep.subr.bf16.mxu1 %v5757_v5  ;;  %v5880_v5 = vld [vmem:[#allocation10 + $0x244] ss:$8 sps:$4 sm:$0xff]  }
 0x1e4   : > { %5560 = vmatmul.mubr.msk.f32.vlgmr.msra.gmra.mrb[6].mxu1 %vm613_vm1, %v612_v4  ;;  %v5877_v4 = vld [vmem:[#allocation10 + $0x144] ss:$8 sps:$4 sm:$0xff]  }
 0x1e5   : > { %1289 = vmatpush1.bf16.msra.mxu1 %v5755_v6  ;;  %v5875_v6 = vld [vmem:[#allocation10 + $0x140] ss:$8 sps:$4 sm:$0xff]  }
 0x1e6   : > { %1290 = vmatprep.subr.bf16.mxu1 %v5763_v7  ;;  %v5878_v7 = vld [vmem:[#allocation10 + $0x240] ss:$8 sps:$4 sm:$0xff]  }
 0x1e9   : > { %1291 = vmatpush1.bf16.msra.mxu1 %v5761_v8  ;;  %v5883_v8 = vld [vmem:[#allocation10 + $0x154] ss:$8 sps:$4 sm:$0xff]  }
 0x1ea   : > { %1292 = vmatprep.subr.bf16.mxu1 %v5769_v9  ;;  %v5886_v9 = vld [vmem:[#allocation10 + $0x254] ss:$8 sps:$4 sm:$0xff]  }
 0x1ed   : > { %1293 = vmatpush1.bf16.msra.mxu1 %v5767_v10  ;;  %v5881_v10 = vld [vmem:[#allocation10 + $0x150] ss:$8 sps:$4 sm:$0xff]  }
 0x1ee   : > { %1294 = vmatprep.subr.bf16.mxu1 %v5775_v11  ;;  %v5884_v11 = vld [vmem:[#allocation10 + $0x250] ss:$8 sps:$4 sm:$0xff]  }
 0x1f1   : > { %1295 = vmatpush1.bf16.msra.mxu1 %v5773_v12  ;;  %v5889_v12 = vld [vmem:[#allocation10 + $0x164] ss:$8 sps:$4 sm:$0xff]  }
 0x1f2   : > { %1296 = vmatprep.subr.bf16.mxu1 %v5781_v13  ;;  %v5892_v13 = vld [vmem:[#allocation10 + $0x264] ss:$8 sps:$4 sm:$0xff]  }
 0x1f5   : > { %1297 = vmatpush1.bf16.msra.mxu1 %v5779_v14  ;;  %v5887_v14 = vld [vmem:[#allocation10 + $0x160] ss:$8 sps:$4 sm:$0xff]  }
 0x1f6   : > { %1298 = vmatprep.subr.bf16.mxu1 %v5787_v15  ;;  %v5890_v15 = vld [vmem:[#allocation10 + $0x260] ss:$8 sps:$4 sm:$0xff]  }
 0x1f9   : > { %1299 = vmatpush1.bf16.msra.mxu1 %v5785_v16  ;;  %v5895_v16 = vld [vmem:[#allocation10 + $0x174] ss:$8 sps:$4 sm:$0xff]  }
 0x1fa   : > { %1300 = vmatprep.subr.bf16.mxu1 %v5793_v17  ;;  %v5898_v17 = vld [vmem:[#allocation10 + $0x274] ss:$8 sps:$4 sm:$0xff]  }
 0x1fd   : > { %1301 = vmatpush1.bf16.msra.mxu1 %v5791_v18  ;;  %v5893_v18 = vld [vmem:[#allocation10 + $0x170] ss:$8 sps:$4 sm:$0xff]  }
 0x1fe   : > { %1302 = vmatprep.subr.bf16.mxu1 %v5799_v19  ;;  %v5896_v19 = vld [vmem:[#allocation10 + $0x270] ss:$8 sps:$4 sm:$0xff]  }
 0x201   : > { %1303 = vmatpush1.bf16.msra.mxu1 %v5797_v20  ;;  %v5901_v20 = vld [vmem:[#allocation10 + $0x184] ss:$8 sps:$4 sm:$0xff]  }
 0x202   : > { %1304 = vmatprep.subr.bf16.mxu1 %v5805_v21  ;;  %v5904_v21 = vld [vmem:[#allocation10 + $0x284] ss:$8 sps:$4 sm:$0xff]  }
 0x205   : > { %1305 = vmatpush1.bf16.msra.mxu1 %v5803_v22  ;;  %v5899_v22 = vld [vmem:[#allocation10 + $0x180] ss:$8 sps:$4 sm:$0xff]  }
 0x206   : > { %1306 = vmatprep.subr.bf16.mxu1 %v5811_v23  ;;  %v5902_v23 = vld [vmem:[#allocation10 + $0x280] ss:$8 sps:$4 sm:$0xff]  }
 0x209   : > { %1307 = vmatpush1.bf16.msra.mxu1 %v5809_v24  ;;  %v5907_v24 = vld [vmem:[#allocation10 + $0x194] ss:$8 sps:$4 sm:$0xff]  }
 0x20a   : > { %1308 = vmatprep.subr.bf16.mxu1 %v5817_v25  ;;  %v5910_v25 = vld [vmem:[#allocation10 + $0x294] ss:$8 sps:$4 sm:$0xff]  }
 0x20d   : > { %1309 = vmatpush1.bf16.msra.mxu1 %v5815_v26  ;;  %v5905_v26 = vld [vmem:[#allocation10 + $0x190] ss:$8 sps:$4 sm:$0xff]  }
 0x20e   : > { %1310 = vmatprep.subr.bf16.mxu1 %v5823_v27  ;;  %v5908_v27 = vld [vmem:[#allocation10 + $0x290] ss:$8 sps:$4 sm:$0xff]  }
 0x211   : > { %1311 = vmatpush1.bf16.msra.mxu1 %v5821_v28  ;;  %v5913_v28 = vld [vmem:[#allocation10 + $0x1a4] ss:$8 sps:$4 sm:$0xff]  }
 0x212   : > { %1312 = vmatprep.subr.bf16.mxu1 %v5829_v29  ;;  %v5916_v29 = vld [vmem:[#allocation10 + $0x2a4] ss:$8 sps:$4 sm:$0xff]  }
 0x215   : > { %1313 = vmatpush1.bf16.msra.mxu1 %v5827_v30  ;;  %v5911_v30 = vld [vmem:[#allocation10 + $0x1a0] ss:$8 sps:$4 sm:$0xff]  }
 0x216   : > { %1314 = vmatprep.subr.bf16.mxu1 %v5835_v31  ;;  %v5914_v31 = vld [vmem:[#allocation10 + $0x2a0] ss:$8 sps:$4 sm:$0xff]  }
 0x219   : > { %1315 = vmatpush1.bf16.msra.mxu1 %v5833_v32  ;;  %v5919_v32 = vld [vmem:[#allocation10 + $0x1b4] ss:$8 sps:$4 sm:$0xff]  }
 0x21a   : > { %1316 = vmatprep.subr.bf16.mxu1 %v5841_v33  ;;  %v5922_v33 = vld [vmem:[#allocation10 + $0x2b4] ss:$8 sps:$4 sm:$0xff]  }
 0x21d   : > { %1317 = vmatpush1.bf16.msra.mxu1 %v5839_v35  ;;  %v5917_v35 = vld [vmem:[#allocation10 + $0x1b0] ss:$8 sps:$4 sm:$0xff]  }
 0x21e   : > { %1318 = vmatprep.subr.bf16.mxu1 %v5847_v37  ;;  %v5925_v37 = vld [vmem:[#allocation10 + $0x1c4] ss:$8 sps:$4 sm:$0xff]  }
 0x221   : > { %1319 = vmatpush1.bf16.msra.mxu1 %v5845_v36  ;;  %v5920_v36 = vld [vmem:[#allocation10 + $0x2b0] ss:$8 sps:$4 sm:$0xff]  }
 0x222   : > { %1329 = vmatprep.subr.bf16.mxu1 %v5853_v40  ;;  %v5926_v40 = vld [vmem:[#allocation10 + $0x2c0] ss:$8 sps:$4 sm:$0xff]  }
 0x2ab   : > { %v683_v42 = vpop.f32.mrb[0].mxu1 }
 0x2ac   : > { %v5546_v43 = vpop.f32.mrb[1].mxu1  ;;  %v7009_v49 = vpack.c.bf16 %v683_v42, %v683_v42  ;;  %v5934_v42 = vld [vmem:[#allocation10 + $0x2d4] ss:$8 sps:$4 sm:$0xff]  }
 0x2ad   : > { %v5929_v43 = vld [vmem:[#allocation10 + $0x1d0] ss:$8 sps:$4 sm:$0xff]  }
 0x2af   : > { %v756_v44 = vpop.f32.mrb[2].mxu1 }
 0x2b0   : > { %v7007_v45 = vpack.c.bf16 %v756_v44, %v756_v44  ;;  %v5551_v46 = vpop.f32.mrb[3].mxu1  ;;  %v5932_v44 = vld [vmem:[#allocation10 + $0x2d0] ss:$8 sps:$4 sm:$0xff]  }
 0x2b1   : > { %v5937_v46 = vld [vmem:[#allocation10 + $0x1e4] ss:$8 sps:$4 sm:$0xff]  }
 0x2b2   : > { %1320 = vmatprep.mubr.bf16.mxu1 %v7007_v45  ;;  %1594 = vmatprep.mubr.bf16.mxu0 %v7007_v45  ;;  %v7014_v51 = vshrl.u32 %v7007_v45, 16 }
 0x2b3   : > { %1321 = vmatmul.mubr.bf16.vlgmr.msra.gmra.mrb[8].mxu1 %v7009_v49  ;;  %1595 = vmatmul.mubr.bf16.vlgmr.msra.gmra.mrb[4].mxu0 %v7009_v49  ;;  %v7018_v53 = vpop.f32.mrb[4].mxu1 }
 0x2b4   : > { %1330 = vmatpush1.bf16.msra.mxu1 %v5851_v47  ;;  %2005 = vmatpush1.bf16.msra.mxu0 %v5854_v48  ;;  %v5556_v56 = vpop.f32.mrb[5].mxu1  ;;  %v5940_v47 = vld [vmem:[#allocation10 + $0x2e4] ss:$8 sps:$4 sm:$0xff]   ;;  %v5935_v48 = vld [vmem:[#allocation10 + $0x1e0] ss:$8 sps:$4 sm:$0xff]  }
 0x2b5   : > { %2036 = vmatprep.mubr.bf16.mxu0 %v7014_v51  ;;  %1331 = vmatprep.subr.bf16.mxu1 %v5859_v50  ;;  %v5938_v50 = vld [vmem:[#allocation10 + $0x2e0] ss:$8 sps:$4 sm:$0xff]   ;;  %v5944_v56 = vld [vmem:[#allocation10 + $0x2f0] ss:$8 sps:$4 sm:$0xff]  }
 0x2b6   : > { %2006 = vmatprep.subr.bf16.mxu0 %v5862_v52  ;;  %v5943_v52 = vld [vmem:[#allocation10 + $0x1f4] ss:$8 sps:$4 sm:$0xff]  }
 0x2b7   : > { %v896_v59 = vpop.f32.mrb[6].mxu1 }
 0x2b8   : > { %1332 = vmatpush1.bf16.msra.mxu1 %v5857_v54  ;;  %2007 = vmatpush1.bf16.msra.mxu0 %v5860_v55  ;;  %v7021_v62 = vpack.c.bf16 %v896_v59, %v896_v59  ;;  %v5561_v63 = vpop.f32.mrb[7].mxu1  ;;  %v5946_v54 = vld [vmem:[#allocation10 + $0x2f4] ss:$8 sps:$4 sm:$0xff]   ;;  %v5941_v55 = vld [vmem:[#allocation10 + $0x1f0] ss:$8 sps:$4 sm:$0xff]  }
 0x2b9   : > { %1333 = vmatprep.subr.bf16.mxu1 %v5865_v57  ;;  %2008 = vmatprep.subr.bf16.mxu0 %v5868_v58  ;;  %v5949_v57 = vld [vmem:[#allocation10 + $0x304] ss:$8 sps:$4 sm:$0xff]   ;;  %v5947_v59 = vld [vmem:[#allocation10 + $0x300] ss:$8 sps:$4 sm:$0xff]   ;;  %v7029_v63 = vshrl.u32 %v7009_v49, 16 }
 0x2ba   : > { %1361 = vmatprep.mubr.bf16.mxu1 %v7021_v62  ;;  %v5952_v58 = vld [vmem:[#allocation12 + $0x104] ss:$8 sps:$4 sm:$0xff]  }
 0x2bc   : > { %1334 = vmatpush1.bf16.msra.mxu1 %v5863_v60  ;;  %2009 = vmatpush1.bf16.msra.mxu0 %v5866_v61  ;;  %v5950_v60 = vld [vmem:[#allocation12 + $0x100] ss:$8 sps:$4 sm:$0xff]   ;;  %v7026_v61 = vpack.c.bf16 %v7018_v53, %v7018_v53  ;;  %v5961_v53 = vld [vmem:[#allocation10 + $0x324] ss:$8 sps:$4 sm:$0xff]  }
 0x2bd   : > { %1335 = vmatprep.subr.bf16.mxu1 %v5871_v0  ;;  %2010 = vmatprep.subr.bf16.mxu0 %v5874_v1  ;;  %v1678_v0 = vshrl.u32 %v7021_v62, 16  ;;  %v5955_v1 = vld [vmem:[#allocation10 + $0x314] ss:$8 sps:$4 sm:$0xff]  }
 0x2c0   : > { %1336 = vmatpush1.bf16.msra.mxu1 %v5869_v2  ;;  %2011 = vmatpush1.bf16.msra.mxu0 %v5872_v3  ;;  %v5958_v2 = vld [vmem:[#allocation12 + $0x114] ss:$8 sps:$4 sm:$0xff]   ;;  %v5953_v3 = vld [vmem:[#allocation10 + $0x310] ss:$8 sps:$4 sm:$0xff]  }
 0x2c1   : > { %1337 = vmatprep.subr.bf16.mxu1 %v5877_v4  ;;  %2012 = vmatprep.subr.bf16.mxu0 %v5880_v5  ;;  %v5956_v4 = vld [vmem:[#allocation12 + $0x110] ss:$8 sps:$4 sm:$0xff]   ;;  %v5964_v5 = vld [vmem:[#allocation12 + $0x124] ss:$8 sps:$4 sm:$0xff]  }
 0x2c4   : > { %1338 = vmatpush1.bf16.msra.mxu1 %v5875_v6  ;;  %2013 = vmatpush1.bf16.msra.mxu0 %v5878_v7  ;;  %v5959_v6 = vld [vmem:[#allocation10 + $0x320] ss:$8 sps:$4 sm:$0xff]  }
 0x2c5   : > { %1339 = vmatprep.subr.bf16.mxu1 %v5883_v8  ;;  %2014 = vmatprep.subr.bf16.mxu0 %v5886_v9  ;;  %v5962_v7 = vld [vmem:[#allocation12 + $0x120] ss:$8 sps:$4 sm:$0xff]   ;;  %v5967_v8 = vld [vmem:[#allocation10 + $0x334] ss:$8 sps:$4 sm:$0xff]  }
 0x2c6   : > { %v5970_v9 = vld [vmem:[#allocation12 + $0x134] ss:$8 sps:$4 sm:$0xff]  }
 0x2c8   : > { %1340 = vmatpush1.bf16.msra.mxu1 %v5881_v10  ;;  %2015 = vmatpush1.bf16.msra.mxu0 %v5884_v11  ;;  %v5965_v10 = vld [vmem:[#allocation10 + $0x330] ss:$8 sps:$4 sm:$0xff]  }
 0x2c9   : > { %1341 = vmatprep.subr.bf16.mxu1 %v5889_v12  ;;  %2016 = vmatprep.subr.bf16.mxu0 %v5892_v13  ;;  %v5968_v11 = vld [vmem:[#allocation12 + $0x130] ss:$8 sps:$4 sm:$0xff]   ;;  %v5973_v12 = vld [vmem:[#allocation10 + $0x344] ss:$8 sps:$4 sm:$0xff]  }
 0x2ca   : > { %v5976_v13 = vld [vmem:[#allocation12 + $0x144] ss:$8 sps:$4 sm:$0xff]  }
 0x2cc   : > { %1342 = vmatpush1.bf16.msra.mxu1 %v5887_v14  ;;  %2017 = vmatpush1.bf16.msra.mxu0 %v5890_v15  ;;  %v5971_v14 = vld [vmem:[#allocation10 + $0x340] ss:$8 sps:$4 sm:$0xff]  }
 0x2cd   : > { %1343 = vmatprep.subr.bf16.mxu1 %v5895_v16  ;;  %2018 = vmatprep.subr.bf16.mxu0 %v5898_v17  ;;  %v5974_v15 = vld [vmem:[#allocation12 + $0x140] ss:$8 sps:$4 sm:$0xff]   ;;  %v5979_v16 = vld [vmem:[#allocation10 + $0x354] ss:$8 sps:$4 sm:$0xff]  }
 0x2ce   : > { %v5982_v17 = vld [vmem:[#allocation12 + $0x154] ss:$8 sps:$4 sm:$0xff]  }
 0x2d0   : > { %1344 = vmatpush1.bf16.msra.mxu1 %v5893_v18  ;;  %2019 = vmatpush1.bf16.msra.mxu0 %v5896_v19  ;;  %v5977_v18 = vld [vmem:[#allocation10 + $0x350] ss:$8 sps:$4 sm:$0xff]  }
 0x2d1   : > { %1345 = vmatprep.subr.bf16.mxu1 %v5901_v20  ;;  %2020 = vmatprep.subr.bf16.mxu0 %v5904_v21  ;;  %v5980_v19 = vld [vmem:[#allocation12 + $0x150] ss:$8 sps:$4 sm:$0xff]   ;;  %v5985_v20 = vld [vmem:[#allocation10 + $0x364] ss:$8 sps:$4 sm:$0xff]  }
 0x2d2   : > { %v5988_v21 = vld [vmem:[#allocation12 + $0x164] ss:$8 sps:$4 sm:$0xff]  }
 0x2d4   : > { %1346 = vmatpush1.bf16.msra.mxu1 %v5899_v22  ;;  %2021 = vmatpush1.bf16.msra.mxu0 %v5902_v23  ;;  %v5983_v22 = vld [vmem:[#allocation10 + $0x360] ss:$8 sps:$4 sm:$0xff]  }
 0x2d5   : > { %1347 = vmatprep.subr.bf16.mxu1 %v5907_v24  ;;  %2022 = vmatprep.subr.bf16.mxu0 %v5910_v25  ;;  %v5986_v23 = vld [vmem:[#allocation12 + $0x160] ss:$8 sps:$4 sm:$0xff]   ;;  %v5991_v24 = vld [vmem:[#allocation10 + $0x374] ss:$8 sps:$4 sm:$0xff]  }
 0x2d6   : > { %v5994_v25 = vld [vmem:[#allocation12 + $0x174] ss:$8 sps:$4 sm:$0xff]  }
 0x2d8   : > { %1348 = vmatpush1.bf16.msra.mxu1 %v5905_v26  ;;  %2023 = vmatpush1.bf16.msra.mxu0 %v5908_v27  ;;  %v5989_v26 = vld [vmem:[#allocation10 + $0x370] ss:$8 sps:$4 sm:$0xff]  }
 0x2d9   : > { %1349 = vmatprep.subr.bf16.mxu1 %v5913_v28  ;;  %2024 = vmatprep.subr.bf16.mxu0 %v5916_v29  ;;  %v5992_v27 = vld [vmem:[#allocation12 + $0x170] ss:$8 sps:$4 sm:$0xff]   ;;  %v5997_v28 = vld [vmem:[#allocation10 + $0x384] ss:$8 sps:$4 sm:$0xff]  }
 0x2da   : > { %v6000_v29 = vld [vmem:[#allocation12 + $0x184] ss:$8 sps:$4 sm:$0xff]  }
 0x2dc   : > { %1350 = vmatpush1.bf16.msra.mxu1 %v5911_v30  ;;  %2025 = vmatpush1.bf16.msra.mxu0 %v5914_v31  ;;  %v5995_v30 = vld [vmem:[#allocation10 + $0x380] ss:$8 sps:$4 sm:$0xff]  }
 0x2dd   : > { %1351 = vmatprep.subr.bf16.mxu1 %v5919_v32  ;;  %2026 = vmatprep.subr.bf16.mxu0 %v5922_v33  ;;  %v5998_v31 = vld [vmem:[#allocation12 + $0x180] ss:$8 sps:$4 sm:$0xff]   ;;  %v6003_v32 = vld [vmem:[#allocation10 + $0x394] ss:$8 sps:$4 sm:$0xff]  }
 0x2de   : > { %v6006_v33 = vld [vmem:[#allocation12 + $0x194] ss:$8 sps:$4 sm:$0xff]  }
 0x2e0   : > { %1352 = vmatpush1.bf16.msra.mxu1 %v5917_v35  ;;  %2027 = vmatpush1.bf16.msra.mxu0 %v5920_v36  ;;  %v6001_v35 = vld [vmem:[#allocation10 + $0x390] ss:$8 sps:$4 sm:$0xff]  }
 0x2e1   : > { %1353 = vmatprep.subr.bf16.mxu1 %v5925_v37  ;;  %2028 = vmatprep.subr.bf16.mxu0 %v5928_v38  ;;  %v6004_v36 = vld [vmem:[#allocation12 + $0x190] ss:$8 sps:$4 sm:$0xff]   ;;  %v6009_v37 = vld [vmem:[#allocation10 + $0x3a4] ss:$8 sps:$4 sm:$0xff]  }
 0x2e2   : > { %v6012_v38 = vld [vmem:[#allocation12 + $0x1a4] ss:$8 sps:$4 sm:$0xff]  }
 0x2e4   : > { %1354 = vmatpush1.bf16.msra.mxu1 %v5923_v39  ;;  %2029 = vmatpush1.bf16.msra.mxu0 %v5926_v40  ;;  %v6007_v39 = vld [vmem:[#allocation10 + $0x3a0] ss:$8 sps:$4 sm:$0xff]  }
 0x2e5   : > { %1355 = vmatprep.subr.bf16.mxu1 %v5931_v41  ;;  %2030 = vmatprep.subr.bf16.mxu0 %v5934_v42  ;;  %v6010_v40 = vld [vmem:[#allocation12 + $0x1a0] ss:$8 sps:$4 sm:$0xff]   ;;  %v6015_v41 = vld [vmem:[#allocation10 + $0x3b4] ss:$8 sps:$4 sm:$0xff]  }
 0x2e6   : > { %v6018_v42 = vld [vmem:[#allocation12 + $0x1b4] ss:$8 sps:$4 sm:$0xff]  }
 0x2e8   : > { %1356 = vmatpush1.bf16.msra.mxu1 %v5929_v43  ;;  %2031 = vmatpush1.bf16.msra.mxu0 %v5932_v44  ;;  %v6013_v43 = vld [vmem:[#allocation10 + $0x3b0] ss:$8 sps:$4 sm:$0xff]  }
 0x2e9   : > { %1357 = vmatprep.subr.bf16.mxu1 %v5937_v46  ;;  %2032 = vmatprep.subr.bf16.mxu0 %v5940_v47  ;;  %v6016_v44 = vld [vmem:[#allocation12 + $0x1b0] ss:$8 sps:$4 sm:$0xff]   ;;  %v6021_v46 = vld [vmem:[#allocation10 + $0x3c4] ss:$8 sps:$4 sm:$0xff]  }
 0x2ea   : > { %v6024_v47 = vld [vmem:[#allocation12 + $0x1c4] ss:$8 sps:$4 sm:$0xff]  }
 0x2ec   : > { %1358 = vmatpush1.bf16.msra.mxu1 %v5935_v48  ;;  %2033 = vmatpush1.bf16.msra.mxu0 %v5938_v50  ;;  %v6019_v48 = vld [vmem:[#allocation10 + $0x3c0] ss:$8 sps:$4 sm:$0xff]  }
 0x2ed   : > { %1359 = vmatprep.subr.bf16.mxu1 %v5943_v52  ;;  %2034 = vmatprep.subr.bf16.mxu0 %v5946_v54  ;;  %v6022_v50 = vld [vmem:[#allocation12 + $0x1c0] ss:$8 sps:$4 sm:$0xff]   ;;  %v6027_v52 = vld [vmem:[#allocation10 + $0x3d4] ss:$8 sps:$4 sm:$0xff]  }
 0x2ee   : > { %v6030_v54 = vld [vmem:[#allocation12 + $0x1d4] ss:$8 sps:$4 sm:$0xff]  }
 0x2f0   : > { %1360 = vmatpush1.bf16.msra.mxu1 %v5941_v55  ;;  %2035 = vmatpush1.bf16.msra.mxu0 %v5944_v56  ;;  %v6025_v55 = vld [vmem:[#allocation10 + $0x3d0] ss:$8 sps:$4 sm:$0xff]  }
 0x2f1   : > { %2045 = vmatprep.subr.bf16.mxu0 %v5949_v57  ;;  %2279 = vmatprep.subr.bf16.mxu1 %v5952_v58  ;;  %v6028_v56 = vld [vmem:[#allocation12 + $0x1d0] ss:$8 sps:$4 sm:$0xff]   ;;  %v6033_v57 = vld [vmem:[#allocation10 + $0x3e4] ss:$8 sps:$4 sm:$0xff]  }
 0x2f2   : > { %v6036_v58 = vld [vmem:[#allocation12 + $0x1e4] ss:$8 sps:$4 sm:$0xff]  }
 0x2f3   : > { %1362 = vmatmul.mubr.bf16.vlgmr.msra.gmra.mrb[8].mxu1 %v7026_v61  ;;  %2037 = vmatmul.mubr.bf16.vlgmr.msra.gmra.mrb[8].mxu0 %v7029_v63 }
 0x2f4   : > { %2046 = vmatpush1.bf16.msra.mxu0 %v5947_v59  ;;  %2280 = vmatpush1.bf16.msra.mxu1 %v5950_v60  ;;  %v6031_v59 = vld [vmem:[#allocation10 + $0x3e0] ss:$8 sps:$4 sm:$0xff]  }
 0x2f5   : > { %2311 = vmatprep.mubr.bf16.mxu1 %v7014_v51  ;;  %2077 = vmatprep.mubr.bf16.mxu0 %v1678_v0  ;;  %v6034_v60 = vld [vmem:[#allocation12 + $0x1e0] ss:$8 sps:$4 sm:$0xff]  }
 0x2f6   : > { %2047 = vmatprep.subr.bf16.mxu0 %v5955_v1  ;;  %2281 = vmatprep.subr.bf16.mxu1 %v5958_v2  ;;  %v6039_v1 = vld [vmem:[#allocation10 + $0x3f4] ss:$8 sps:$4 sm:$0xff]  }
 0x2f7   : > { %v6042_v2 = vld [vmem:[#allocation12 + $0x1f4] ss:$8 sps:$4 sm:$0xff]  }
 0x2f8   : > { %2048 = vmatpush1.bf16.msra.mxu0 %v5953_v3  ;;  %2282 = vmatpush1.bf16.msra.mxu1 %v5956_v4  ;;  %v6037_v3 = vld [vmem:[#allocation10 + $0x3f0] ss:$8 sps:$4 sm:$0xff]  }
 0x2f9   : > { %2049 = vmatprep.subr.bf16.mxu0 %v5961_v53  ;;  %2283 = vmatprep.subr.bf16.mxu1 %v5964_v5  ;;  %v6040_v4 = vld [vmem:[#allocation12 + $0x1f0] ss:$8 sps:$4 sm:$0xff]   ;;  %v6045_v53 = vld [vmem:[#allocation10 + $0x404] ss:$8 sps:$4 sm:$0xff]  }
 0x2fa   : > { %v6048_v5 = vld [vmem:[#allocation12 + $0x204] ss:$8 sps:$4 sm:$0xff]  }
 0x2fc   : > { %2050 = vmatpush1.bf16.msra.mxu0 %v5959_v6  ;;  %2284 = vmatpush1.bf16.msra.mxu1 %v5962_v7  ;;  %v6043_v6 = vld [vmem:[#allocation10 + $0x400] ss:$8 sps:$4 sm:$0xff]   ;;  %v1675_v7 = vshrl.u32 %v7026_v61, 16 }
 0x2fd   : > { %2051 = vmatprep.subr.bf16.mxu0 %v5967_v8  ;;  %2285 = vmatprep.subr.bf16.mxu1 %v5970_v9  ;;  %v6046_v8 = vld [vmem:[#allocation12 + $0x200] ss:$8 sps:$4 sm:$0xff]   ;;  %v2390_v9 = vrot.slane %v7007_v45, 1 }
 0x300   : > { %2052 = vmatpush1.bf16.msra.mxu0 %v5965_v10  ;;  %2286 = vmatpush1.bf16.msra.mxu1 %v5968_v11  ;;  %v6051_v10 = vld [vmem:[#allocation10 + $0x414] ss:$8 sps:$4 sm:$0xff]  }
 0x301   : > { %2053 = vmatprep.subr.bf16.mxu0 %v5973_v12  ;;  %2287 = vmatprep.subr.bf16.mxu1 %v5976_v13  ;;  %v6054_v11 = vld [vmem:[#allocation12 + $0x214] ss:$8 sps:$4 sm:$0xff]   ;;  %v6049_v12 = vld [vmem:[#allocation10 + $0x410] ss:$8 sps:$4 sm:$0xff]  }
 0x302   : > { %v6052_v13 = vld [vmem:[#allocation12 + $0x210] ss:$8 sps:$4 sm:$0xff]  }
 0x304   : > { %2054 = vmatpush1.bf16.msra.mxu0 %v5971_v14  ;;  %2288 = vmatpush1.bf16.msra.mxu1 %v5974_v15  ;;  %v6057_v14 = vld [vmem:[#allocation10 + $0x424] ss:$8 sps:$4 sm:$0xff]  }
 0x305   : > { %2055 = vmatprep.subr.bf16.mxu0 %v5979_v16  ;;  %2289 = vmatprep.subr.bf16.mxu1 %v5982_v17  ;;  %v6060_v15 = vld [vmem:[#allocation12 + $0x224] ss:$8 sps:$4 sm:$0xff]   ;;  %v6055_v16 = vld [vmem:[#allocation10 + $0x420] ss:$8 sps:$4 sm:$0xff]  }
 0x306   : > { %v6058_v17 = vld [vmem:[#allocation12 + $0x220] ss:$8 sps:$4 sm:$0xff]  }
 0x308   : > { %2056 = vmatpush1.bf16.msra.mxu0 %v5977_v18  ;;  %2290 = vmatpush1.bf16.msra.mxu1 %v5980_v19  ;;  %v6063_v18 = vld [vmem:[#allocation10 + $0x434] ss:$8 sps:$4 sm:$0xff]  }
 0x309   : > { %2057 = vmatprep.subr.bf16.mxu0 %v5985_v20  ;;  %2291 = vmatprep.subr.bf16.mxu1 %v5988_v21  ;;  %v6066_v19 = vld [vmem:[#allocation12 + $0x234] ss:$8 sps:$4 sm:$0xff]   ;;  %v6061_v20 = vld [vmem:[#allocation10 + $0x430] ss:$8 sps:$4 sm:$0xff]  }
 0x30a   : > { %v6064_v21 = vld [vmem:[#allocation12 + $0x230] ss:$8 sps:$4 sm:$0xff]  }
 0x30c   : > { %2058 = vmatpush1.bf16.msra.mxu0 %v5983_v22  ;;  %2292 = vmatpush1.bf16.msra.mxu1 %v5986_v23  ;;  %v6069_v22 = vld [vmem:[#allocation10 + $0x444] ss:$8 sps:$4 sm:$0xff]  }
 0x30d   : > { %2059 = vmatprep.subr.bf16.mxu0 %v5991_v24  ;;  %2293 = vmatprep.subr.bf16.mxu1 %v5994_v25  ;;  %v6072_v23 = vld [vmem:[#allocation12 + $0x244] ss:$8 sps:$4 sm:$0xff]   ;;  %v6067_v24 = vld [vmem:[#allocation10 + $0x440] ss:$8 sps:$4 sm:$0xff]  }
 0x30e   : > { %v6070_v25 = vld [vmem:[#allocation12 + $0x240] ss:$8 sps:$4 sm:$0xff]  }
 0x310   : > { %2060 = vmatpush1.bf16.msra.mxu0 %v5989_v26  ;;  %2294 = vmatpush1.bf16.msra.mxu1 %v5992_v27  ;;  %v6075_v26 = vld [vmem:[#allocation10 + $0x454] ss:$8 sps:$4 sm:$0xff]  }
 0x311   : > { %2061 = vmatprep.subr.bf16.mxu0 %v5997_v28  ;;  %2295 = vmatprep.subr.bf16.mxu1 %v6000_v29  ;;  %v6078_v27 = vld [vmem:[#allocation12 + $0x254] ss:$8 sps:$4 sm:$0xff]   ;;  %v6073_v28 = vld [vmem:[#allocation10 + $0x450] ss:$8 sps:$4 sm:$0xff]  }
 0x312   : > { %v6076_v29 = vld [vmem:[#allocation12 + $0x250] ss:$8 sps:$4 sm:$0xff]  }
 0x314   : > { %2062 = vmatpush1.bf16.msra.mxu0 %v5995_v30  ;;  %2296 = vmatpush1.bf16.msra.mxu1 %v5998_v31  ;;  %v6081_v30 = vld [vmem:[#allocation10 + $0x464] ss:$8 sps:$4 sm:$0xff]  }
 0x315   : > { %2063 = vmatprep.subr.bf16.mxu0 %v6003_v32  ;;  %2297 = vmatprep.subr.bf16.mxu1 %v6006_v33  ;;  %v6084_v31 = vld [vmem:[#allocation12 + $0x264] ss:$8 sps:$4 sm:$0xff]   ;;  %v6079_v32 = vld [vmem:[#allocation10 + $0x460] ss:$8 sps:$4 sm:$0xff]  }
 0x316   : > { %v6082_v33 = vld [vmem:[#allocation12 + $0x260] ss:$8 sps:$4 sm:$0xff]  }
 0x318   : > { %2064 = vmatpush1.bf16.msra.mxu0 %v6001_v35  ;;  %2298 = vmatpush1.bf16.msra.mxu1 %v6004_v36  ;;  %v6087_v35 = vld [vmem:[#allocation10 + $0x474] ss:$8 sps:$4 sm:$0xff]  }
 0x319   : > { %2065 = vmatprep.subr.bf16.mxu0 %v6009_v37  ;;  %2299 = vmatprep.subr.bf16.mxu1 %v6012_v38  ;;  %v6090_v36 = vld [vmem:[#allocation12 + $0x274] ss:$8 sps:$4 sm:$0xff]   ;;  %v6085_v37 = vld [vmem:[#allocation10 + $0x470] ss:$8 sps:$4 sm:$0xff]  }
 0x31a   : > { %v6088_v38 = vld [vmem:[#allocation12 + $0x270] ss:$8 sps:$4 sm:$0xff]  }
 0x31c   : > { %2066 = vmatpush1.bf16.msra.mxu0 %v6007_v39  ;;  %2300 = vmatpush1.bf16.msra.mxu1 %v6010_v40  ;;  %v6093_v39 = vld [vmem:[#allocation10 + $0x484] ss:$8 sps:$4 sm:$0xff]  }
 0x31d   : > { %2067 = vmatprep.subr.bf16.mxu0 %v6015_v41  ;;  %2301 = vmatprep.subr.bf16.mxu1 %v6018_v42  ;;  %v6096_v40 = vld [vmem:[#allocation12 + $0x284] ss:$8 sps:$4 sm:$0xff]   ;;  %v6091_v41 = vld [vmem:[#allocation10 + $0x480] ss:$8 sps:$4 sm:$0xff]  }
 0x31e   : > { %v6094_v42 = vld [vmem:[#allocation12 + $0x280] ss:$8 sps:$4 sm:$0xff]  }
 0x320   : > { %2068 = vmatpush1.bf16.msra.mxu0 %v6013_v43  ;;  %2302 = vmatpush1.bf16.msra.mxu1 %v6016_v44  ;;  %v6099_v43 = vld [vmem:[#allocation10 + $0x494] ss:$8 sps:$4 sm:$0xff]  }
 0x321   : > { %2069 = vmatprep.subr.bf16.mxu0 %v6021_v46  ;;  %2303 = vmatprep.subr.bf16.mxu1 %v6024_v47  ;;  %v6102_v44 = vld [vmem:[#allocation12 + $0x294] ss:$8 sps:$4 sm:$0xff]   ;;  %v6097_v46 = vld [vmem:[#allocation10 + $0x490] ss:$8 sps:$4 sm:$0xff]  }
 0x322   : > { %v6100_v47 = vld [vmem:[#allocation12 + $0x290] ss:$8 sps:$4 sm:$0xff]  }
 0x324   : > { %2070 = vmatpush1.bf16.msra.mxu0 %v6019_v48  ;;  %2304 = vmatpush1.bf16.msra.mxu1 %v6022_v50  ;;  %v6105_v48 = vld [vmem:[#allocation10 + $0x4a4] ss:$8 sps:$4 sm:$0xff]  }
 0x325   : > { %2071 = vmatprep.subr.bf16.mxu0 %v6027_v52  ;;  %2305 = vmatprep.subr.bf16.mxu1 %v6030_v54  ;;  %v6108_v50 = vld [vmem:[#allocation12 + $0x2a4] ss:$8 sps:$4 sm:$0xff]   ;;  %v6103_v52 = vld [vmem:[#allocation10 + $0x4a0] ss:$8 sps:$4 sm:$0xff]  }
 0x326   : > { %v6106_v54 = vld [vmem:[#allocation12 + $0x2a0] ss:$8 sps:$4 sm:$0xff]  }
 0x328   : > { %2072 = vmatpush1.bf16.msra.mxu0 %v6025_v55  ;;  %2306 = vmatpush1.bf16.msra.mxu1 %v6028_v56  ;;  %v6111_v55 = vld [vmem:[#allocation10 + $0x4b4] ss:$8 sps:$4 sm:$0xff]  }
 0x329   : > { %2073 = vmatprep.subr.bf16.mxu0 %v6033_v57  ;;  %2307 = vmatprep.subr.bf16.mxu1 %v6036_v58  ;;  %v6114_v56 = vld [vmem:[#allocation12 + $0x2b4] ss:$8 sps:$4 sm:$0xff]   ;;  %v6109_v57 = vld [vmem:[#allocation10 + $0x4b0] ss:$8 sps:$4 sm:$0xff]  }
 0x32a   : > { %v6112_v58 = vld [vmem:[#allocation12 + $0x2b0] ss:$8 sps:$4 sm:$0xff]  }
 0x32c   : > { %2074 = vmatpush1.bf16.msra.mxu0 %v6031_v59  ;;  %2308 = vmatpush1.bf16.msra.mxu1 %v6034_v60  ;;  %v6117_v59 = vld [vmem:[#allocation10 + $0x4c4] ss:$8 sps:$4 sm:$0xff]  }
 0x32d   : > { %2075 = vmatprep.subr.bf16.mxu0 %v6039_v1  ;;  %2309 = vmatprep.subr.bf16.mxu1 %v6042_v2  ;;  %v6120_v60 = vld [vmem:[#allocation12 + $0x2c4] ss:$8 sps:$4 sm:$0xff]   ;;  %v6115_v1 = vld [vmem:[#allocation10 + $0x4c0] ss:$8 sps:$4 sm:$0xff]  }
 0x32e   : > { %v6118_v2 = vld [vmem:[#allocation12 + $0x2c0] ss:$8 sps:$4 sm:$0xff]  }
 0x330   : > { %2076 = vmatpush1.bf16.msra.mxu0 %v6037_v3  ;;  %2310 = vmatpush1.bf16.msra.mxu1 %v6040_v4  ;;  %v6123_v3 = vld [vmem:[#allocation10 + $0x4d4] ss:$8 sps:$4 sm:$0xff]  }
 0x331   : > { %2717 = vmatprep.subr.bf16.mxu1 %v6045_v53  ;;  %2992 = vmatprep.subr.bf16.mxu0 %v6048_v5  ;;  %v6126_v4 = vld [vmem:[#allocation12 + $0x2d4] ss:$8 sps:$4 sm:$0xff]   ;;  %v6121_v53 = vld [vmem:[#allocation10 + $0x4d0] ss:$8 sps:$4 sm:$0xff]  }
 0x332   : > { %v6124_v5 = vld [vmem:[#allocation12 + $0x2d0] ss:$8 sps:$4 sm:$0xff]  }
 0x333   : > { %2078 = vmatmul.mubr.bf16.vlgmr.msra.gmra.mrb[8].mxu0 %v1675_v7  ;;  %2312 = vmatmul.mubr.bf16.vlgmr.msra.gmra.mrb[12].mxu1 %v7029_v63 }
 0x334   : > { %2718 = vmatpush1.bf16.msra.mxu1 %v6043_v6  ;;  %2749 = vmatprep.mubr.bf16.mxu1 %v2390_v9  ;;  %v6129_v6 = vld [vmem:[#allocation10 + $0x4e4] ss:$8 sps:$4 sm:$0xff]  }
 0x335   : > { %2993 = vmatpush1.bf16.msra.mxu0 %v6046_v8  ;;  %3024 = vmatprep.mubr.bf16.mxu0 %v2390_v9  ;;  %v6132_v8 = vld [vmem:[#allocation12 + $0x2e4] ss:$8 sps:$4 sm:$0xff]   ;;  %v6127_v9 = vld [vmem:[#allocation10 + $0x4e0] ss:$8 sps:$4 sm:$0xff]  }
 0x336   : > { %2719 = vmatprep.subr.bf16.mxu1 %v6051_v10  ;;  %2994 = vmatprep.subr.bf16.mxu0 %v6054_v11  ;;  %v6130_v10 = vld [vmem:[#allocation12 + $0x2e0] ss:$8 sps:$4 sm:$0xff]   ;;  %v6135_v11 = vld [vmem:[#allocation10 + $0x4f4] ss:$8 sps:$4 sm:$0xff]  }
 0x338   : > { %2720 = vmatpush1.bf16.msra.mxu1 %v6049_v12  ;;  %v6138_v12 = vld [vmem:[#allocation12 + $0x2f4] ss:$8 sps:$4 sm:$0xff]  }
 0x339   : > { %2995 = vmatpush1.bf16.msra.mxu0 %v6052_v13  ;;  %2721 = vmatprep.subr.bf16.mxu1 %v6057_v14  ;;  %v6133_v13 = vld [vmem:[#allocation10 + $0x4f0] ss:$8 sps:$4 sm:$0xff]  }
 0x33a   : > { %2996 = vmatprep.subr.bf16.mxu0 %v6060_v15  ;;  %v6136_v14 = vld [vmem:[#allocation12 + $0x2f0] ss:$8 sps:$4 sm:$0xff]   ;;  %v6141_v15 = vld [vmem:[#allocation10 + $0x504] ss:$8 sps:$4 sm:$0xff]  }
 0x33c   : > { %2722 = vmatpush1.bf16.msra.mxu1 %v6055_v16  ;;  %v6144_v16 = vld [vmem:[#allocation10 + $0x604] ss:$8 sps:$4 sm:$0xff]  }
 0x33d   : > { %2997 = vmatpush1.bf16.msra.mxu0 %v6058_v17  ;;  %2723 = vmatprep.subr.bf16.mxu1 %v6063_v18  ;;  %v6139_v17 = vld [vmem:[#allocation10 + $0x500] ss:$8 sps:$4 sm:$0xff]   ;;  %v2389_v18 = vrot.slane %v7009_v49, 1 }
 0x33e   : > { %2998 = vmatprep.subr.bf16.mxu0 %v6066_v19  ;;  %v6142_v19 = vld [vmem:[#allocation10 + $0x600] ss:$8 sps:$4 sm:$0xff]  }
 0x340   : > { %2724 = vmatpush1.bf16.msra.mxu1 %v6061_v20  ;;  %v6147_v20 = vld [vmem:[#allocation10 + $0x514] ss:$8 sps:$4 sm:$0xff]  }
 0x341   : > { %2999 = vmatpush1.bf16.msra.mxu0 %v6064_v21  ;;  %2725 = vmatprep.subr.bf16.mxu1 %v6069_v22  ;;  %v2392_v21 = vrot.slane %v7021_v62, 1  ;;  %v6150_v22 = vld [vmem:[#allocation10 + $0x614] ss:$8 sps:$4 sm:$0xff]  }
 0x342   : > { %3000 = vmatprep.subr.bf16.mxu0 %v6072_v23  ;;  %v3099_v23 = vrot.slane %v7014_v51, 1  ;;  %v6261_v51 = vld [vmem:[#allocation10 + $0x744] ss:$8 sps:$4 sm:$0xff]  }
 0x344   : > { %2726 = vmatpush1.bf16.msra.mxu1 %v6067_v24  ;;  %v6145_v24 = vld [vmem:[#allocation10 + $0x510] ss:$8 sps:$4 sm:$0xff]  }
 0x345   : > { %3001 = vmatpush1.bf16.msra.mxu0 %v6070_v25  ;;  %2727 = vmatprep.subr.bf16.mxu1 %v6075_v26  ;;  %v6148_v25 = vld [vmem:[#allocation10 + $0x610] ss:$8 sps:$4 sm:$0xff]   ;;  %v6153_v26 = vld [vmem:[#allocation10 + $0x524] ss:$8 sps:$4 sm:$0xff]  }
 0x346   : > { %3002 = vmatprep.subr.bf16.mxu0 %v6078_v27  ;;  %v6156_v27 = vld [vmem:[#allocation10 + $0x624] ss:$8 sps:$4 sm:$0xff]  }
 0x348   : > { %2728 = vmatpush1.bf16.msra.mxu1 %v6073_v28  ;;  %v6151_v28 = vld [vmem:[#allocation10 + $0x520] ss:$8 sps:$4 sm:$0xff]  }
 0x349   : > { %3003 = vmatpush1.bf16.msra.mxu0 %v6076_v29  ;;  %2729 = vmatprep.subr.bf16.mxu1 %v6081_v30  ;;  %v6154_v29 = vld [vmem:[#allocation10 + $0x620] ss:$8 sps:$4 sm:$0xff]   ;;  %v6159_v30 = vld [vmem:[#allocation10 + $0x534] ss:$8 sps:$4 sm:$0xff]  }
 0x34a   : > { %3004 = vmatprep.subr.bf16.mxu0 %v6084_v31  ;;  %v6162_v31 = vld [vmem:[#allocation10 + $0x634] ss:$8 sps:$4 sm:$0xff]  }
 0x34c   : > { %2730 = vmatpush1.bf16.msra.mxu1 %v6079_v32  ;;  %v6157_v32 = vld [vmem:[#allocation10 + $0x530] ss:$8 sps:$4 sm:$0xff]  }
 0x34d   : > { %3005 = vmatpush1.bf16.msra.mxu0 %v6082_v33  ;;  %2731 = vmatprep.subr.bf16.mxu1 %v6087_v35  ;;  %v6160_v33 = vld [vmem:[#allocation10 + $0x630] ss:$8 sps:$4 sm:$0xff]   ;;  %v6165_v35 = vld [vmem:[#allocation10 + $0x544] ss:$8 sps:$4 sm:$0xff]  }
 0x34e   : > { %3006 = vmatprep.subr.bf16.mxu0 %v6090_v36  ;;  %v6168_v36 = vld [vmem:[#allocation10 + $0x644] ss:$8 sps:$4 sm:$0xff]  }
 0x350   : > { %2732 = vmatpush1.bf16.msra.mxu1 %v6085_v37  ;;  %v6163_v37 = vld [vmem:[#allocation10 + $0x540] ss:$8 sps:$4 sm:$0xff]  }
 0x351   : > { %3007 = vmatpush1.bf16.msra.mxu0 %v6088_v38  ;;  %2733 = vmatprep.subr.bf16.mxu1 %v6093_v39  ;;  %v6166_v38 = vld [vmem:[#allocation10 + $0x640] ss:$8 sps:$4 sm:$0xff]   ;;  %v6171_v39 = vld [vmem:[#allocation10 + $0x554] ss:$8 sps:$4 sm:$0xff]  }
 0x352   : > { %3008 = vmatprep.subr.bf16.mxu0 %v6096_v40  ;;  %v6174_v40 = vld [vmem:[#allocation10 + $0x654] ss:$8 sps:$4 sm:$0xff]  }
 0x354   : > { %2734 = vmatpush1.bf16.msra.mxu1 %v6091_v41  ;;  %v6169_v41 = vld [vmem:[#allocation10 + $0x550] ss:$8 sps:$4 sm:$0xff]  }
 0x355   : > { %3009 = vmatpush1.bf16.msra.mxu0 %v6094_v42  ;;  %2735 = vmatprep.subr.bf16.mxu1 %v6099_v43  ;;  %v6172_v42 = vld [vmem:[#allocation10 + $0x650] ss:$8 sps:$4 sm:$0xff]   ;;  %v6177_v43 = vld [vmem:[#allocation10 + $0x564] ss:$8 sps:$4 sm:$0xff]  }
 0x356   : > { %3010 = vmatprep.subr.bf16.mxu0 %v6102_v44 }
 0x358   : > { %2736 = vmatpush1.bf16.msra.mxu1 %v6097_v46  ;;  %v6180_v46 = vld [vmem:[#allocation10 + $0x664] ss:$8 sps:$4 sm:$0xff]  }
 0x359   : > { %3011 = vmatpush1.bf16.msra.mxu0 %v6100_v47  ;;  %2737 = vmatprep.subr.bf16.mxu1 %v6105_v48 }
 0x35a   : > { %3012 = vmatprep.subr.bf16.mxu0 %v6108_v50  ;;  %v6175_v50 = vld [vmem:[#allocation10 + $0x560] ss:$8 sps:$4 sm:$0xff]  }
 0x35c   : > { %2738 = vmatpush1.bf16.msra.mxu1 %v6103_v52 }
 0x35d   : > { %3013 = vmatpush1.bf16.msra.mxu0 %v6106_v54  ;;  %2739 = vmatprep.subr.bf16.mxu1 %v6111_v55  ;;  %v6178_v54 = vld [vmem:[#allocation10 + $0x660] ss:$8 sps:$4 sm:$0xff]   ;;  %v6183_v55 = vld [vmem:[#allocation10 + $0x574] ss:$8 sps:$4 sm:$0xff]  }
 0x35e   : > { %3014 = vmatprep.subr.bf16.mxu0 %v6114_v56  ;;  %v6186_v56 = vld [vmem:[#allocation10 + $0x674] ss:$8 sps:$4 sm:$0xff]  }
 0x360   : > { %2740 = vmatpush1.bf16.msra.mxu1 %v6109_v57  ;;  %v6181_v57 = vld [vmem:[#allocation10 + $0x570] ss:$8 sps:$4 sm:$0xff]  }
 0x361   : > { %3015 = vmatpush1.bf16.msra.mxu0 %v6112_v58  ;;  %2741 = vmatprep.subr.bf16.mxu1 %v6117_v59  ;;  %v6184_v58 = vld [vmem:[#allocation10 + $0x670] ss:$8 sps:$4 sm:$0xff]   ;;  %v6189_v59 = vld [vmem:[#allocation10 + $0x584] ss:$8 sps:$4 sm:$0xff]  }
 0x362   : > { %3016 = vmatprep.subr.bf16.mxu0 %v6120_v60  ;;  %v6192_v60 = vld [vmem:[#allocation10 + $0x684] ss:$8 sps:$4 sm:$0xff]  }
 0x364   : > { %2742 = vmatpush1.bf16.msra.mxu1 %v6115_v1  ;;  %v6187_v1 = vld [vmem:[#allocation10 + $0x580] ss:$8 sps:$4 sm:$0xff]  }
 0x365   : > { %3017 = vmatpush1.bf16.msra.mxu0 %v6118_v2  ;;  %2743 = vmatprep.subr.bf16.mxu1 %v6123_v3  ;;  %v6190_v2 = vld [vmem:[#allocation10 + $0x680] ss:$8 sps:$4 sm:$0xff]   ;;  %v6195_v3 = vld [vmem:[#allocation10 + $0x594] ss:$8 sps:$4 sm:$0xff]  }
 0x366   : > { %3018 = vmatprep.subr.bf16.mxu0 %v6126_v4  ;;  %v6198_v4 = vld [vmem:[#allocation10 + $0x694] ss:$8 sps:$4 sm:$0xff]  }
 0x368   : > { %2744 = vmatpush1.bf16.msra.mxu1 %v6121_v53  ;;  %v6193_v53 = vld [vmem:[#allocation10 + $0x590] ss:$8 sps:$4 sm:$0xff]  }
 0x369   : > { %3019 = vmatpush1.bf16.msra.mxu0 %v6124_v5  ;;  %2745 = vmatprep.subr.bf16.mxu1 %v6129_v6  ;;  %v6196_v5 = vld [vmem:[#allocation10 + $0x690] ss:$8 sps:$4 sm:$0xff]   ;;  %v6201_v6 = vld [vmem:[#allocation10 + $0x5a4] ss:$8 sps:$4 sm:$0xff]  }
 0x36a   : > { %3020 = vmatprep.subr.bf16.mxu0 %v6132_v8  ;;  %v6204_v8 = vld [vmem:[#allocation10 + $0x6a4] ss:$8 sps:$4 sm:$0xff]  }
 0x36c   : > { %2746 = vmatpush1.bf16.msra.mxu1 %v6127_v9  ;;  %v6199_v9 = vld [vmem:[#allocation10 + $0x5a0] ss:$8 sps:$4 sm:$0xff]  }
 0x36d   : > { %3021 = vmatpush1.bf16.msra.mxu0 %v6130_v10  ;;  %2747 = vmatprep.subr.bf16.mxu1 %v6135_v11  ;;  %v6202_v10 = vld [vmem:[#allocation10 + $0x6a0] ss:$8 sps:$4 sm:$0xff]   ;;  %v6207_v11 = vld [vmem:[#allocation10 + $0x5b4] ss:$8 sps:$4 sm:$0xff]  }
 0x36e   : > { %3022 = vmatprep.subr.bf16.mxu0 %v6138_v12  ;;  %v6210_v12 = vld [vmem:[#allocation10 + $0x6b4] ss:$8 sps:$4 sm:$0xff]  }
 0x370   : > { %2748 = vmatpush1.bf16.msra.mxu1 %v6133_v13  ;;  %v6205_v13 = vld [vmem:[#allocation10 + $0x5b0] ss:$8 sps:$4 sm:$0xff]  }
 0x371   : > { %3023 = vmatpush1.bf16.msra.mxu0 %v6136_v14  ;;  %2758 = vmatprep.subr.bf16.mxu1 %v6141_v15  ;;  %v6208_v14 = vld [vmem:[#allocation10 + $0x6b0] ss:$8 sps:$4 sm:$0xff]   ;;  %v6213_v15 = vld [vmem:[#allocation10 + $0x5c4] ss:$8 sps:$4 sm:$0xff]  }
 0x372   : > { %3426 = vmatprep.subr.bf16.mxu0 %v6144_v16  ;;  %v6216_v16 = vld [vmem:[#allocation10 + $0x6c4] ss:$8 sps:$4 sm:$0xff]  }
 0x373   : > { %2750 = vmatmul.mubr.bf16.vlgmr.msra.gmra.mrb[16].mxu1 %v2389_v18 }
 0x374   : > { %3025 = vmatmul.mubr.bf16.vlgmr.msra.gmra.mrb[12].mxu0 %v2389_v18  ;;  %2759 = vmatpush1.bf16.msra.mxu1 %v6139_v17  ;;  %v6211_v17 = vld [vmem:[#allocation10 + $0x5c0] ss:$8 sps:$4 sm:$0xff]  }
 0x375   : > { %2790 = vmatprep.mubr.bf16.mxu1 %v2392_v21  ;;  %3427 = vmatpush1.bf16.msra.mxu0 %v6142_v19  ;;  %v6214_v18 = vld [vmem:[#allocation10 + $0x6c0] ss:$8 sps:$4 sm:$0xff]   ;;  %v6219_v19 = vld [vmem:[#allocation10 + $0x5d4] ss:$8 sps:$4 sm:$0xff]   ;;  %v6217_v21 = vld [vmem:[#allocation10 + $0x5d0] ss:$8 sps:$4 sm:$0xff]  }
 0x376   : > { %3458 = vmatprep.mubr.bf16.mxu0 %v3099_v23  ;;  %2760 = vmatprep.subr.bf16.mxu1 %v6147_v20  ;;  %v6222_v20 = vld [vmem:[#allocation10 + $0x6d4] ss:$8 sps:$4 sm:$0xff]  }
 0x377   : > { %3428 = vmatprep.subr.bf16.mxu0 %v6150_v22  ;;  %v6220_v22 = vld [vmem:[#allocation10 + $0x6d0] ss:$8 sps:$4 sm:$0xff]  }
 0x378   : > { %2761 = vmatpush1.bf16.msra.mxu1 %v6145_v24  ;;  %v6225_v24 = vld [vmem:[#allocation10 + $0x5e4] ss:$8 sps:$4 sm:$0xff]  }
 0x379   : > { %3429 = vmatpush1.bf16.msra.mxu0 %v6148_v25  ;;  %2762 = vmatprep.subr.bf16.mxu1 %v6153_v26  ;;  %v6228_v25 = vld [vmem:[#allocation10 + $0x6e4] ss:$8 sps:$4 sm:$0xff]   ;;  %v6223_v26 = vld [vmem:[#allocation10 + $0x5e0] ss:$8 sps:$4 sm:$0xff]  }
 0x37a   : > { %3430 = vmatprep.subr.bf16.mxu0 %v6156_v27  ;;  %v6226_v27 = vld [vmem:[#allocation10 + $0x6e0] ss:$8 sps:$4 sm:$0xff]  }
 0x37c   : > { %2763 = vmatpush1.bf16.msra.mxu1 %v6151_v28  ;;  %v6231_v28 = vld [vmem:[#allocation10 + $0x5f4] ss:$8 sps:$4 sm:$0xff]  }
 0x37d   : > { %3431 = vmatpush1.bf16.msra.mxu0 %v6154_v29  ;;  %2764 = vmatprep.subr.bf16.mxu1 %v6159_v30  ;;  %v6234_v29 = vld [vmem:[#allocation10 + $0x6f4] ss:$8 sps:$4 sm:$0xff]   ;;  %v6229_v30 = vld [vmem:[#allocation10 + $0x5f0] ss:$8 sps:$4 sm:$0xff]  }
 0x37e   : > { %3432 = vmatprep.subr.bf16.mxu0 %v6162_v31  ;;  %v6232_v31 = vld [vmem:[#allocation10 + $0x6f0] ss:$8 sps:$4 sm:$0xff]  }
 0x380   : > { %2765 = vmatpush1.bf16.msra.mxu1 %v6157_v32  ;;  %v6240_v32 = vld [vmem:[#allocation12 + $0x304] ss:$8 sps:$4 sm:$0xff]  }
 0x381   : > { %3433 = vmatpush1.bf16.msra.mxu0 %v6160_v33  ;;  %2766 = vmatprep.subr.bf16.mxu1 %v6165_v35  ;;  %v6237_v33 = vld [vmem:[#allocation10 + $0x704] ss:$8 sps:$4 sm:$0xff]   ;;  %v6238_v35 = vld [vmem:[#allocation12 + $0x300] ss:$8 sps:$4 sm:$0xff]  }
 0x382   : > { %3434 = vmatprep.subr.bf16.mxu0 %v6168_v36  ;;  %v2391_v36 = vrot.slane %v7026_v61, 1 }
 0x384   : > { %2767 = vmatpush1.bf16.msra.mxu1 %v6163_v37  ;;  %v6235_v37 = vld [vmem:[#allocation10 + $0x700] ss:$8 sps:$4 sm:$0xff]  }
 0x385   : > { %3435 = vmatpush1.bf16.msra.mxu0 %v6166_v38  ;;  %2768 = vmatprep.subr.bf16.mxu1 %v6171_v39  ;;  %v3098_v38 = vrot.slane %v7029_v63, 1  ;;  %v6243_v39 = vld [vmem:[#allocation10 + $0x714] ss:$8 sps:$4 sm:$0xff]   ;;  %v6346_v63 = vld [vmem:[#allocation12 + $0x420] ss:$8 sps:$4 sm:$0xff]  }
 0x386   : > { %v7047_v44 = vpop.f32.mrb[4].mxu0  ;;  %3436 = vmatprep.subr.bf16.mxu0 %v6174_v40  ;;  %v3101_v40 = vrot.slane %v1678_v0, 1  ;;  %v6247_v0 = vld [vmem:[#allocation10 + $0x720] ss:$8 sps:$4 sm:$0xff]  }
 0x387   : > { %v7049_v47 = vpop.f32.mrb[5].mxu0 }
 0x388   : > { %2769 = vmatpush1.bf16.msra.mxu1 %v6169_v41  ;;  %v1600_v48 = vpop.f32.mrb[6].mxu0  ;;  %v6246_v41 = vld [vmem:[#allocation12 + $0x314] ss:$8 sps:$4 sm:$0xff]  }
 0x389   : > { %3437 = vmatpush1.bf16.msra.mxu0 %v6172_v42  ;;  %v1601_v52 = vpop.f32.mrb[7].mxu0  ;;  %2770 = vmatprep.subr.bf16.mxu1 %v6177_v43  ;;  %v6244_v42 = vld [vmem:[#allocation12 + $0x310] ss:$8 sps:$4 sm:$0xff]   ;;  %v6249_v48 = vld [vmem:[#allocation10 + $0x724] ss:$8 sps:$4 sm:$0xff]  }
 0x38a   : > { %3438 = vmatprep.subr.bf16.mxu0 %v6180_v46  ;;  %v6241_v43 = vld [vmem:[#allocation10 + $0x710] ss:$8 sps:$4 sm:$0xff]   ;;  %v6252_v46 = vld [vmem:[#allocation12 + $0x324] ss:$8 sps:$4 sm:$0xff]   ;;  %v6258_v52 = vld [vmem:[#allocation12 + $0x334] ss:$8 sps:$4 sm:$0xff]  }
 0x38c   : > { %2771 = vmatpush1.bf16.msra.mxu1 %v6175_v50  ;;  %v6250_v50 = vld [vmem:[#allocation12 + $0x320] ss:$8 sps:$4 sm:$0xff]  }
 0x38d   : > { %3439 = vmatpush1.bf16.msra.mxu0 %v6178_v54  ;;  %2772 = vmatprep.subr.bf16.mxu1 %v6183_v55  ;;  %v6255_v54 = vld [vmem:[#allocation10 + $0x734] ss:$8 sps:$4 sm:$0xff]   ;;  %v6256_v55 = vld [vmem:[#allocation12 + $0x330] ss:$8 sps:$4 sm:$0xff]  }
 0x38e   : > { %3440 = vmatprep.subr.bf16.mxu0 %v6186_v56  ;;  %v6253_v56 = vld [vmem:[#allocation10 + $0x730] ss:$8 sps:$4 sm:$0xff]  }
 0x390   : > { %2773 = vmatpush1.bf16.msra.mxu1 %v6181_v57  ;;  %v6264_v57 = vld [vmem:[#allocation12 + $0x344] ss:$8 sps:$4 sm:$0xff]  }
 0x391   : > { %3441 = vmatpush1.bf16.msra.mxu0 %v6184_v58  ;;  %2774 = vmatprep.subr.bf16.mxu1 %v6189_v59  ;;  %v6259_v58 = vld [vmem:[#allocation10 + $0x740] ss:$8 sps:$4 sm:$0xff]   ;;  %v6270_v59 = vld [vmem:[#allocation12 + $0x354] ss:$8 sps:$4 sm:$0xff]  }
 0x392   : > { %3442 = vmatprep.subr.bf16.mxu0 %v6192_v60  ;;  %v6267_v60 = vld [vmem:[#allocation10 + $0x754] ss:$8 sps:$4 sm:$0xff]  }
 0x394   : > { %2775 = vmatpush1.bf16.msra.mxu1 %v6187_v1  ;;  %v6268_v1 = vld [vmem:[#allocation12 + $0x350] ss:$8 sps:$4 sm:$0xff]  }
 0x395   : > { %3443 = vmatpush1.bf16.msra.mxu0 %v6190_v2  ;;  %2776 = vmatprep.subr.bf16.mxu1 %v6195_v3  ;;  %v6265_v2 = vld [vmem:[#allocation10 + $0x750] ss:$8 sps:$4 sm:$0xff]   ;;  %v6276_v3 = vld [vmem:[#allocation12 + $0x364] ss:$8 sps:$4 sm:$0xff]  }
 0x396   : > { %3444 = vmatprep.subr.bf16.mxu0 %v6198_v4 }
 0x398   : > { %2777 = vmatpush1.bf16.msra.mxu1 %v6193_v53  ;;  %v6273_v53 = vld [vmem:[#allocation10 + $0x764] ss:$8 sps:$4 sm:$0xff]  }
 0x399   : > { %3445 = vmatpush1.bf16.msra.mxu0 %v6196_v5  ;;  %2778 = vmatprep.subr.bf16.mxu1 %v6201_v6 }
 0x39a   : > { %3446 = vmatprep.subr.bf16.mxu0 %v6204_v8  ;;  %v6274_v8 = vld [vmem:[#allocation12 + $0x360] ss:$8 sps:$4 sm:$0xff]  }
 0x39c   : > { %2779 = vmatpush1.bf16.msra.mxu1 %v6199_v9 }
 0x39d   : > { %3447 = vmatpush1.bf16.msra.mxu0 %v6202_v10  ;;  %2780 = vmatprep.subr.bf16.mxu1 %v6207_v11  ;;  %v6271_v10 = vld [vmem:[#allocation10 + $0x760] ss:$8 sps:$4 sm:$0xff]   ;;  %v6282_v11 = vld [vmem:[#allocation12 + $0x374] ss:$8 sps:$4 sm:$0xff]  }
 0x39e   : > { %3448 = vmatprep.subr.bf16.mxu0 %v6210_v12  ;;  %v6279_v12 = vld [vmem:[#allocation10 + $0x774] ss:$8 sps:$4 sm:$0xff]  }
 0x3a0   : > { %2781 = vmatpush1.bf16.msra.mxu1 %v6205_v13  ;;  %v6280_v13 = vld [vmem:[#allocation12 + $0x370] ss:$8 sps:$4 sm:$0xff]  }
 0x3a1   : > { %3449 = vmatpush1.bf16.msra.mxu0 %v6208_v14  ;;  %2782 = vmatprep.subr.bf16.mxu1 %v6213_v15  ;;  %v6277_v14 = vld [vmem:[#allocation10 + $0x770] ss:$8 sps:$4 sm:$0xff]   ;;  %v6288_v15 = vld [vmem:[#allocation12 + $0x384] ss:$8 sps:$4 sm:$0xff]  }
 0x3a2   : > { %3450 = vmatprep.subr.bf16.mxu0 %v6216_v16  ;;  %v6285_v16 = vld [vmem:[#allocation10 + $0x784] ss:$8 sps:$4 sm:$0xff]  }
 0x3a4   : > { %2783 = vmatpush1.bf16.msra.mxu1 %v6211_v17  ;;  %v6286_v17 = vld [vmem:[#allocation12 + $0x380] ss:$8 sps:$4 sm:$0xff]  }
 0x3a5   : > { %3451 = vmatpush1.bf16.msra.mxu0 %v6214_v18  ;;  %2784 = vmatprep.subr.bf16.mxu1 %v6219_v19  ;;  %v6283_v18 = vld [vmem:[#allocation10 + $0x780] ss:$8 sps:$4 sm:$0xff]   ;;  %v6294_v19 = vld [vmem:[#allocation12 + $0x394] ss:$8 sps:$4 sm:$0xff]  }
 0x3a6   : > { %3452 = vmatprep.subr.bf16.mxu0 %v6222_v20  ;;  %v6291_v20 = vld [vmem:[#allocation10 + $0x794] ss:$8 sps:$4 sm:$0xff]  }
 0x3a8   : > { %2785 = vmatpush1.bf16.msra.mxu1 %v6217_v21  ;;  %v6292_v21 = vld [vmem:[#allocation12 + $0x390] ss:$8 sps:$4 sm:$0xff]  }
 0x3a9   : > { %3453 = vmatpush1.bf16.msra.mxu0 %v6220_v22  ;;  %2786 = vmatprep.subr.bf16.mxu1 %v6225_v24  ;;  %v6289_v22 = vld [vmem:[#allocation10 + $0x790] ss:$8 sps:$4 sm:$0xff]   ;;  %v6300_v24 = vld [vmem:[#allocation12 + $0x3a4] ss:$8 sps:$4 sm:$0xff]  }
 0x3aa   : > { %3454 = vmatprep.subr.bf16.mxu0 %v6228_v25  ;;  %v6297_v25 = vld [vmem:[#allocation10 + $0x7a4] ss:$8 sps:$4 sm:$0xff]  }
 0x3ac   : > { %2787 = vmatpush1.bf16.msra.mxu1 %v6223_v26  ;;  %v6298_v26 = vld [vmem:[#allocation12 + $0x3a0] ss:$8 sps:$4 sm:$0xff]  }
 0x3ad   : > { %3455 = vmatpush1.bf16.msra.mxu0 %v6226_v27  ;;  %2788 = vmatprep.subr.bf16.mxu1 %v6231_v28  ;;  %v6295_v27 = vld [vmem:[#allocation10 + $0x7a0] ss:$8 sps:$4 sm:$0xff]   ;;  %v6306_v28 = vld [vmem:[#allocation12 + $0x3b4] ss:$8 sps:$4 sm:$0xff]  }
 0x3ae   : > { %3456 = vmatprep.subr.bf16.mxu0 %v6234_v29  ;;  %v6303_v29 = vld [vmem:[#allocation10 + $0x7b4] ss:$8 sps:$4 sm:$0xff]  }
 0x3b0   : > { %2789 = vmatpush1.bf16.msra.mxu1 %v6229_v30  ;;  %v6304_v30 = vld [vmem:[#allocation12 + $0x3b0] ss:$8 sps:$4 sm:$0xff]  }
 0x3b1   : > { %3457 = vmatpush1.bf16.msra.mxu0 %v6232_v31  ;;  %3701 = vmatprep.subr.bf16.mxu1 %v6240_v32  ;;  %v6301_v31 = vld [vmem:[#allocation10 + $0x7b0] ss:$8 sps:$4 sm:$0xff]   ;;  %v6312_v32 = vld [vmem:[#allocation12 + $0x3c4] ss:$8 sps:$4 sm:$0xff]  }
 0x3b2   : > { %3467 = vmatprep.subr.bf16.mxu0 %v6237_v33  ;;  %v6309_v33 = vld [vmem:[#allocation10 + $0x7c4] ss:$8 sps:$4 sm:$0xff]  }
 0x3b3   : > { %2791 = vmatmul.mubr.bf16.vlgmr.msra.gmra.mrb[16].mxu1 %v2391_v36  ;;  %v6307_v36 = vld [vmem:[#allocation10 + $0x7c0] ss:$8 sps:$4 sm:$0xff]  }
 0x3b4   : > { %3459 = vmatmul.mubr.bf16.vlgmr.msra.gmra.mrb[16].mxu0 %v3098_v38  ;;  %3702 = vmatpush1.bf16.msra.mxu1 %v6238_v35  ;;  %v6310_v35 = vld [vmem:[#allocation12 + $0x3c0] ss:$8 sps:$4 sm:$0xff]  }
 0x3b5   : > { %3468 = vmatpush1.bf16.msra.mxu0 %v6235_v37  ;;  %3499 = vmatprep.mubr.bf16.mxu0 %v3101_v40  ;;  %v6318_v37 = vld [vmem:[#allocation12 + $0x3d4] ss:$8 sps:$4 sm:$0xff]   ;;  %v6316_v40 = vld [vmem:[#allocation12 + $0x3d0] ss:$8 sps:$4 sm:$0xff]  }
 0x3b6   : > { %3733 = vmatprep.mubr.bf16.mxu1 %v3099_v23  ;;  %3469 = vmatprep.subr.bf16.mxu0 %v6243_v39  ;;  %v6262_v23 = vld [vmem:[#allocation12 + $0x340] ss:$8 sps:$4 sm:$0xff]   ;;  %v6315_v39 = vld [vmem:[#allocation10 + $0x7d4] ss:$8 sps:$4 sm:$0xff]  }
 0x3b7   : > { %3703 = vmatprep.subr.bf16.mxu1 %v6246_v41  ;;  %v6313_v41 = vld [vmem:[#allocation10 + $0x7d0] ss:$8 sps:$4 sm:$0xff]  }
 0x3b8   : > { %3704 = vmatpush1.bf16.msra.mxu1 %v6244_v42  ;;  %v6324_v42 = vld [vmem:[#allocation12 + $0x3e4] ss:$8 sps:$4 sm:$0xff]  }
 0x3b9   : > { %3470 = vmatpush1.bf16.msra.mxu0 %v6241_v43  ;;  %3705 = vmatprep.subr.bf16.mxu1 %v6252_v46  ;;  %v6321_v43 = vld [vmem:[#allocation10 + $0x7e4] ss:$8 sps:$4 sm:$0xff]   ;;  %v6322_v46 = vld [vmem:[#allocation12 + $0x3e0] ss:$8 sps:$4 sm:$0xff]  }
 0x3ba   : > { %3471 = vmatprep.subr.bf16.mxu0 %v6249_v48  ;;  %v6319_v48 = vld [vmem:[#allocation10 + $0x7e0] ss:$8 sps:$4 sm:$0xff]  }
 0x3bc   : > { %3706 = vmatpush1.bf16.msra.mxu1 %v6250_v50  ;;  %v6330_v50 = vld [vmem:[#allocation12 + $0x3f4] ss:$8 sps:$4 sm:$0xff]  }
 0x3bd   : > { %3472 = vmatpush1.bf16.msra.mxu0 %v6247_v0  ;;  %3707 = vmatprep.subr.bf16.mxu1 %v6258_v52  ;;  %v6327_v0 = vld [vmem:[#allocation10 + $0x7f4] ss:$8 sps:$4 sm:$0xff]   ;;  %v6328_v52 = vld [vmem:[#allocation12 + $0x3f0] ss:$8 sps:$4 sm:$0xff]  }
 0x3be   : > { %3473 = vmatprep.subr.bf16.mxu0 %v6255_v54  ;;  %v6325_v54 = vld [vmem:[#allocation10 + $0x7f0] ss:$8 sps:$4 sm:$0xff]  }
 0x3c0   : > { %3708 = vmatpush1.bf16.msra.mxu1 %v6256_v55  ;;  %v6333_v55 = vld [vmem:[#allocation10 + $0x804] ss:$8 sps:$4 sm:$0xff]  }
 0x3c1   : > { %3474 = vmatpush1.bf16.msra.mxu0 %v6253_v56  ;;  %3709 = vmatprep.subr.bf16.mxu1 %v6264_v57  ;;  %v6336_v56 = vld [vmem:[#allocation12 + $0x404] ss:$8 sps:$4 sm:$0xff]   ;;  %v6331_v57 = vld [vmem:[#allocation10 + $0x800] ss:$8 sps:$4 sm:$0xff]  }
 0x3c2   : > { %3475 = vmatprep.subr.bf16.mxu0 %v6261_v51  ;;  %v6334_v51 = vld [vmem:[#allocation12 + $0x400] ss:$8 sps:$4 sm:$0xff]  }
 0x3c4   : > { %3710 = vmatpush1.bf16.msra.mxu1 %v6262_v23  ;;  %v3100_v23 = vrot.slane %v1675_v7, 1  ;;  %v6343_v7 = vld [vmem:[#allocation10 + $0x820] ss:$8 sps:$4 sm:$0xff]  }
 0x3c5   : > { %3476 = vmatpush1.bf16.msra.mxu0 %v6259_v58  ;;  %3711 = vmatprep.subr.bf16.mxu1 %v6270_v59  ;;  %v6339_v58 = vld [vmem:[#allocation10 + $0x814] ss:$8 sps:$4 sm:$0xff]   ;;  %v3808_v59 = vrot.slane %v7007_v45, 2 }
 0x3c6   : > { %v7059_v4 = vpop.f32.mrb[8].mxu1  ;;  %3477 = vmatprep.subr.bf16.mxu0 %v6267_v60  ;;  %v6342_v60 = vld [vmem:[#allocation12 + $0x414] ss:$8 sps:$4 sm:$0xff]  }
 0x3c7   : > { %v7061_v5 = vpop.f32.mrb[9].mxu1  ;;  %v6354_v45 = vld [vmem:[#allocation12 + $0x434] ss:$8 sps:$4 sm:$0xff]  }
 0x3c8   : > { %v1367_v6 = vpop.f32.mrb[10].mxu1  ;;  %3712 = vmatpush1.bf16.msra.mxu1 %v6268_v1  ;;  %v6337_v1 = vld [vmem:[#allocation10 + $0x810] ss:$8 sps:$4 sm:$0xff]  }
 0x3c9   : > { %3478 = vmatpush1.bf16.msra.mxu0 %v6265_v2  ;;  %v1368_v9 = vpop.f32.mrb[11].mxu1  ;;  %3713 = vmatprep.subr.bf16.mxu1 %v6276_v3  ;;  %v6340_v2 = vld [vmem:[#allocation12 + $0x410] ss:$8 sps:$4 sm:$0xff]   ;;  %v6345_v3 = vld [vmem:[#allocation10 + $0x824] ss:$8 sps:$4 sm:$0xff]  }
 0x3ca   : > { %3479 = vmatprep.subr.bf16.mxu0 %v6273_v53  ;;  %v6348_v53 = vld [vmem:[#allocation12 + $0x424] ss:$8 sps:$4 sm:$0xff]   ;;  %v6349_v6 = vld [vmem:[#allocation10 + $0x830] ss:$8 sps:$4 sm:$0xff]  }
 0x3cb   : > { %v6357_v9 = vld [vmem:[#allocation10 + $0x844] ss:$8 sps:$4 sm:$0xff]  }
 0x3cc   : > { %3714 = vmatpush1.bf16.msra.mxu1 %v6274_v8  ;;  %v6352_v8 = vld [vmem:[#allocation12 + $0x430] ss:$8 sps:$4 sm:$0xff]  }
 0x3cd   : > { %3480 = vmatpush1.bf16.msra.mxu0 %v6271_v10  ;;  %3715 = vmatprep.subr.bf16.mxu1 %v6282_v11  ;;  %v6360_v10 = vld [vmem:[#allocation12 + $0x444] ss:$8 sps:$4 sm:$0xff]   ;;  %v6355_v11 = vld [vmem:[#allocation10 + $0x840] ss:$8 sps:$4 sm:$0xff]  }
 0x3ce   : > { %3481 = vmatprep.subr.bf16.mxu0 %v6279_v12  ;;  %v6358_v12 = vld [vmem:[#allocation12 + $0x440] ss:$8 sps:$4 sm:$0xff]  }
 0x3d0   : > { %3716 = vmatpush1.bf16.msra.mxu1 %v6280_v13  ;;  %v6363_v13 = vld [vmem:[#allocation10 + $0x854] ss:$8 sps:$4 sm:$0xff]  }
 0x3d1   : > { %3482 = vmatpush1.bf16.msra.mxu0 %v6277_v14  ;;  %3717 = vmatprep.subr.bf16.mxu1 %v6288_v15  ;;  %v6366_v14 = vld [vmem:[#allocation12 + $0x454] ss:$8 sps:$4 sm:$0xff]   ;;  %v6361_v15 = vld [vmem:[#allocation10 + $0x850] ss:$8 sps:$4 sm:$0xff]  }
 0x3d2   : > { %3483 = vmatprep.subr.bf16.mxu0 %v6285_v16  ;;  %v6364_v16 = vld [vmem:[#allocation12 + $0x450] ss:$8 sps:$4 sm:$0xff]  }
 0x3d4   : > { %3718 = vmatpush1.bf16.msra.mxu1 %v6286_v17  ;;  %v6369_v17 = vld [vmem:[#allocation10 + $0x864] ss:$8 sps:$4 sm:$0xff]  }
 0x3d5   : > { %3484 = vmatpush1.bf16.msra.mxu0 %v6283_v18  ;;  %3719 = vmatprep.subr.bf16.mxu1 %v6294_v19 }
 0x3d6   : > { %3485 = vmatprep.subr.bf16.mxu0 %v6291_v20  ;;  %v6372_v20 = vld [vmem:[#allocation12 + $0x464] ss:$8 sps:$4 sm:$0xff]  }
 0x3d8   : > { %3720 = vmatpush1.bf16.msra.mxu1 %v6292_v21 }
 0x3d9   : > { %3486 = vmatpush1.bf16.msra.mxu0 %v6289_v22  ;;  %3721 = vmatprep.subr.bf16.mxu1 %v6300_v24 }
 0x3da   : > { %3487 = vmatprep.subr.bf16.mxu0 %v6297_v25 }
 0x3dc   : > { %3722 = vmatpush1.bf16.msra.mxu1 %v6298_v26 }
 0x3dd   : > { %3488 = vmatpush1.bf16.msra.mxu0 %v6295_v27  ;;  %3723 = vmatprep.subr.bf16.mxu1 %v6306_v28 }
 0x3de   : > { %3489 = vmatprep.subr.bf16.mxu0 %v6303_v29 }
 0x3e0   : > { %3724 = vmatpush1.bf16.msra.mxu1 %v6304_v30  ;;  %v6367_v30 = vld [vmem:[#allocation10 + $0x860] ss:$8 sps:$4 sm:$0xff]  }
 0x3e1   : > { %3490 = vmatpush1.bf16.msra.mxu0 %v6301_v31  ;;  %3725 = vmatprep.subr.bf16.mxu1 %v6312_v32 }
 0x3e2   : > { %3491 = vmatprep.subr.bf16.mxu0 %v6309_v33 }
 0x3e4   : > { %3726 = vmatpush1.bf16.msra.mxu1 %v6310_v35 }
 0x3e5   : > { %3492 = vmatpush1.bf16.msra.mxu0 %v6307_v36  ;;  %3727 = vmatprep.subr.bf16.mxu1 %v6318_v37  ;;  %v6370_v36 = vld [vmem:[#allocation12 + $0x460] ss:$8 sps:$4 sm:$0xff]   ;;  %v6375_v37 = vld [vmem:[#allocation10 + $0x874] ss:$8 sps:$4 sm:$0xff]  }
 0x3e6   : > { %3493 = vmatprep.subr.bf16.mxu0 %v6315_v39 }
 0x3e8   : > { %3728 = vmatpush1.bf16.msra.mxu1 %v6316_v40 }
 0x3e9   : > { %3494 = vmatpush1.bf16.msra.mxu0 %v6313_v41  ;;  %3729 = vmatprep.subr.bf16.mxu1 %v6324_v42  ;;  %v6373_v41 = vld [vmem:[#allocation10 + $0x870] ss:$8 sps:$4 sm:$0xff]   ;;  %v6381_v42 = vld [vmem:[#allocation10 + $0x884] ss:$8 sps:$4 sm:$0xff]  }
 0x3ea   : > { %3495 = vmatprep.subr.bf16.mxu0 %v6321_v43  ;;  %v6384_v43 = vld [vmem:[#allocation12 + $0x484] ss:$8 sps:$4 sm:$0xff]  }
 0x3ec   : > { %3730 = vmatpush1.bf16.msra.mxu1 %v6322_v46  ;;  %v6379_v46 = vld [vmem:[#allocation10 + $0x880] ss:$8 sps:$4 sm:$0xff]  }
 0x3ed   : > { %3496 = vmatpush1.bf16.msra.mxu0 %v6319_v48  ;;  %3731 = vmatprep.subr.bf16.mxu1 %v6330_v50  ;;  %v6387_v48 = vld [vmem:[#allocation10 + $0x894] ss:$8 sps:$4 sm:$0xff]  }
 0x3ee   : > { %3497 = vmatprep.subr.bf16.mxu0 %v6327_v0  ;;  %v6390_v50 = vld [vmem:[#allocation12 + $0x494] ss:$8 sps:$4 sm:$0xff]   ;;  %v6388_v0 = vld [vmem:[#allocation12 + $0x490] ss:$8 sps:$4 sm:$0xff]  }
 0x3f0   : > { %3732 = vmatpush1.bf16.msra.mxu1 %v6328_v52  ;;  %v6393_v52 = vld [vmem:[#allocation10 + $0x8a4] ss:$8 sps:$4 sm:$0xff]  }
 0x3f1   : > { %3498 = vmatpush1.bf16.msra.mxu0 %v6325_v54  ;;  %4135 = vmatprep.subr.bf16.mxu1 %v6333_v55  ;;  %v6396_v54 = vld [vmem:[#allocation12 + $0x4a4] ss:$8 sps:$4 sm:$0xff]   ;;  %v6391_v55 = vld [vmem:[#allocation10 + $0x8a0] ss:$8 sps:$4 sm:$0xff]  }
 0x3f2   : > { %4410 = vmatprep.subr.bf16.mxu0 %v6336_v56  ;;  %v6394_v56 = vld [vmem:[#allocation12 + $0x4a0] ss:$8 sps:$4 sm:$0xff]  }
 0x3f3   : > { %3734 = vmatmul.mubr.bf16.vlgmr.msra.gmra.mrb[20].mxu1 %v3098_v38  ;;  %v6351_v38 = vld [vmem:[#allocation10 + $0x834] ss:$8 sps:$4 sm:$0xff]  }
 0x3f4   : > { %3500 = vmatmul.mubr.bf16.vlgmr.msra.gmra.mrb[16].mxu0 %v3100_v23  ;;  %4136 = vmatpush1.bf16.msra.mxu1 %v6331_v57  ;;  %v6399_v57 = vld [vmem:[#allocation10 + $0x8b4] ss:$8 sps:$4 sm:$0xff]   ;;  %v6397_v23 = vld [vmem:[#allocation10 + $0x8b0] ss:$8 sps:$4 sm:$0xff]  }
 0x3f5   : > { %4167 = vmatprep.mubr.bf16.mxu1 %v3808_v59  ;;  %4411 = vmatpush1.bf16.msra.mxu0 %v6334_v51  ;;  %v6402_v51 = vld [vmem:[#allocation12 + $0x4b4] ss:$8 sps:$4 sm:$0xff]  }
 0x3f6   : > { %4442 = vmatprep.mubr.bf16.mxu0 %v3808_v59  ;;  %4137 = vmatprep.subr.bf16.mxu1 %v6339_v58  ;;  %v6400_v58 = vld [vmem:[#allocation12 + $0x4b0] ss:$8 sps:$4 sm:$0xff]   ;;  %v6405_v59 = vld [vmem:[#allocation10 + $0x8c4] ss:$8 sps:$4 sm:$0xff]  }
 0x3f7   : > { %4412 = vmatprep.subr.bf16.mxu0 %v6342_v60  ;;  %v6408_v60 = vld [vmem:[#allocation12 + $0x4c4] ss:$8 sps:$4 sm:$0xff]  }
 0x3f8   : > { %4138 = vmatpush1.bf16.msra.mxu1 %v6337_v1  ;;  %v6403_v1 = vld [vmem:[#allocation10 + $0x8c0] ss:$8 sps:$4 sm:$0xff]  }
 0x3f9   : > { %4413 = vmatpush1.bf16.msra.mxu0 %v6340_v2  ;;  %4139 = vmatprep.subr.bf16.mxu1 %v6345_v3  ;;  %v6406_v2 = vld [vmem:[#allocation12 + $0x4c0] ss:$8 sps:$4 sm:$0xff]   ;;  %v6411_v3 = vld [vmem:[#allocation10 + $0x8d4] ss:$8 sps:$4 sm:$0xff]  }
 0x3fa   : > { %4414 = vmatprep.subr.bf16.mxu0 %v6348_v53  ;;  %v6414_v53 = vld [vmem:[#allocation12 + $0x4d4] ss:$8 sps:$4 sm:$0xff]  }
 0x3fc   : > { %4140 = vmatpush1.bf16.msra.mxu1 %v6343_v7  ;;  %v6409_v7 = vld [vmem:[#allocation10 + $0x8d0] ss:$8 sps:$4 sm:$0xff]  }
 0x3fd   : > { %4415 = vmatpush1.bf16.msra.mxu0 %v6346_v63  ;;  %4141 = vmatprep.subr.bf16.mxu1 %v6351_v38  ;;  %v6412_v63 = vld [vmem:[#allocation12 + $0x4d0] ss:$8 sps:$4 sm:$0xff]   ;;  %v6417_v38 = vld [vmem:[#allocation10 + $0x8e4] ss:$8 sps:$4 sm:$0xff]  }
 0x3fe   : > { %4416 = vmatprep.subr.bf16.mxu0 %v6354_v45  ;;  %v6420_v45 = vld [vmem:[#allocation12 + $0x4e4] ss:$8 sps:$4 sm:$0xff]  }
 0x400   : > { %4142 = vmatpush1.bf16.msra.mxu1 %v6349_v6  ;;  %v6415_v6 = vld [vmem:[#allocation10 + $0x8e0] ss:$8 sps:$4 sm:$0xff]  }
 0x401   : > { %4417 = vmatpush1.bf16.msra.mxu0 %v6352_v8  ;;  %4143 = vmatprep.subr.bf16.mxu1 %v6357_v9  ;;  %v6418_v8 = vld [vmem:[#allocation12 + $0x4e0] ss:$8 sps:$4 sm:$0xff]   ;;  %v6423_v9 = vld [vmem:[#allocation10 + $0x8f4] ss:$8 sps:$4 sm:$0xff]  }
 0x402   : > { %4418 = vmatprep.subr.bf16.mxu0 %v6360_v10  ;;  %v6426_v10 = vld [vmem:[#allocation12 + $0x4f4] ss:$8 sps:$4 sm:$0xff]  }
 0x404   : > { %4144 = vmatpush1.bf16.msra.mxu1 %v6355_v11  ;;  %v6421_v11 = vld [vmem:[#allocation10 + $0x8f0] ss:$8 sps:$4 sm:$0xff]  }
 0x405   : > { %4419 = vmatpush1.bf16.msra.mxu0 %v6358_v12  ;;  %4145 = vmatprep.subr.bf16.mxu1 %v6363_v13  ;;  %v6424_v12 = vld [vmem:[#allocation12 + $0x4f0] ss:$8 sps:$4 sm:$0xff]   ;;  %v6429_v13 = vld [vmem:[#allocation10 + $0x904] ss:$8 sps:$4 sm:$0xff]  }
 0x406   : > { %v2079_v18 = vpop.f32.mrb[8].mxu0  ;;  %v2313_v19 = vpop.f32.mrb[12].mxu1  ;;  %4420 = vmatprep.subr.bf16.mxu0 %v6366_v14  ;;  %v6427_v14 = vld [vmem:[#allocation10 + $0x900] ss:$8 sps:$4 sm:$0xff]  }
 0x407   : > { %v4453_v21 = vrot.slane %v2079_v18, 7  ;;  %v4489_v22 = vrot.slane %v2313_v19, 7  ;;  %v2081_v24 = vpop.f32.mrb[9].mxu0  ;;  %v2315_v25 = vpop.f32.mrb[13].mxu1  ;;  %v6430_v18 = vld [vmem:[#allocation10 + $0x910] ss:$8 sps:$4 sm:$0xff]  }
 0x408   : > { %v4454_v26 = vrot.slane %v2081_v24, 7  ;;  %v4490_v27 = vrot.slane %v2315_v25, 7  ;;  %v2083_v28 = vpop.f32.mrb[10].mxu0  ;;  %v2317_v29 = vpop.f32.mrb[14].mxu1  ;;  %4146 = vmatpush1.bf16.msra.mxu1 %v6361_v15  ;;  %v3807_v15 = vrot.slane %v7009_v49, 2 }
 0x409   : > { %v7070_v31 = vsel %vm4475_vm2, %v7059_v4, %v4453_v21  ;;  %v7074_v32 = vsel %vm4475_vm2, %v7047_v44, %v4489_v22  ;;  %4421 = vmatpush1.bf16.msra.mxu0 %v6364_v16  ;;  %v2084_v33 = vpop.f32.mrb[11].mxu0  ;;  %v2318_v35 = vpop.f32.mrb[15].mxu1  ;;  %4147 = vmatprep.subr.bf16.mxu1 %v6369_v17  ;;  %v6378_v4 = vld [vmem:[#allocation12 + $0x474] ss:$8 sps:$4 sm:$0xff]   ;;  %v6376_v44 = vld [vmem:[#allocation12 + $0x470] ss:$8 sps:$4 sm:$0xff]  }
 0x40a   : > { %v7078_v39 = vsel %vm4475_vm2, %v7061_v5, %v4454_v26  ;;  %v7082_v40 = vsel %vm4475_vm2, %v7049_v47, %v4490_v27  ;;  %4422 = vmatprep.subr.bf16.mxu0 %v6372_v20  ;;  %v6382_v5 = vld [vmem:[#allocation12 + $0x480] ss:$8 sps:$4 sm:$0xff]   ;;  %v6385_v47 = vld [vmem:[#allocation10 + $0x890] ss:$8 sps:$4 sm:$0xff]   ;;  %v6432_v16 = vld [vmem:[#allocation10 + $0x914] ss:$8 sps:$4 sm:$0xff]  }
 0x40b   : > { %v3810_v17 = vrot.slane %v7021_v62, 2  ;;  %v6435_v19 = vld [vmem:[#allocation10 + $0x924] ss:$8 sps:$4 sm:$0xff]   ;;  %v6433_v20 = vld [vmem:[#allocation10 + $0x920] ss:$8 sps:$4 sm:$0xff]  }
 0x40c   : > { %4148 = vmatpush1.bf16.msra.mxu1 %v6367_v30  ;;  %v6438_v49 = vld [vmem:[#allocation10 + $0x934] ss:$8 sps:$4 sm:$0xff]   ;;  %v6436_v21 = vld [vmem:[#allocation10 + $0x930] ss:$8 sps:$4 sm:$0xff]   ;;  %v6441_v22 = vld [vmem:[#allocation10 + $0x944] ss:$8 sps:$4 sm:$0xff]  }
 0x40d   : > { %4423 = vmatpush1.bf16.msra.mxu0 %v6370_v36  ;;  %4149 = vmatprep.subr.bf16.mxu1 %v6375_v37  ;;  %v6439_v24 = vld [vmem:[#allocation10 + $0x940] ss:$8 sps:$4 sm:$0xff]   ;;  %v6444_v62 = vld [vmem:[#allocation10 + $0x954] ss:$8 sps:$4 sm:$0xff]   ;;  %v6442_v25 = vld [vmem:[#allocation10 + $0x950] ss:$8 sps:$4 sm:$0xff]  }
 0x40e   : > { %4424 = vmatprep.subr.bf16.mxu0 %v6378_v4  ;;  %v6447_v26 = vld [vmem:[#allocation10 + $0x964] ss:$8 sps:$4 sm:$0xff]   ;;  %v6445_v30 = vld [vmem:[#allocation10 + $0x960] ss:$8 sps:$4 sm:$0xff]   ;;  %v6450_v36 = vld [vmem:[#allocation10 + $0x974] ss:$8 sps:$4 sm:$0xff]  }
 0x410   : > { %4150 = vmatpush1.bf16.msra.mxu1 %v6373_v41 }
 0x411   : > { %4425 = vmatpush1.bf16.msra.mxu0 %v6376_v44  ;;  %4151 = vmatprep.subr.bf16.mxu1 %v6381_v42  ;;  %v6448_v44 = vld [vmem:[#allocation10 + $0x970] ss:$8 sps:$4 sm:$0xff]   ;;  %v6453_v42 = vld [vmem:[#allocation10 + $0x984] ss:$8 sps:$4 sm:$0xff]  }
 0x412   : > { %4426 = vmatprep.subr.bf16.mxu0 %v6384_v43  ;;  %v6451_v43 = vld [vmem:[#allocation10 + $0x980] ss:$8 sps:$4 sm:$0xff]  }
 0x414   : > { %4152 = vmatpush1.bf16.msra.mxu1 %v6379_v46  ;;  %v6456_v46 = vld [vmem:[#allocation10 + $0x994] ss:$8 sps:$4 sm:$0xff]  }
 0x415   : > { %4427 = vmatpush1.bf16.msra.mxu0 %v6382_v5  ;;  %4153 = vmatprep.subr.bf16.mxu1 %v6387_v48  ;;  %v6454_v5 = vld [vmem:[#allocation10 + $0x990] ss:$8 sps:$4 sm:$0xff]   ;;  %v6459_v48 = vld [vmem:[#allocation10 + $0x9a4] ss:$8 sps:$4 sm:$0xff]  }
 0x416   : > { %4428 = vmatprep.subr.bf16.mxu0 %v6390_v50  ;;  %v6457_v50 = vld [vmem:[#allocation10 + $0x9a0] ss:$8 sps:$4 sm:$0xff]  }
 0x418   : > { %4154 = vmatpush1.bf16.msra.mxu1 %v6385_v47  ;;  %v6460_v47 = vld [vmem:[#allocation10 + $0x9b0] ss:$8 sps:$4 sm:$0xff]  }
 0x419   : > { %4429 = vmatpush1.bf16.msra.mxu0 %v6388_v0  ;;  %4155 = vmatprep.subr.bf16.mxu1 %v6393_v52  ;;  %v6463_v0 = vld [vmem:[#allocation10 + $0x9c0] ss:$8 sps:$4 sm:$0xff]   ;;  %v6468_v52 = vld [vmem:[#allocation10 + $0x9d4] ss:$8 sps:$4 sm:$0xff]  }
 0x41a   : > { %4430 = vmatprep.subr.bf16.mxu0 %v6396_v54  ;;  %v6466_v54 = vld [vmem:[#allocation10 + $0x9d0] ss:$8 sps:$4 sm:$0xff]  }
 0x41c   : > { %4156 = vmatpush1.bf16.msra.mxu1 %v6391_v55  ;;  %v6471_v55 = vld [vmem:[#allocation10 + $0x9e4] ss:$8 sps:$4 sm:$0xff]  }
 0x41d   : > { %4431 = vmatpush1.bf16.msra.mxu0 %v6394_v56  ;;  %4157 = vmatprep.subr.bf16.mxu1 %v6399_v57  ;;  %v6469_v56 = vld [vmem:[#allocation10 + $0x9e0] ss:$8 sps:$4 sm:$0xff]   ;;  %v6474_v57 = vld [vmem:[#allocation10 + $0x9f4] ss:$8 sps:$4 sm:$0xff]  }
 0x41e   : > { %4432 = vmatprep.subr.bf16.mxu0 %v6402_v51  ;;  %v6472_v51 = vld [vmem:[#allocation10 + $0x9f0] ss:$8 sps:$4 sm:$0xff]  }
 0x420   : > { %4158 = vmatpush1.bf16.msra.mxu1 %v6397_v23  ;;  %v3809_v23 = vrot.slane %v7026_v61, 2 }
 0x421   : > { %4433 = vmatpush1.bf16.msra.mxu0 %v6400_v58  ;;  %4159 = vmatprep.subr.bf16.mxu1 %v6405_v59 }
 0x422   : > { %4434 = vmatprep.subr.bf16.mxu0 %v6408_v60 }
 0x424   : > { %4160 = vmatpush1.bf16.msra.mxu1 %v6403_v1 }
 0x425   : > { %4435 = vmatpush1.bf16.msra.mxu0 %v6406_v2  ;;  %4161 = vmatprep.subr.bf16.mxu1 %v6411_v3 }
 0x426   : > { %4436 = vmatprep.subr.bf16.mxu0 %v6414_v53 }
 0x428   : > { %4162 = vmatpush1.bf16.msra.mxu1 %v6409_v7 }
 0x429   : > { %4437 = vmatpush1.bf16.msra.mxu0 %v6412_v63  ;;  %4163 = vmatprep.subr.bf16.mxu1 %v6417_v38 }
 0x42a   : > { %4438 = vmatprep.subr.bf16.mxu0 %v6420_v45 }
 0x42c   : > { %4164 = vmatpush1.bf16.msra.mxu1 %v6415_v6 }
 0x42d   : > { %4439 = vmatpush1.bf16.msra.mxu0 %v6418_v8  ;;  %4165 = vmatprep.subr.bf16.mxu1 %v6423_v9 }
 0x42e   : > { %4440 = vmatprep.subr.bf16.mxu0 %v6426_v10 }
 0x430   : > { %4166 = vmatpush1.bf16.msra.mxu1 %v6421_v11 }
 0x431   : > { %4441 = vmatpush1.bf16.msra.mxu0 %v6424_v12  ;;  %4176 = vmatprep.subr.bf16.mxu1 %v6429_v13 }
 0x432   : > { %5562 = vmatprep.subr.mxu0 %v6706_v34 }
 0x433   : > { %4168 = vmatmul.mubr.bf16.vlgmr.msra.gmra.mrb[24].mxu1 %v3807_v15 }
 0x434   : > { %4443 = vmatmul.mubr.bf16.vlgmr.msra.gmra.mrb[20].mxu0 %v3807_v15  ;;  %4177 = vmatpush1.bf16.msra.mxu1 %v6427_v14 }
 0x435   : > { %4208 = vmatprep.mubr.bf16.mxu1 %v3810_v17  ;;  %4178 = vmatprep.subr.bf16.mxu1 %v6432_v16 }
 0x436   : > { %5564 = vmatprep.mubr.msk.f32.mxu0 %vm6707_vm0, %v6706_v34 }
 0x438   : > { %4179 = vmatpush1.bf16.msra.mxu1 %v6430_v18 }
 0x439   : > { %4180 = vmatprep.subr.bf16.mxu1 %v6435_v19 }
 0x43c   : > { %4181 = vmatpush1.bf16.msra.mxu1 %v6433_v20 }
 0x43d   : > { %4182 = vmatprep.subr.bf16.mxu1 %v6438_v49 }
 0x440   : > { %4183 = vmatpush1.bf16.msra.mxu1 %v6436_v21 }
 0x441   : > { %4184 = vmatprep.subr.bf16.mxu1 %v6441_v22 }
 0x444   : > { %4185 = vmatpush1.bf16.msra.mxu1 %v6439_v24 }
 0x445   : > { %4186 = vmatprep.subr.bf16.mxu1 %v6444_v62 }
 0x447   : > { %v3026_v27 = vpop.f32.mrb[12].mxu0 }
 0x448   : > { %v4495_v28 = vrot.slane %v3026_v27, 6  ;;  %v3028_v29 = vpop.f32.mrb[13].mxu0  ;;  %4187 = vmatpush1.bf16.msra.mxu1 %v6442_v25 }
 0x449   : > { %v4496_v33 = vrot.slane %v3028_v29, 6  ;;  %v3030_v35 = vpop.f32.mrb[14].mxu0  ;;  %4188 = vmatprep.subr.bf16.mxu1 %v6447_v26 }
 0x44a   : > { %v4513_v37 = vsel %vm4478_vm3, %v7074_v32, %v4495_v28  ;;  %v3031_v4 = vpop.f32.mrb[15].mxu0  ;;  %v6462_v32 = vld [vmem:[#allocation10 + $0x9b4] ss:$8 sps:$4 sm:$0xff]  }
 0x44b   : > { %v4514_v41 = vsel %vm4478_vm3, %v7082_v40, %v4496_v33  ;;  %v6465_v40 = vld [vmem:[#allocation10 + $0x9c4] ss:$8 sps:$4 sm:$0xff]   ;;  %v4520_v33 = vld [vmem:[#allocation9] sm:$0xff] }
 0x44c   : > { %4189 = vmatpush1.bf16.msra.mxu1 %v6445_v30 }
 0x44d   : > { %4190 = vmatprep.subr.bf16.mxu1 %v6450_v36  ;;  %v4519_v36 = vld [vmem:[#allocation7] sm:$0xff] }
 0x450   : > { %4191 = vmatpush1.bf16.msra.mxu1 %v6448_v44 }
 0x451   : > { %4192 = vmatprep.subr.bf16.mxu1 %v6453_v42 }
 0x454   : > { %4193 = vmatpush1.bf16.msra.mxu1 %v6451_v43 }
 0x455   : > { %4194 = vmatprep.subr.bf16.mxu1 %v6456_v46 }
 0x458   : > { %4195 = vmatpush1.bf16.msra.mxu1 %v6454_v5 }
 0x459   : > { %4196 = vmatprep.subr.bf16.mxu1 %v6459_v48 }
 0x45c   : > { %4197 = vmatpush1.bf16.msra.mxu1 %v6457_v50 }
 0x45d   : > { %4198 = vmatprep.subr.bf16.mxu1 %v6462_v32 }
 0x460   : > { %4199 = vmatpush1.bf16.msra.mxu1 %v6460_v47 }
 0x461   : > { %4200 = vmatprep.subr.bf16.mxu1 %v6465_v40 }
 0x464   : > { %4201 = vmatpush1.bf16.msra.mxu1 %v6463_v0 }
 0x465   : > { %4202 = vmatprep.subr.bf16.mxu1 %v6468_v52 }
 0x468   : > { %4203 = vmatpush1.bf16.msra.mxu1 %v6466_v54 }
 0x469   : > { %4204 = vmatprep.subr.bf16.mxu1 %v6471_v55 }
 0x46c   : > { %4205 = vmatpush1.bf16.msra.mxu1 %v6469_v56 }
 0x46d   : > { %4206 = vmatprep.subr.bf16.mxu1 %v6474_v57 }
 0x470   : > { %4207 = vmatpush1.bf16.msra.mxu1 %v6472_v51 }
 0x473   : > { %4209 = vmatmul.mubr.bf16.vlgmr.msra.gmra.mrb[24].mxu1 %v3809_v23 }
 0x486   : > { %v2792_v58 = vpop.f32.mrb[16].mxu1 }
 0x487   : > { %v4459_v59 = vrot.slane %v2792_v58, 6  ;;  %v2794_v60 = vpop.f32.mrb[17].mxu1 }
 0x488   : > { %v4460_v1 = vrot.slane %v2794_v60, 6  ;;  %v2796_v2 = vpop.f32.mrb[18].mxu1 }
 0x489   : > { %v4479_v3 = vsel %vm4478_vm3, %v7070_v31, %v4459_v59  ;;  %v2797_v53 = vpop.f32.mrb[19].mxu1 }
 0x48a   : > { %v4480_v7 = vsel %vm4478_vm3, %v7078_v39, %v4460_v1 }
 0x4c6   : > { %v3735_v63 = vpop.f32.mrb[20].mxu1 }
 0x4c7   : > { %v3501_v38 = vpop.f32.mrb[16].mxu0  ;;  %v4501_v45 = vrot.slane %v3735_v63, 5  ;;  %v3737_v6 = vpop.f32.mrb[21].mxu1 }
 0x4c8   : > { %v4465_v8 = vrot.slane %v3501_v38, 5  ;;  %v3503_v61 = vpop.f32.mrb[17].mxu0  ;;  %v4502_v9 = vrot.slane %v3737_v6, 5  ;;  %v3739_v10 = vpop.f32.mrb[22].mxu1 }
 0x4c9   : > { %v4515_v11 = vsel %vm4481_vm4, %v4513_v37, %v4501_v45  ;;  %v4466_v12 = vrot.slane %v3503_v61, 5  ;;  %v3505_v13 = vpop.f32.mrb[18].mxu0  ;;  %v3740_v14 = vpop.f32.mrb[23].mxu1 }
 0x4ca   : > { %v4482_v31 = vsel %vm4481_vm4, %v4479_v3, %v4465_v8  ;;  %v4516_v15 = vsel %vm4481_vm4, %v4514_v41, %v4502_v9  ;;  %v3506_v16 = vpop.f32.mrb[19].mxu0 }
 0x4cb   : > { %v4483_v39 = vsel %vm4481_vm4, %v4480_v7, %v4466_v12 }
 0x507   : > { %v4444_v17 = vpop.f32.mrb[20].mxu0 }
 0x508   : > { %v4507_v18 = vrot.slane %v4444_v17, 4  ;;  %v4446_v19 = vpop.f32.mrb[21].mxu0 }
 0x509   : > { %v4508_v20 = vrot.slane %v4446_v19, 4  ;;  %v4448_v49 = vpop.f32.mrb[22].mxu0 }
 0x50a   : > { %v4517_v21 = vsel %vm4484_vm5, %v4515_v11, %v4507_v18  ;;  %v4449_v22 = vpop.f32.mrb[23].mxu0 }
 0x50b   : > { %v4518_v24 = vsel %vm4484_vm5, %v4516_v15, %v4508_v20 }
 0x546   : > { %v4210_v62 = vpop.f32.mrb[24].mxu1 }
 0x547   : > { %v4471_v25 = vrot.slane %v4210_v62, 4  ;;  %v4212_v26 = vpop.f32.mrb[25].mxu1 }
 0x548   : > { %v4472_v27 = vrot.slane %v4212_v26, 4  ;;  %v4214_v28 = vpop.f32.mrb[26].mxu1 }
 0x549   : > { %v4485_v29 = vsel %vm4484_vm5, %v4482_v31, %v4471_v25  ;;  %v4215_v30 = vpop.f32.mrb[27].mxu1 }
 0x54a   : > { %v4486_v35 = vsel %vm4484_vm5, %v4483_v39, %v4472_v27 }
 0x54b   : > { %5563 = vmatpush3.msk.msra.mxu0 %vm4525_vm6, %v4486_v35 }
 0x54c   : > { %5565 = vmatmul.mubr.msk.f32.vlgmr.msra.gmra.mrb[2].mxu0 %vm4521_vm7, %v4520_v33  ;;  %5567 = vmatprep.subr.mxu0 %v6706_v34 }
 0x54d   : > { %5568 = vmatpush3.msk.msra.mxu0 %vm4525_vm6, %v4485_v29  ;;  %5569 = vmatprep.mubr.msk.f32.mxu0 %vm6707_vm0, %v6706_v34 }
 0x54e   : > { %5572 = vmatprep.subr.mxu0 %v6706_v34 }
 0x554   : > { %5570 = vmatmul.mubr.msk.f32.vlgmr.msra.gmra.mrb[2].mxu0 %vm4521_vm7, %v4519_v36 }
 0x555   : > { %5573 = vmatpush3.msk.msra.mxu0 %vm4525_vm6, %v4518_v24  ;;  %5574 = vmatprep.mubr.msk.f32.mxu0 %vm6707_vm0, %v6706_v34 }
 0x556   : > { %5577 = vmatprep.subr.mxu0 %v6706_v34 }
 0x558   : > { %5575 = vmatmul.mubr.msk.f32.vlgmr.msra.gmra.mrb[24].mxu0 %vm4521_vm7, %v4520_v33 }
 0x559   : > { %5578 = vmatpush3.msk.msra.mxu0 %vm4525_vm6, %v4517_v21  ;;  %5579 = vmatprep.mubr.msk.f32.mxu0 %vm6707_vm0, %v6706_v34 }
 0x560   : > { %5580 = vmatmul.mubr.msk.f32.vlgmr.msra.gmra.mrb[24].mxu0 %vm4521_vm7, %v4519_v36 }
 0x627   : > { %v4671_v37 = vpop.f32.mrb[2].mxu0 }
 0x628   : > { %4821 = vst [vmem:[%s468_s19] sm:$0xff] %v4671_v37  ;;  %v5571_v4 = vpop.f32.mrb[3].mxu0 }
 0x633   : > { %v4817_v41 = vpop.f32.mrb[24].mxu0 }
 0x634   : > { %4822 = vst [vmem:[%s472_s27] sm:$0xff] %v4817_v41  ;;  %v5581_v44 = vpop.f32.mrb[25].mxu0 }
 0x635 PF: > { %s25_s13 = sadd.s32 1, %s6693_s13  }
 0x636   : > { %p22_p11 = scmp.ge.s32.totalorder %s25_s13, 4  }
 0x638   :  { %24 = sbr.rel (!%p22_p11) target bundleno = 6 (0x6), region = 143 }
 0x63f   :  { %4870 = vsyncpa [#allocation3], 1 }
 0x640   :  { %4872 = vsyncpa [#allocation3 + $0x1], 1 }
 0x641   :  { %4873 = vsyncpa [#allocation5], 1 }
 0x642   :  { %4874 = vsyncpa [#allocation8], 1 }
 0x643   :  { %4875 = vsyncpa [#allocation11], 1 }

// kernel: _lambda_.11
= control target key start
LH: loop header
LB: loop body
LE: loop exit
PB: predicated region body
PF: predicated region fallthrough
CT: control target
= control target key end

     0   :  { %s452_s12 = smov 0   ;;  %s496_s0 = inlined_call_operand.vmem [shape: bf16[32,128], index: 0, kind: input, shape index: {}]   ;;  %s497_s1 = inlined_call_operand.vmem [shape: bf16[128,128], index: 1, kind: input, shape index: {}]   ;;  %s498_s2 = inlined_call_operand.vmem [shape: f32[1,128], index: 2, kind: input, shape index: {}]   ;;  %s499_s3 = inlined_call_operand.vmem [shape: f32[32,128], index: 3, kind: output, shape index: {}]  }
   0x1 LB: > { %s353_s13 = sadd.s32 4294967295, %s428_s12   ;;  %p357_p0 = scmp.ge.s32.totalorder %s428_s12, 1  ;;  %s428_s12 = sphi %s452_s12, %s13_s12  }
   0x2   : > { %p138_p1 = scmp.lt.s32.totalorder %s428_s12, 3 }
   0x4   : > { %p139_p2 = pnand %p357_p0, %p138_p1 }
   0x5   : > { %v413_v0 = vld [vmem:[%s497_s1] sm:$0xff] (!%p139_p2)   ;;  %v430_v1 = vmov (!%p139_p2), 0.0   ;;  %v414_v2 = vld [vmem:[%s497_s1 + $0x8] sm:$0xff] (!%p139_p2)   ;;  %vm431_vm0 = vmmov (!%p139_p2), 0   ;;  %s358_s18 = sshll.u32 (!%p139_p2), %s353_s13, 1  ;;  %v415_v3 = vld [vmem:[%s497_s1 + $0x10] sm:$0xff] (!%p139_p2)  }
   0x6   : > { %142 = sbr.rel (%p139_p2) target bundleno = 255 (0xff), region = 32  ;;  %383 = vmatprep.subr.bf16.mxu0 (!%p139_p2), %v430_v1  ;;  %399 = vmatprep.mubr.msk.bf16.mxu0 (!%p139_p2), %vm431_vm0, %v430_v1  ;;  %p163_p3 = scmp.lt.s32.totalorder (!%p139_p2), %s358_s18, 3  ;;  %v416_v4 = vld [vmem:[%s497_s1 + $0x18] sm:$0xff] (!%p139_p2)   ;;  %v417_v5 = vld [vmem:[%s497_s1 + $0x20] sm:$0xff] (!%p139_p2)   ;;  %v418_v6 = vld [vmem:[%s497_s1 + $0x28] sm:$0xff] (!%p139_p2)  }
   0x7   : > { %384 = vmatpush3.bf16.msra.mxu0 (!%p139_p2), %v413_v0  ;;  %v419_v7 = vld [vmem:[%s497_s1 + $0x30] sm:$0xff] (!%p139_p2)   ;;  %v420_v8 = vld [vmem:[%s497_s1 + $0x38] sm:$0xff] (!%p139_p2)   ;;  %v362_v10 = vld [vmem:[%s498_s2] ss:$0 sm:$0xff] (!%p139_p2) }
   0x8   : > { %385 = vmatprep.subr.bf16.mxu0 (!%p139_p2), %v430_v1 }
   0xb   : > { %386 = vmatpush3.bf16.msra.mxu0 (!%p139_p2), %v414_v2 }
   0xc   : > { %387 = vmatprep.subr.bf16.mxu0 (!%p139_p2), %v430_v1 }
   0xd   : > { %s501_s18 = smov (!%p163_p3, %s358_s18), 3 }
   0xe   : > { %s359_s21 = sshll.u32 %s501_s18, 2  ;;  %s361_s8 = sshll.u32 %s501_s18, 3 }
   0xf   : > { %s166_s24 = scalar_lea.vmem %s496_s0, %s359_s21  ;;  %388 = vmatpush3.bf16.msra.mxu0 %v415_v3  ;;  %s172_s14 = scalar_lea.vmem %s499_s3, %s361_s8 }
  0x10   : > { %389 = vmatprep.subr.bf16.mxu0 %v430_v1  ;;  %v421_v9 = vld [vmem:[%s166_s24] sm:$0xff]  }
  0x13   : > { %390 = vmatpush3.bf16.msra.mxu0 %v416_v4 }
  0x14   : > { %391 = vmatprep.subr.bf16.mxu0 %v430_v1 }
  0x17   : > { %392 = vmatpush3.bf16.msra.mxu0 %v417_v5 }
  0x18   : > { %393 = vmatprep.subr.bf16.mxu0 %v430_v1 }
  0x1b   : > { %394 = vmatpush3.bf16.msra.mxu0 %v418_v6 }
  0x1c   : > { %395 = vmatprep.subr.bf16.mxu0 %v430_v1 }
  0x1f   : > { %396 = vmatpush3.bf16.msra.mxu0 %v419_v7 }
  0x20   : > { %397 = vmatprep.subr.bf16.mxu0 %v430_v1 }
  0x23   : > { %398 = vmatpush3.bf16.msra.mxu0 %v420_v8 }
  0x26   : > { %400 = vmatmul.mubr.bf16.vlgmr.msra.gmra.mrb[0].mxu0 %v421_v9 }
  0xf9   : > { %v288_v11 = vpop.f32.mrb[0].mxu0 }
  0xfa   : > { %v289_v12 = vadd.f32 %v362_v10, %v288_v11  ;;  %v401_v13 = vpop.f32.mrb[1].mxu0 }
  0xfb   : > { %v291_v14 = vpop.f32.mrb[2].mxu0 }
  0xfc   : > { %295 = vst [vmem:[%s172_s14] sm:$0xff] %v289_v12  ;;  %v292_v15 = vadd.f32 %v362_v10, %v291_v14  ;;  %v402_v16 = vpop.f32.mrb[3].mxu0 }
  0xfe   : > { %296 = vst [vmem:[%s172_s14 + $0x8] sm:$0xff] %v292_v15 }
  0xff PF: > { %s13_s12 = sadd.s32 1, %s428_s12  }
 0x100   : > { %p10_p4 = scmp.ge.s32.totalorder %s13_s12, 4  }
 0x102   :  { %12 = sbr.rel (!%p10_p4) target bundleno = 1 (0x1), region = 62 }

</bundles_post_ra>
